<compile_context>
chip_gen: v5e
topology: v5e:2x2
jax: 0.10.0
libtpu: 0.0.40
codegen_flags: <defaults>
</compile_context>

<pallas_src>
import math

import jax
import jax.numpy as jnp
from jax.experimental import pallas as pl
from jax.experimental.pallas import tpu as pltpu

# ------------------- hyperparameters (small, consistent with the module) -------------------
N_CONCEPT = 16
D_MODEL = 32
N_BLOCKS = 1
N_HEADS = 4
D_FF = 64
FINAL_FC_DIM = 64
OUT_HIDDEN = 1024          # literal in nn.Sequential of VAKT.out
KQ_SAME = True             # kq_same == 1 -> q projection shares k_linear weights
DROPOUT = 0.0              # identity
BATCH = 2
SEQ = 8
DK = D_MODEL // N_HEADS
N_LAYERS = 3 * N_BLOCKS    # blocks_1 (1) + blocks_2 (2)
BS = BATCH * SEQ           # batch folded into rows
VOCAB_PAD = 32             # c_embed table (N_CONCEPT+1 = 17 rows) zero-padded to 32 rows

# slab32 row layout (all last-dim-32 weights of one transformer layer)
_R_KW, _R_VW, _R_OW, _R_F2W, _R_BIAS = 0, 32, 64, 96, 160
SLAB32_ROWS = 168          # 3*32 (k/v/out W) + 64 (ff2 W) + 8 bias/LN rows


# ===================== in-kernel helpers (pure jnp on VMEM values) =====================

def _softmax_last(x):
    m = jnp.max(x, axis=-1, keepdims=True)
    e = jnp.exp(x - m)
    return e / jnp.sum(e, axis=-1, keepdims=True)


def _layernorm(x, g, b, eps=1e-5):
    mean = jnp.mean(x, axis=-1, keepdims=True)
    var = jnp.mean(jnp.square(x - mean), axis=-1, keepdims=True)
    return (x - mean) * jax.lax.rsqrt(var + eps) * g + b


# ===================== the fully-fused forward kernel =====================

def _vakt_kernel(gam_ref, c_ref, ca_ref, ctab_ref, catab_ref,
                 slab32_ref, slab64_ref, mlp1_ref, mlp2_ref, mlp3_ref, o_ref):
    f32 = jnp.float32
    neg = f32(-1e32)
    scale = f32(1.0 / math.sqrt(DK))

    # ------------- embedding lookups (in-kernel; tables already in VMEM) -------------
    cid = c_ref[...]                                              # (BS, 1) int32
    caid = ca_ref[...]                                            # (BS, 1) int32
    vocab_iota = jax.lax.broadcasted_iota(jnp.int32, (BS, VOCAB_PAD), 1)
    onehot = (vocab_iota == cid).astype(f32)                      # (BS, 32)
    c_emb = jnp.dot(onehot, ctab_ref[...], preferred_element_type=f32)   # (BS, D)
    # (ca_data - c_data) // n_concept   (exact: int->f32 is exact, 1/16 is exact)
    sel = jnp.floor((caid - cid).astype(f32) * f32(1.0 / N_CONCEPT))     # (BS, 1) in {0,1}
    ca_emb = (catab_ref[0:1, :] * (f32(1.0) - sel)
              + catab_ref[1:2, :] * sel) + c_emb                  # (BS, D)

    # ------------- shared attention geometry (batch folded, block-diagonal mask) -------------
    row = jax.lax.broadcasted_iota(jnp.int32, (BS, BS), 0)        # global query row
    col = jax.lax.broadcasted_iota(jnp.int32, (BS, BS), 1)        # global key col
    rowf = row.astype(f32)
    colf = col.astype(f32)
    inv_seq = f32(1.0 / SEQ)
    same_b = jnp.floor(rowf * inv_seq) == jnp.floor(colf * inv_seq)   # same batch block
    vis1 = same_b & (col < row + 1)                               # mask == 1 (see current & past)
    vis0 = same_b & (col < row)                                   # mask == 0 (strictly past)
    visf1 = vis1.astype(f32)
    visf0 = vis0.astype(f32)
    pos_eff = jnp.abs(colf - rowf)                                # |j - i| (within-block only used)
    tri = (row <= col).astype(f32)                                # cumsum-along-last-axis operator
    rvec = jax.lax.broadcasted_iota(jnp.int32, (BS, 1), 0).astype(f32)
    # zero_pad keeps rows whose within-sequence position > 0
    keep_row = ((rvec - f32(SEQ) * jnp.floor(rvec * inv_seq)) > 0).astype(f32)   # (BS, 1)

    lane = jax.lax.broadcasted_iota(jnp.int32, (1, D_MODEL), 1)
    head_masks = [((lane >= h * DK) & (lane < (h + 1) * DK)).astype(f32)
                  for h in range(N_HEADS)]

    # ------------- one whole TransformerLayer (statically unrolled per layer) -------------
    def transformer_layer(l, q_in, k_in, v_in, vis, visf, zero_pad, apply_pos):
        w32 = slab32_ref[l]                                       # (168, 32) packed slab
        w64 = slab64_ref[l]                                       # (33, 64)  packed slab
        kw = w32[_R_KW:_R_KW + D_MODEL]
        vw = w32[_R_VW:_R_VW + D_MODEL]
        ow = w32[_R_OW:_R_OW + D_MODEL]
        f2w = w32[_R_F2W:_R_F2W + D_FF]
        bias = w32[_R_BIAS:_R_BIAS + 8]                           # 8 bias/LN rows, (8, 32)
        kb, vb, ob = bias[0:1], bias[1:2], bias[2:3]
        ln1g, ln1b = bias[3:4], bias[4:5]
        f2b, ln2g, ln2b = bias[5:6], bias[6:7], bias[7:8]
        f1w, f1b = w64[0:D_MODEL], w64[D_MODEL:D_MODEL + 1]

        # kq_same == True: query projection reuses the key projection weights.
        q = jnp.dot(q_in, kw, preferred_element_type=f32) + kb
        k = jnp.dot(k_in, kw, preferred_element_type=f32) + kb
        v = jnp.dot(v_in, vw, preferred_element_type=f32) + vb

        # All heads via lane-selector masks (no per-head slicing / concat needed);
        # head outputs accumulate directly into the lane-dense (BS, D) context.
        ctx = jnp.zeros((BS, D_MODEL), f32)
        for h in range(N_HEADS):                                  # static unroll (4 heads)
            mh = head_masks[h]
            sc = jax.lax.dot_general(q * mh, k, (((1,), (1,)), ((), ())),
                                     preferred_element_type=f32) * scale    # (BS, BS)

            # "detached" distance branch (torch runs it under no_grad / .detach())
            sm = _softmax_last(jnp.where(vis, sc, neg)) * visf
            distcum = jnp.dot(sm, tri, preferred_element_type=f32)
            disttot = jnp.sum(sm, axis=-1, keepdims=True)
            dist = jax.lax.stop_gradient(
                jnp.sqrt(jnp.maximum((disttot - distcum) * pos_eff, 0.0)))

            g = gam_ref[l * N_HEADS + h]                          # scalar = -softplus(gamma)
            total_effect = jnp.clip(jnp.exp(dist * g), 1e-5, 1e5)

            attn = _softmax_last(jnp.where(vis, sc * total_effect, neg))
            if zero_pad:
                # mask == 0: first row of every batch block is zeroed (torch pad_zero cat)
                attn = attn * keep_row
            ctx = ctx + jnp.dot(attn, v * mh, preferred_element_type=f32)

        attn_out = jnp.dot(ctx, ow, preferred_element_type=f32) + ob
        x = _layernorm(q_in + attn_out, ln1g, ln1b)               # residual + LN1
        if apply_pos:
            h1 = jnp.maximum(jnp.dot(x, f1w, preferred_element_type=f32) + f1b, 0.0)
            ff = jnp.dot(h1, f2w, preferred_element_type=f32) + f2b
            x = _layernorm(x + ff, ln2g, ln2b)                    # residual + LN2
        return x

    x = c_emb
    y = ca_emb
    # blocks_1[0]: mask=1, q=y, k=x, v=y, apply_pos=True
    y = transformer_layer(0, y, x, y, vis1, visf1, zero_pad=False, apply_pos=True)
    # blocks_2[0]: mask=1, q=k=v=x, apply_pos=False
    x = transformer_layer(1, x, x, x, vis1, visf1, zero_pad=False, apply_pos=False)
    # blocks_2[1]: mask=0, q=k=x, v=y, apply_pos=True (zero_pad=True)
    x = transformer_layer(2, x, x, y, vis0, visf0, zero_pad=True, apply_pos=True)

    # ------------- output MLP on folded (BS, ·) rows; 1024-wide intermediate stays in VMEM -------------
    # concat([d_output, c_embed]) @ W1  ==  d_output @ W1[:D] + c_embed @ W1[D:]
    w1a = mlp1_ref[0:D_MODEL, :]
    w1b = mlp1_ref[D_MODEL:2 * D_MODEL, :]
    b1 = mlp1_ref[2 * D_MODEL:2 * D_MODEL + 1, :]
    h1 = jnp.maximum(jnp.dot(x, w1a, preferred_element_type=f32)
                     + jnp.dot(c_emb, w1b, preferred_element_type=f32) + b1, 0.0)
    w2 = mlp2_ref[0:FINAL_FC_DIM, :]
    b2 = mlp2_ref[FINAL_FC_DIM:FINAL_FC_DIM + 1, :]
    h2 = jnp.maximum(jnp.dot(h1, w2, preferred_element_type=f32) + b2, 0.0)
    w3 = mlp3_ref[0:OUT_HIDDEN, :]
    b3 = mlp3_ref[OUT_HIDDEN:OUT_HIDDEN + 1, :]
    o_ref[...] = jnp.dot(h2, w3, preferred_element_type=f32) + b3


# ===================== wrapper: one pallas_call for the whole forward =====================

def vakt_forward(pk, c_data, ca_data):
    b, s = c_data.shape
    assert (b, s) == (BATCH, SEQ)
    cid = c_data.reshape(BS, 1).astype(jnp.int32)
    caid = ca_data.reshape(BS, 1).astype(jnp.int32)

    vspec = pl.BlockSpec(memory_space=pltpu.MemorySpace.VMEM)
    smem_spec = pl.BlockSpec(memory_space=pltpu.MemorySpace.SMEM)

    # TODO(synk): if BATCH grows well beyond 2, reintroduce a "parallel" batch grid axis so
    # both v7x TensorCores get work (and row-tile the (B*S, 1024) MLP intermediate for VMEM).
    out = pl.pallas_call(
        _vakt_kernel,
        out_shape=jax.ShapeDtypeStruct((BS, N_CONCEPT), jnp.float32),
        in_specs=[smem_spec] + [vspec] * 9,
        out_specs=vspec,
    )(pk['neg_gamma'], cid, caid, pk['ctab'], pk['catab'],
      pk['slab32'], pk['slab64'], pk['mlp1'], pk['mlp2'], pk['mlp3'])
    return out.reshape(b, s, N_CONCEPT)


# ===================== one-time weight packing (outside jit) =====================

def pack_params(p):
    """Pack all small weights into a few contiguous f32 slabs (done once, not per call)."""
    def layer32(blk):
        return jnp.concatenate([
            blk['k_w'], blk['v_w'], blk['out_w'], blk['ff2_w'],
            blk['k_b'][None], blk['v_b'][None], blk['out_b'][None],
            blk['ln1_g'][None], blk['ln1_b'][None], blk['ff2_b'][None],
            blk['ln2_g'][None], blk['ln2_b'][None]], axis=0)      # (168, 32)

    def layer64(blk):
        return jnp.concatenate([blk['ff1_w'], blk['ff1_b'][None]], axis=0)   # (33, 64)

    layers = p['arch']['blocks_1'] + p['arch']['blocks_2']
    slab32 = jnp.stack([layer32(blk) for blk in layers])          # (3, 168, 32)
    slab64 = jnp.stack([layer64(blk) for blk in layers])          # (3, 33, 64)
    neg_gamma = jnp.concatenate([-jax.nn.softplus(blk['gammas']) for blk in layers])  # (12,)
    ctab = jnp.zeros((VOCAB_PAD, D_MODEL), jnp.float32).at[:N_CONCEPT + 1].set(p['c_embed'])
    mlp1 = jnp.concatenate([p['out1_w'], p['out1_b'][None]], axis=0)   # (65, 64)
    mlp2 = jnp.concatenate([p['out2_w'], p['out2_b'][None]], axis=0)   # (65, 1024)
    mlp3 = jnp.concatenate([p['out3_w'], p['out3_b'][None]], axis=0)   # (1025, 16)
    return dict(neg_gamma=neg_gamma, ctab=ctab, catab=p['ca_embed'],
                slab32=slab32, slab64=slab64, mlp1=mlp1, mlp2=mlp2, mlp3=mlp3)


# ===================== deterministic parameter init =====================

def _glorot(key, shape):
    fan_in, fan_out = shape
    limit = math.sqrt(6.0 / (fan_in + fan_out))
    return jax.random.uniform(key, shape, jnp.float32, -limit, limit)


def _init_layer(key):
    ks = jax.random.split(key, 6)
    return dict(
        k_w=_glorot(ks[0], (D_MODEL, D_MODEL)), k_b=jnp.zeros((D_MODEL,), jnp.float32),
        v_w=_glorot(ks[1], (D_MODEL, D_MODEL)), v_b=jnp.zeros((D_MODEL,), jnp.float32),
        out_w=_glorot(ks[2], (D_MODEL, D_MODEL)), out_b=jnp.zeros((D_MODEL,), jnp.float32),
        gammas=jax.random.uniform(ks[3], (N_HEADS,), jnp.float32, -0.5, 0.5),
        ln1_g=jnp.ones((D_MODEL,), jnp.float32), ln1_b=jnp.zeros((D_MODEL,), jnp.float32),
        ff1_w=_glorot(ks[4], (D_MODEL, D_FF)), ff1_b=jnp.zeros((D_FF,), jnp.float32),
        ff2_w=_glorot(ks[5], (D_FF, D_MODEL)), ff2_b=jnp.zeros((D_MODEL,), jnp.float32),
        ln2_g=jnp.ones((D_MODEL,), jnp.float32), ln2_b=jnp.zeros((D_MODEL,), jnp.float32),
    )


def init_params(key):
    n_layer_keys = N_BLOCKS + 2 * N_BLOCKS
    keys = jax.random.split(key, 5 + n_layer_keys)
    blocks_1 = [_init_layer(keys[5 + i]) for i in range(N_BLOCKS)]
    blocks_2 = [_init_layer(keys[5 + N_BLOCKS + i]) for i in range(2 * N_BLOCKS)]
    return dict(
        c_embed=0.1 * jax.random.normal(keys[0], (N_CONCEPT + 1, D_MODEL), jnp.float32),
        ca_embed=0.1 * jax.random.normal(keys[1], (2, D_MODEL), jnp.float32),
        arch=dict(blocks_1=blocks_1, blocks_2=blocks_2),
        out1_w=_glorot(keys[2], (2 * D_MODEL, FINAL_FC_DIM)),
        out1_b=jnp.zeros((FINAL_FC_DIM,), jnp.float32),
        out2_w=_glorot(keys[3], (FINAL_FC_DIM, OUT_HIDDEN)),
        out2_b=jnp.zeros((OUT_HIDDEN,), jnp.float32),
        out3_w=_glorot(keys[4], (OUT_HIDDEN, N_CONCEPT)),
        out3_b=jnp.zeros((N_CONCEPT,), jnp.float32),
    )


# ===================== main =====================

if __name__ == "__main__":
    root = jax.random.PRNGKey(0)
    pkey, dkey = jax.random.split(root)
    params = init_params(pkey)
    packed = pack_params(params)          # one-time packing, outside jit

    k1, k2 = jax.random.split(dkey)
    c_data = jax.random.randint(k1, (BATCH, SEQ), 1, N_CONCEPT + 1, dtype=jnp.int32)
    answers = jax.random.randint(k2, (BATCH, SEQ), 0, 2, dtype=jnp.int32)
    ca_data = c_data + N_CONCEPT * answers

    out = jax.jit(vakt_forward)(packed, c_data, ca_data)
    out = jax.block_until_ready(out)
    assert out.shape == (BATCH, SEQ, N_CONCEPT)
    assert bool(jnp.all(jnp.isfinite(out)))
    print("KERNEL_OK")
</pallas_src>

<mosaic_0001>
module attributes {stable_mosaic.version = 11 : i64} {
  func.func @_vakt_kernel(%arg0: memref<12xf32, #tpu.memory_space<smem>>, %arg1: memref<16x1xi32, #tpu.memory_space<vmem>>, %arg2: memref<16x1xi32, #tpu.memory_space<vmem>>, %arg3: memref<32x32xf32, #tpu.memory_space<vmem>>, %arg4: memref<2x32xf32, #tpu.memory_space<vmem>>, %arg5: memref<3x168x32xf32, #tpu.memory_space<vmem>>, %arg6: memref<3x33x64xf32, #tpu.memory_space<vmem>>, %arg7: memref<65x64xf32, #tpu.memory_space<vmem>>, %arg8: memref<65x1024xf32, #tpu.memory_space<vmem>>, %arg9: memref<1025x16xf32, #tpu.memory_space<vmem>>, %arg10: memref<16x16xf32, #tpu.memory_space<vmem>>) attributes {dimension_semantics = [], scalar_prefetch = 0 : i64, scratch_operands = 0 : i64, tpu.core_type = #tpu.core_type<tc>} {
    %c0 = arith.constant 0 : index
    %c0_0 = arith.constant 0 : index
    %0 = vector.load %arg1[%c0, %c0_0] : memref<16x1xi32, #tpu.memory_space<vmem>>, vector<16x1xi32>
    %c0_1 = arith.constant 0 : index
    %c0_2 = arith.constant 0 : index
    %1 = vector.load %arg2[%c0_1, %c0_2] : memref<16x1xi32, #tpu.memory_space<vmem>>, vector<16x1xi32>
    %2 = tpu.iota {dimensions = array<i32: 1>} : vector<16x32xi32>
    %3 = vector.broadcast %0 : vector<16x1xi32> to vector<16x32xi32>
    %4 = arith.cmpi eq, %2, %3 : vector<16x32xi32>
    %5 = arith.extui %4 : vector<16x32xi1> to vector<16x32xi32>
    %6 = arith.sitofp %5 : vector<16x32xi32> to vector<16x32xf32>
    %c0_3 = arith.constant 0 : index
    %c0_4 = arith.constant 0 : index
    %7 = vector.load %arg3[%c0_3, %c0_4] : memref<32x32xf32, #tpu.memory_space<vmem>>, vector<32x32xf32>
    %cst = arith.constant dense<0.000000e+00> : vector<16x32xf32>
    %8 = tpu.matmul %6, %7, %cst {dimension_numbers = #tpu.dot_dimension_numbers<[1], [0], [0], [1], [0, 0, 1, 1], [], []>} : vector<16x32xf32>, vector<32x32xf32>, vector<16x32xf32> -> vector<16x32xf32>
    %9 = arith.subi %1, %0 : vector<16x1xi32>
    %10 = arith.sitofp %9 : vector<16x1xi32> to vector<16x1xf32>
    %cst_5 = arith.constant 6.250000e-02 : f32
    %11 = vector.broadcast %cst_5 : f32 to vector<16x1xf32>
    %12 = arith.mulf %10, %11 : vector<16x1xf32>
    %13 = math.floor %12 : vector<16x1xf32>
    %c0_6 = arith.constant 0 : index
    %c0_7 = arith.constant 0 : index
    %14 = vector.load %arg4[%c0_6, %c0_7] : memref<2x32xf32, #tpu.memory_space<vmem>>, vector<1x32xf32>
    %cst_8 = arith.constant 1.000000e+00 : f32
    %15 = vector.broadcast %cst_8 : f32 to vector<16x1xf32>
    %16 = arith.subf %15, %13 : vector<16x1xf32>
    %17 = vector.broadcast %14 : vector<1x32xf32> to vector<16x32xf32>
    %18 = vector.broadcast %16 : vector<16x1xf32> to vector<16x32xf32>
    %19 = arith.mulf %17, %18 : vector<16x32xf32>
    %c1 = arith.constant 1 : index
    %c0_9 = arith.constant 0 : index
    %20 = vector.load %arg4[%c1, %c0_9] : memref<2x32xf32, #tpu.memory_space<vmem>>, vector<1x32xf32>
    %21 = vector.broadcast %20 : vector<1x32xf32> to vector<16x32xf32>
    %22 = vector.broadcast %13 : vector<16x1xf32> to vector<16x32xf32>
    %23 = arith.mulf %21, %22 : vector<16x32xf32>
    %24 = arith.addf %19, %23 : vector<16x32xf32>
    %25 = arith.addf %24, %8 : vector<16x32xf32>
    %26 = tpu.iota {dimensions = array<i32: 0>} : vector<16x16xi32>
    %27 = tpu.iota {dimensions = array<i32: 1>} : vector<16x16xi32>
    %28 = arith.sitofp %26 : vector<16x16xi32> to vector<16x16xf32>
    %29 = arith.sitofp %27 : vector<16x16xi32> to vector<16x16xf32>
    %cst_10 = arith.constant 1.250000e-01 : f32
    %30 = vector.broadcast %cst_10 : f32 to vector<16x16xf32>
    %31 = arith.mulf %28, %30 : vector<16x16xf32>
    %32 = math.floor %31 : vector<16x16xf32>
    %cst_11 = arith.constant 1.250000e-01 : f32
    %33 = vector.broadcast %cst_11 : f32 to vector<16x16xf32>
    %34 = arith.mulf %29, %33 : vector<16x16xf32>
    %35 = math.floor %34 : vector<16x16xf32>
    %36 = arith.cmpf oeq, %32, %35 : vector<16x16xf32>
    %c1_i32 = arith.constant 1 : i32
    %37 = vector.broadcast %c1_i32 : i32 to vector<16x16xi32>
    %38 = arith.addi %26, %37 : vector<16x16xi32>
    %39 = arith.cmpi slt, %27, %38 : vector<16x16xi32>
    %40 = arith.andi %36, %39 : vector<16x16xi1>
    %41 = arith.cmpi slt, %27, %26 : vector<16x16xi32>
    %42 = arith.andi %36, %41 : vector<16x16xi1>
    %43 = arith.extui %40 : vector<16x16xi1> to vector<16x16xi32>
    %44 = arith.sitofp %43 : vector<16x16xi32> to vector<16x16xf32>
    %45 = arith.extui %42 : vector<16x16xi1> to vector<16x16xi32>
    %46 = arith.sitofp %45 : vector<16x16xi32> to vector<16x16xf32>
    %47 = arith.subf %29, %28 : vector<16x16xf32>
    %48 = math.absf %47 : vector<16x16xf32>
    %49 = arith.cmpi sle, %26, %27 : vector<16x16xi32>
    %50 = arith.extui %49 : vector<16x16xi1> to vector<16x16xi32>
    %51 = arith.sitofp %50 : vector<16x16xi32> to vector<16x16xf32>
    %52 = tpu.iota {dimensions = array<i32: 0>} : vector<16x1xi32>
    %53 = arith.sitofp %52 : vector<16x1xi32> to vector<16x1xf32>
    %cst_12 = arith.constant 1.250000e-01 : f32
    %54 = vector.broadcast %cst_12 : f32 to vector<16x1xf32>
    %55 = arith.mulf %53, %54 : vector<16x1xf32>
    %56 = math.floor %55 : vector<16x1xf32>
    %cst_13 = arith.constant 8.000000e+00 : f32
    %57 = vector.broadcast %cst_13 : f32 to vector<16x1xf32>
    %58 = arith.mulf %57, %56 : vector<16x1xf32>
    %59 = arith.subf %53, %58 : vector<16x1xf32>
    %cst_14 = arith.constant 0.000000e+00 : f32
    %60 = vector.broadcast %cst_14 : f32 to vector<16x1xf32>
    %61 = arith.cmpf ogt, %59, %60 : vector<16x1xf32>
    %62 = arith.extui %61 : vector<16x1xi1> to vector<16x1xi32>
    %63 = arith.sitofp %62 : vector<16x1xi32> to vector<16x1xf32>
    %64 = tpu.iota {dimensions = array<i32: 1>} : vector<1x32xi32>
    %c0_i32 = arith.constant 0 : i32
    %65 = vector.broadcast %c0_i32 : i32 to vector<1x32xi32>
    %66 = arith.cmpi sge, %64, %65 : vector<1x32xi32>
    %c8_i32 = arith.constant 8 : i32
    %67 = vector.broadcast %c8_i32 : i32 to vector<1x32xi32>
    %68 = arith.cmpi slt, %64, %67 : vector<1x32xi32>
    %69 = arith.andi %66, %68 : vector<1x32xi1>
    %70 = arith.extui %69 : vector<1x32xi1> to vector<1x32xi32>
    %71 = arith.sitofp %70 : vector<1x32xi32> to vector<1x32xf32>
    %c8_i32_15 = arith.constant 8 : i32
    %72 = vector.broadcast %c8_i32_15 : i32 to vector<1x32xi32>
    %73 = arith.cmpi sge, %64, %72 : vector<1x32xi32>
    %c16_i32 = arith.constant 16 : i32
    %74 = vector.broadcast %c16_i32 : i32 to vector<1x32xi32>
    %75 = arith.cmpi slt, %64, %74 : vector<1x32xi32>
    %76 = arith.andi %73, %75 : vector<1x32xi1>
    %77 = arith.extui %76 : vector<1x32xi1> to vector<1x32xi32>
    %78 = arith.sitofp %77 : vector<1x32xi32> to vector<1x32xf32>
    %c16_i32_16 = arith.constant 16 : i32
    %79 = vector.broadcast %c16_i32_16 : i32 to vector<1x32xi32>
    %80 = arith.cmpi sge, %64, %79 : vector<1x32xi32>
    %c24_i32 = arith.constant 24 : i32
    %81 = vector.broadcast %c24_i32 : i32 to vector<1x32xi32>
    %82 = arith.cmpi slt, %64, %81 : vector<1x32xi32>
    %83 = arith.andi %80, %82 : vector<1x32xi1>
    %84 = arith.extui %83 : vector<1x32xi1> to vector<1x32xi32>
    %85 = arith.sitofp %84 : vector<1x32xi32> to vector<1x32xf32>
    %c24_i32_17 = arith.constant 24 : i32
    %86 = vector.broadcast %c24_i32_17 : i32 to vector<1x32xi32>
    %87 = arith.cmpi sge, %64, %86 : vector<1x32xi32>
    %c32_i32 = arith.constant 32 : i32
    %88 = vector.broadcast %c32_i32 : i32 to vector<1x32xi32>
    %89 = arith.cmpi slt, %64, %88 : vector<1x32xi32>
    %90 = arith.andi %87, %89 : vector<1x32xi1>
    %91 = arith.extui %90 : vector<1x32xi1> to vector<1x32xi32>
    %92 = arith.sitofp %91 : vector<1x32xi32> to vector<1x32xf32>
    %c0_18 = arith.constant 0 : index
    %c0_19 = arith.constant 0 : index
    %c0_20 = arith.constant 0 : index
    %93 = vector.load %arg5[%c0_18, %c0_19, %c0_20] : memref<3x168x32xf32, #tpu.memory_space<vmem>>, vector<1x168x32xf32>
    %94 = vector.shape_cast %93 : vector<1x168x32xf32> to vector<168x32xf32>
    %c0_21 = arith.constant 0 : index
    %c0_22 = arith.constant 0 : index
    %c0_23 = arith.constant 0 : index
    %95 = vector.load %arg6[%c0_21, %c0_22, %c0_23] : memref<3x33x64xf32, #tpu.memory_space<vmem>>, vector<1x33x64xf32>
    %96 = vector.shape_cast %95 : vector<1x33x64xf32> to vector<33x64xf32>
    %97 = vector.extract_strided_slice %94 {offsets = [0, 0], sizes = [32, 32], strides = [1, 1]} : vector<168x32xf32> to vector<32x32xf32>
    %98 = vector.extract_strided_slice %94 {offsets = [32, 0], sizes = [32, 32], strides = [1, 1]} : vector<168x32xf32> to vector<32x32xf32>
    %99 = vector.extract_strided_slice %94 {offsets = [64, 0], sizes = [32, 32], strides = [1, 1]} : vector<168x32xf32> to vector<32x32xf32>
    %100 = vector.extract_strided_slice %94 {offsets = [96, 0], sizes = [64, 32], strides = [1, 1]} : vector<168x32xf32> to vector<64x32xf32>
    %101 = vector.extract_strided_slice %94 {offsets = [160, 0], sizes = [8, 32], strides = [1, 1]} : vector<168x32xf32> to vector<8x32xf32>
    %102 = vector.extract_strided_slice %101 {offsets = [0, 0], sizes = [1, 32], strides = [1, 1]} : vector<8x32xf32> to vector<1x32xf32>
    %103 = vector.extract_strided_slice %101 {offsets = [1, 0], sizes = [1, 32], strides = [1, 1]} : vector<8x32xf32> to vector<1x32xf32>
    %104 = vector.extract_strided_slice %101 {offsets = [2, 0], sizes = [1, 32], strides = [1, 1]} : vector<8x32xf32> to vector<1x32xf32>
    %105 = vector.extract_strided_slice %101 {offsets = [3, 0], sizes = [1, 32], strides = [1, 1]} : vector<8x32xf32> to vector<1x32xf32>
    %106 = vector.extract_strided_slice %101 {offsets = [4, 0], sizes = [1, 32], strides = [1, 1]} : vector<8x32xf32> to vector<1x32xf32>
    %107 = vector.extract_strided_slice %101 {offsets = [5, 0], sizes = [1, 32], strides = [1, 1]} : vector<8x32xf32> to vector<1x32xf32>
    %108 = vector.extract_strided_slice %101 {offsets = [6, 0], sizes = [1, 32], strides = [1, 1]} : vector<8x32xf32> to vector<1x32xf32>
    %109 = vector.extract_strided_slice %101 {offsets = [7, 0], sizes = [1, 32], strides = [1, 1]} : vector<8x32xf32> to vector<1x32xf32>
    %110 = vector.extract_strided_slice %96 {offsets = [0, 0], sizes = [32, 64], strides = [1, 1]} : vector<33x64xf32> to vector<32x64xf32>
    %111 = vector.extract_strided_slice %96 {offsets = [32, 0], sizes = [1, 64], strides = [1, 1]} : vector<33x64xf32> to vector<1x64xf32>
    %cst_24 = arith.constant dense<0.000000e+00> : vector<16x32xf32>
    %112 = tpu.matmul %25, %97, %cst_24 {dimension_numbers = #tpu.dot_dimension_numbers<[1], [0], [0], [1], [0, 0, 1, 1], [], []>} : vector<16x32xf32>, vector<32x32xf32>, vector<16x32xf32> -> vector<16x32xf32>
    %113 = vector.broadcast %102 : vector<1x32xf32> to vector<16x32xf32>
    %114 = arith.addf %112, %113 : vector<16x32xf32>
    %cst_25 = arith.constant dense<0.000000e+00> : vector<16x32xf32>
    %115 = tpu.matmul %8, %97, %cst_25 {dimension_numbers = #tpu.dot_dimension_numbers<[1], [0], [0], [1], [0, 0, 1, 1], [], []>} : vector<16x32xf32>, vector<32x32xf32>, vector<16x32xf32> -> vector<16x32xf32>
    %116 = vector.broadcast %102 : vector<1x32xf32> to vector<16x32xf32>
    %117 = arith.addf %115, %116 : vector<16x32xf32>
    %cst_26 = arith.constant dense<0.000000e+00> : vector<16x32xf32>
    %118 = tpu.matmul %25, %98, %cst_26 {dimension_numbers = #tpu.dot_dimension_numbers<[1], [0], [0], [1], [0, 0, 1, 1], [], []>} : vector<16x32xf32>, vector<32x32xf32>, vector<16x32xf32> -> vector<16x32xf32>
    %119 = vector.broadcast %103 : vector<1x32xf32> to vector<16x32xf32>
    %120 = arith.addf %118, %119 : vector<16x32xf32>
    %cst_27 = arith.constant 0.000000e+00 : f32
    %121 = vector.broadcast %cst_27 : f32 to vector<16x32xf32>
    %122 = vector.broadcast %71 : vector<1x32xf32> to vector<16x32xf32>
    %123 = arith.mulf %114, %122 : vector<16x32xf32>
    %cst_28 = arith.constant dense<0.000000e+00> : vector<16x16xf32>
    %124 = tpu.matmul %123, %117, %cst_28 {dimension_numbers = #tpu.dot_dimension_numbers<[1], [1], [0], [0], [0, 0, 1, 0], [], []>} : vector<16x32xf32>, vector<16x32xf32>, vector<16x16xf32> -> vector<16x16xf32>
    %cst_29 = arith.constant 0.353553385 : f32
    %125 = vector.broadcast %cst_29 : f32 to vector<16x16xf32>
    %126 = arith.mulf %124, %125 : vector<16x16xf32>
    %cst_30 = arith.constant -1.000000e+32 : f32
    %127 = vector.broadcast %cst_30 : f32 to vector<16x16xf32>
    %128 = arith.select %40, %126, %127 : vector<16x16xi1>, vector<16x16xf32>
    %cst_31 = arith.constant dense<0xFF800000> : vector<16xf32>
    %129 = vector.multi_reduction <maximumf>, %128, %cst_31 [1] : vector<16x16xf32> to vector<16xf32>
    %130 = vector.shape_cast %129 : vector<16xf32> to vector<16x1xf32>
    %131 = vector.broadcast %130 : vector<16x1xf32> to vector<16x16xf32>
    %132 = arith.subf %128, %131 : vector<16x16xf32>
    %133 = math.exp %132 : vector<16x16xf32>
    %cst_32 = arith.constant dense<0.000000e+00> : vector<16xf32>
    %134 = vector.multi_reduction <add>, %133, %cst_32 [1] : vector<16x16xf32> to vector<16xf32>
    %135 = vector.shape_cast %134 : vector<16xf32> to vector<16x1xf32>
    %136 = vector.broadcast %135 : vector<16x1xf32> to vector<16x16xf32>
    %137 = arith.divf %133, %136 : vector<16x16xf32>
    %138 = arith.mulf %137, %44 : vector<16x16xf32>
    %cst_33 = arith.constant dense<0.000000e+00> : vector<16x16xf32>
    %139 = tpu.matmul %138, %51, %cst_33 {dimension_numbers = #tpu.dot_dimension_numbers<[1], [0], [0], [1], [0, 0, 1, 1], [], []>} : vector<16x16xf32>, vector<16x16xf32>, vector<16x16xf32> -> vector<16x16xf32>
    %cst_34 = arith.constant dense<0.000000e+00> : vector<16xf32>
    %140 = vector.multi_reduction <add>, %138, %cst_34 [1] : vector<16x16xf32> to vector<16xf32>
    %141 = vector.shape_cast %140 : vector<16xf32> to vector<16x1xf32>
    %142 = vector.broadcast %141 : vector<16x1xf32> to vector<16x16xf32>
    %143 = arith.subf %142, %139 : vector<16x16xf32>
    %144 = arith.mulf %143, %48 : vector<16x16xf32>
    %cst_35 = arith.constant 0.000000e+00 : f32
    %145 = vector.broadcast %cst_35 : f32 to vector<16x16xf32>
    %146 = arith.maximumf %144, %145 : vector<16x16xf32>
    %147 = math.sqrt %146 : vector<16x16xf32>
    %c0_36 = arith.constant 0 : index
    %148 = memref.load %arg0[%c0_36] : memref<12xf32, #tpu.memory_space<smem>>
    %149 = vector.broadcast %148 : f32 to vector<16x16xf32>
    %150 = arith.mulf %147, %149 : vector<16x16xf32>
    %151 = math.exp %150 : vector<16x16xf32>
    %cst_37 = arith.constant 9.99999974E-6 : f32
    %cst_38 = arith.constant 1.000000e+05 : f32
    %152 = vector.broadcast %cst_37 : f32 to vector<16x16xf32>
    %153 = arith.maximumf %152, %151 : vector<16x16xf32>
    %154 = vector.broadcast %cst_38 : f32 to vector<16x16xf32>
    %155 = arith.minimumf %154, %153 : vector<16x16xf32>
    %156 = arith.mulf %126, %155 : vector<16x16xf32>
    %cst_39 = arith.constant -1.000000e+32 : f32
    %157 = vector.broadcast %cst_39 : f32 to vector<16x16xf32>
    %158 = arith.select %40, %156, %157 : vector<16x16xi1>, vector<16x16xf32>
    %cst_40 = arith.constant dense<0xFF800000> : vector<16xf32>
    %159 = vector.multi_reduction <maximumf>, %158, %cst_40 [1] : vector<16x16xf32> to vector<16xf32>
    %160 = vector.shape_cast %159 : vector<16xf32> to vector<16x1xf32>
    %161 = vector.broadcast %160 : vector<16x1xf32> to vector<16x16xf32>
    %162 = arith.subf %158, %161 : vector<16x16xf32>
    %163 = math.exp %162 : vector<16x16xf32>
    %cst_41 = arith.constant dense<0.000000e+00> : vector<16xf32>
    %164 = vector.multi_reduction <add>, %163, %cst_41 [1] : vector<16x16xf32> to vector<16xf32>
    %165 = vector.shape_cast %164 : vector<16xf32> to vector<16x1xf32>
    %166 = vector.broadcast %165 : vector<16x1xf32> to vector<16x16xf32>
    %167 = arith.divf %163, %166 : vector<16x16xf32>
    %168 = vector.broadcast %71 : vector<1x32xf32> to vector<16x32xf32>
    %169 = arith.mulf %120, %168 : vector<16x32xf32>
    %cst_42 = arith.constant dense<0.000000e+00> : vector<16x32xf32>
    %170 = tpu.matmul %167, %169, %cst_42 {dimension_numbers = #tpu.dot_dimension_numbers<[1], [0], [0], [1], [0, 0, 1, 1], [], []>} : vector<16x16xf32>, vector<16x32xf32>, vector<16x32xf32> -> vector<16x32xf32>
    %171 = arith.addf %121, %170 : vector<16x32xf32>
    %172 = vector.broadcast %78 : vector<1x32xf32> to vector<16x32xf32>
    %173 = arith.mulf %114, %172 : vector<16x32xf32>
    %cst_43 = arith.constant dense<0.000000e+00> : vector<16x16xf32>
    %174 = tpu.matmul %173, %117, %cst_43 {dimension_numbers = #tpu.dot_dimension_numbers<[1], [1], [0], [0], [0, 0, 1, 0], [], []>} : vector<16x32xf32>, vector<16x32xf32>, vector<16x16xf32> -> vector<16x16xf32>
    %cst_44 = arith.constant 0.353553385 : f32
    %175 = vector.broadcast %cst_44 : f32 to vector<16x16xf32>
    %176 = arith.mulf %174, %175 : vector<16x16xf32>
    %cst_45 = arith.constant -1.000000e+32 : f32
    %177 = vector.broadcast %cst_45 : f32 to vector<16x16xf32>
    %178 = arith.select %40, %176, %177 : vector<16x16xi1>, vector<16x16xf32>
    %cst_46 = arith.constant dense<0xFF800000> : vector<16xf32>
    %179 = vector.multi_reduction <maximumf>, %178, %cst_46 [1] : vector<16x16xf32> to vector<16xf32>
    %180 = vector.shape_cast %179 : vector<16xf32> to vector<16x1xf32>
    %181 = vector.broadcast %180 : vector<16x1xf32> to vector<16x16xf32>
    %182 = arith.subf %178, %181 : vector<16x16xf32>
    %183 = math.exp %182 : vector<16x16xf32>
    %cst_47 = arith.constant dense<0.000000e+00> : vector<16xf32>
    %184 = vector.multi_reduction <add>, %183, %cst_47 [1] : vector<16x16xf32> to vector<16xf32>
    %185 = vector.shape_cast %184 : vector<16xf32> to vector<16x1xf32>
    %186 = vector.broadcast %185 : vector<16x1xf32> to vector<16x16xf32>
    %187 = arith.divf %183, %186 : vector<16x16xf32>
    %188 = arith.mulf %187, %44 : vector<16x16xf32>
    %cst_48 = arith.constant dense<0.000000e+00> : vector<16x16xf32>
    %189 = tpu.matmul %188, %51, %cst_48 {dimension_numbers = #tpu.dot_dimension_numbers<[1], [0], [0], [1], [0, 0, 1, 1], [], []>} : vector<16x16xf32>, vector<16x16xf32>, vector<16x16xf32> -> vector<16x16xf32>
    %cst_49 = arith.constant dense<0.000000e+00> : vector<16xf32>
    %190 = vector.multi_reduction <add>, %188, %cst_49 [1] : vector<16x16xf32> to vector<16xf32>
    %191 = vector.shape_cast %190 : vector<16xf32> to vector<16x1xf32>
    %192 = vector.broadcast %191 : vector<16x1xf32> to vector<16x16xf32>
    %193 = arith.subf %192, %189 : vector<16x16xf32>
    %194 = arith.mulf %193, %48 : vector<16x16xf32>
    %cst_50 = arith.constant 0.000000e+00 : f32
    %195 = vector.broadcast %cst_50 : f32 to vector<16x16xf32>
    %196 = arith.maximumf %194, %195 : vector<16x16xf32>
    %197 = math.sqrt %196 : vector<16x16xf32>
    %c1_51 = arith.constant 1 : index
    %198 = memref.load %arg0[%c1_51] : memref<12xf32, #tpu.memory_space<smem>>
    %199 = vector.broadcast %198 : f32 to vector<16x16xf32>
    %200 = arith.mulf %197, %199 : vector<16x16xf32>
    %201 = math.exp %200 : vector<16x16xf32>
    %cst_52 = arith.constant 9.99999974E-6 : f32
    %cst_53 = arith.constant 1.000000e+05 : f32
    %202 = vector.broadcast %cst_52 : f32 to vector<16x16xf32>
    %203 = arith.maximumf %202, %201 : vector<16x16xf32>
    %204 = vector.broadcast %cst_53 : f32 to vector<16x16xf32>
    %205 = arith.minimumf %204, %203 : vector<16x16xf32>
    %206 = arith.mulf %176, %205 : vector<16x16xf32>
    %cst_54 = arith.constant -1.000000e+32 : f32
    %207 = vector.broadcast %cst_54 : f32 to vector<16x16xf32>
    %208 = arith.select %40, %206, %207 : vector<16x16xi1>, vector<16x16xf32>
    %cst_55 = arith.constant dense<0xFF800000> : vector<16xf32>
    %209 = vector.multi_reduction <maximumf>, %208, %cst_55 [1] : vector<16x16xf32> to vector<16xf32>
    %210 = vector.shape_cast %209 : vector<16xf32> to vector<16x1xf32>
    %211 = vector.broadcast %210 : vector<16x1xf32> to vector<16x16xf32>
    %212 = arith.subf %208, %211 : vector<16x16xf32>
    %213 = math.exp %212 : vector<16x16xf32>
    %cst_56 = arith.constant dense<0.000000e+00> : vector<16xf32>
    %214 = vector.multi_reduction <add>, %213, %cst_56 [1] : vector<16x16xf32> to vector<16xf32>
    %215 = vector.shape_cast %214 : vector<16xf32> to vector<16x1xf32>
    %216 = vector.broadcast %215 : vector<16x1xf32> to vector<16x16xf32>
    %217 = arith.divf %213, %216 : vector<16x16xf32>
    %218 = vector.broadcast %78 : vector<1x32xf32> to vector<16x32xf32>
    %219 = arith.mulf %120, %218 : vector<16x32xf32>
    %cst_57 = arith.constant dense<0.000000e+00> : vector<16x32xf32>
    %220 = tpu.matmul %217, %219, %cst_57 {dimension_numbers = #tpu.dot_dimension_numbers<[1], [0], [0], [1], [0, 0, 1, 1], [], []>} : vector<16x16xf32>, vector<16x32xf32>, vector<16x32xf32> -> vector<16x32xf32>
    %221 = arith.addf %171, %220 : vector<16x32xf32>
    %222 = vector.broadcast %85 : vector<1x32xf32> to vector<16x32xf32>
    %223 = arith.mulf %114, %222 : vector<16x32xf32>
    %cst_58 = arith.constant dense<0.000000e+00> : vector<16x16xf32>
    %224 = tpu.matmul %223, %117, %cst_58 {dimension_numbers = #tpu.dot_dimension_numbers<[1], [1], [0], [0], [0, 0, 1, 0], [], []>} : vector<16x32xf32>, vector<16x32xf32>, vector<16x16xf32> -> vector<16x16xf32>
    %cst_59 = arith.constant 0.353553385 : f32
    %225 = vector.broadcast %cst_59 : f32 to vector<16x16xf32>
    %226 = arith.mulf %224, %225 : vector<16x16xf32>
    %cst_60 = arith.constant -1.000000e+32 : f32
    %227 = vector.broadcast %cst_60 : f32 to vector<16x16xf32>
    %228 = arith.select %40, %226, %227 : vector<16x16xi1>, vector<16x16xf32>
    %cst_61 = arith.constant dense<0xFF800000> : vector<16xf32>
    %229 = vector.multi_reduction <maximumf>, %228, %cst_61 [1] : vector<16x16xf32> to vector<16xf32>
    %230 = vector.shape_cast %229 : vector<16xf32> to vector<16x1xf32>
    %231 = vector.broadcast %230 : vector<16x1xf32> to vector<16x16xf32>
    %232 = arith.subf %228, %231 : vector<16x16xf32>
    %233 = math.exp %232 : vector<16x16xf32>
    %cst_62 = arith.constant dense<0.000000e+00> : vector<16xf32>
    %234 = vector.multi_reduction <add>, %233, %cst_62 [1] : vector<16x16xf32> to vector<16xf32>
    %235 = vector.shape_cast %234 : vector<16xf32> to vector<16x1xf32>
    %236 = vector.broadcast %235 : vector<16x1xf32> to vector<16x16xf32>
    %237 = arith.divf %233, %236 : vector<16x16xf32>
    %238 = arith.mulf %237, %44 : vector<16x16xf32>
    %cst_63 = arith.constant dense<0.000000e+00> : vector<16x16xf32>
    %239 = tpu.matmul %238, %51, %cst_63 {dimension_numbers = #tpu.dot_dimension_numbers<[1], [0], [0], [1], [0, 0, 1, 1], [], []>} : vector<16x16xf32>, vector<16x16xf32>, vector<16x16xf32> -> vector<16x16xf32>
    %cst_64 = arith.constant dense<0.000000e+00> : vector<16xf32>
    %240 = vector.multi_reduction <add>, %238, %cst_64 [1] : vector<16x16xf32> to vector<16xf32>
    %241 = vector.shape_cast %240 : vector<16xf32> to vector<16x1xf32>
    %242 = vector.broadcast %241 : vector<16x1xf32> to vector<16x16xf32>
    %243 = arith.subf %242, %239 : vector<16x16xf32>
    %244 = arith.mulf %243, %48 : vector<16x16xf32>
    %cst_65 = arith.constant 0.000000e+00 : f32
    %245 = vector.broadcast %cst_65 : f32 to vector<16x16xf32>
    %246 = arith.maximumf %244, %245 : vector<16x16xf32>
    %247 = math.sqrt %246 : vector<16x16xf32>
    %c2 = arith.constant 2 : index
    %248 = memref.load %arg0[%c2] : memref<12xf32, #tpu.memory_space<smem>>
    %249 = vector.broadcast %248 : f32 to vector<16x16xf32>
    %250 = arith.mulf %247, %249 : vector<16x16xf32>
    %251 = math.exp %250 : vector<16x16xf32>
    %cst_66 = arith.constant 9.99999974E-6 : f32
    %cst_67 = arith.constant 1.000000e+05 : f32
    %252 = vector.broadcast %cst_66 : f32 to vector<16x16xf32>
    %253 = arith.maximumf %252, %251 : vector<16x16xf32>
    %254 = vector.broadcast %cst_67 : f32 to vector<16x16xf32>
    %255 = arith.minimumf %254, %253 : vector<16x16xf32>
    %256 = arith.mulf %226, %255 : vector<16x16xf32>
    %cst_68 = arith.constant -1.000000e+32 : f32
    %257 = vector.broadcast %cst_68 : f32 to vector<16x16xf32>
    %258 = arith.select %40, %256, %257 : vector<16x16xi1>, vector<16x16xf32>
    %cst_69 = arith.constant dense<0xFF800000> : vector<16xf32>
    %259 = vector.multi_reduction <maximumf>, %258, %cst_69 [1] : vector<16x16xf32> to vector<16xf32>
    %260 = vector.shape_cast %259 : vector<16xf32> to vector<16x1xf32>
    %261 = vector.broadcast %260 : vector<16x1xf32> to vector<16x16xf32>
    %262 = arith.subf %258, %261 : vector<16x16xf32>
    %263 = math.exp %262 : vector<16x16xf32>
    %cst_70 = arith.constant dense<0.000000e+00> : vector<16xf32>
    %264 = vector.multi_reduction <add>, %263, %cst_70 [1] : vector<16x16xf32> to vector<16xf32>
    %265 = vector.shape_cast %264 : vector<16xf32> to vector<16x1xf32>
    %266 = vector.broadcast %265 : vector<16x1xf32> to vector<16x16xf32>
    %267 = arith.divf %263, %266 : vector<16x16xf32>
    %268 = vector.broadcast %85 : vector<1x32xf32> to vector<16x32xf32>
    %269 = arith.mulf %120, %268 : vector<16x32xf32>
    %cst_71 = arith.constant dense<0.000000e+00> : vector<16x32xf32>
    %270 = tpu.matmul %267, %269, %cst_71 {dimension_numbers = #tpu.dot_dimension_numbers<[1], [0], [0], [1], [0, 0, 1, 1], [], []>} : vector<16x16xf32>, vector<16x32xf32>, vector<16x32xf32> -> vector<16x32xf32>
    %271 = arith.addf %221, %270 : vector<16x32xf32>
    %272 = vector.broadcast %92 : vector<1x32xf32> to vector<16x32xf32>
    %273 = arith.mulf %114, %272 : vector<16x32xf32>
    %cst_72 = arith.constant dense<0.000000e+00> : vector<16x16xf32>
    %274 = tpu.matmul %273, %117, %cst_72 {dimension_numbers = #tpu.dot_dimension_numbers<[1], [1], [0], [0], [0, 0, 1, 0], [], []>} : vector<16x32xf32>, vector<16x32xf32>, vector<16x16xf32> -> vector<16x16xf32>
    %cst_73 = arith.constant 0.353553385 : f32
    %275 = vector.broadcast %cst_73 : f32 to vector<16x16xf32>
    %276 = arith.mulf %274, %275 : vector<16x16xf32>
    %cst_74 = arith.constant -1.000000e+32 : f32
    %277 = vector.broadcast %cst_74 : f32 to vector<16x16xf32>
    %278 = arith.select %40, %276, %277 : vector<16x16xi1>, vector<16x16xf32>
    %cst_75 = arith.constant dense<0xFF800000> : vector<16xf32>
    %279 = vector.multi_reduction <maximumf>, %278, %cst_75 [1] : vector<16x16xf32> to vector<16xf32>
    %280 = vector.shape_cast %279 : vector<16xf32> to vector<16x1xf32>
    %281 = vector.broadcast %280 : vector<16x1xf32> to vector<16x16xf32>
    %282 = arith.subf %278, %281 : vector<16x16xf32>
    %283 = math.exp %282 : vector<16x16xf32>
    %cst_76 = arith.constant dense<0.000000e+00> : vector<16xf32>
    %284 = vector.multi_reduction <add>, %283, %cst_76 [1] : vector<16x16xf32> to vector<16xf32>
    %285 = vector.shape_cast %284 : vector<16xf32> to vector<16x1xf32>
    %286 = vector.broadcast %285 : vector<16x1xf32> to vector<16x16xf32>
    %287 = arith.divf %283, %286 : vector<16x16xf32>
    %288 = arith.mulf %287, %44 : vector<16x16xf32>
    %cst_77 = arith.constant dense<0.000000e+00> : vector<16x16xf32>
    %289 = tpu.matmul %288, %51, %cst_77 {dimension_numbers = #tpu.dot_dimension_numbers<[1], [0], [0], [1], [0, 0, 1, 1], [], []>} : vector<16x16xf32>, vector<16x16xf32>, vector<16x16xf32> -> vector<16x16xf32>
    %cst_78 = arith.constant dense<0.000000e+00> : vector<16xf32>
    %290 = vector.multi_reduction <add>, %288, %cst_78 [1] : vector<16x16xf32> to vector<16xf32>
    %291 = vector.shape_cast %290 : vector<16xf32> to vector<16x1xf32>
    %292 = vector.broadcast %291 : vector<16x1xf32> to vector<16x16xf32>
    %293 = arith.subf %292, %289 : vector<16x16xf32>
    %294 = arith.mulf %293, %48 : vector<16x16xf32>
    %cst_79 = arith.constant 0.000000e+00 : f32
    %295 = vector.broadcast %cst_79 : f32 to vector<16x16xf32>
    %296 = arith.maximumf %294, %295 : vector<16x16xf32>
    %297 = math.sqrt %296 : vector<16x16xf32>
    %c3 = arith.constant 3 : index
    %298 = memref.load %arg0[%c3] : memref<12xf32, #tpu.memory_space<smem>>
    %299 = vector.broadcast %298 : f32 to vector<16x16xf32>
    %300 = arith.mulf %297, %299 : vector<16x16xf32>
    %301 = math.exp %300 : vector<16x16xf32>
    %cst_80 = arith.constant 9.99999974E-6 : f32
    %cst_81 = arith.constant 1.000000e+05 : f32
    %302 = vector.broadcast %cst_80 : f32 to vector<16x16xf32>
    %303 = arith.maximumf %302, %301 : vector<16x16xf32>
    %304 = vector.broadcast %cst_81 : f32 to vector<16x16xf32>
    %305 = arith.minimumf %304, %303 : vector<16x16xf32>
    %306 = arith.mulf %276, %305 : vector<16x16xf32>
    %cst_82 = arith.constant -1.000000e+32 : f32
    %307 = vector.broadcast %cst_82 : f32 to vector<16x16xf32>
    %308 = arith.select %40, %306, %307 : vector<16x16xi1>, vector<16x16xf32>
    %cst_83 = arith.constant dense<0xFF800000> : vector<16xf32>
    %309 = vector.multi_reduction <maximumf>, %308, %cst_83 [1] : vector<16x16xf32> to vector<16xf32>
    %310 = vector.shape_cast %309 : vector<16xf32> to vector<16x1xf32>
    %311 = vector.broadcast %310 : vector<16x1xf32> to vector<16x16xf32>
    %312 = arith.subf %308, %311 : vector<16x16xf32>
    %313 = math.exp %312 : vector<16x16xf32>
    %cst_84 = arith.constant dense<0.000000e+00> : vector<16xf32>
    %314 = vector.multi_reduction <add>, %313, %cst_84 [1] : vector<16x16xf32> to vector<16xf32>
    %315 = vector.shape_cast %314 : vector<16xf32> to vector<16x1xf32>
    %316 = vector.broadcast %315 : vector<16x1xf32> to vector<16x16xf32>
    %317 = arith.divf %313, %316 : vector<16x16xf32>
    %318 = vector.broadcast %92 : vector<1x32xf32> to vector<16x32xf32>
    %319 = arith.mulf %120, %318 : vector<16x32xf32>
    %cst_85 = arith.constant dense<0.000000e+00> : vector<16x32xf32>
    %320 = tpu.matmul %317, %319, %cst_85 {dimension_numbers = #tpu.dot_dimension_numbers<[1], [0], [0], [1], [0, 0, 1, 1], [], []>} : vector<16x16xf32>, vector<16x32xf32>, vector<16x32xf32> -> vector<16x32xf32>
    %321 = arith.addf %271, %320 : vector<16x32xf32>
    %cst_86 = arith.constant dense<0.000000e+00> : vector<16x32xf32>
    %322 = tpu.matmul %321, %99, %cst_86 {dimension_numbers = #tpu.dot_dimension_numbers<[1], [0], [0], [1], [0, 0, 1, 1], [], []>} : vector<16x32xf32>, vector<32x32xf32>, vector<16x32xf32> -> vector<16x32xf32>
    %323 = vector.broadcast %104 : vector<1x32xf32> to vector<16x32xf32>
    %324 = arith.addf %322, %323 : vector<16x32xf32>
    %325 = arith.addf %25, %324 : vector<16x32xf32>
    %cst_87 = arith.constant dense<0.000000e+00> : vector<16xf32>
    %326 = vector.multi_reduction <add>, %325, %cst_87 [1] : vector<16x32xf32> to vector<16xf32>
    %327 = vector.shape_cast %326 : vector<16xf32> to vector<16x1xf32>
    %cst_88 = arith.constant 3.200000e+01 : f32
    %328 = vector.broadcast %cst_88 : f32 to vector<16x1xf32>
    %329 = arith.divf %327, %328 : vector<16x1xf32>
    %330 = vector.broadcast %329 : vector<16x1xf32> to vector<16x32xf32>
    %331 = arith.subf %325, %330 : vector<16x32xf32>
    %332 = arith.mulf %331, %331 : vector<16x32xf32>
    %cst_89 = arith.constant dense<0.000000e+00> : vector<16xf32>
    %333 = vector.multi_reduction <add>, %332, %cst_89 [1] : vector<16x32xf32> to vector<16xf32>
    %334 = vector.shape_cast %333 : vector<16xf32> to vector<16x1xf32>
    %cst_90 = arith.constant 3.200000e+01 : f32
    %335 = vector.broadcast %cst_90 : f32 to vector<16x1xf32>
    %336 = arith.divf %334, %335 : vector<16x1xf32>
    %337 = vector.broadcast %329 : vector<16x1xf32> to vector<16x32xf32>
    %338 = arith.subf %325, %337 : vector<16x32xf32>
    %cst_91 = arith.constant 9.99999974E-6 : f32
    %339 = vector.broadcast %cst_91 : f32 to vector<16x1xf32>
    %340 = arith.addf %336, %339 : vector<16x1xf32>
    %341 = math.rsqrt %340 : vector<16x1xf32>
    %342 = vector.broadcast %341 : vector<16x1xf32> to vector<16x32xf32>
    %343 = arith.mulf %338, %342 : vector<16x32xf32>
    %344 = vector.broadcast %105 : vector<1x32xf32> to vector<16x32xf32>
    %345 = arith.mulf %343, %344 : vector<16x32xf32>
    %346 = vector.broadcast %106 : vector<1x32xf32> to vector<16x32xf32>
    %347 = arith.addf %345, %346 : vector<16x32xf32>
    %cst_92 = arith.constant dense<0.000000e+00> : vector<16x64xf32>
    %348 = tpu.matmul %347, %110, %cst_92 {dimension_numbers = #tpu.dot_dimension_numbers<[1], [0], [0], [1], [0, 0, 1, 1], [], []>} : vector<16x32xf32>, vector<32x64xf32>, vector<16x64xf32> -> vector<16x64xf32>
    %349 = vector.broadcast %111 : vector<1x64xf32> to vector<16x64xf32>
    %350 = arith.addf %348, %349 : vector<16x64xf32>
    %cst_93 = arith.constant 0.000000e+00 : f32
    %351 = vector.broadcast %cst_93 : f32 to vector<16x64xf32>
    %352 = arith.maximumf %350, %351 : vector<16x64xf32>
    %cst_94 = arith.constant dense<0.000000e+00> : vector<16x32xf32>
    %353 = tpu.matmul %352, %100, %cst_94 {dimension_numbers = #tpu.dot_dimension_numbers<[1], [0], [0], [1], [0, 0, 1, 1], [], []>} : vector<16x64xf32>, vector<64x32xf32>, vector<16x32xf32> -> vector<16x32xf32>
    %354 = vector.broadcast %107 : vector<1x32xf32> to vector<16x32xf32>
    %355 = arith.addf %353, %354 : vector<16x32xf32>
    %356 = arith.addf %347, %355 : vector<16x32xf32>
    %cst_95 = arith.constant dense<0.000000e+00> : vector<16xf32>
    %357 = vector.multi_reduction <add>, %356, %cst_95 [1] : vector<16x32xf32> to vector<16xf32>
    %358 = vector.shape_cast %357 : vector<16xf32> to vector<16x1xf32>
    %cst_96 = arith.constant 3.200000e+01 : f32
    %359 = vector.broadcast %cst_96 : f32 to vector<16x1xf32>
    %360 = arith.divf %358, %359 : vector<16x1xf32>
    %361 = vector.broadcast %360 : vector<16x1xf32> to vector<16x32xf32>
    %362 = arith.subf %356, %361 : vector<16x32xf32>
    %363 = arith.mulf %362, %362 : vector<16x32xf32>
    %cst_97 = arith.constant dense<0.000000e+00> : vector<16xf32>
    %364 = vector.multi_reduction <add>, %363, %cst_97 [1] : vector<16x32xf32> to vector<16xf32>
    %365 = vector.shape_cast %364 : vector<16xf32> to vector<16x1xf32>
    %cst_98 = arith.constant 3.200000e+01 : f32
    %366 = vector.broadcast %cst_98 : f32 to vector<16x1xf32>
    %367 = arith.divf %365, %366 : vector<16x1xf32>
    %368 = vector.broadcast %360 : vector<16x1xf32> to vector<16x32xf32>
    %369 = arith.subf %356, %368 : vector<16x32xf32>
    %cst_99 = arith.constant 9.99999974E-6 : f32
    %370 = vector.broadcast %cst_99 : f32 to vector<16x1xf32>
    %371 = arith.addf %367, %370 : vector<16x1xf32>
    %372 = math.rsqrt %371 : vector<16x1xf32>
    %373 = vector.broadcast %372 : vector<16x1xf32> to vector<16x32xf32>
    %374 = arith.mulf %369, %373 : vector<16x32xf32>
    %375 = vector.broadcast %108 : vector<1x32xf32> to vector<16x32xf32>
    %376 = arith.mulf %374, %375 : vector<16x32xf32>
    %377 = vector.broadcast %109 : vector<1x32xf32> to vector<16x32xf32>
    %378 = arith.addf %376, %377 : vector<16x32xf32>
    %c1_100 = arith.constant 1 : index
    %c0_101 = arith.constant 0 : index
    %c0_102 = arith.constant 0 : index
    %379 = vector.load %arg5[%c1_100, %c0_101, %c0_102] : memref<3x168x32xf32, #tpu.memory_space<vmem>>, vector<1x168x32xf32>
    %380 = vector.shape_cast %379 : vector<1x168x32xf32> to vector<168x32xf32>
    %381 = vector.extract_strided_slice %380 {offsets = [0, 0], sizes = [32, 32], strides = [1, 1]} : vector<168x32xf32> to vector<32x32xf32>
    %382 = vector.extract_strided_slice %380 {offsets = [32, 0], sizes = [32, 32], strides = [1, 1]} : vector<168x32xf32> to vector<32x32xf32>
    %383 = vector.extract_strided_slice %380 {offsets = [64, 0], sizes = [32, 32], strides = [1, 1]} : vector<168x32xf32> to vector<32x32xf32>
    %384 = vector.extract_strided_slice %380 {offsets = [160, 0], sizes = [8, 32], strides = [1, 1]} : vector<168x32xf32> to vector<8x32xf32>
    %385 = vector.extract_strided_slice %384 {offsets = [0, 0], sizes = [1, 32], strides = [1, 1]} : vector<8x32xf32> to vector<1x32xf32>
    %386 = vector.extract_strided_slice %384 {offsets = [1, 0], sizes = [1, 32], strides = [1, 1]} : vector<8x32xf32> to vector<1x32xf32>
    %387 = vector.extract_strided_slice %384 {offsets = [2, 0], sizes = [1, 32], strides = [1, 1]} : vector<8x32xf32> to vector<1x32xf32>
    %388 = vector.extract_strided_slice %384 {offsets = [3, 0], sizes = [1, 32], strides = [1, 1]} : vector<8x32xf32> to vector<1x32xf32>
    %389 = vector.extract_strided_slice %384 {offsets = [4, 0], sizes = [1, 32], strides = [1, 1]} : vector<8x32xf32> to vector<1x32xf32>
    %cst_103 = arith.constant dense<0.000000e+00> : vector<16x32xf32>
    %390 = tpu.matmul %8, %381, %cst_103 {dimension_numbers = #tpu.dot_dimension_numbers<[1], [0], [0], [1], [0, 0, 1, 1], [], []>} : vector<16x32xf32>, vector<32x32xf32>, vector<16x32xf32> -> vector<16x32xf32>
    %391 = vector.broadcast %385 : vector<1x32xf32> to vector<16x32xf32>
    %392 = arith.addf %390, %391 : vector<16x32xf32>
    %cst_104 = arith.constant dense<0.000000e+00> : vector<16x32xf32>
    %393 = tpu.matmul %8, %381, %cst_104 {dimension_numbers = #tpu.dot_dimension_numbers<[1], [0], [0], [1], [0, 0, 1, 1], [], []>} : vector<16x32xf32>, vector<32x32xf32>, vector<16x32xf32> -> vector<16x32xf32>
    %394 = vector.broadcast %385 : vector<1x32xf32> to vector<16x32xf32>
    %395 = arith.addf %393, %394 : vector<16x32xf32>
    %cst_105 = arith.constant dense<0.000000e+00> : vector<16x32xf32>
    %396 = tpu.matmul %8, %382, %cst_105 {dimension_numbers = #tpu.dot_dimension_numbers<[1], [0], [0], [1], [0, 0, 1, 1], [], []>} : vector<16x32xf32>, vector<32x32xf32>, vector<16x32xf32> -> vector<16x32xf32>
    %397 = vector.broadcast %386 : vector<1x32xf32> to vector<16x32xf32>
    %398 = arith.addf %396, %397 : vector<16x32xf32>
    %cst_106 = arith.constant 0.000000e+00 : f32
    %399 = vector.broadcast %cst_106 : f32 to vector<16x32xf32>
    %400 = vector.broadcast %71 : vector<1x32xf32> to vector<16x32xf32>
    %401 = arith.mulf %392, %400 : vector<16x32xf32>
    %cst_107 = arith.constant dense<0.000000e+00> : vector<16x16xf32>
    %402 = tpu.matmul %401, %395, %cst_107 {dimension_numbers = #tpu.dot_dimension_numbers<[1], [1], [0], [0], [0, 0, 1, 0], [], []>} : vector<16x32xf32>, vector<16x32xf32>, vector<16x16xf32> -> vector<16x16xf32>
    %cst_108 = arith.constant 0.353553385 : f32
    %403 = vector.broadcast %cst_108 : f32 to vector<16x16xf32>
    %404 = arith.mulf %402, %403 : vector<16x16xf32>
    %cst_109 = arith.constant -1.000000e+32 : f32
    %405 = vector.broadcast %cst_109 : f32 to vector<16x16xf32>
    %406 = arith.select %40, %404, %405 : vector<16x16xi1>, vector<16x16xf32>
    %cst_110 = arith.constant dense<0xFF800000> : vector<16xf32>
    %407 = vector.multi_reduction <maximumf>, %406, %cst_110 [1] : vector<16x16xf32> to vector<16xf32>
    %408 = vector.shape_cast %407 : vector<16xf32> to vector<16x1xf32>
    %409 = vector.broadcast %408 : vector<16x1xf32> to vector<16x16xf32>
    %410 = arith.subf %406, %409 : vector<16x16xf32>
    %411 = math.exp %410 : vector<16x16xf32>
    %cst_111 = arith.constant dense<0.000000e+00> : vector<16xf32>
    %412 = vector.multi_reduction <add>, %411, %cst_111 [1] : vector<16x16xf32> to vector<16xf32>
    %413 = vector.shape_cast %412 : vector<16xf32> to vector<16x1xf32>
    %414 = vector.broadcast %413 : vector<16x1xf32> to vector<16x16xf32>
    %415 = arith.divf %411, %414 : vector<16x16xf32>
    %416 = arith.mulf %415, %44 : vector<16x16xf32>
    %cst_112 = arith.constant dense<0.000000e+00> : vector<16x16xf32>
    %417 = tpu.matmul %416, %51, %cst_112 {dimension_numbers = #tpu.dot_dimension_numbers<[1], [0], [0], [1], [0, 0, 1, 1], [], []>} : vector<16x16xf32>, vector<16x16xf32>, vector<16x16xf32> -> vector<16x16xf32>
    %cst_113 = arith.constant dense<0.000000e+00> : vector<16xf32>
    %418 = vector.multi_reduction <add>, %416, %cst_113 [1] : vector<16x16xf32> to vector<16xf32>
    %419 = vector.shape_cast %418 : vector<16xf32> to vector<16x1xf32>
    %420 = vector.broadcast %419 : vector<16x1xf32> to vector<16x16xf32>
    %421 = arith.subf %420, %417 : vector<16x16xf32>
    %422 = arith.mulf %421, %48 : vector<16x16xf32>
    %cst_114 = arith.constant 0.000000e+00 : f32
    %423 = vector.broadcast %cst_114 : f32 to vector<16x16xf32>
    %424 = arith.maximumf %422, %423 : vector<16x16xf32>
    %425 = math.sqrt %424 : vector<16x16xf32>
    %c4 = arith.constant 4 : index
    %426 = memref.load %arg0[%c4] : memref<12xf32, #tpu.memory_space<smem>>
    %427 = vector.broadcast %426 : f32 to vector<16x16xf32>
    %428 = arith.mulf %425, %427 : vector<16x16xf32>
    %429 = math.exp %428 : vector<16x16xf32>
    %cst_115 = arith.constant 9.99999974E-6 : f32
    %cst_116 = arith.constant 1.000000e+05 : f32
    %430 = vector.broadcast %cst_115 : f32 to vector<16x16xf32>
    %431 = arith.maximumf %430, %429 : vector<16x16xf32>
    %432 = vector.broadcast %cst_116 : f32 to vector<16x16xf32>
    %433 = arith.minimumf %432, %431 : vector<16x16xf32>
    %434 = arith.mulf %404, %433 : vector<16x16xf32>
    %cst_117 = arith.constant -1.000000e+32 : f32
    %435 = vector.broadcast %cst_117 : f32 to vector<16x16xf32>
    %436 = arith.select %40, %434, %435 : vector<16x16xi1>, vector<16x16xf32>
    %cst_118 = arith.constant dense<0xFF800000> : vector<16xf32>
    %437 = vector.multi_reduction <maximumf>, %436, %cst_118 [1] : vector<16x16xf32> to vector<16xf32>
    %438 = vector.shape_cast %437 : vector<16xf32> to vector<16x1xf32>
    %439 = vector.broadcast %438 : vector<16x1xf32> to vector<16x16xf32>
    %440 = arith.subf %436, %439 : vector<16x16xf32>
    %441 = math.exp %440 : vector<16x16xf32>
    %cst_119 = arith.constant dense<0.000000e+00> : vector<16xf32>
    %442 = vector.multi_reduction <add>, %441, %cst_119 [1] : vector<16x16xf32> to vector<16xf32>
    %443 = vector.shape_cast %442 : vector<16xf32> to vector<16x1xf32>
    %444 = vector.broadcast %443 : vector<16x1xf32> to vector<16x16xf32>
    %445 = arith.divf %441, %444 : vector<16x16xf32>
    %446 = vector.broadcast %71 : vector<1x32xf32> to vector<16x32xf32>
    %447 = arith.mulf %398, %446 : vector<16x32xf32>
    %cst_120 = arith.constant dense<0.000000e+00> : vector<16x32xf32>
    %448 = tpu.matmul %445, %447, %cst_120 {dimension_numbers = #tpu.dot_dimension_numbers<[1], [0], [0], [1], [0, 0, 1, 1], [], []>} : vector<16x16xf32>, vector<16x32xf32>, vector<16x32xf32> -> vector<16x32xf32>
    %449 = arith.addf %399, %448 : vector<16x32xf32>
    %450 = vector.broadcast %78 : vector<1x32xf32> to vector<16x32xf32>
    %451 = arith.mulf %392, %450 : vector<16x32xf32>
    %cst_121 = arith.constant dense<0.000000e+00> : vector<16x16xf32>
    %452 = tpu.matmul %451, %395, %cst_121 {dimension_numbers = #tpu.dot_dimension_numbers<[1], [1], [0], [0], [0, 0, 1, 0], [], []>} : vector<16x32xf32>, vector<16x32xf32>, vector<16x16xf32> -> vector<16x16xf32>
    %cst_122 = arith.constant 0.353553385 : f32
    %453 = vector.broadcast %cst_122 : f32 to vector<16x16xf32>
    %454 = arith.mulf %452, %453 : vector<16x16xf32>
    %cst_123 = arith.constant -1.000000e+32 : f32
    %455 = vector.broadcast %cst_123 : f32 to vector<16x16xf32>
    %456 = arith.select %40, %454, %455 : vector<16x16xi1>, vector<16x16xf32>
    %cst_124 = arith.constant dense<0xFF800000> : vector<16xf32>
    %457 = vector.multi_reduction <maximumf>, %456, %cst_124 [1] : vector<16x16xf32> to vector<16xf32>
    %458 = vector.shape_cast %457 : vector<16xf32> to vector<16x1xf32>
    %459 = vector.broadcast %458 : vector<16x1xf32> to vector<16x16xf32>
    %460 = arith.subf %456, %459 : vector<16x16xf32>
    %461 = math.exp %460 : vector<16x16xf32>
    %cst_125 = arith.constant dense<0.000000e+00> : vector<16xf32>
    %462 = vector.multi_reduction <add>, %461, %cst_125 [1] : vector<16x16xf32> to vector<16xf32>
    %463 = vector.shape_cast %462 : vector<16xf32> to vector<16x1xf32>
    %464 = vector.broadcast %463 : vector<16x1xf32> to vector<16x16xf32>
    %465 = arith.divf %461, %464 : vector<16x16xf32>
    %466 = arith.mulf %465, %44 : vector<16x16xf32>
    %cst_126 = arith.constant dense<0.000000e+00> : vector<16x16xf32>
    %467 = tpu.matmul %466, %51, %cst_126 {dimension_numbers = #tpu.dot_dimension_numbers<[1], [0], [0], [1], [0, 0, 1, 1], [], []>} : vector<16x16xf32>, vector<16x16xf32>, vector<16x16xf32> -> vector<16x16xf32>
    %cst_127 = arith.constant dense<0.000000e+00> : vector<16xf32>
    %468 = vector.multi_reduction <add>, %466, %cst_127 [1] : vector<16x16xf32> to vector<16xf32>
    %469 = vector.shape_cast %468 : vector<16xf32> to vector<16x1xf32>
    %470 = vector.broadcast %469 : vector<16x1xf32> to vector<16x16xf32>
    %471 = arith.subf %470, %467 : vector<16x16xf32>
    %472 = arith.mulf %471, %48 : vector<16x16xf32>
    %cst_128 = arith.constant 0.000000e+00 : f32
    %473 = vector.broadcast %cst_128 : f32 to vector<16x16xf32>
    %474 = arith.maximumf %472, %473 : vector<16x16xf32>
    %475 = math.sqrt %474 : vector<16x16xf32>
    %c5 = arith.constant 5 : index
    %476 = memref.load %arg0[%c5] : memref<12xf32, #tpu.memory_space<smem>>
    %477 = vector.broadcast %476 : f32 to vector<16x16xf32>
    %478 = arith.mulf %475, %477 : vector<16x16xf32>
    %479 = math.exp %478 : vector<16x16xf32>
    %cst_129 = arith.constant 9.99999974E-6 : f32
    %cst_130 = arith.constant 1.000000e+05 : f32
    %480 = vector.broadcast %cst_129 : f32 to vector<16x16xf32>
    %481 = arith.maximumf %480, %479 : vector<16x16xf32>
    %482 = vector.broadcast %cst_130 : f32 to vector<16x16xf32>
    %483 = arith.minimumf %482, %481 : vector<16x16xf32>
    %484 = arith.mulf %454, %483 : vector<16x16xf32>
    %cst_131 = arith.constant -1.000000e+32 : f32
    %485 = vector.broadcast %cst_131 : f32 to vector<16x16xf32>
    %486 = arith.select %40, %484, %485 : vector<16x16xi1>, vector<16x16xf32>
    %cst_132 = arith.constant dense<0xFF800000> : vector<16xf32>
    %487 = vector.multi_reduction <maximumf>, %486, %cst_132 [1] : vector<16x16xf32> to vector<16xf32>
    %488 = vector.shape_cast %487 : vector<16xf32> to vector<16x1xf32>
    %489 = vector.broadcast %488 : vector<16x1xf32> to vector<16x16xf32>
    %490 = arith.subf %486, %489 : vector<16x16xf32>
    %491 = math.exp %490 : vector<16x16xf32>
    %cst_133 = arith.constant dense<0.000000e+00> : vector<16xf32>
    %492 = vector.multi_reduction <add>, %491, %cst_133 [1] : vector<16x16xf32> to vector<16xf32>
    %493 = vector.shape_cast %492 : vector<16xf32> to vector<16x1xf32>
    %494 = vector.broadcast %493 : vector<16x1xf32> to vector<16x16xf32>
    %495 = arith.divf %491, %494 : vector<16x16xf32>
    %496 = vector.broadcast %78 : vector<1x32xf32> to vector<16x32xf32>
    %497 = arith.mulf %398, %496 : vector<16x32xf32>
    %cst_134 = arith.constant dense<0.000000e+00> : vector<16x32xf32>
    %498 = tpu.matmul %495, %497, %cst_134 {dimension_numbers = #tpu.dot_dimension_numbers<[1], [0], [0], [1], [0, 0, 1, 1], [], []>} : vector<16x16xf32>, vector<16x32xf32>, vector<16x32xf32> -> vector<16x32xf32>
    %499 = arith.addf %449, %498 : vector<16x32xf32>
    %500 = vector.broadcast %85 : vector<1x32xf32> to vector<16x32xf32>
    %501 = arith.mulf %392, %500 : vector<16x32xf32>
    %cst_135 = arith.constant dense<0.000000e+00> : vector<16x16xf32>
    %502 = tpu.matmul %501, %395, %cst_135 {dimension_numbers = #tpu.dot_dimension_numbers<[1], [1], [0], [0], [0, 0, 1, 0], [], []>} : vector<16x32xf32>, vector<16x32xf32>, vector<16x16xf32> -> vector<16x16xf32>
    %cst_136 = arith.constant 0.353553385 : f32
    %503 = vector.broadcast %cst_136 : f32 to vector<16x16xf32>
    %504 = arith.mulf %502, %503 : vector<16x16xf32>
    %cst_137 = arith.constant -1.000000e+32 : f32
    %505 = vector.broadcast %cst_137 : f32 to vector<16x16xf32>
    %506 = arith.select %40, %504, %505 : vector<16x16xi1>, vector<16x16xf32>
    %cst_138 = arith.constant dense<0xFF800000> : vector<16xf32>
    %507 = vector.multi_reduction <maximumf>, %506, %cst_138 [1] : vector<16x16xf32> to vector<16xf32>
    %508 = vector.shape_cast %507 : vector<16xf32> to vector<16x1xf32>
    %509 = vector.broadcast %508 : vector<16x1xf32> to vector<16x16xf32>
    %510 = arith.subf %506, %509 : vector<16x16xf32>
    %511 = math.exp %510 : vector<16x16xf32>
    %cst_139 = arith.constant dense<0.000000e+00> : vector<16xf32>
    %512 = vector.multi_reduction <add>, %511, %cst_139 [1] : vector<16x16xf32> to vector<16xf32>
    %513 = vector.shape_cast %512 : vector<16xf32> to vector<16x1xf32>
    %514 = vector.broadcast %513 : vector<16x1xf32> to vector<16x16xf32>
    %515 = arith.divf %511, %514 : vector<16x16xf32>
    %516 = arith.mulf %515, %44 : vector<16x16xf32>
    %cst_140 = arith.constant dense<0.000000e+00> : vector<16x16xf32>
    %517 = tpu.matmul %516, %51, %cst_140 {dimension_numbers = #tpu.dot_dimension_numbers<[1], [0], [0], [1], [0, 0, 1, 1], [], []>} : vector<16x16xf32>, vector<16x16xf32>, vector<16x16xf32> -> vector<16x16xf32>
    %cst_141 = arith.constant dense<0.000000e+00> : vector<16xf32>
    %518 = vector.multi_reduction <add>, %516, %cst_141 [1] : vector<16x16xf32> to vector<16xf32>
    %519 = vector.shape_cast %518 : vector<16xf32> to vector<16x1xf32>
    %520 = vector.broadcast %519 : vector<16x1xf32> to vector<16x16xf32>
    %521 = arith.subf %520, %517 : vector<16x16xf32>
    %522 = arith.mulf %521, %48 : vector<16x16xf32>
    %cst_142 = arith.constant 0.000000e+00 : f32
    %523 = vector.broadcast %cst_142 : f32 to vector<16x16xf32>
    %524 = arith.maximumf %522, %523 : vector<16x16xf32>
    %525 = math.sqrt %524 : vector<16x16xf32>
    %c6 = arith.constant 6 : index
    %526 = memref.load %arg0[%c6] : memref<12xf32, #tpu.memory_space<smem>>
    %527 = vector.broadcast %526 : f32 to vector<16x16xf32>
    %528 = arith.mulf %525, %527 : vector<16x16xf32>
    %529 = math.exp %528 : vector<16x16xf32>
    %cst_143 = arith.constant 9.99999974E-6 : f32
    %cst_144 = arith.constant 1.000000e+05 : f32
    %530 = vector.broadcast %cst_143 : f32 to vector<16x16xf32>
    %531 = arith.maximumf %530, %529 : vector<16x16xf32>
    %532 = vector.broadcast %cst_144 : f32 to vector<16x16xf32>
    %533 = arith.minimumf %532, %531 : vector<16x16xf32>
    %534 = arith.mulf %504, %533 : vector<16x16xf32>
    %cst_145 = arith.constant -1.000000e+32 : f32
    %535 = vector.broadcast %cst_145 : f32 to vector<16x16xf32>
    %536 = arith.select %40, %534, %535 : vector<16x16xi1>, vector<16x16xf32>
    %cst_146 = arith.constant dense<0xFF800000> : vector<16xf32>
    %537 = vector.multi_reduction <maximumf>, %536, %cst_146 [1] : vector<16x16xf32> to vector<16xf32>
    %538 = vector.shape_cast %537 : vector<16xf32> to vector<16x1xf32>
    %539 = vector.broadcast %538 : vector<16x1xf32> to vector<16x16xf32>
    %540 = arith.subf %536, %539 : vector<16x16xf32>
    %541 = math.exp %540 : vector<16x16xf32>
    %cst_147 = arith.constant dense<0.000000e+00> : vector<16xf32>
    %542 = vector.multi_reduction <add>, %541, %cst_147 [1] : vector<16x16xf32> to vector<16xf32>
    %543 = vector.shape_cast %542 : vector<16xf32> to vector<16x1xf32>
    %544 = vector.broadcast %543 : vector<16x1xf32> to vector<16x16xf32>
    %545 = arith.divf %541, %544 : vector<16x16xf32>
    %546 = vector.broadcast %85 : vector<1x32xf32> to vector<16x32xf32>
    %547 = arith.mulf %398, %546 : vector<16x32xf32>
    %cst_148 = arith.constant dense<0.000000e+00> : vector<16x32xf32>
    %548 = tpu.matmul %545, %547, %cst_148 {dimension_numbers = #tpu.dot_dimension_numbers<[1], [0], [0], [1], [0, 0, 1, 1], [], []>} : vector<16x16xf32>, vector<16x32xf32>, vector<16x32xf32> -> vector<16x32xf32>
    %549 = arith.addf %499, %548 : vector<16x32xf32>
    %550 = vector.broadcast %92 : vector<1x32xf32> to vector<16x32xf32>
    %551 = arith.mulf %392, %550 : vector<16x32xf32>
    %cst_149 = arith.constant dense<0.000000e+00> : vector<16x16xf32>
    %552 = tpu.matmul %551, %395, %cst_149 {dimension_numbers = #tpu.dot_dimension_numbers<[1], [1], [0], [0], [0, 0, 1, 0], [], []>} : vector<16x32xf32>, vector<16x32xf32>, vector<16x16xf32> -> vector<16x16xf32>
    %cst_150 = arith.constant 0.353553385 : f32
    %553 = vector.broadcast %cst_150 : f32 to vector<16x16xf32>
    %554 = arith.mulf %552, %553 : vector<16x16xf32>
    %cst_151 = arith.constant -1.000000e+32 : f32
    %555 = vector.broadcast %cst_151 : f32 to vector<16x16xf32>
    %556 = arith.select %40, %554, %555 : vector<16x16xi1>, vector<16x16xf32>
    %cst_152 = arith.constant dense<0xFF800000> : vector<16xf32>
    %557 = vector.multi_reduction <maximumf>, %556, %cst_152 [1] : vector<16x16xf32> to vector<16xf32>
    %558 = vector.shape_cast %557 : vector<16xf32> to vector<16x1xf32>
    %559 = vector.broadcast %558 : vector<16x1xf32> to vector<16x16xf32>
    %560 = arith.subf %556, %559 : vector<16x16xf32>
    %561 = math.exp %560 : vector<16x16xf32>
    %cst_153 = arith.constant dense<0.000000e+00> : vector<16xf32>
    %562 = vector.multi_reduction <add>, %561, %cst_153 [1] : vector<16x16xf32> to vector<16xf32>
    %563 = vector.shape_cast %562 : vector<16xf32> to vector<16x1xf32>
    %564 = vector.broadcast %563 : vector<16x1xf32> to vector<16x16xf32>
    %565 = arith.divf %561, %564 : vector<16x16xf32>
    %566 = arith.mulf %565, %44 : vector<16x16xf32>
    %cst_154 = arith.constant dense<0.000000e+00> : vector<16x16xf32>
    %567 = tpu.matmul %566, %51, %cst_154 {dimension_numbers = #tpu.dot_dimension_numbers<[1], [0], [0], [1], [0, 0, 1, 1], [], []>} : vector<16x16xf32>, vector<16x16xf32>, vector<16x16xf32> -> vector<16x16xf32>
    %cst_155 = arith.constant dense<0.000000e+00> : vector<16xf32>
    %568 = vector.multi_reduction <add>, %566, %cst_155 [1] : vector<16x16xf32> to vector<16xf32>
    %569 = vector.shape_cast %568 : vector<16xf32> to vector<16x1xf32>
    %570 = vector.broadcast %569 : vector<16x1xf32> to vector<16x16xf32>
    %571 = arith.subf %570, %567 : vector<16x16xf32>
    %572 = arith.mulf %571, %48 : vector<16x16xf32>
    %cst_156 = arith.constant 0.000000e+00 : f32
    %573 = vector.broadcast %cst_156 : f32 to vector<16x16xf32>
    %574 = arith.maximumf %572, %573 : vector<16x16xf32>
    %575 = math.sqrt %574 : vector<16x16xf32>
    %c7 = arith.constant 7 : index
    %576 = memref.load %arg0[%c7] : memref<12xf32, #tpu.memory_space<smem>>
    %577 = vector.broadcast %576 : f32 to vector<16x16xf32>
    %578 = arith.mulf %575, %577 : vector<16x16xf32>
    %579 = math.exp %578 : vector<16x16xf32>
    %cst_157 = arith.constant 9.99999974E-6 : f32
    %cst_158 = arith.constant 1.000000e+05 : f32
    %580 = vector.broadcast %cst_157 : f32 to vector<16x16xf32>
    %581 = arith.maximumf %580, %579 : vector<16x16xf32>
    %582 = vector.broadcast %cst_158 : f32 to vector<16x16xf32>
    %583 = arith.minimumf %582, %581 : vector<16x16xf32>
    %584 = arith.mulf %554, %583 : vector<16x16xf32>
    %cst_159 = arith.constant -1.000000e+32 : f32
    %585 = vector.broadcast %cst_159 : f32 to vector<16x16xf32>
    %586 = arith.select %40, %584, %585 : vector<16x16xi1>, vector<16x16xf32>
    %cst_160 = arith.constant dense<0xFF800000> : vector<16xf32>
    %587 = vector.multi_reduction <maximumf>, %586, %cst_160 [1] : vector<16x16xf32> to vector<16xf32>
    %588 = vector.shape_cast %587 : vector<16xf32> to vector<16x1xf32>
    %589 = vector.broadcast %588 : vector<16x1xf32> to vector<16x16xf32>
    %590 = arith.subf %586, %589 : vector<16x16xf32>
    %591 = math.exp %590 : vector<16x16xf32>
    %cst_161 = arith.constant dense<0.000000e+00> : vector<16xf32>
    %592 = vector.multi_reduction <add>, %591, %cst_161 [1] : vector<16x16xf32> to vector<16xf32>
    %593 = vector.shape_cast %592 : vector<16xf32> to vector<16x1xf32>
    %594 = vector.broadcast %593 : vector<16x1xf32> to vector<16x16xf32>
    %595 = arith.divf %591, %594 : vector<16x16xf32>
    %596 = vector.broadcast %92 : vector<1x32xf32> to vector<16x32xf32>
    %597 = arith.mulf %398, %596 : vector<16x32xf32>
    %cst_162 = arith.constant dense<0.000000e+00> : vector<16x32xf32>
    %598 = tpu.matmul %595, %597, %cst_162 {dimension_numbers = #tpu.dot_dimension_numbers<[1], [0], [0], [1], [0, 0, 1, 1], [], []>} : vector<16x16xf32>, vector<16x32xf32>, vector<16x32xf32> -> vector<16x32xf32>
    %599 = arith.addf %549, %598 : vector<16x32xf32>
    %cst_163 = arith.constant dense<0.000000e+00> : vector<16x32xf32>
    %600 = tpu.matmul %599, %383, %cst_163 {dimension_numbers = #tpu.dot_dimension_numbers<[1], [0], [0], [1], [0, 0, 1, 1], [], []>} : vector<16x32xf32>, vector<32x32xf32>, vector<16x32xf32> -> vector<16x32xf32>
    %601 = vector.broadcast %387 : vector<1x32xf32> to vector<16x32xf32>
    %602 = arith.addf %600, %601 : vector<16x32xf32>
    %603 = arith.addf %8, %602 : vector<16x32xf32>
    %cst_164 = arith.constant dense<0.000000e+00> : vector<16xf32>
    %604 = vector.multi_reduction <add>, %603, %cst_164 [1] : vector<16x32xf32> to vector<16xf32>
    %605 = vector.shape_cast %604 : vector<16xf32> to vector<16x1xf32>
    %cst_165 = arith.constant 3.200000e+01 : f32
    %606 = vector.broadcast %cst_165 : f32 to vector<16x1xf32>
    %607 = arith.divf %605, %606 : vector<16x1xf32>
    %608 = vector.broadcast %607 : vector<16x1xf32> to vector<16x32xf32>
    %609 = arith.subf %603, %608 : vector<16x32xf32>
    %610 = arith.mulf %609, %609 : vector<16x32xf32>
    %cst_166 = arith.constant dense<0.000000e+00> : vector<16xf32>
    %611 = vector.multi_reduction <add>, %610, %cst_166 [1] : vector<16x32xf32> to vector<16xf32>
    %612 = vector.shape_cast %611 : vector<16xf32> to vector<16x1xf32>
    %cst_167 = arith.constant 3.200000e+01 : f32
    %613 = vector.broadcast %cst_167 : f32 to vector<16x1xf32>
    %614 = arith.divf %612, %613 : vector<16x1xf32>
    %615 = vector.broadcast %607 : vector<16x1xf32> to vector<16x32xf32>
    %616 = arith.subf %603, %615 : vector<16x32xf32>
    %cst_168 = arith.constant 9.99999974E-6 : f32
    %617 = vector.broadcast %cst_168 : f32 to vector<16x1xf32>
    %618 = arith.addf %614, %617 : vector<16x1xf32>
    %619 = math.rsqrt %618 : vector<16x1xf32>
    %620 = vector.broadcast %619 : vector<16x1xf32> to vector<16x32xf32>
    %621 = arith.mulf %616, %620 : vector<16x32xf32>
    %622 = vector.broadcast %388 : vector<1x32xf32> to vector<16x32xf32>
    %623 = arith.mulf %621, %622 : vector<16x32xf32>
    %624 = vector.broadcast %389 : vector<1x32xf32> to vector<16x32xf32>
    %625 = arith.addf %623, %624 : vector<16x32xf32>
    %c2_169 = arith.constant 2 : index
    %c0_170 = arith.constant 0 : index
    %c0_171 = arith.constant 0 : index
    %626 = vector.load %arg5[%c2_169, %c0_170, %c0_171] : memref<3x168x32xf32, #tpu.memory_space<vmem>>, vector<1x168x32xf32>
    %627 = vector.shape_cast %626 : vector<1x168x32xf32> to vector<168x32xf32>
    %c2_172 = arith.constant 2 : index
    %c0_173 = arith.constant 0 : index
    %c0_174 = arith.constant 0 : index
    %628 = vector.load %arg6[%c2_172, %c0_173, %c0_174] : memref<3x33x64xf32, #tpu.memory_space<vmem>>, vector<1x33x64xf32>
    %629 = vector.shape_cast %628 : vector<1x33x64xf32> to vector<33x64xf32>
    %630 = vector.extract_strided_slice %627 {offsets = [0, 0], sizes = [32, 32], strides = [1, 1]} : vector<168x32xf32> to vector<32x32xf32>
    %631 = vector.extract_strided_slice %627 {offsets = [32, 0], sizes = [32, 32], strides = [1, 1]} : vector<168x32xf32> to vector<32x32xf32>
    %632 = vector.extract_strided_slice %627 {offsets = [64, 0], sizes = [32, 32], strides = [1, 1]} : vector<168x32xf32> to vector<32x32xf32>
    %633 = vector.extract_strided_slice %627 {offsets = [96, 0], sizes = [64, 32], strides = [1, 1]} : vector<168x32xf32> to vector<64x32xf32>
    %634 = vector.extract_strided_slice %627 {offsets = [160, 0], sizes = [8, 32], strides = [1, 1]} : vector<168x32xf32> to vector<8x32xf32>
    %635 = vector.extract_strided_slice %634 {offsets = [0, 0], sizes = [1, 32], strides = [1, 1]} : vector<8x32xf32> to vector<1x32xf32>
    %636 = vector.extract_strided_slice %634 {offsets = [1, 0], sizes = [1, 32], strides = [1, 1]} : vector<8x32xf32> to vector<1x32xf32>
    %637 = vector.extract_strided_slice %634 {offsets = [2, 0], sizes = [1, 32], strides = [1, 1]} : vector<8x32xf32> to vector<1x32xf32>
    %638 = vector.extract_strided_slice %634 {offsets = [3, 0], sizes = [1, 32], strides = [1, 1]} : vector<8x32xf32> to vector<1x32xf32>
    %639 = vector.extract_strided_slice %634 {offsets = [4, 0], sizes = [1, 32], strides = [1, 1]} : vector<8x32xf32> to vector<1x32xf32>
    %640 = vector.extract_strided_slice %634 {offsets = [5, 0], sizes = [1, 32], strides = [1, 1]} : vector<8x32xf32> to vector<1x32xf32>
    %641 = vector.extract_strided_slice %634 {offsets = [6, 0], sizes = [1, 32], strides = [1, 1]} : vector<8x32xf32> to vector<1x32xf32>
    %642 = vector.extract_strided_slice %634 {offsets = [7, 0], sizes = [1, 32], strides = [1, 1]} : vector<8x32xf32> to vector<1x32xf32>
    %643 = vector.extract_strided_slice %629 {offsets = [0, 0], sizes = [32, 64], strides = [1, 1]} : vector<33x64xf32> to vector<32x64xf32>
    %644 = vector.extract_strided_slice %629 {offsets = [32, 0], sizes = [1, 64], strides = [1, 1]} : vector<33x64xf32> to vector<1x64xf32>
    %cst_175 = arith.constant dense<0.000000e+00> : vector<16x32xf32>
    %645 = tpu.matmul %625, %630, %cst_175 {dimension_numbers = #tpu.dot_dimension_numbers<[1], [0], [0], [1], [0, 0, 1, 1], [], []>} : vector<16x32xf32>, vector<32x32xf32>, vector<16x32xf32> -> vector<16x32xf32>
    %646 = vector.broadcast %635 : vector<1x32xf32> to vector<16x32xf32>
    %647 = arith.addf %645, %646 : vector<16x32xf32>
    %cst_176 = arith.constant dense<0.000000e+00> : vector<16x32xf32>
    %648 = tpu.matmul %625, %630, %cst_176 {dimension_numbers = #tpu.dot_dimension_numbers<[1], [0], [0], [1], [0, 0, 1, 1], [], []>} : vector<16x32xf32>, vector<32x32xf32>, vector<16x32xf32> -> vector<16x32xf32>
    %649 = vector.broadcast %635 : vector<1x32xf32> to vector<16x32xf32>
    %650 = arith.addf %648, %649 : vector<16x32xf32>
    %cst_177 = arith.constant dense<0.000000e+00> : vector<16x32xf32>
    %651 = tpu.matmul %378, %631, %cst_177 {dimension_numbers = #tpu.dot_dimension_numbers<[1], [0], [0], [1], [0, 0, 1, 1], [], []>} : vector<16x32xf32>, vector<32x32xf32>, vector<16x32xf32> -> vector<16x32xf32>
    %652 = vector.broadcast %636 : vector<1x32xf32> to vector<16x32xf32>
    %653 = arith.addf %651, %652 : vector<16x32xf32>
    %cst_178 = arith.constant 0.000000e+00 : f32
    %654 = vector.broadcast %cst_178 : f32 to vector<16x32xf32>
    %655 = vector.broadcast %71 : vector<1x32xf32> to vector<16x32xf32>
    %656 = arith.mulf %647, %655 : vector<16x32xf32>
    %cst_179 = arith.constant dense<0.000000e+00> : vector<16x16xf32>
    %657 = tpu.matmul %656, %650, %cst_179 {dimension_numbers = #tpu.dot_dimension_numbers<[1], [1], [0], [0], [0, 0, 1, 0], [], []>} : vector<16x32xf32>, vector<16x32xf32>, vector<16x16xf32> -> vector<16x16xf32>
    %cst_180 = arith.constant 0.353553385 : f32
    %658 = vector.broadcast %cst_180 : f32 to vector<16x16xf32>
    %659 = arith.mulf %657, %658 : vector<16x16xf32>
    %cst_181 = arith.constant -1.000000e+32 : f32
    %660 = vector.broadcast %cst_181 : f32 to vector<16x16xf32>
    %661 = arith.select %42, %659, %660 : vector<16x16xi1>, vector<16x16xf32>
    %cst_182 = arith.constant dense<0xFF800000> : vector<16xf32>
    %662 = vector.multi_reduction <maximumf>, %661, %cst_182 [1] : vector<16x16xf32> to vector<16xf32>
    %663 = vector.shape_cast %662 : vector<16xf32> to vector<16x1xf32>
    %664 = vector.broadcast %663 : vector<16x1xf32> to vector<16x16xf32>
    %665 = arith.subf %661, %664 : vector<16x16xf32>
    %666 = math.exp %665 : vector<16x16xf32>
    %cst_183 = arith.constant dense<0.000000e+00> : vector<16xf32>
    %667 = vector.multi_reduction <add>, %666, %cst_183 [1] : vector<16x16xf32> to vector<16xf32>
    %668 = vector.shape_cast %667 : vector<16xf32> to vector<16x1xf32>
    %669 = vector.broadcast %668 : vector<16x1xf32> to vector<16x16xf32>
    %670 = arith.divf %666, %669 : vector<16x16xf32>
    %671 = arith.mulf %670, %46 : vector<16x16xf32>
    %cst_184 = arith.constant dense<0.000000e+00> : vector<16x16xf32>
    %672 = tpu.matmul %671, %51, %cst_184 {dimension_numbers = #tpu.dot_dimension_numbers<[1], [0], [0], [1], [0, 0, 1, 1], [], []>} : vector<16x16xf32>, vector<16x16xf32>, vector<16x16xf32> -> vector<16x16xf32>
    %cst_185 = arith.constant dense<0.000000e+00> : vector<16xf32>
    %673 = vector.multi_reduction <add>, %671, %cst_185 [1] : vector<16x16xf32> to vector<16xf32>
    %674 = vector.shape_cast %673 : vector<16xf32> to vector<16x1xf32>
    %675 = vector.broadcast %674 : vector<16x1xf32> to vector<16x16xf32>
    %676 = arith.subf %675, %672 : vector<16x16xf32>
    %677 = arith.mulf %676, %48 : vector<16x16xf32>
    %cst_186 = arith.constant 0.000000e+00 : f32
    %678 = vector.broadcast %cst_186 : f32 to vector<16x16xf32>
    %679 = arith.maximumf %677, %678 : vector<16x16xf32>
    %680 = math.sqrt %679 : vector<16x16xf32>
    %c8 = arith.constant 8 : index
    %681 = memref.load %arg0[%c8] : memref<12xf32, #tpu.memory_space<smem>>
    %682 = vector.broadcast %681 : f32 to vector<16x16xf32>
    %683 = arith.mulf %680, %682 : vector<16x16xf32>
    %684 = math.exp %683 : vector<16x16xf32>
    %cst_187 = arith.constant 9.99999974E-6 : f32
    %cst_188 = arith.constant 1.000000e+05 : f32
    %685 = vector.broadcast %cst_187 : f32 to vector<16x16xf32>
    %686 = arith.maximumf %685, %684 : vector<16x16xf32>
    %687 = vector.broadcast %cst_188 : f32 to vector<16x16xf32>
    %688 = arith.minimumf %687, %686 : vector<16x16xf32>
    %689 = arith.mulf %659, %688 : vector<16x16xf32>
    %cst_189 = arith.constant -1.000000e+32 : f32
    %690 = vector.broadcast %cst_189 : f32 to vector<16x16xf32>
    %691 = arith.select %42, %689, %690 : vector<16x16xi1>, vector<16x16xf32>
    %cst_190 = arith.constant dense<0xFF800000> : vector<16xf32>
    %692 = vector.multi_reduction <maximumf>, %691, %cst_190 [1] : vector<16x16xf32> to vector<16xf32>
    %693 = vector.shape_cast %692 : vector<16xf32> to vector<16x1xf32>
    %694 = vector.broadcast %693 : vector<16x1xf32> to vector<16x16xf32>
    %695 = arith.subf %691, %694 : vector<16x16xf32>
    %696 = math.exp %695 : vector<16x16xf32>
    %cst_191 = arith.constant dense<0.000000e+00> : vector<16xf32>
    %697 = vector.multi_reduction <add>, %696, %cst_191 [1] : vector<16x16xf32> to vector<16xf32>
    %698 = vector.shape_cast %697 : vector<16xf32> to vector<16x1xf32>
    %699 = vector.broadcast %698 : vector<16x1xf32> to vector<16x16xf32>
    %700 = arith.divf %696, %699 : vector<16x16xf32>
    %701 = vector.broadcast %63 : vector<16x1xf32> to vector<16x16xf32>
    %702 = arith.mulf %700, %701 : vector<16x16xf32>
    %703 = vector.broadcast %71 : vector<1x32xf32> to vector<16x32xf32>
    %704 = arith.mulf %653, %703 : vector<16x32xf32>
    %cst_192 = arith.constant dense<0.000000e+00> : vector<16x32xf32>
    %705 = tpu.matmul %702, %704, %cst_192 {dimension_numbers = #tpu.dot_dimension_numbers<[1], [0], [0], [1], [0, 0, 1, 1], [], []>} : vector<16x16xf32>, vector<16x32xf32>, vector<16x32xf32> -> vector<16x32xf32>
    %706 = arith.addf %654, %705 : vector<16x32xf32>
    %707 = vector.broadcast %78 : vector<1x32xf32> to vector<16x32xf32>
    %708 = arith.mulf %647, %707 : vector<16x32xf32>
    %cst_193 = arith.constant dense<0.000000e+00> : vector<16x16xf32>
    %709 = tpu.matmul %708, %650, %cst_193 {dimension_numbers = #tpu.dot_dimension_numbers<[1], [1], [0], [0], [0, 0, 1, 0], [], []>} : vector<16x32xf32>, vector<16x32xf32>, vector<16x16xf32> -> vector<16x16xf32>
    %cst_194 = arith.constant 0.353553385 : f32
    %710 = vector.broadcast %cst_194 : f32 to vector<16x16xf32>
    %711 = arith.mulf %709, %710 : vector<16x16xf32>
    %cst_195 = arith.constant -1.000000e+32 : f32
    %712 = vector.broadcast %cst_195 : f32 to vector<16x16xf32>
    %713 = arith.select %42, %711, %712 : vector<16x16xi1>, vector<16x16xf32>
    %cst_196 = arith.constant dense<0xFF800000> : vector<16xf32>
    %714 = vector.multi_reduction <maximumf>, %713, %cst_196 [1] : vector<16x16xf32> to vector<16xf32>
    %715 = vector.shape_cast %714 : vector<16xf32> to vector<16x1xf32>
    %716 = vector.broadcast %715 : vector<16x1xf32> to vector<16x16xf32>
    %717 = arith.subf %713, %716 : vector<16x16xf32>
    %718 = math.exp %717 : vector<16x16xf32>
    %cst_197 = arith.constant dense<0.000000e+00> : vector<16xf32>
    %719 = vector.multi_reduction <add>, %718, %cst_197 [1] : vector<16x16xf32> to vector<16xf32>
    %720 = vector.shape_cast %719 : vector<16xf32> to vector<16x1xf32>
    %721 = vector.broadcast %720 : vector<16x1xf32> to vector<16x16xf32>
    %722 = arith.divf %718, %721 : vector<16x16xf32>
    %723 = arith.mulf %722, %46 : vector<16x16xf32>
    %cst_198 = arith.constant dense<0.000000e+00> : vector<16x16xf32>
    %724 = tpu.matmul %723, %51, %cst_198 {dimension_numbers = #tpu.dot_dimension_numbers<[1], [0], [0], [1], [0, 0, 1, 1], [], []>} : vector<16x16xf32>, vector<16x16xf32>, vector<16x16xf32> -> vector<16x16xf32>
    %cst_199 = arith.constant dense<0.000000e+00> : vector<16xf32>
    %725 = vector.multi_reduction <add>, %723, %cst_199 [1] : vector<16x16xf32> to vector<16xf32>
    %726 = vector.shape_cast %725 : vector<16xf32> to vector<16x1xf32>
    %727 = vector.broadcast %726 : vector<16x1xf32> to vector<16x16xf32>
    %728 = arith.subf %727, %724 : vector<16x16xf32>
    %729 = arith.mulf %728, %48 : vector<16x16xf32>
    %cst_200 = arith.constant 0.000000e+00 : f32
    %730 = vector.broadcast %cst_200 : f32 to vector<16x16xf32>
    %731 = arith.maximumf %729, %730 : vector<16x16xf32>
    %732 = math.sqrt %731 : vector<16x16xf32>
    %c9 = arith.constant 9 : index
    %733 = memref.load %arg0[%c9] : memref<12xf32, #tpu.memory_space<smem>>
    %734 = vector.broadcast %733 : f32 to vector<16x16xf32>
    %735 = arith.mulf %732, %734 : vector<16x16xf32>
    %736 = math.exp %735 : vector<16x16xf32>
    %cst_201 = arith.constant 9.99999974E-6 : f32
    %cst_202 = arith.constant 1.000000e+05 : f32
    %737 = vector.broadcast %cst_201 : f32 to vector<16x16xf32>
    %738 = arith.maximumf %737, %736 : vector<16x16xf32>
    %739 = vector.broadcast %cst_202 : f32 to vector<16x16xf32>
    %740 = arith.minimumf %739, %738 : vector<16x16xf32>
    %741 = arith.mulf %711, %740 : vector<16x16xf32>
    %cst_203 = arith.constant -1.000000e+32 : f32
    %742 = vector.broadcast %cst_203 : f32 to vector<16x16xf32>
    %743 = arith.select %42, %741, %742 : vector<16x16xi1>, vector<16x16xf32>
    %cst_204 = arith.constant dense<0xFF800000> : vector<16xf32>
    %744 = vector.multi_reduction <maximumf>, %743, %cst_204 [1] : vector<16x16xf32> to vector<16xf32>
    %745 = vector.shape_cast %744 : vector<16xf32> to vector<16x1xf32>
    %746 = vector.broadcast %745 : vector<16x1xf32> to vector<16x16xf32>
    %747 = arith.subf %743, %746 : vector<16x16xf32>
    %748 = math.exp %747 : vector<16x16xf32>
    %cst_205 = arith.constant dense<0.000000e+00> : vector<16xf32>
    %749 = vector.multi_reduction <add>, %748, %cst_205 [1] : vector<16x16xf32> to vector<16xf32>
    %750 = vector.shape_cast %749 : vector<16xf32> to vector<16x1xf32>
    %751 = vector.broadcast %750 : vector<16x1xf32> to vector<16x16xf32>
    %752 = arith.divf %748, %751 : vector<16x16xf32>
    %753 = vector.broadcast %63 : vector<16x1xf32> to vector<16x16xf32>
    %754 = arith.mulf %752, %753 : vector<16x16xf32>
    %755 = vector.broadcast %78 : vector<1x32xf32> to vector<16x32xf32>
    %756 = arith.mulf %653, %755 : vector<16x32xf32>
    %cst_206 = arith.constant dense<0.000000e+00> : vector<16x32xf32>
    %757 = tpu.matmul %754, %756, %cst_206 {dimension_numbers = #tpu.dot_dimension_numbers<[1], [0], [0], [1], [0, 0, 1, 1], [], []>} : vector<16x16xf32>, vector<16x32xf32>, vector<16x32xf32> -> vector<16x32xf32>
    %758 = arith.addf %706, %757 : vector<16x32xf32>
    %759 = vector.broadcast %85 : vector<1x32xf32> to vector<16x32xf32>
    %760 = arith.mulf %647, %759 : vector<16x32xf32>
    %cst_207 = arith.constant dense<0.000000e+00> : vector<16x16xf32>
    %761 = tpu.matmul %760, %650, %cst_207 {dimension_numbers = #tpu.dot_dimension_numbers<[1], [1], [0], [0], [0, 0, 1, 0], [], []>} : vector<16x32xf32>, vector<16x32xf32>, vector<16x16xf32> -> vector<16x16xf32>
    %cst_208 = arith.constant 0.353553385 : f32
    %762 = vector.broadcast %cst_208 : f32 to vector<16x16xf32>
    %763 = arith.mulf %761, %762 : vector<16x16xf32>
    %cst_209 = arith.constant -1.000000e+32 : f32
    %764 = vector.broadcast %cst_209 : f32 to vector<16x16xf32>
    %765 = arith.select %42, %763, %764 : vector<16x16xi1>, vector<16x16xf32>
    %cst_210 = arith.constant dense<0xFF800000> : vector<16xf32>
    %766 = vector.multi_reduction <maximumf>, %765, %cst_210 [1] : vector<16x16xf32> to vector<16xf32>
    %767 = vector.shape_cast %766 : vector<16xf32> to vector<16x1xf32>
    %768 = vector.broadcast %767 : vector<16x1xf32> to vector<16x16xf32>
    %769 = arith.subf %765, %768 : vector<16x16xf32>
    %770 = math.exp %769 : vector<16x16xf32>
    %cst_211 = arith.constant dense<0.000000e+00> : vector<16xf32>
    %771 = vector.multi_reduction <add>, %770, %cst_211 [1] : vector<16x16xf32> to vector<16xf32>
    %772 = vector.shape_cast %771 : vector<16xf32> to vector<16x1xf32>
    %773 = vector.broadcast %772 : vector<16x1xf32> to vector<16x16xf32>
    %774 = arith.divf %770, %773 : vector<16x16xf32>
    %775 = arith.mulf %774, %46 : vector<16x16xf32>
    %cst_212 = arith.constant dense<0.000000e+00> : vector<16x16xf32>
    %776 = tpu.matmul %775, %51, %cst_212 {dimension_numbers = #tpu.dot_dimension_numbers<[1], [0], [0], [1], [0, 0, 1, 1], [], []>} : vector<16x16xf32>, vector<16x16xf32>, vector<16x16xf32> -> vector<16x16xf32>
    %cst_213 = arith.constant dense<0.000000e+00> : vector<16xf32>
    %777 = vector.multi_reduction <add>, %775, %cst_213 [1] : vector<16x16xf32> to vector<16xf32>
    %778 = vector.shape_cast %777 : vector<16xf32> to vector<16x1xf32>
    %779 = vector.broadcast %778 : vector<16x1xf32> to vector<16x16xf32>
    %780 = arith.subf %779, %776 : vector<16x16xf32>
    %781 = arith.mulf %780, %48 : vector<16x16xf32>
    %cst_214 = arith.constant 0.000000e+00 : f32
    %782 = vector.broadcast %cst_214 : f32 to vector<16x16xf32>
    %783 = arith.maximumf %781, %782 : vector<16x16xf32>
    %784 = math.sqrt %783 : vector<16x16xf32>
    %c10 = arith.constant 10 : index
    %785 = memref.load %arg0[%c10] : memref<12xf32, #tpu.memory_space<smem>>
    %786 = vector.broadcast %785 : f32 to vector<16x16xf32>
    %787 = arith.mulf %784, %786 : vector<16x16xf32>
    %788 = math.exp %787 : vector<16x16xf32>
    %cst_215 = arith.constant 9.99999974E-6 : f32
    %cst_216 = arith.constant 1.000000e+05 : f32
    %789 = vector.broadcast %cst_215 : f32 to vector<16x16xf32>
    %790 = arith.maximumf %789, %788 : vector<16x16xf32>
    %791 = vector.broadcast %cst_216 : f32 to vector<16x16xf32>
    %792 = arith.minimumf %791, %790 : vector<16x16xf32>
    %793 = arith.mulf %763, %792 : vector<16x16xf32>
    %cst_217 = arith.constant -1.000000e+32 : f32
    %794 = vector.broadcast %cst_217 : f32 to vector<16x16xf32>
    %795 = arith.select %42, %793, %794 : vector<16x16xi1>, vector<16x16xf32>
    %cst_218 = arith.constant dense<0xFF800000> : vector<16xf32>
    %796 = vector.multi_reduction <maximumf>, %795, %cst_218 [1] : vector<16x16xf32> to vector<16xf32>
    %797 = vector.shape_cast %796 : vector<16xf32> to vector<16x1xf32>
    %798 = vector.broadcast %797 : vector<16x1xf32> to vector<16x16xf32>
    %799 = arith.subf %795, %798 : vector<16x16xf32>
    %800 = math.exp %799 : vector<16x16xf32>
    %cst_219 = arith.constant dense<0.000000e+00> : vector<16xf32>
    %801 = vector.multi_reduction <add>, %800, %cst_219 [1] : vector<16x16xf32> to vector<16xf32>
    %802 = vector.shape_cast %801 : vector<16xf32> to vector<16x1xf32>
    %803 = vector.broadcast %802 : vector<16x1xf32> to vector<16x16xf32>
    %804 = arith.divf %800, %803 : vector<16x16xf32>
    %805 = vector.broadcast %63 : vector<16x1xf32> to vector<16x16xf32>
    %806 = arith.mulf %804, %805 : vector<16x16xf32>
    %807 = vector.broadcast %85 : vector<1x32xf32> to vector<16x32xf32>
    %808 = arith.mulf %653, %807 : vector<16x32xf32>
    %cst_220 = arith.constant dense<0.000000e+00> : vector<16x32xf32>
    %809 = tpu.matmul %806, %808, %cst_220 {dimension_numbers = #tpu.dot_dimension_numbers<[1], [0], [0], [1], [0, 0, 1, 1], [], []>} : vector<16x16xf32>, vector<16x32xf32>, vector<16x32xf32> -> vector<16x32xf32>
    %810 = arith.addf %758, %809 : vector<16x32xf32>
    %811 = vector.broadcast %92 : vector<1x32xf32> to vector<16x32xf32>
    %812 = arith.mulf %647, %811 : vector<16x32xf32>
    %cst_221 = arith.constant dense<0.000000e+00> : vector<16x16xf32>
    %813 = tpu.matmul %812, %650, %cst_221 {dimension_numbers = #tpu.dot_dimension_numbers<[1], [1], [0], [0], [0, 0, 1, 0], [], []>} : vector<16x32xf32>, vector<16x32xf32>, vector<16x16xf32> -> vector<16x16xf32>
    %cst_222 = arith.constant 0.353553385 : f32
    %814 = vector.broadcast %cst_222 : f32 to vector<16x16xf32>
    %815 = arith.mulf %813, %814 : vector<16x16xf32>
    %cst_223 = arith.constant -1.000000e+32 : f32
    %816 = vector.broadcast %cst_223 : f32 to vector<16x16xf32>
    %817 = arith.select %42, %815, %816 : vector<16x16xi1>, vector<16x16xf32>
    %cst_224 = arith.constant dense<0xFF800000> : vector<16xf32>
    %818 = vector.multi_reduction <maximumf>, %817, %cst_224 [1] : vector<16x16xf32> to vector<16xf32>
    %819 = vector.shape_cast %818 : vector<16xf32> to vector<16x1xf32>
    %820 = vector.broadcast %819 : vector<16x1xf32> to vector<16x16xf32>
    %821 = arith.subf %817, %820 : vector<16x16xf32>
    %822 = math.exp %821 : vector<16x16xf32>
    %cst_225 = arith.constant dense<0.000000e+00> : vector<16xf32>
    %823 = vector.multi_reduction <add>, %822, %cst_225 [1] : vector<16x16xf32> to vector<16xf32>
    %824 = vector.shape_cast %823 : vector<16xf32> to vector<16x1xf32>
    %825 = vector.broadcast %824 : vector<16x1xf32> to vector<16x16xf32>
    %826 = arith.divf %822, %825 : vector<16x16xf32>
    %827 = arith.mulf %826, %46 : vector<16x16xf32>
    %cst_226 = arith.constant dense<0.000000e+00> : vector<16x16xf32>
    %828 = tpu.matmul %827, %51, %cst_226 {dimension_numbers = #tpu.dot_dimension_numbers<[1], [0], [0], [1], [0, 0, 1, 1], [], []>} : vector<16x16xf32>, vector<16x16xf32>, vector<16x16xf32> -> vector<16x16xf32>
    %cst_227 = arith.constant dense<0.000000e+00> : vector<16xf32>
    %829 = vector.multi_reduction <add>, %827, %cst_227 [1] : vector<16x16xf32> to vector<16xf32>
    %830 = vector.shape_cast %829 : vector<16xf32> to vector<16x1xf32>
    %831 = vector.broadcast %830 : vector<16x1xf32> to vector<16x16xf32>
    %832 = arith.subf %831, %828 : vector<16x16xf32>
    %833 = arith.mulf %832, %48 : vector<16x16xf32>
    %cst_228 = arith.constant 0.000000e+00 : f32
    %834 = vector.broadcast %cst_228 : f32 to vector<16x16xf32>
    %835 = arith.maximumf %833, %834 : vector<16x16xf32>
    %836 = math.sqrt %835 : vector<16x16xf32>
    %c11 = arith.constant 11 : index
    %837 = memref.load %arg0[%c11] : memref<12xf32, #tpu.memory_space<smem>>
    %838 = vector.broadcast %837 : f32 to vector<16x16xf32>
    %839 = arith.mulf %836, %838 : vector<16x16xf32>
    %840 = math.exp %839 : vector<16x16xf32>
    %cst_229 = arith.constant 9.99999974E-6 : f32
    %cst_230 = arith.constant 1.000000e+05 : f32
    %841 = vector.broadcast %cst_229 : f32 to vector<16x16xf32>
    %842 = arith.maximumf %841, %840 : vector<16x16xf32>
    %843 = vector.broadcast %cst_230 : f32 to vector<16x16xf32>
    %844 = arith.minimumf %843, %842 : vector<16x16xf32>
    %845 = arith.mulf %815, %844 : vector<16x16xf32>
    %cst_231 = arith.constant -1.000000e+32 : f32
    %846 = vector.broadcast %cst_231 : f32 to vector<16x16xf32>
    %847 = arith.select %42, %845, %846 : vector<16x16xi1>, vector<16x16xf32>
    %cst_232 = arith.constant dense<0xFF800000> : vector<16xf32>
    %848 = vector.multi_reduction <maximumf>, %847, %cst_232 [1] : vector<16x16xf32> to vector<16xf32>
    %849 = vector.shape_cast %848 : vector<16xf32> to vector<16x1xf32>
    %850 = vector.broadcast %849 : vector<16x1xf32> to vector<16x16xf32>
    %851 = arith.subf %847, %850 : vector<16x16xf32>
    %852 = math.exp %851 : vector<16x16xf32>
    %cst_233 = arith.constant dense<0.000000e+00> : vector<16xf32>
    %853 = vector.multi_reduction <add>, %852, %cst_233 [1] : vector<16x16xf32> to vector<16xf32>
    %854 = vector.shape_cast %853 : vector<16xf32> to vector<16x1xf32>
    %855 = vector.broadcast %854 : vector<16x1xf32> to vector<16x16xf32>
    %856 = arith.divf %852, %855 : vector<16x16xf32>
    %857 = vector.broadcast %63 : vector<16x1xf32> to vector<16x16xf32>
    %858 = arith.mulf %856, %857 : vector<16x16xf32>
    %859 = vector.broadcast %92 : vector<1x32xf32> to vector<16x32xf32>
    %860 = arith.mulf %653, %859 : vector<16x32xf32>
    %cst_234 = arith.constant dense<0.000000e+00> : vector<16x32xf32>
    %861 = tpu.matmul %858, %860, %cst_234 {dimension_numbers = #tpu.dot_dimension_numbers<[1], [0], [0], [1], [0, 0, 1, 1], [], []>} : vector<16x16xf32>, vector<16x32xf32>, vector<16x32xf32> -> vector<16x32xf32>
    %862 = arith.addf %810, %861 : vector<16x32xf32>
    %cst_235 = arith.constant dense<0.000000e+00> : vector<16x32xf32>
    %863 = tpu.matmul %862, %632, %cst_235 {dimension_numbers = #tpu.dot_dimension_numbers<[1], [0], [0], [1], [0, 0, 1, 1], [], []>} : vector<16x32xf32>, vector<32x32xf32>, vector<16x32xf32> -> vector<16x32xf32>
    %864 = vector.broadcast %637 : vector<1x32xf32> to vector<16x32xf32>
    %865 = arith.addf %863, %864 : vector<16x32xf32>
    %866 = arith.addf %625, %865 : vector<16x32xf32>
    %cst_236 = arith.constant dense<0.000000e+00> : vector<16xf32>
    %867 = vector.multi_reduction <add>, %866, %cst_236 [1] : vector<16x32xf32> to vector<16xf32>
    %868 = vector.shape_cast %867 : vector<16xf32> to vector<16x1xf32>
    %cst_237 = arith.constant 3.200000e+01 : f32
    %869 = vector.broadcast %cst_237 : f32 to vector<16x1xf32>
    %870 = arith.divf %868, %869 : vector<16x1xf32>
    %871 = vector.broadcast %870 : vector<16x1xf32> to vector<16x32xf32>
    %872 = arith.subf %866, %871 : vector<16x32xf32>
    %873 = arith.mulf %872, %872 : vector<16x32xf32>
    %cst_238 = arith.constant dense<0.000000e+00> : vector<16xf32>
    %874 = vector.multi_reduction <add>, %873, %cst_238 [1] : vector<16x32xf32> to vector<16xf32>
    %875 = vector.shape_cast %874 : vector<16xf32> to vector<16x1xf32>
    %cst_239 = arith.constant 3.200000e+01 : f32
    %876 = vector.broadcast %cst_239 : f32 to vector<16x1xf32>
    %877 = arith.divf %875, %876 : vector<16x1xf32>
    %878 = vector.broadcast %870 : vector<16x1xf32> to vector<16x32xf32>
    %879 = arith.subf %866, %878 : vector<16x32xf32>
    %cst_240 = arith.constant 9.99999974E-6 : f32
    %880 = vector.broadcast %cst_240 : f32 to vector<16x1xf32>
    %881 = arith.addf %877, %880 : vector<16x1xf32>
    %882 = math.rsqrt %881 : vector<16x1xf32>
    %883 = vector.broadcast %882 : vector<16x1xf32> to vector<16x32xf32>
    %884 = arith.mulf %879, %883 : vector<16x32xf32>
    %885 = vector.broadcast %638 : vector<1x32xf32> to vector<16x32xf32>
    %886 = arith.mulf %884, %885 : vector<16x32xf32>
    %887 = vector.broadcast %639 : vector<1x32xf32> to vector<16x32xf32>
    %888 = arith.addf %886, %887 : vector<16x32xf32>
    %cst_241 = arith.constant dense<0.000000e+00> : vector<16x64xf32>
    %889 = tpu.matmul %888, %643, %cst_241 {dimension_numbers = #tpu.dot_dimension_numbers<[1], [0], [0], [1], [0, 0, 1, 1], [], []>} : vector<16x32xf32>, vector<32x64xf32>, vector<16x64xf32> -> vector<16x64xf32>
    %890 = vector.broadcast %644 : vector<1x64xf32> to vector<16x64xf32>
    %891 = arith.addf %889, %890 : vector<16x64xf32>
    %cst_242 = arith.constant 0.000000e+00 : f32
    %892 = vector.broadcast %cst_242 : f32 to vector<16x64xf32>
    %893 = arith.maximumf %891, %892 : vector<16x64xf32>
    %cst_243 = arith.constant dense<0.000000e+00> : vector<16x32xf32>
    %894 = tpu.matmul %893, %633, %cst_243 {dimension_numbers = #tpu.dot_dimension_numbers<[1], [0], [0], [1], [0, 0, 1, 1], [], []>} : vector<16x64xf32>, vector<64x32xf32>, vector<16x32xf32> -> vector<16x32xf32>
    %895 = vector.broadcast %640 : vector<1x32xf32> to vector<16x32xf32>
    %896 = arith.addf %894, %895 : vector<16x32xf32>
    %897 = arith.addf %888, %896 : vector<16x32xf32>
    %cst_244 = arith.constant dense<0.000000e+00> : vector<16xf32>
    %898 = vector.multi_reduction <add>, %897, %cst_244 [1] : vector<16x32xf32> to vector<16xf32>
    %899 = vector.shape_cast %898 : vector<16xf32> to vector<16x1xf32>
    %cst_245 = arith.constant 3.200000e+01 : f32
    %900 = vector.broadcast %cst_245 : f32 to vector<16x1xf32>
    %901 = arith.divf %899, %900 : vector<16x1xf32>
    %902 = vector.broadcast %901 : vector<16x1xf32> to vector<16x32xf32>
    %903 = arith.subf %897, %902 : vector<16x32xf32>
    %904 = arith.mulf %903, %903 : vector<16x32xf32>
    %cst_246 = arith.constant dense<0.000000e+00> : vector<16xf32>
    %905 = vector.multi_reduction <add>, %904, %cst_246 [1] : vector<16x32xf32> to vector<16xf32>
    %906 = vector.shape_cast %905 : vector<16xf32> to vector<16x1xf32>
    %cst_247 = arith.constant 3.200000e+01 : f32
    %907 = vector.broadcast %cst_247 : f32 to vector<16x1xf32>
    %908 = arith.divf %906, %907 : vector<16x1xf32>
    %909 = vector.broadcast %901 : vector<16x1xf32> to vector<16x32xf32>
    %910 = arith.subf %897, %909 : vector<16x32xf32>
    %cst_248 = arith.constant 9.99999974E-6 : f32
    %911 = vector.broadcast %cst_248 : f32 to vector<16x1xf32>
    %912 = arith.addf %908, %911 : vector<16x1xf32>
    %913 = math.rsqrt %912 : vector<16x1xf32>
    %914 = vector.broadcast %913 : vector<16x1xf32> to vector<16x32xf32>
    %915 = arith.mulf %910, %914 : vector<16x32xf32>
    %916 = vector.broadcast %641 : vector<1x32xf32> to vector<16x32xf32>
    %917 = arith.mulf %915, %916 : vector<16x32xf32>
    %918 = vector.broadcast %642 : vector<1x32xf32> to vector<16x32xf32>
    %919 = arith.addf %917, %918 : vector<16x32xf32>
    %c0_249 = arith.constant 0 : index
    %c0_250 = arith.constant 0 : index
    %920 = vector.load %arg7[%c0_249, %c0_250] : memref<65x64xf32, #tpu.memory_space<vmem>>, vector<32x64xf32>
    %c32 = arith.constant 32 : index
    %c0_251 = arith.constant 0 : index
    %921 = vector.load %arg7[%c32, %c0_251] : memref<65x64xf32, #tpu.memory_space<vmem>>, vector<32x64xf32>
    %c64 = arith.constant 64 : index
    %c0_252 = arith.constant 0 : index
    %922 = vector.load %arg7[%c64, %c0_252] : memref<65x64xf32, #tpu.memory_space<vmem>>, vector<1x64xf32>
    %cst_253 = arith.constant dense<0.000000e+00> : vector<16x64xf32>
    %923 = tpu.matmul %919, %920, %cst_253 {dimension_numbers = #tpu.dot_dimension_numbers<[1], [0], [0], [1], [0, 0, 1, 1], [], []>} : vector<16x32xf32>, vector<32x64xf32>, vector<16x64xf32> -> vector<16x64xf32>
    %cst_254 = arith.constant dense<0.000000e+00> : vector<16x64xf32>
    %924 = tpu.matmul %8, %921, %cst_254 {dimension_numbers = #tpu.dot_dimension_numbers<[1], [0], [0], [1], [0, 0, 1, 1], [], []>} : vector<16x32xf32>, vector<32x64xf32>, vector<16x64xf32> -> vector<16x64xf32>
    %925 = arith.addf %923, %924 : vector<16x64xf32>
    %926 = vector.broadcast %922 : vector<1x64xf32> to vector<16x64xf32>
    %927 = arith.addf %925, %926 : vector<16x64xf32>
    %cst_255 = arith.constant 0.000000e+00 : f32
    %928 = vector.broadcast %cst_255 : f32 to vector<16x64xf32>
    %929 = arith.maximumf %927, %928 : vector<16x64xf32>
    %c0_256 = arith.constant 0 : index
    %c0_257 = arith.constant 0 : index
    %930 = vector.load %arg8[%c0_256, %c0_257] : memref<65x1024xf32, #tpu.memory_space<vmem>>, vector<64x1024xf32>
    %c64_258 = arith.constant 64 : index
    %c0_259 = arith.constant 0 : index
    %931 = vector.load %arg8[%c64_258, %c0_259] : memref<65x1024xf32, #tpu.memory_space<vmem>>, vector<1x1024xf32>
    %cst_260 = arith.constant dense<0.000000e+00> : vector<16x1024xf32>
    %932 = tpu.matmul %929, %930, %cst_260 {dimension_numbers = #tpu.dot_dimension_numbers<[1], [0], [0], [1], [0, 0, 1, 1], [], []>} : vector<16x64xf32>, vector<64x1024xf32>, vector<16x1024xf32> -> vector<16x1024xf32>
    %933 = vector.broadcast %931 : vector<1x1024xf32> to vector<16x1024xf32>
    %934 = arith.addf %932, %933 : vector<16x1024xf32>
    %cst_261 = arith.constant 0.000000e+00 : f32
    %935 = vector.broadcast %cst_261 : f32 to vector<16x1024xf32>
    %936 = arith.maximumf %934, %935 : vector<16x1024xf32>
    %c0_262 = arith.constant 0 : index
    %c0_263 = arith.constant 0 : index
    %937 = vector.load %arg9[%c0_262, %c0_263] : memref<1025x16xf32, #tpu.memory_space<vmem>>, vector<1024x16xf32>
    %c1024 = arith.constant 1024 : index
    %c0_264 = arith.constant 0 : index
    %938 = vector.load %arg9[%c1024, %c0_264] : memref<1025x16xf32, #tpu.memory_space<vmem>>, vector<1x16xf32>
    %cst_265 = arith.constant dense<0.000000e+00> : vector<16x16xf32>
    %939 = tpu.matmul %936, %937, %cst_265 {dimension_numbers = #tpu.dot_dimension_numbers<[1], [0], [0], [1], [0, 0, 1, 1], [], []>} : vector<16x1024xf32>, vector<1024x16xf32>, vector<16x16xf32> -> vector<16x16xf32>
    %940 = vector.broadcast %938 : vector<1x16xf32> to vector<16x16xf32>
    %941 = arith.addf %939, %940 : vector<16x16xf32>
    %c0_266 = arith.constant 0 : index
    %c0_267 = arith.constant 0 : index
    %942 = vector.load %arg10[%c0_266, %c0_267] : memref<16x16xf32, #tpu.memory_space<vmem>>, vector<16x16xf32>
    tpu.vector_store %arg10[%c0_266, %c0_267], %941 {strides = array<i32>} : memref<16x16xf32, #tpu.memory_space<vmem>>, vector<16x16xf32>,
    return
  }
}

</mosaic_0001>

<bundles_post_ra>
// kernel: vakt_forward.1
= control target key start
LH: loop header
LB: loop body
LE: loop exit
PB: predicated region body
PF: predicated region fallthrough
CT: control target
= control target key end

     0   :  { %15 = vsyncpa [#allocation4], 0  ;;  %s7468_s0 = inlined_call_operand.vmem [shape: f32[12], index: 0, kind: input, shape index: {}]   ;;  %s7469_s1 = inlined_call_operand.vmem [shape: s32[16,1], index: 1, kind: input, shape index: {}]   ;;  %s7470_s2 = inlined_call_operand.vmem [shape: s32[16,1], index: 2, kind: input, shape index: {}]   ;;  %s7471_s3 = inlined_call_operand.vmem [shape: f32[32,32], index: 3, kind: input, shape index: {}]   ;;  %s7472_s4 = inlined_call_operand.vmem [shape: f32[2,32], index: 4, kind: input, shape index: {}]   ;;  %s7473_s5 = inlined_call_operand.vmem [shape: f32[3,168,32], index: 5, kind: input, shape index: {}]   ;;  %s7474_s6 = inlined_call_operand.vmem [shape: f32[3,33,64], index: 6, kind: input, shape index: {}]   ;;  %s7475_s7 = inlined_call_operand.vmem [shape: f32[65,64], index: 7, kind: input, shape index: {}]   ;;  %s7476_s8 = inlined_call_operand.vmem [shape: f32[65,1024], index: 8, kind: input, shape index: {}]   ;;  %s7477_s9 = inlined_call_operand.vmem [shape: f32[1025,16], index: 9, kind: input, shape index: {}]   ;;  %s7478_s10 = inlined_call_operand.hbm [shape: f32[16,16], index: 10, kind: output, shape index: {}]  }
   0x1   :  { %16 = vsyncpa [#allocation3], 0  ;;  %s22_s15 = sshll.u32 %s7468_s0, 4  ;;  %s5238_s16 = smov [#allocation2]   ;;  %s23_s15 = int_to_ptr.vmem [resolvable:$true] %s22_s15 }
   0x2   :  { %25 = dma.vmem_to_smem %s23_s15, 16, %s5238_s16, [#allocation4]  }
   0x3   :  { %5234 = dma.done.wait [#allocation4], 16  }
   0x4   :  { %5235 = vsyncadd [#allocation4], 4294967280 }
   0x5   :  { %48 = sfence }
   0x6   :  { %v49_v0 = vld [vmem:[%s7469_s1] sm:$0xff]  ;;  %v5239_v1 = vmov 0   ;;  %v70_v2 = vld [vmem:[%s7471_s3 + $0x18] sm:$0xff]  ;;  %v69_v3 = vld [vmem:[%s7471_s3 + $0x10] sm:$0xff]  ;;  %v53_v19 = vlaneseq  ;;  %vm71_vm0 = vcmask 261120   ;;  %v7482_v22 = vmov 0.0  }
   0x7   :  { %4875 = vset.pattern.permute.xlu0 %v5239_v1  ;;  %4876 = vset.pattern.permute.xlu1 %v5239_v1  ;;  %v68_v4 = vld [vmem:[%s7471_s3 + $0x8] sm:$0xff]  ;;  %v51_v6 = vld [vmem:[%s7470_s2] sm:$0xff]  ;;  %v218_v26 = vld [vmem:[%s7473_s5 + $0x18] sm:$0xff]  ;;  %v7484_v54 = vmov 1.0   ;;  %vm365_vm15 = vcmask 130048   ;;  %s481_s29 = sld [smem:[#allocation2]] }
   0x8   :  { %56 = vperm.xlu0 %4875, %v49_v0   ;;  %90 = vmatpush.msra.mxu0 %v70_v2  ;;  %v50_v5 = vld [vmem:[%s7469_s1 + $0x8] sm:$0xff]  ;;  %v101_v7 = vsub.s32 %v51_v6, %v49_v0  ;;  %v67_v14 = vld [vmem:[%s7471_s3] sm:$0xff]  ;;  %v5328_v20 = vand.u32 127, %v53_v19  ;;  %v217_v27 = vld [vmem:[%s7473_s5 + $0x10] sm:$0xff]  ;;  %v5388_v50 = vshrl.u32 %v53_v19, 7  ;;  %s5684_s30 = sld [smem:[#allocation2 + $0x1]] }
   0x9   :  { %4863 = vmatpush.msra.mxu1 %v70_v2  ;;  %4877 = vset.pattern.permute.xlu2 %v5239_v1  ;;  %v52_v11 = vld [vmem:[%s7470_s2 + $0x8] sm:$0xff]  ;;  %v222_v28 = vld [vmem:[%s7473_s5 + $0x38] sm:$0xff]  ;;  %v221_v30 = vld [vmem:[%s7473_s5 + $0x30] sm:$0xff]  ;;  %s5724_s11 = sld [smem:[#allocation2 + $0x2]]  ;;  %s5245_s2 = smov 8  }
   0xa   :  { %91 = vmatpush.msra.mxu0 %v69_v3  ;;  %v103_v8 = vcvt.s32.f32 %v101_v7  ;;  %v102_v12 = vsub.s32 %v52_v11, %v50_v5  ;;  %289 = vmatpush.msra.mxu2 %v218_v26  ;;  %v216_v29 = vld [vmem:[%s7473_s5 + $0x8] sm:$0xff]  ;;  %v215_v31 = vld [vmem:[%s7473_s5] sm:$0xff]  ;;  %v5391_v51 = vadd.s32 8, %v5388_v50  ;;  %vm5401_vm4 = vcmp.le.s32.totalorder %v5388_v50, %v5328_v20  ;;  %s5753_s1 = sld [smem:[#allocation2 + $0x3]] }
   0xb   :  { %4864 = vmatpush.msra.mxu1 %v69_v3  ;;  %313 = vmatpush.msra.mxu3 %v222_v28  ;;  %v220_v32 = vld [vmem:[%s7473_s5 + $0x28] sm:$0xff]  ;;  %v219_v33 = vld [vmem:[%s7473_s5 + $0x20] sm:$0xff]  ;;  %vm200_vm5 = vcmp.ge.s32.totalorder %v5328_v20, 8  ;;  %vm201_vm6 = vcmp.lt.s32.totalorder %v5328_v20, 16  ;;  %vm196_vm7 = vcmp.lt.s32.totalorder %v5328_v20, 8  ;;  %vm205_vm9 = vcmp.ge.s32.totalorder %v5328_v20, 16 }
   0xc   :  { %92 = vmatpush.msra.mxu0 %v68_v4  ;;  %v105_v9 = vmul.f32 0.0625, %v103_v8  ;;  %v104_v15 = vcvt.s32.f32 %v102_v12  ;;  %290 = vmatpush.msra.mxu2 %v217_v27  ;;  %v4878_v36 = vld [vmem:[%s7472_s4] ss:$0 sm:$0xff]  ;;  %v4879_v37 = vld [vmem:[%s7472_s4 + $0x1] ss:$0 sm:$0xff]  ;;  %vm5395_vm3 = vcmp.le.s32.totalorder %v5391_v51, %v5328_v20  ;;  %vm202_vm8 = vmand %vm200_vm5, %vm201_vm6  ;;  %vm206_vm10 = vcmp.lt.s32.totalorder %v5328_v20, 24 }
   0xd   :  { %4865 = vmatpush.msra.mxu1 %v68_v4  ;;  %314 = vmatpush.msra.mxu3 %v221_v30  ;;  %v235_v57 = vld [vmem:[%s7473_s5 + $0xa0] sm:$0xff]  ;;  %v5444_v3 = vsel %vm196_vm7, 1.0, %v7482_v22  ;;  %v5447_v4 = vsel %vm202_vm8, 1.0, %v7482_v22  ;;  %vm207_vm11 = vmand %vm205_vm9, %vm206_vm10  ;;  %v157_v30 = vadd.s32 1, %v5388_v50  ;;  %s4723_s14 = sld [smem:[#allocation2 + $0x4]] }
   0xe   :  { %v107_v10 = vfloor.f32 %v105_v9  ;;  %93 = vmatpush.msra.mxu0 %v67_v14  ;;  %v106_v16 = vmul.f32 0.0625, %v104_v15  ;;  %291 = vmatpush.msra.mxu2 %v216_v29  ;;  %v241_v58 = vperm.slane %v235_v57, 0  ;;  %v300_v60 = vperm.slane %v235_v57, 1  ;;  %s6127_s15 = sld [smem:[#allocation2 + $0x5]] }
   0xf   :  { %4866 = vmatpush.msra.mxu1 %v67_v14  ;;  %315 = vmatpush.msra.mxu3 %v220_v32  ;;  %vm159_vm13 = vcmp.lt.s32.totalorder %v5328_v20, %v157_v30  ;;  %s6153_s16 = sld [smem:[#allocation2 + $0x6]] }
  0x10   :  { %59 = vperm.xlu0 %4875, %v50_v5   ;;  %v110_v13 = vsub.f32 1.0, %v107_v10  ;;  %v108_v17 = vfloor.f32 %v106_v16  ;;  %292 = vmatpush.msra.mxu2 %v215_v31  ;;  %s6177_s17 = sld [smem:[#allocation2 + $0x7]] }
  0x11   :  { %260 = vmatpush.msrb.mxu1 %v218_v26  ;;  %316 = vmatpush.msra.mxu3 %v219_v33  ;;  %s4799_s0 = sld [smem:[#allocation2 + $0x8]] }
  0x12   :  { %115 = vperm.xlu1 %4876, %v110_v13   ;;  %v111_v18 = vsub.f32 1.0, %v108_v17  ;;  %s6575_s23 = sld [smem:[#allocation2 + $0x9]] }
  0x13   :  { %261 = vmatpush.msrb.mxu1 %v217_v27  ;;  %4661 = vmatpush.msk.msrb.mxu3 %vm5395_vm3, %v7484_v54  ;;  %v5511_v27 = vcvt.s32.f32 %v5391_v51  ;;  %s6615_s24 = sld [smem:[#allocation2 + $0xa]] }
  0x14   :  { %120 = vperm.xlu2 %4877, %v111_v18   ;;  %s6644_s25 = sld [smem:[#allocation2 + $0xb]] }
  0x15   :  { %262 = vmatpush.msrb.mxu1 %v216_v29  ;;  %4662 = vmatpush.msk.msrb.mxu3 %vm5401_vm4, %v7484_v54 }
  0x17   :  { %263 = vmatpush.msrb.mxu1 %v215_v31  ;;  %v5516_v31 = vmul.f32 0.125, %v5511_v27 }
  0x1a   :  { %129 = vperm.xlu1 %4876, %v107_v10   ;;  %v5464_v10 = vsel %vm207_vm11, 1.0, %v7482_v22 }
  0x1c   :  { %134 = vperm.xlu2 %4877, %v108_v17  }
  0x6e   :  { %v121_v35 = vpop.permute.xlu2 %120 }
  0x6f   :  { %v124_v44 = vmul.f32 %v4878_v36, %v121_v35  ;;  %v7480_v35 = vfloor.f32 %v5516_v31 }
  0x76   :  { %v135_v42 = vpop.permute.xlu2 %134 }
  0x77   :  { %v138_v46 = vmul.f32 %v4879_v37, %v135_v42 }
  0x79   :  { %v140_v47 = vadd.f32 %v138_v46, %v124_v44 }
  0x7a   :  { %v57_v21 = vpop.permute.xlu0 %56 }
  0x7b   :  { %vm61_vm1 = vcmp.eq.s32.totalorder %v5328_v20, %v57_v21 }
  0x7c   :  { %v4627_v23 = vsel %vm61_vm1, 1.0, %v7482_v22 }
  0x7d   :  { %4629 = vmatmul.msk.f32.vlgmr.msra.gmra.mxu0 %vm71_vm0, %v4627_v23  ;;  %v5501_v23 = vcvt.s32.f32 %v5388_v50 }
  0x82   :  { %v60_v24 = vpop.permute.xlu0 %59 }
  0x83   :  { %vm62_vm2 = vcmp.eq.s32.totalorder %v5328_v20, %v60_v24  ;;  %v5504_v24 = vcvt.s32.f32 %v5328_v20 }
  0x84   :  { %v4628_v25 = vsel %vm62_vm2, 1.0, %v7482_v22  ;;  %v116_v34 = vpop.permute.xlu1 %115 }
  0x85   :  { %4630 = vmatmul.msk.f32.vlgmr.msra.gmra.mxu1 %vm71_vm0, %v4628_v25  ;;  %v123_v39 = vmul.f32 %v4878_v36, %v116_v34  ;;  %v5507_v25 = vmul.f32 0.125, %v5501_v23  ;;  %v153_v26 = vmul.f32 0.125, %v5504_v24  ;;  %v158_v36 = vadd.s32 1, %v5391_v51 }
  0x86   :  { %4653 = vmatpush.msk.msra.mxu1 %vm5395_vm3, %v7484_v54 }
  0x87   :  { %v7481_v28 = vfloor.f32 %v5507_v25  ;;  %v154_v29 = vfloor.f32 %v153_v26  ;;  %vm160_vm2 = vcmp.lt.s32.totalorder %v5328_v20, %v158_v36 }
  0x88   :  { %4654 = vmatpush.msk.msra.mxu1 %vm5401_vm4, %v7484_v54 }
  0x89   :  { %vm5520_vm12 = vcmp.eq.f32.partialorder %v7481_v28, %v154_v29  ;;  %vm5541_vm1 = vcmp.eq.f32.partialorder %v7480_v35, %v154_v29 }
  0x8a   :  { %vm5527_vm14 = vmand %vm5520_vm12, %vm159_vm13 }
  0x8b   :  { %vm5548_vm5 = vmand %vm5541_vm1, %vm160_vm2 }
  0x8c   :  { %v130_v38 = vpop.permute.xlu1 %129 }
  0x8d   :  { %v137_v40 = vmul.f32 %v4879_v37, %v130_v38 }
  0x8f   :  { %v139_v41 = vadd.f32 %v137_v40, %v123_v39 }
  0xfa   :  { %v5366_v43 = vpop.f32.mrf.mxu0 }
  0xfb   :  { %4645 = vmatmul.msk.f32.vlgmr.msra.gmra.mxu2 %vm71_vm0, %v5366_v43  ;;  %v5371_v45 = vadd.f32 %v139_v41, %v5366_v43 }
  0xfd   :  { %4643 = vmatmul.msk.f32.vlgmr.msrb.gmra.mxu1 %vm71_vm0, %v5371_v45  ;;  %4647 = vmatmul.msk.f32.vlgmr.msra.gmra.mxu3 %vm71_vm0, %v5371_v45 }
  0xfe   :  { %4674 = vmatpush.msk.msra.mxu3 %vm5395_vm3, %v7484_v54 }
 0x100   :  { %4675 = vmatpush.msk.msra.mxu3 %vm5401_vm4, %v7484_v54 }
 0x102   :  { %v5377_v48 = vpop.f32.mrf.mxu1 }
 0x103   :  { %4646 = vmatmul.msk.f32.gmra.mxu2 %vm71_vm0, %v5377_v48  ;;  %v5382_v49 = vadd.f32 %v140_v47, %v5377_v48 }
 0x105   :  { %4644 = vmatmul.msk.f32.gmra.mxu1 %vm71_vm0, %v5382_v49  ;;  %4648 = vmatmul.msk.f32.gmra.mxu3 %vm71_vm0, %v5382_v49 }
 0x17a   :  { %v265_v59 = vpop.f32.mrf.mxu1 }
 0x17b   :  { %v5439_v1 = vadd.f32 %v265_v59, %v241_v58 }
 0x17d   :  { %v324_v9 = vmul.f32 %v5444_v3, %v5439_v1  ;;  %v547_v12 = vmul.f32 %v5447_v4, %v5439_v1  ;;  %v821_v19 = vmul.f32 %v5464_v10, %v5439_v1 }
 0x17e   :  { %v294_v55 = vpop.f32.mrf.mxu2 }
 0x17f   :  { %v5449_v5 = vadd.f32 %v294_v55, %v241_v58 }
 0x180   :  { %v318_v56 = vpop.f32.mrf.mxu3 }
 0x181   :  { %v5441_v2 = vadd.f32 %v318_v56, %v300_v60 }
 0x182   :  { %v268_v11 = vpop.f32.mrf.mxu1 }
 0x183   :  { %v545_v8 = vmul.f32 %v5444_v3, %v5441_v2  ;;  %v761_v13 = vmul.f32 %v5447_v4, %v5441_v2  ;;  %v5476_v15 = vadd.f32 %v268_v11, %v241_v58  ;;  %v1035_v16 = vmul.f32 %v5464_v10, %v5441_v2 }
 0x185   :  { %v325_v17 = vmul.f32 %v5444_v3, %v5476_v15  ;;  %v548_v18 = vmul.f32 %v5447_v4, %v5476_v15  ;;  %v822_v21 = vmul.f32 %v5464_v10, %v5476_v15 }
 0x186   :  { %v297_v61 = vpop.f32.mrf.mxu2 }
 0x187   :  { %v5428_v62 = vadd.f32 %v297_v61, %v241_v58 }
 0x188   :  { %v321_v63 = vpop.f32.mrf.mxu3 }
 0x189   :  { %v5433_v0 = vadd.f32 %v321_v63, %v300_v60  ;;  %4649 = vmatpush.xpose.msk.msrb.mxu0 %vm71_vm0, %v5428_v62  ;;  %4657 = vmatpush.xpose.msk.msrb.mxu2 %vm71_vm0, %v5428_v62 }
 0x18b   :  { %v546_v6 = vmul.f32 %v5444_v3, %v5433_v0  ;;  %v762_v7 = vmul.f32 %v5447_v4, %v5433_v0  ;;  %v1036_v14 = vmul.f32 %v5464_v10, %v5433_v0 }
 0x18d   :  { %4650 = vmatpush.xpose.msk.msrb.mxu0 %vm71_vm0, %v5449_v5  ;;  %4658 = vmatpush.xpose.msk.msrb.mxu2 %vm71_vm0, %v5449_v5 }
 0x18e   :  { %812 = vmatpush.msrb.mxu1 %v546_v6 }
 0x190   :  { %813 = vmatpush.msrb.mxu1 %v545_v8  ;;  %4651 = vmatmul.msk.f32.vlgmr.msrb.gmra.mxu0 %vm71_vm0, %v324_v9 }
 0x191   :  { %783 = vmatpush.msra.mxu0 %v762_v7  ;;  %4670 = vmatpush.xpose.msk.msra.mxu2 %vm71_vm0, %v5428_v62 }
 0x192   :  { %4659 = vmatmul.msk.f32.vlgmr.msrb.gmra.mxu2 %vm71_vm0, %v547_v12 }
 0x193   :  { %784 = vmatpush.msra.mxu0 %v761_v13 }
 0x195   :  { %1057 = vmatpush.msrb.mxu0 %v1036_v14  ;;  %4671 = vmatpush.xpose.msk.msra.mxu2 %vm71_vm0, %v5449_v5 }
 0x197   :  { %1058 = vmatpush.msrb.mxu0 %v1035_v16 }
 0x198   :  { %4652 = vmatmul.msk.f32.gmra.mxu0 %vm71_vm0, %v325_v17 }
 0x199   :  { %4685 = vmatpush.msk.msrb.mxu2 %vm5395_vm3, %v7484_v54 }
 0x19a   :  { %4660 = vmatmul.msk.f32.gmra.mxu2 %vm71_vm0, %v548_v18 }
 0x19b   :  { %4686 = vmatpush.msk.msrb.mxu2 %vm5401_vm4, %v7484_v54 }
 0x1a2   :  { %4672 = vmatmul.msk.f32.vlgmr.msra.gmra.mxu2 %vm71_vm0, %v821_v19 }
 0x1aa   :  { %4673 = vmatmul.msk.f32.gmra.mxu2 %vm71_vm0, %v822_v21 }
 0x20d   :  { %v355_v34 = vpop.f32.mrf.mxu0 }
 0x20e   :  { %v5533_v37 = vmul.f32 0.35355338, %v355_v34  ;;  %v5563_v34 = vsel %vm5527_vm14, 1.0, %v7482_v22 }
 0x210   :  { %v363_v38 = vsel %vm5527_vm14, %v5533_v37, -1e+32 }
 0x211   :  { %v366_v39 = vsel %vm365_vm15, %v363_v38, -inf }
 0x212   :  { %367 = vmax.xlane.f32.xlu0 %v366_v39 }
 0x215   :  { %v358_v42 = vpop.f32.mrf.mxu0 }
 0x216   :  { %v5552_v44 = vmul.f32 0.35355338, %v358_v42 }
 0x218   :  { %v364_v46 = vsel %vm5548_vm5, %v5552_v44, -1e+32 }
 0x219   :  { %v369_v47 = vsel %vm365_vm15, %v364_v46, -inf }
 0x21a   :  { %370 = vmax.xlane.f32.xlu1 %v369_v47 }
 0x285   :  { %v368_v55 = vpop.xlane.xlu0 %367 }
 0x286   :  { %v372_v56 = vsub.f32 %v363_v38, %v368_v55 }
 0x288   :  { %v374_v57 = vmul.f32 1.442695, %v372_v56 }
 0x28a   :  { %4884 = vpow2.f32 %v374_v57 }
 0x28d   :  { %v371_v58 = vpop.xlane.xlu1 %370 }
 0x28e   :  { %v373_v59 = vsub.f32 %v364_v46, %v371_v58 }
 0x290   :  { %v4885_v60 = vpop.eup %4884  ;;  %v376_v61 = vmul.f32 1.442695, %v373_v59  ;;  %v5573_v59 = vsel %vm5548_vm5, 1.0, %v7482_v22 }
 0x291   :  { %v378_v63 = vsel %vm365_vm15, %v4885_v60, 0.0 }
 0x292   :  { %4886 = vpow2.f32 %v376_v61  ;;  %379 = vadd.xlane.f32.xlu2 %v378_v63 }
 0x298   :  { %v4887_v6 = vpop.eup %4886 }
 0x299   :  { %v381_v7 = vsel %vm365_vm15, %v4887_v6, 0.0 }
 0x29a   :  { %382 = vadd.xlane.f32.xlu2 %v381_v7 }
 0x305   :  { %v380_v8 = vpop.xlane.xlu2 %379 }
 0x306   :  { %4888 = vrcp.f32 %v380_v8  ;;  %v395_v14 = vand.u32 2147483648, %v380_v8  ;;  %v393_v17 = vand.u32 2147483647, %v380_v8  ;;  %vm389_vm7 = vweird.f32 %v380_v8 }
 0x308   :  { %v396_v21 = vor.u32 1.1754944e-38, %v395_v14  ;;  %vm394_vm9 = vcmp.eq.f32.partialorder %v393_v17, 8.507059e+37 }
 0x30c   :  { %v4889_v9 = vpop.eup %4888 }
 0x30d   :  { %v385_v11 = vmul.f32 %v4889_v9, %v380_v8  ;;  %v383_v12 = vpop.xlane.xlu2 %382  ;;  %vm390_vm6 = vweird.f32 %v4889_v9 }
 0x30e   :  { %4890 = vrcp.f32 %v383_v12  ;;  %vm391_vm8 = vmor %vm389_vm7, %vm390_vm6  ;;  %v410_v39 = vand.u32 2147483648, %v383_v12  ;;  %v408_v46 = vand.u32 2147483647, %v383_v12  ;;  %vm404_vm11 = vweird.f32 %v383_v12 }
 0x30f   :  { %v386_v13 = vsub.f32 1.0, %v385_v11 }
 0x310   :  { %v411_v57 = vor.u32 1.1754944e-38, %v410_v39  ;;  %vm409_vm2 = vcmp.eq.f32.partialorder %v408_v46, 8.507059e+37 }
 0x311   :  { %v387_v16 = vmul.f32 %v4889_v9, %v386_v13 }
 0x313   :  { %v388_v18 = vadd.f32 %v4889_v9, %v387_v16 }
 0x314   :  { %v4891_v19 = vpop.eup %4890 }
 0x315   :  { %v392_v26 = vsel %vm391_vm8, %v4889_v9, %v388_v18  ;;  %v400_v29 = vmul.f32 %v4891_v19, %v383_v12  ;;  %vm405_vm10 = vweird.f32 %v4891_v19 }
 0x316   :  { %v397_v30 = vsel %vm394_vm9, %v396_v21, %v392_v26  ;;  %vm406_vm13 = vmor %vm404_vm11, %vm405_vm10 }
 0x317   :  { %v398_v36 = vmul.f32 %v4885_v60, %v397_v30  ;;  %v401_v38 = vsub.f32 1.0, %v400_v29 }
 0x319   :  { %v402_v42 = vmul.f32 %v4891_v19, %v401_v38  ;;  %v414_v47 = vmul.f32 %v5563_v34, %v398_v36 }
 0x31b   :  { %v403_v55 = vadd.f32 %v4891_v19, %v402_v42  ;;  %4655 = vmatmul.msk.f32.vlgmr.msra.gmra.mxu1 %vm365_vm15, %v414_v47  ;;  %v445_v56 = vsel %vm365_vm15, %v414_v47, 0.0 }
 0x31c   :  { %4681 = vmatpush.xpose.msk.msra.mxu1 %vm71_vm0, %v5428_v62  ;;  %446 = vadd.xlane.f32.xlu0 %v445_v56  ;;  %v175_v62 = vsub.f32 %v5504_v24, %v5501_v23  ;;  %v482_v56 = vstv %s481_s29 }
 0x31d   :  { %v407_v58 = vsel %vm406_vm13, %v4891_v19, %v403_v55 }
 0x31e   :  { %v412_v60 = vsel %vm409_vm2, %v411_v57, %v407_v58  ;;  %v5582_v8 = vand.u32 2147483647, %v175_v62 }
 0x31f   :  { %v413_v61 = vmul.f32 %v4887_v6, %v412_v60  ;;  %v176_v6 = vsub.f32 %v5504_v24, %v5511_v27 }
 0x320   :  { %4682 = vmatpush.xpose.msk.msra.mxu1 %vm71_vm0, %v5449_v5 }
 0x321   :  { %v415_v63 = vmul.f32 %v5573_v59, %v413_v61  ;;  %v5587_v14 = vand.u32 2147483647, %v176_v6 }
 0x323   :  { %4656 = vmatmul.msk.f32.gmra.mxu1 %vm365_vm15, %v415_v63  ;;  %v448_v7 = vsel %vm365_vm15, %v415_v63, 0.0 }
 0x324   :  { %449 = vadd.xlane.f32.xlu1 %v448_v7 }
 0x38f   :  { %v447_v9 = vpop.xlane.xlu0 %446 }
 0x397   :  { %v450_v16 = vpop.xlane.xlu1 %449 }
 0x398   :  { %v439_v11 = vpop.f32.mrf.mxu1 }
 0x399   :  { %v451_v12 = vsub.f32 %v447_v9, %v439_v11 }
 0x39b   :  { %v453_v5 = vmul.f32 %v451_v12, %v5582_v8 }
 0x39d   :  { %v455_v13 = vmax.f32 %v453_v5, 0.0 }
 0x39f   :  { %4892 = vrsqrt.f32 %v455_v13  ;;  %vm464_vm6 = vcmp.eq.f32.partialorder %v455_v13, inf  ;;  %v467_v55 = vand.u32 2147483648, %v455_v13  ;;  %vm466_vm7 = vcmp.eq.f32.partialorder %v455_v13, 0.0 }
 0x3a0   :  { %v442_v17 = vpop.f32.mrf.mxu1 }
 0x3a1   :  { %v452_v18 = vsub.f32 %v450_v16, %v442_v17 }
 0x3a3   :  { %v454_v19 = vmul.f32 %v452_v18, %v5587_v14 }
 0x3a5   :  { %v4893_v21 = vpop.eup %4892  ;;  %v456_v26 = vmax.f32 %v454_v19, 0.0  ;;  %v572_v19 = vpop.f32.mrf.mxu2 }
 0x3a6   :  { %v458_v29 = vmul.f32 %v4893_v21, %v455_v13 }
 0x3a7   :  { %4894 = vrsqrt.f32 %v456_v26  ;;  %vm476_vm8 = vcmp.eq.f32.partialorder %v456_v26, inf  ;;  %v479_v11 = vand.u32 2147483648, %v456_v26  ;;  %vm478_vm9 = vcmp.eq.f32.partialorder %v456_v26, 0.0 }
 0x3a8   :  { %v459_v30 = vmul.f32 %v4893_v21, %v458_v29 }
 0x3aa   :  { %v460_v36 = vmul.f32 0.5, %v459_v30 }
 0x3ac   :  { %v461_v38 = vsub.f32 1.5, %v460_v36 }
 0x3ad   :  { %v4895_v24 = vpop.eup %4894 }
 0x3ae   :  { %v462_v39 = vmul.f32 %v4893_v21, %v461_v38  ;;  %v470_v42 = vmul.f32 %v4895_v24, %v456_v26 }
 0x3b0   :  { %v463_v46 = vmul.f32 %v462_v39, %v455_v13  ;;  %v471_v47 = vmul.f32 %v4895_v24, %v470_v42 }
 0x3b2   :  { %v465_v57 = vsel %vm464_vm6, %v455_v13, %v463_v46  ;;  %v472_v58 = vmul.f32 0.5, %v471_v47  ;;  %v5598_v47 = vmul.f32 0.35355338, %v572_v19 }
 0x3b3   :  { %v468_v60 = vsel %vm466_vm7, %v467_v55, %v465_v57 }
 0x3b4   :  { %v483_v61 = vmul.f32 %v482_v56, %v468_v60  ;;  %v473_v63 = vsub.f32 1.5, %v472_v58 }
 0x3b6   :  { %v485_v7 = vmul.f32 1.442695, %v483_v61  ;;  %v474_v62 = vmul.f32 %v4895_v24, %v473_v63 }
 0x3b8   :  { %4896 = vpow2.f32 %v485_v7  ;;  %v475_v9 = vmul.f32 %v474_v62, %v456_v26 }
 0x3ba   :  { %v477_v12 = vsel %vm476_vm8, %v456_v26, %v475_v9  ;;  %v575_v26 = vpop.f32.mrf.mxu2 }
 0x3bb   :  { %v480_v6 = vsel %vm478_vm9, %v479_v11, %v477_v12 }
 0x3bc   :  { %v484_v5 = vmul.f32 %v482_v56, %v480_v6  ;;  %v5611_v6 = vmul.f32 0.35355338, %v575_v26 }
 0x3be   :  { %v4897_v16 = vpop.eup %4896  ;;  %v487_v17 = vmul.f32 1.442695, %v484_v5 }
 0x3bf   :  { %v489_v18 = vmax.f32 %v4897_v16, 1e-05 }
 0x3c0   :  { %4898 = vpow2.f32 %v487_v17  ;;  %v5616_v17 = vsel %vm5548_vm5, %v5611_v6, -1e+32 }
 0x3c1   :  { %v491_v13 = vmin.f32 %v489_v18, 100000.0 }
 0x3c2   :  { %v846_v55 = vpop.f32.mrf.mxu2 }
 0x3c3   :  { %v493_v21 = vmul.f32 %v491_v13, %v5533_v37  ;;  %v580_v37 = vsel %vm5527_vm14, %v5598_v47, -1e+32  ;;  %v5604_v57 = vmul.f32 0.35355338, %v846_v55 }
 0x3c4   :  { %v582_v56 = vsel %vm365_vm15, %v580_v37, -inf }
 0x3c5   :  { %v495_v29 = vsel %vm5527_vm14, %v493_v21, -1e+32  ;;  %v585_v21 = vsel %vm365_vm15, %v5616_v17, -inf }
 0x3c6   :  { %v4899_v30 = vpop.eup %4898  ;;  %v497_v36 = vsel %vm365_vm15, %v495_v29, -inf }
 0x3c7   :  { %498 = vmax.xlane.f32.xlu2 %v497_v36  ;;  %v490_v38 = vmax.f32 %v4899_v30, 1e-05 }
 0x3c9   :  { %v492_v24 = vmin.f32 %v490_v38, 100000.0 }
 0x3cb   :  { %v494_v39 = vmul.f32 %v492_v24, %v5552_v44  ;;  %v854_v44 = vsel %vm5527_vm14, %v5604_v57, -1e+32 }
 0x3cc   :  { %v856_v58 = vsel %vm365_vm15, %v854_v44, -inf }
 0x3cd   :  { %v496_v42 = vsel %vm5548_vm5, %v494_v39, -1e+32 }
 0x3ce   :  { %v500_v46 = vsel %vm365_vm15, %v496_v42, -inf }
 0x3cf   :  { %501 = vmax.xlane.f32.xlu0 %v500_v46 }
 0x3d7   :  { %583 = vmax.xlane.f32.xlu0 %v582_v56 }
 0x3df   :  { %857 = vmax.xlane.f32.xlu0 %v856_v58 }
 0x43a   :  { %v499_v60 = vpop.xlane.xlu2 %498 }
 0x43b   :  { %v503_v61 = vsub.f32 %v495_v29, %v499_v60 }
 0x43d   :  { %v505_v63 = vmul.f32 1.442695, %v503_v61 }
 0x43f   :  { %4900 = vpow2.f32 %v505_v63 }
 0x442   :  { %v502_v7 = vpop.xlane.xlu0 %501 }
 0x443   :  { %v504_v62 = vsub.f32 %v496_v42, %v502_v7 }
 0x445   :  { %v4901_v9 = vpop.eup %4900  ;;  %v507_v11 = vmul.f32 1.442695, %v504_v62 }
 0x446   :  { %v509_v12 = vsel %vm365_vm15, %v4901_v9, 0.0 }
 0x447   :  { %4902 = vpow2.f32 %v507_v11  ;;  %510 = vadd.xlane.f32.xlu1 %v509_v12 }
 0x44a   :  { %v584_v5 = vpop.xlane.xlu0 %583 }
 0x44b   :  { %v588_v16 = vsub.f32 %v580_v37, %v584_v5 }
 0x44d   :  { %v4903_v18 = vpop.eup %4902  ;;  %v590_v19 = vmul.f32 1.442695, %v588_v16 }
 0x44e   :  { %v512_v13 = vsel %vm365_vm15, %v4903_v18, 0.0 }
 0x44f   :  { %4904 = vpow2.f32 %v590_v19  ;;  %513 = vadd.xlane.f32.xlu2 %v512_v13  ;;  %586 = vmax.xlane.f32.xlu1 %v585_v21 }
 0x452   :  { %v858_v29 = vpop.xlane.xlu0 %857 }
 0x453   :  { %v862_v30 = vsub.f32 %v854_v44, %v858_v29 }
 0x455   :  { %v5621_v36 = vpop.eup %4904  ;;  %v864_v38 = vmul.f32 1.442695, %v862_v30 }
 0x456   :  { %v594_v24 = vsel %vm365_vm15, %v5621_v36, 0.0 }
 0x457   :  { %4906 = vpow2.f32 %v864_v38  ;;  %595 = vadd.xlane.f32.xlu0 %v594_v24 }
 0x45d   :  { %v5625_v26 = vpop.eup %4906 }
 0x45e   :  { %v868_v39 = vsel %vm365_vm15, %v5625_v26, 0.0 }
 0x45f   :  { %869 = vadd.xlane.f32.xlu0 %v868_v39 }
 0x4ba   :  { %v511_v42 = vpop.xlane.xlu1 %510 }
 0x4bb   :  { %4908 = vrcp.f32 %v511_v42  ;;  %v526_v44 = vand.u32 2147483648, %v511_v42  ;;  %v524_v60 = vand.u32 2147483647, %v511_v42  ;;  %vm520_vm11 = vweird.f32 %v511_v42 }
 0x4bd   :  { %v527_v7 = vor.u32 1.1754944e-38, %v526_v44  ;;  %vm525_vm2 = vcmp.eq.f32.partialorder %v524_v60, 8.507059e+37 }
 0x4c1   :  { %v4909_v46 = vpop.eup %4908 }
 0x4c2   :  { %v516_v37 = vmul.f32 %v4909_v46, %v511_v42  ;;  %v514_v55 = vpop.xlane.xlu2 %513  ;;  %vm521_vm10 = vweird.f32 %v4909_v46 }
 0x4c3   :  { %4910 = vrcp.f32 %v514_v55  ;;  %vm522_vm13 = vmor %vm520_vm11, %vm521_vm10  ;;  %v541_v13 = vand.u32 2147483648, %v514_v55  ;;  %v539_v29 = vand.u32 2147483647, %v514_v55  ;;  %vm535_vm7 = vweird.f32 %v514_v55 }
 0x4c4   :  { %v517_v56 = vsub.f32 1.0, %v516_v37  ;;  %vm210_vm10 = vcmp.ge.s32.totalorder %v5328_v20, 24  ;;  %vm211_vm11 = vcmp.lt.s32.totalorder %v5328_v20, 32 }
 0x4c5   :  { %v542_v24 = vor.u32 1.1754944e-38, %v541_v13  ;;  %vm540_vm9 = vcmp.eq.f32.partialorder %v539_v29, 8.507059e+37 }
 0x4c6   :  { %v518_v58 = vmul.f32 %v4909_v46, %v517_v56 }
 0x4c8   :  { %v519_v61 = vadd.f32 %v4909_v46, %v518_v58 }
 0x4c9   :  { %v4911_v63 = vpop.eup %4910 }
 0x4ca   :  { %v523_v62 = vsel %vm522_vm13, %v4909_v46, %v519_v61  ;;  %v531_v11 = vmul.f32 %v4911_v63, %v514_v55  ;;  %v596_v12 = vpop.xlane.xlu0 %595  ;;  %vm536_vm6 = vweird.f32 %v4911_v63  ;;  %vm212_vm13 = vmand %vm210_vm10, %vm211_vm11 }
 0x4cb   :  { %v528_v5 = vsel %vm525_vm2, %v527_v7, %v523_v62  ;;  %4912 = vrcp.f32 %v596_v12  ;;  %vm537_vm8 = vmor %vm535_vm7, %vm536_vm6  ;;  %v611_v44 = vand.u32 2147483648, %v596_v12  ;;  %v609_v55 = vand.u32 2147483647, %v596_v12 }
 0x4cc   :  { %v532_v16 = vsub.f32 1.0, %v531_v11  ;;  %v529_v19 = vmul.f32 %v4901_v9, %v528_v5  ;;  %vm605_vm6 = vweird.f32 %v596_v12 }
 0x4cd   :  { %v612_v7 = vor.u32 1.1754944e-38, %v611_v44  ;;  %v587_v44 = vpop.xlane.xlu1 %586 }
 0x4ce   :  { %v533_v21 = vmul.f32 %v4911_v63, %v532_v16  ;;  %4668 = vmatmul.msk.f32.vlgmr.msrb.gmra.mxu1 %vm365_vm15, %v529_v19 }
 0x4d0   :  { %v534_v30 = vadd.f32 %v4911_v63, %v533_v21 }
 0x4d1   :  { %v4913_v38 = vpop.eup %4912 }
 0x4d2   :  { %v601_v39 = vmul.f32 %v4913_v38, %v596_v12  ;;  %v870_v42 = vpop.xlane.xlu0 %869  ;;  %v538_v46 = vsel %vm537_vm8, %v4911_v63, %v534_v30  ;;  %vm606_vm2 = vweird.f32 %v4913_v38  ;;  %v5634_v63 = vsel %vm212_vm13, 1.0, %v7482_v22 }
 0x4d3   :  { %4914 = vrcp.f32 %v870_v42  ;;  %v543_v9 = vsel %vm540_vm9, %v542_v24, %v538_v46  ;;  %vm607_vm7 = vmor %vm605_vm6, %vm606_vm2  ;;  %vm610_vm8 = vcmp.eq.f32.partialorder %v609_v55, 8.507059e+37  ;;  %v885_v13 = vand.u32 2147483648, %v870_v42 }
 0x4d4   :  { %v602_v37 = vsub.f32 1.0, %v601_v39  ;;  %v544_v56 = vmul.f32 %v4903_v18, %v543_v9  ;;  %v1068_v18 = vmul.f32 %v5634_v63, %v5439_v1  ;;  %v883_v29 = vand.u32 2147483647, %v870_v42 }
 0x4d5   :  { %v1283_v30 = vmul.f32 %v5634_v63, %v5433_v0  ;;  %vm879_vm10 = vweird.f32 %v870_v42  ;;  %v886_v24 = vor.u32 1.1754944e-38, %v885_v13  ;;  %v1069_v0 = vmul.f32 %v5634_v63, %v5476_v15  ;;  %v849_v15 = vpop.f32.mrf.mxu2 }
 0x4d6   :  { %v603_v58 = vmul.f32 %v4913_v38, %v602_v37  ;;  %4669 = vmatmul.msk.f32.gmra.mxu1 %vm365_vm15, %v544_v56  ;;  %vm884_vm13 = vcmp.eq.f32.partialorder %v883_v29, 8.507059e+37 }
 0x4d8   :  { %v604_v60 = vadd.f32 %v4913_v38, %v603_v58 }
 0x4d9   :  { %v4915_v61 = vpop.eup %4914 }
 0x4da   :  { %v608_v62 = vsel %vm607_vm7, %v4913_v38, %v604_v60  ;;  %v875_v11 = vmul.f32 %v4915_v61, %v870_v42  ;;  %vm880_vm9 = vweird.f32 %v4915_v61 }
 0x4db   :  { %v613_v5 = vsel %vm610_vm8, %v612_v7, %v608_v62  ;;  %vm881_vm11 = vmor %vm879_vm10, %vm880_vm9  ;;  %v5667_v7 = vmul.f32 0.35355338, %v849_v15 }
 0x4dc   :  { %v876_v16 = vsub.f32 1.0, %v875_v11  ;;  %v614_v19 = vmul.f32 %v5621_v36, %v613_v5  ;;  %v1282_v36 = vmul.f32 %v5634_v63, %v5441_v2 }
 0x4de   :  { %v877_v21 = vmul.f32 %v4915_v61, %v876_v16  ;;  %4683 = vmatmul.msk.f32.vlgmr.msra.gmra.mxu1 %vm71_vm0, %v1068_v18  ;;  %v630_v12 = vmul.f32 %v5563_v34, %v614_v19 }
 0x4e0   :  { %4663 = vmatmul.msk.f32.vlgmr.msrb.gmra.mxu3 %vm365_vm15, %v630_v12  ;;  %v661_v38 = vsel %vm365_vm15, %v630_v12, 0.0  ;;  %v878_v1 = vadd.f32 %v4915_v61, %v877_v21 }
 0x4e1   :  { %1304 = vmatpush.msrb.mxu3 %v1283_v30  ;;  %662 = vadd.xlane.f32.xlu0 %v661_v38 }
 0x4e2   :  { %v882_v39 = vsel %vm881_vm11, %v4915_v61, %v878_v1 }
 0x4e3   :  { %1305 = vmatpush.msrb.mxu3 %v1282_v36  ;;  %v887_v46 = vsel %vm884_vm13, %v886_v24, %v882_v39 }
 0x4e4   :  { %v888_v42 = vmul.f32 %v5625_v26, %v887_v46  ;;  %v589_v26 = vsub.f32 %v5616_v17, %v587_v44  ;;  %v855_v17 = vsel %vm5548_vm5, %v5667_v7, -1e+32 }
 0x4e5   :  { %v859_v12 = vsel %vm365_vm15, %v855_v17, -inf }
 0x4e6   :  { %4684 = vmatmul.msk.f32.gmra.mxu1 %vm71_vm0, %v1069_v0  ;;  %v5652_v9 = vmul.f32 %v5563_v34, %v888_v42  ;;  %v592_v62 = vmul.f32 1.442695, %v589_v26 }
 0x4e8   :  { %v935_v37 = vsel %vm365_vm15, %v5652_v9, 0.0  ;;  %4916 = vpow2.f32 %v592_v62 }
 0x4e9   :  { %936 = vadd.xlane.f32.xlu0 %v935_v37 }
 0x4ee   :  { %v5680_v38 = vpop.eup %4916 }
 0x4ef   :  { %v597_v1 = vsel %vm365_vm15, %v5680_v38, 0.0 }
 0x54b   :  { %v5656_v56 = vpop.f32.mrf.mxu1 }
 0x553   :  { %v5658_v2 = vpop.f32.mrf.mxu1 }
 0x554   :  { %v663_v11 = vpop.xlane.xlu0 %662 }
 0x55b   :  { %v1093_v58 = vpop.f32.mrf.mxu1 }
 0x55c   :  { %v5660_v55 = vmul.f32 0.35355338, %v1093_v58  ;;  %v698_v58 = vstv %s5684_s30 }
 0x55e   :  { %v1101_v60 = vsel %vm5527_vm14, %v5660_v55, -1e+32 }
 0x55f   :  { %v1103_v61 = vsel %vm365_vm15, %v1101_v60, -inf }
 0x560   :  { %1104 = vmax.xlane.f32.xlu2 %v1103_v61 }
 0x563   :  { %v655_v5 = vpop.f32.mrf.mxu3  ;;  %v1096_v18 = vpop.f32.mrf.mxu1 }
 0x564   :  { %v667_v16 = vsub.f32 %v663_v11, %v655_v5  ;;  %v5669_v19 = vmul.f32 0.35355338, %v1096_v18 }
 0x566   :  { %v669_v13 = vmul.f32 %v667_v16, %v5582_v8  ;;  %v1102_v21 = vsel %vm5548_vm5, %v5669_v19, -1e+32 }
 0x567   :  { %v1106_v29 = vsel %vm365_vm15, %v1102_v21, -inf }
 0x568   :  { %v671_v30 = vmax.f32 %v669_v13, 0.0  ;;  %860 = vmax.xlane.f32.xlu2 %v859_v12  ;;  %1107 = vmax.xlane.f32.xlu1 %v1106_v29 }
 0x56a   :  { %4918 = vrsqrt.f32 %v671_v30  ;;  %vm680_vm2 = vcmp.eq.f32.partialorder %v671_v30, inf  ;;  %v683_v44 = vand.u32 2147483648, %v671_v30  ;;  %vm682_vm6 = vcmp.eq.f32.partialorder %v671_v30, 0.0 }
 0x570   :  { %v4919_v24 = vpop.eup %4918  ;;  %598 = vadd.xlane.f32.xlu1 %v597_v1 }
 0x571   :  { %v674_v36 = vmul.f32 %v4919_v24, %v671_v30 }
 0x573   :  { %v675_v39 = vmul.f32 %v4919_v24, %v674_v36 }
 0x575   :  { %v676_v46 = vmul.f32 0.5, %v675_v39 }
 0x577   :  { %v677_v0 = vsub.f32 1.5, %v676_v46 }
 0x579   :  { %v678_v42 = vmul.f32 %v4919_v24, %v677_v0 }
 0x57b   :  { %v679_v37 = vmul.f32 %v678_v42, %v671_v30 }
 0x57d   :  { %v681_v15 = vsel %vm680_vm2, %v671_v30, %v679_v37 }
 0x57e   :  { %v684_v26 = vsel %vm682_vm6, %v683_v44, %v681_v15 }
 0x57f   :  { %v699_v61 = vmul.f32 %v698_v58, %v684_v26 }
 0x581   :  { %v701_v62 = vmul.f32 1.442695, %v699_v61 }
 0x583   :  { %4920 = vpow2.f32 %v701_v62 }
 0x589   :  { %v4921_v11 = vpop.eup %4920 }
 0x58a   :  { %v705_v5 = vmax.f32 %v4921_v11, 1e-05 }
 0x58c   :  { %v707_v18 = vmin.f32 %v705_v5, 100000.0 }
 0x58e   :  { %v709_v16 = vmul.f32 %v707_v18, %v5598_v47 }
 0x590   :  { %v5692_v13 = vsel %vm5527_vm14, %v709_v16, -1e+32 }
 0x591   :  { %v713_v12 = vsel %vm365_vm15, %v5692_v13, -inf }
 0x592   :  { %714 = vmax.xlane.f32.xlu0 %v713_v12 }
 0x5d3   :  { %v1105_v29 = vpop.xlane.xlu2 %1104 }
 0x5d4   :  { %v1109_v30 = vsub.f32 %v1101_v60, %v1105_v29 }
 0x5d6   :  { %v1111_v1 = vmul.f32 1.442695, %v1109_v30 }
 0x5d8   :  { %4922 = vpow2.f32 %v1111_v1 }
 0x5db   :  { %v861_v24 = vpop.xlane.xlu2 %860  ;;  %v1108_v36 = vpop.xlane.xlu1 %1107 }
 0x5dc   :  { %v863_v39 = vsub.f32 %v855_v17, %v861_v24  ;;  %v1110_v46 = vsub.f32 %v1102_v21, %v1108_v36 }
 0x5de   :  { %v4923_v0 = vpop.eup %4922  ;;  %v866_v42 = vmul.f32 1.442695, %v863_v39  ;;  %v1113_v37 = vmul.f32 1.442695, %v1110_v46 }
 0x5df   :  { %v1115_v47 = vsel %vm365_vm15, %v4923_v0, 0.0 }
 0x5e0   :  { %4924 = vpow2.f32 %v866_v42  ;;  %1116 = vadd.xlane.f32.xlu2 %v1115_v47 }
 0x5e1   :  { %4926 = vpow2.f32 %v1113_v37 }
 0x5e3   :  { %v599_v44 = vpop.xlane.xlu1 %598 }
 0x5e4   :  { %4928 = vrcp.f32 %v599_v44  ;;  %v626_v11 = vand.u32 2147483648, %v599_v44  ;;  %v624_v18 = vand.u32 2147483647, %v599_v44  ;;  %vm620_vm8 = vweird.f32 %v599_v44 }
 0x5e6   :  { %v5697_v15 = vpop.eup %4924  ;;  %v627_v12 = vor.u32 1.1754944e-38, %v626_v11  ;;  %vm625_vm10 = vcmp.eq.f32.partialorder %v624_v18, 8.507059e+37 }
 0x5e7   :  { %v5699_v26 = vpop.eup %4926  ;;  %v871_v60 = vsel %vm365_vm15, %v5697_v15, 0.0 }
 0x5e8   :  { %872 = vadd.xlane.f32.xlu2 %v871_v60  ;;  %v1118_v17 = vsel %vm365_vm15, %v5699_v26, 0.0 }
 0x5e9   :  { %1119 = vadd.xlane.f32.xlu1 %v1118_v17 }
 0x5ea   :  { %v4929_v21 = vpop.eup %4928 }
 0x5eb   :  { %v616_v61 = vmul.f32 %v4929_v21, %v599_v44  ;;  %vm621_vm7 = vweird.f32 %v4929_v21 }
 0x5ec   :  { %vm622_vm9 = vmor %vm620_vm8, %vm621_vm7 }
 0x5ed   :  { %v617_v62 = vsub.f32 1.0, %v616_v61 }
 0x5ef   :  { %v618_v5 = vmul.f32 %v4929_v21, %v617_v62 }
 0x5f1   :  { %v619_v16 = vadd.f32 %v4929_v21, %v618_v5 }
 0x5f3   :  { %v623_v29 = vsel %vm622_vm9, %v4929_v21, %v619_v16 }
 0x5f4   :  { %v628_v30 = vsel %vm625_vm10, %v627_v12, %v623_v29 }
 0x5f5   :  { %v629_v1 = vmul.f32 %v5680_v38, %v628_v30 }
 0x5f7   :  { %v631_v24 = vmul.f32 %v5573_v59, %v629_v1 }
 0x5f9   :  { %4664 = vmatmul.msk.f32.gmra.mxu3 %vm365_vm15, %v631_v24  ;;  %v664_v36 = vsel %vm365_vm15, %v631_v24, 0.0 }
 0x5fa   :  { %665 = vadd.xlane.f32.xlu1 %v664_v36 }
 0x601   :  { %4676 = vmatmul.msk.f32.vlgmr.msra.gmra.mxu3 %vm365_vm15, %v5652_v9 }
 0x653   :  { %v1117_v39 = vpop.xlane.xlu2 %1116 }
 0x654   :  { %4930 = vrcp.f32 %v1117_v39  ;;  %v1132_v38 = vand.u32 2147483648, %v1117_v39  ;;  %v1130_v17 = vand.u32 2147483647, %v1117_v39  ;;  %vm1126_vm13 = vweird.f32 %v1117_v39 }
 0x656   :  { %v1133_v62 = vor.u32 1.1754944e-38, %v1132_v38  ;;  %vm1131_vm6 = vcmp.eq.f32.partialorder %v1130_v17, 8.507059e+37 }
 0x65a   :  { %v4931_v46 = vpop.eup %4930 }
 0x65b   :  { %v1122_v42 = vmul.f32 %v4931_v46, %v1117_v39  ;;  %v873_v37 = vpop.xlane.xlu2 %872  ;;  %vm1127_vm11 = vweird.f32 %v4931_v46 }
 0x65c   :  { %4932 = vrcp.f32 %v873_v37  ;;  %v1120_v47 = vpop.xlane.xlu1 %1119  ;;  %vm1128_vm2 = vmor %vm1126_vm13, %vm1127_vm11  ;;  %v898_v30 = vand.u32 2147483647, %v873_v37  ;;  %v900_v1 = vand.u32 2147483648, %v873_v37  ;;  %vm894_vm9 = vweird.f32 %v873_v37 }
 0x65d   :  { %v1123_v44 = vsub.f32 1.0, %v1122_v42  ;;  %4934 = vrcp.f32 %v1120_v47  ;;  %v1147_v42 = vand.u32 2147483648, %v1120_v47  ;;  %vm1141_vm11 = vweird.f32 %v1120_v47 }
 0x65e   :  { %vm899_vm13 = vcmp.eq.f32.partialorder %v898_v30, 8.507059e+37 }
 0x65f   :  { %v1124_v60 = vmul.f32 %v4931_v46, %v1123_v44 }
 0x661   :  { %v1125_v21 = vadd.f32 %v4931_v46, %v1124_v60  ;;  %v1145_v60 = vand.u32 2147483647, %v1120_v47 }
 0x662   :  { %v4933_v61 = vpop.eup %4932 }
 0x663   :  { %v4935_v11 = vpop.eup %4934  ;;  %v1129_v9 = vsel %vm1128_vm2, %v4931_v46, %v1125_v21  ;;  %v890_v5 = vmul.f32 %v4933_v61, %v873_v37  ;;  %vm895_vm7 = vweird.f32 %v4933_v61  ;;  %v1148_v21 = vor.u32 1.1754944e-38, %v1147_v42 }
 0x664   :  { %v1134_v18 = vsel %vm1131_vm6, %v1133_v62, %v1129_v9  ;;  %v1137_v16 = vmul.f32 %v4935_v11, %v1120_v47  ;;  %vm1142_vm8 = vweird.f32 %v4935_v11  ;;  %vm896_vm10 = vmor %vm894_vm9, %vm895_vm7  ;;  %vm1146_vm6 = vcmp.eq.f32.partialorder %v1145_v60, 8.507059e+37 }
 0x665   :  { %v1135_v12 = vmul.f32 %v4923_v0, %v1134_v18  ;;  %v891_v29 = vsub.f32 1.0, %v890_v5  ;;  %v901_v0 = vor.u32 1.1754944e-38, %v900_v1  ;;  %vm1143_vm2 = vmor %vm1141_vm11, %vm1142_vm8 }
 0x666   :  { %v1138_v24 = vsub.f32 1.0, %v1137_v16 }
 0x667   :  { %v892_v36 = vmul.f32 %v4933_v61, %v891_v29  ;;  %v1151_v44 = vmul.f32 %v5563_v34, %v1135_v12 }
 0x668   :  { %v1139_v39 = vmul.f32 %v4935_v11, %v1138_v24  ;;  %v937_v24 = vpop.xlane.xlu0 %936 }
 0x669   :  { %v893_v38 = vadd.f32 %v4933_v61, %v892_v36  ;;  %4687 = vmatmul.msk.f32.vlgmr.msrb.gmra.mxu2 %vm365_vm15, %v1151_v44  ;;  %v1182_v46 = vsel %vm365_vm15, %v1151_v44, 0.0 }
 0x66a   :  { %v1140_v17 = vadd.f32 %v4935_v11, %v1139_v39  ;;  %1183 = vadd.xlane.f32.xlu2 %v1182_v46 }
 0x66b   :  { %v897_v62 = vsel %vm896_vm10, %v4933_v61, %v893_v38 }
 0x66c   :  { %v902_v9 = vsel %vm899_vm13, %v901_v0, %v897_v62  ;;  %v1144_v5 = vsel %vm1143_vm2, %v4935_v11, %v1140_v17 }
 0x66d   :  { %v903_v18 = vmul.f32 %v5697_v15, %v902_v9  ;;  %v1149_v16 = vsel %vm1146_vm6, %v1148_v21, %v1144_v5  ;;  %v666_v11 = vpop.xlane.xlu1 %665 }
 0x66e   :  { %v1150_v37 = vmul.f32 %v5699_v26, %v1149_v16 }
 0x66f   :  { %v905_v12 = vmul.f32 %v5573_v59, %v903_v18 }
 0x670   :  { %v1152_v29 = vmul.f32 %v5573_v59, %v1150_v37 }
 0x671   :  { %4677 = vmatmul.msk.f32.gmra.mxu3 %vm365_vm15, %v905_v12  ;;  %v938_v47 = vsel %vm365_vm15, %v905_v12, 0.0 }
 0x672   :  { %4688 = vmatmul.msk.f32.gmra.mxu2 %vm365_vm15, %v1152_v29  ;;  %939 = vadd.xlane.f32.xlu2 %v938_v47  ;;  %v1185_v61 = vsel %vm365_vm15, %v1152_v29, 0.0 }
 0x673   :  { %1186 = vadd.xlane.f32.xlu1 %v1185_v61 }
 0x67c   :  { %v658_v30 = vpop.f32.mrf.mxu3 }
 0x67d   :  { %v668_v15 = vsub.f32 %v666_v11, %v658_v30 }
 0x67f   :  { %v670_v1 = vmul.f32 %v668_v15, %v5587_v14 }
 0x681   :  { %v672_v26 = vmax.f32 %v670_v1, 0.0 }
 0x683   :  { %4936 = vrsqrt.f32 %v672_v26  ;;  %vm692_vm7 = vcmp.eq.f32.partialorder %v672_v26, inf  ;;  %v695_v16 = vand.u32 2147483648, %v672_v26  ;;  %vm694_vm8 = vcmp.eq.f32.partialorder %v672_v26, 0.0 }
 0x684   :  { %v929_v36 = vpop.f32.mrf.mxu3 }
 0x685   :  { %v941_v42 = vsub.f32 %v937_v24, %v929_v36  ;;  %v972_v24 = vstv %s5724_s11  ;;  %s4614_s11 = sshll.u32 %s7478_s10, 4  ;;  %s4615_s11 = int_to_ptr.hbm [resolvable:$true] %s4614_s11 }
 0x687   :  { %v943_v44 = vmul.f32 %v941_v42, %v5582_v8 }
 0x689   :  { %v4937_v39 = vpop.eup %4936  ;;  %v945_v60 = vmax.f32 %v943_v44, 0.0 }
 0x68a   :  { %v686_v38 = vmul.f32 %v4937_v39, %v672_v26 }
 0x68b   :  { %4938 = vrsqrt.f32 %v945_v60  ;;  %vm954_vm9 = vcmp.eq.f32.partialorder %v945_v60, inf  ;;  %v957_v1 = vand.u32 2147483648, %v945_v60  ;;  %vm956_vm10 = vcmp.eq.f32.partialorder %v945_v60, 0.0 }
 0x68c   :  { %v687_v46 = vmul.f32 %v4937_v39, %v686_v38 }
 0x68e   :  { %v688_v0 = vmul.f32 0.5, %v687_v46 }
 0x690   :  { %v689_v17 = vsub.f32 1.5, %v688_v0  ;;  %v715_v0 = vpop.xlane.xlu0 %714 }
 0x691   :  { %v4939_v21 = vpop.eup %4938 }
 0x692   :  { %v690_v62 = vmul.f32 %v4937_v39, %v689_v17  ;;  %v948_v9 = vmul.f32 %v4939_v21, %v945_v60  ;;  %v719_v17 = vsub.f32 %v5692_v13, %v715_v0 }
 0x694   :  { %v691_v5 = vmul.f32 %v690_v62, %v672_v26  ;;  %v949_v18 = vmul.f32 %v4939_v21, %v948_v9 }
 0x696   :  { %v693_v37 = vsel %vm692_vm7, %v672_v26, %v691_v5  ;;  %v950_v12 = vmul.f32 0.5, %v949_v18  ;;  %v721_v5 = vmul.f32 1.442695, %v719_v17 }
 0x697   :  { %v696_v29 = vsel %vm694_vm8, %v695_v16, %v693_v37 }
 0x698   :  { %v700_v47 = vmul.f32 %v698_v58, %v696_v29  ;;  %v951_v61 = vsub.f32 1.5, %v950_v12 }
 0x69a   :  { %v703_v11 = vmul.f32 1.442695, %v700_v47  ;;  %v952_v30 = vmul.f32 %v4939_v21, %v951_v61 }
 0x69c   :  { %4940 = vpow2.f32 %v703_v11  ;;  %v953_v15 = vmul.f32 %v952_v30, %v945_v60 }
 0x69e   :  { %v955_v36 = vsel %vm954_vm9, %v945_v60, %v953_v15 }
 0x69f   :  { %v958_v42 = vsel %vm956_vm10, %v957_v1, %v955_v36 }
 0x6a0   :  { %v973_v44 = vmul.f32 %v972_v24, %v958_v42 }
 0x6a2   :  { %v4941_v39 = vpop.eup %4940  ;;  %v975_v38 = vmul.f32 1.442695, %v973_v44 }
 0x6a3   :  { %v706_v26 = vmax.f32 %v4941_v39, 1e-05 }
 0x6a4   :  { %4942 = vpow2.f32 %v975_v38 }
 0x6a5   :  { %v708_v46 = vmin.f32 %v706_v26, 100000.0  ;;  %4944 = vpow2.f32 %v721_v5 }
 0x6a7   :  { %v710_v58 = vmul.f32 %v708_v46, %v5611_v6 }
 0x6a9   :  { %v5735_v21 = vsel %vm5548_vm5, %v710_v58, -1e+32 }
 0x6aa   :  { %v4943_v62 = vpop.eup %4942  ;;  %v716_v60 = vsel %vm365_vm15, %v5735_v21, -inf }
 0x6ab   :  { %717 = vmax.xlane.f32.xlu1 %v716_v60  ;;  %v979_v9 = vmax.f32 %v4943_v62, 1e-05  ;;  %v5746_v37 = vpop.eup %4944 }
 0x6ac   :  { %v725_v12 = vsel %vm365_vm15, %v5746_v37, 0.0 }
 0x6ad   :  { %v981_v18 = vmin.f32 %v979_v9, 100000.0 }
 0x6af   :  { %v983_v16 = vmul.f32 %v981_v18, %v5604_v57 }
 0x6b1   :  { %v5742_v6 = vsel %vm5527_vm14, %v983_v16, -1e+32 }
 0x6b2   :  { %v987_v13 = vsel %vm365_vm15, %v5742_v6, -inf }
 0x6b3   :  { %988 = vmax.xlane.f32.xlu0 %v987_v13 }
 0x6bb   :  { %726 = vadd.xlane.f32.xlu0 %v725_v12 }
 0x6dd   :  { %v1184_v29 = vpop.xlane.xlu2 %1183 }
 0x6e5   :  { %v940_v30 = vpop.xlane.xlu2 %939 }
 0x6e6   :  { %v1187_v1 = vpop.xlane.xlu1 %1186 }
 0x6ec   :  { %v1176_v47 = vpop.f32.mrf.mxu2 }
 0x6ed   :  { %v1188_v61 = vsub.f32 %v1184_v29, %v1176_v47 }
 0x6ef   :  { %v1190_v57 = vmul.f32 %v1188_v61, %v5582_v8  ;;  %v1219_v61 = vstv %s5753_s1  ;;  %s5244_s1 = smov 128  }
 0x6f1   :  { %v1192_v11 = vmax.f32 %v1190_v57, 0.0 }
 0x6f3   :  { %4946 = vrsqrt.f32 %v1192_v11  ;;  %vm1201_vm11 = vcmp.eq.f32.partialorder %v1192_v11, inf  ;;  %v1204_v47 = vand.u32 2147483648, %v1192_v11  ;;  %vm1203_vm13 = vcmp.eq.f32.partialorder %v1192_v11, 0.0 }
 0x6f4   :  { %v932_v15 = vpop.f32.mrf.mxu3 }
 0x6f5   :  { %v942_v36 = vsub.f32 %v940_v30, %v932_v15  ;;  %v1179_v42 = vpop.f32.mrf.mxu2 }
 0x6f6   :  { %v1189_v44 = vsub.f32 %v1187_v1, %v1179_v42 }
 0x6f7   :  { %v944_v39 = vmul.f32 %v942_v36, %v5587_v14 }
 0x6f8   :  { %v1191_v38 = vmul.f32 %v1189_v44, %v5587_v14 }
 0x6f9   :  { %v4947_v26 = vpop.eup %4946  ;;  %v946_v46 = vmax.f32 %v944_v39, 0.0 }
 0x6fa   :  { %v1193_v0 = vmax.f32 %v1191_v38, 0.0  ;;  %v1195_v58 = vmul.f32 %v4947_v26, %v1192_v11 }
 0x6fb   :  { %4948 = vrsqrt.f32 %v946_v46  ;;  %vm966_vm2 = vcmp.eq.f32.partialorder %v946_v46, inf  ;;  %vm968_vm6 = vcmp.eq.f32.partialorder %v946_v46, 0.0 }
 0x6fc   :  { %4950 = vrsqrt.f32 %v1193_v0  ;;  %v1196_v17 = vmul.f32 %v4947_v26, %v1195_v58  ;;  %vm1213_vm7 = vcmp.eq.f32.partialorder %v1193_v0, inf  ;;  %vm1215_vm8 = vcmp.eq.f32.partialorder %v1193_v0, 0.0 }
 0x6fe   :  { %v1197_v62 = vmul.f32 0.5, %v1196_v17 }
 0x700   :  { %v1198_v60 = vsub.f32 1.5, %v1197_v62  ;;  %v969_v62 = vand.u32 2147483648, %v946_v46 }
 0x701   :  { %v4949_v9 = vpop.eup %4948 }
 0x702   :  { %v4951_v5 = vpop.eup %4950  ;;  %v1199_v18 = vmul.f32 %v4947_v26, %v1198_v60  ;;  %v960_v16 = vmul.f32 %v4949_v9, %v946_v46 }
 0x703   :  { %v1207_v13 = vmul.f32 %v4951_v5, %v1193_v0 }
 0x704   :  { %v1200_v12 = vmul.f32 %v1199_v18, %v1192_v11  ;;  %v961_v29 = vmul.f32 %v4949_v9, %v960_v16  ;;  %v1216_v16 = vand.u32 2147483648, %v1193_v0 }
 0x705   :  { %v1208_v57 = vmul.f32 %v4951_v5, %v1207_v13 }
 0x706   :  { %v1202_v30 = vsel %vm1201_vm11, %v1192_v11, %v1200_v12  ;;  %v962_v15 = vmul.f32 0.5, %v961_v29 }
 0x707   :  { %v1205_v1 = vsel %vm1203_vm13, %v1204_v47, %v1202_v30  ;;  %v1209_v36 = vmul.f32 0.5, %v1208_v57 }
 0x708   :  { %v1220_v42 = vmul.f32 %v1219_v61, %v1205_v1  ;;  %v963_v44 = vsub.f32 1.5, %v962_v15 }
 0x709   :  { %v1210_v39 = vsub.f32 1.5, %v1209_v36 }
 0x70a   :  { %v1222_v38 = vmul.f32 1.442695, %v1220_v42  ;;  %v964_v58 = vmul.f32 %v4949_v9, %v963_v44 }
 0x70b   :  { %v1211_v26 = vmul.f32 %v4951_v5, %v1210_v39 }
 0x70c   :  { %4952 = vpow2.f32 %v1222_v38  ;;  %v965_v17 = vmul.f32 %v964_v58, %v946_v46 }
 0x70d   :  { %v1212_v60 = vmul.f32 %v1211_v26, %v1193_v0 }
 0x70e   :  { %v967_v18 = vsel %vm966_vm2, %v946_v46, %v965_v17 }
 0x70f   :  { %v970_v11 = vsel %vm968_vm6, %v969_v62, %v967_v18  ;;  %v1214_v13 = vsel %vm1213_vm7, %v1193_v0, %v1212_v60 }
 0x710   :  { %v974_v12 = vmul.f32 %v972_v24, %v970_v11  ;;  %v1217_v29 = vsel %vm1215_vm8, %v1216_v16, %v1214_v13 }
 0x711   :  { %v1221_v47 = vmul.f32 %v1219_v61, %v1217_v29 }
 0x712   :  { %v4953_v57 = vpop.eup %4952  ;;  %v977_v30 = vmul.f32 1.442695, %v974_v12 }
 0x713   :  { %v1226_v9 = vmax.f32 %v4953_v57, 1e-05  ;;  %v1224_v5 = vmul.f32 1.442695, %v1221_v47 }
 0x714   :  { %4954 = vpow2.f32 %v977_v30 }
 0x715   :  { %v1228_v15 = vmin.f32 %v1226_v9, 100000.0  ;;  %4956 = vpow2.f32 %v1224_v5 }
 0x717   :  { %v1230_v1 = vmul.f32 %v1228_v15, %v5660_v55 }
 0x719   :  { %v1232_v46 = vsel %vm5527_vm14, %v1230_v1, -1e+32 }
 0x71a   :  { %v4955_v36 = vpop.eup %4954  ;;  %v1234_v42 = vsel %vm365_vm15, %v1232_v46, -inf }
 0x71b   :  { %v4957_v0 = vpop.eup %4956  ;;  %1235 = vmax.xlane.f32.xlu2 %v1234_v42  ;;  %v980_v24 = vmax.f32 %v4955_v36, 1e-05 }
 0x71c   :  { %v1227_v44 = vmax.f32 %v4957_v0, 1e-05 }
 0x71d   :  { %v982_v61 = vmin.f32 %v980_v24, 100000.0 }
 0x71e   :  { %v718_v39 = vpop.xlane.xlu1 %717  ;;  %v1229_v38 = vmin.f32 %v1227_v44, 100000.0 }
 0x71f   :  { %v720_v58 = vsub.f32 %v5735_v21, %v718_v39  ;;  %v984_v26 = vmul.f32 %v982_v61, %v5667_v7 }
 0x720   :  { %v1231_v17 = vmul.f32 %v1229_v38, %v5669_v19 }
 0x721   :  { %v723_v55 = vmul.f32 1.442695, %v720_v58  ;;  %v986_v62 = vsel %vm5548_vm5, %v984_v26, -1e+32 }
 0x722   :  { %v990_v60 = vsel %vm365_vm15, %v986_v62, -inf  ;;  %v1233_v18 = vsel %vm5548_vm5, %v1231_v17, -1e+32 }
 0x723   :  { %4958 = vpow2.f32 %v723_v55  ;;  %991 = vmax.xlane.f32.xlu2 %v990_v60  ;;  %v1237_v16 = vsel %vm365_vm15, %v1233_v18, -inf }
 0x724   :  { %1238 = vmax.xlane.f32.xlu1 %v1237_v16 }
 0x726   :  { %v989_v11 = vpop.xlane.xlu0 %988 }
 0x727   :  { %v993_v21 = vsub.f32 %v5742_v6, %v989_v11 }
 0x729   :  { %v5772_v7 = vpop.eup %4958  ;;  %v995_v19 = vmul.f32 1.442695, %v993_v21 }
 0x72a   :  { %v728_v13 = vsel %vm365_vm15, %v5772_v7, 0.0 }
 0x72b   :  { %4960 = vpow2.f32 %v995_v19 }
 0x72c   :  { %729 = vadd.xlane.f32.xlu1 %v728_v13 }
 0x72e   :  { %v727_v12 = vpop.xlane.xlu0 %726 }
 0x72f   :  { %4962 = vrcp.f32 %v727_v12  ;;  %v742_v6 = vand.u32 2147483648, %v727_v12  ;;  %v740_v15 = vand.u32 2147483647, %v727_v12  ;;  %vm736_vm10 = vweird.f32 %v727_v12 }
 0x731   :  { %v5776_v29 = vpop.eup %4960  ;;  %v743_v36 = vor.u32 1.1754944e-38, %v742_v6  ;;  %vm741_vm13 = vcmp.eq.f32.partialorder %v740_v15, 8.507059e+37 }
 0x732   :  { %v999_v47 = vsel %vm365_vm15, %v5776_v29, 0.0 }
 0x733   :  { %1000 = vadd.xlane.f32.xlu0 %v999_v47 }
 0x735   :  { %v4963_v57 = vpop.eup %4962 }
 0x736   :  { %v732_v30 = vmul.f32 %v4963_v57, %v727_v12  ;;  %vm737_vm9 = vweird.f32 %v4963_v57 }
 0x737   :  { %vm738_vm11 = vmor %vm736_vm10, %vm737_vm9 }
 0x738   :  { %v733_v9 = vsub.f32 1.0, %v732_v30 }
 0x73a   :  { %v734_v5 = vmul.f32 %v4963_v57, %v733_v9 }
 0x73c   :  { %v735_v1 = vadd.f32 %v4963_v57, %v734_v5 }
 0x73e   :  { %v739_v42 = vsel %vm738_vm11, %v4963_v57, %v735_v1 }
 0x73f   :  { %v744_v0 = vsel %vm741_vm13, %v743_v36, %v739_v42 }
 0x740   :  { %v745_v24 = vmul.f32 %v5746_v37, %v744_v0 }
 0x742   :  { %4666 = vmatmul.msk.f32.vlgmr.msra.gmra.mxu0 %vm365_vm15, %v745_v24 }
 0x78e   :  { %v1236_v44 = vpop.xlane.xlu2 %1235 }
 0x78f   :  { %v1240_v61 = vsub.f32 %v1232_v46, %v1236_v44 }
 0x791   :  { %v1242_v39 = vmul.f32 1.442695, %v1240_v61 }
 0x793   :  { %4964 = vpow2.f32 %v1242_v39 }
 0x796   :  { %v992_v38 = vpop.xlane.xlu2 %991 }
 0x797   :  { %v994_v58 = vsub.f32 %v986_v62, %v992_v38  ;;  %v1239_v26 = vpop.xlane.xlu1 %1238 }
 0x798   :  { %v1241_v17 = vsub.f32 %v1233_v18, %v1239_v26 }
 0x799   :  { %v5782_v55 = vpop.eup %4964  ;;  %v997_v60 = vmul.f32 1.442695, %v994_v58 }
 0x79a   :  { %v1244_v16 = vmul.f32 1.442695, %v1241_v17  ;;  %v1246_v11 = vsel %vm365_vm15, %v5782_v55, 0.0 }
 0x79b   :  { %4966 = vpow2.f32 %v997_v60  ;;  %1247 = vadd.xlane.f32.xlu2 %v1246_v11 }
 0x79c   :  { %4968 = vpow2.f32 %v1244_v16  ;;  %v4700_v16 = vld [vmem:[%s7473_s5 + $0xb8] sm:$0xff] }
 0x79f   :  { %v730_v37 = vpop.xlane.xlu1 %729 }
 0x7a0   :  { %4970 = vrcp.f32 %v730_v37  ;;  %v757_v57 = vand.u32 2147483648, %v730_v37  ;;  %v755_v9 = vand.u32 2147483647, %v730_v37  ;;  %vm751_vm6 = vweird.f32 %v730_v37 }
 0x7a1   :  { %v5786_v21 = vpop.eup %4966 }
 0x7a2   :  { %v5788_v46 = vpop.eup %4968  ;;  %v1002_v62 = vsel %vm365_vm15, %v5786_v21, 0.0  ;;  %v758_v15 = vor.u32 1.1754944e-38, %v757_v57  ;;  %vm756_vm8 = vcmp.eq.f32.partialorder %v755_v9, 8.507059e+37  ;;  %v226_v9 = vld [vmem:[%s7473_s5 + $0x58] sm:$0xff] }
 0x7a3   :  { %1003 = vadd.xlane.f32.xlu2 %v1002_v62  ;;  %v1249_v18 = vsel %vm365_vm15, %v5788_v46, 0.0  ;;  %1334 = vmatpush.msra.mxu0 %v226_v9  ;;  %v4704_v9 = vld [vmem:[%s7473_s5 + $0xd8] sm:$0xff] }
 0x7a4   :  { %1250 = vadd.xlane.f32.xlu1 %v1249_v18 }
 0x7a6   :  { %v4971_v19 = vpop.eup %4970  ;;  %v1001_v13 = vpop.xlane.xlu0 %1000 }
 0x7a7   :  { %v747_v12 = vmul.f32 %v4971_v19, %v730_v37  ;;  %4972 = vrcp.f32 %v1001_v13  ;;  %vm752_vm2 = vweird.f32 %v4971_v19  ;;  %v1016_v24 = vand.u32 2147483648, %v1001_v13  ;;  %v4699_v37 = vld [vmem:[%s7473_s5 + $0xb0] sm:$0xff] }
 0x7a8   :  { %vm753_vm7 = vmor %vm751_vm6, %vm752_vm2  ;;  %v1014_v39 = vand.u32 2147483647, %v1001_v13  ;;  %vm1010_vm10 = vweird.f32 %v1001_v13 }
 0x7a9   :  { %v748_v47 = vsub.f32 1.0, %v747_v12  ;;  %v1017_v58 = vor.u32 1.1754944e-38, %v1016_v24 }
 0x7aa   :  { %vm1015_vm13 = vcmp.eq.f32.partialorder %v1014_v39, 8.507059e+37 }
 0x7ab   :  { %v749_v30 = vmul.f32 %v4971_v19, %v748_v47 }
 0x7ad   :  { %v4973_v6 = vpop.eup %4972  ;;  %v750_v5 = vadd.f32 %v4971_v19, %v749_v30 }
 0x7ae   :  { %v1006_v1 = vmul.f32 %v4973_v6, %v1001_v13  ;;  %vm1011_vm9 = vweird.f32 %v4973_v6 }
 0x7af   :  { %v754_v36 = vsel %vm753_vm7, %v4971_v19, %v750_v5  ;;  %vm1012_vm11 = vmor %vm1010_vm10, %vm1011_vm9 }
 0x7b0   :  { %v1007_v42 = vsub.f32 1.0, %v1006_v1  ;;  %v759_v0 = vsel %vm756_vm8, %v758_v15, %v754_v36 }
 0x7b1   :  { %v760_v44 = vmul.f32 %v5772_v7, %v759_v0  ;;  %v4701_v7 = vld [vmem:[%s7473_s5 + $0xc0] sm:$0xff] }
 0x7b2   :  { %v1008_v61 = vmul.f32 %v4973_v6, %v1007_v42  ;;  %1546 = vmatpush.msra.mxu3 %v4701_v7 }
 0x7b3   :  { %4667 = vmatmul.msk.f32.gmra.mxu0 %vm365_vm15, %v760_v44 }
 0x7b4   :  { %v1009_v38 = vadd.f32 %v4973_v6, %v1008_v61  ;;  %1547 = vmatpush.msra.mxu3 %v4700_v16 }
 0x7b6   :  { %v1013_v26 = vsel %vm1012_vm11, %v4973_v6, %v1009_v38  ;;  %1548 = vmatpush.msra.mxu3 %v4699_v37  ;;  %v225_v6 = vld [vmem:[%s7473_s5 + $0x50] sm:$0xff] }
 0x7b7   :  { %v1018_v17 = vsel %vm1015_vm13, %v1017_v58, %v1013_v26  ;;  %1335 = vmatpush.msra.mxu0 %v225_v6  ;;  %v4703_v6 = vld [vmem:[%s7473_s5 + $0xd0] sm:$0xff] }
 0x7b8   :  { %v1019_v60 = vmul.f32 %v5776_v29, %v1018_v17  ;;  %v4698_v29 = vld [vmem:[%s7473_s5 + $0xa8] sm:$0xff] }
 0x7b9   :  { %1549 = vmatpush.msra.mxu3 %v4698_v29 }
 0x7bb   :  { %4679 = vmatmul.msk.f32.vlgmr.msrb.gmra.mxu0 %vm365_vm15, %v1019_v60 }
 0x80e   :  { %v1248_v11 = vpop.xlane.xlu2 %1247 }
 0x80f   :  { %4974 = vrcp.f32 %v1248_v11  ;;  %v1263_v47 = vand.u32 2147483648, %v1248_v11  ;;  %v1261_v30 = vand.u32 2147483647, %v1248_v11  ;;  %vm1257_vm6 = vweird.f32 %v1248_v11 }
 0x811   :  { %v1264_v1 = vor.u32 1.1754944e-38, %v1263_v47  ;;  %vm1262_vm8 = vcmp.eq.f32.partialorder %v1261_v30, 8.507059e+37 }
 0x815   :  { %v4975_v62 = vpop.eup %4974 }
 0x816   :  { %v1253_v18 = vmul.f32 %v4975_v62, %v1248_v11  ;;  %v1004_v19 = vpop.xlane.xlu2 %1003  ;;  %vm1258_vm2 = vweird.f32 %v4975_v62 }
 0x817   :  { %4976 = vrcp.f32 %v1004_v19  ;;  %v1251_v13 = vpop.xlane.xlu1 %1250  ;;  %vm1259_vm7 = vmor %vm1257_vm6, %vm1258_vm2  ;;  %v1031_v38 = vand.u32 2147483648, %v1004_v19  ;;  %v1029_v60 = vand.u32 2147483647, %v1004_v19  ;;  %vm1025_vm11 = vweird.f32 %v1004_v19 }
 0x818   :  { %v1254_v12 = vsub.f32 1.0, %v1253_v18  ;;  %4978 = vrcp.f32 %v1251_v13  ;;  %v1278_v17 = vand.u32 2147483648, %v1251_v13  ;;  %v1276_v16 = vand.u32 2147483647, %v1251_v13 }
 0x819   :  { %v1032_v37 = vor.u32 1.1754944e-38, %v1031_v38  ;;  %vm1272_vm13 = vweird.f32 %v1251_v13  ;;  %vm1030_vm6 = vcmp.eq.f32.partialorder %v1029_v60, 8.507059e+37 }
 0x81a   :  { %v1255_v57 = vmul.f32 %v4975_v62, %v1254_v12 }
 0x81c   :  { %v1256_v5 = vadd.f32 %v4975_v62, %v1255_v57 }
 0x81d   :  { %v4977_v15 = vpop.eup %4976 }
 0x81e   :  { %v4979_v36 = vpop.eup %4978  ;;  %v1260_v42 = vsel %vm1259_vm7, %v4975_v62, %v1256_v5  ;;  %v1021_v0 = vmul.f32 %v4977_v15, %v1004_v19  ;;  %vm1026_vm9 = vweird.f32 %v4977_v15  ;;  %v1279_v62 = vor.u32 1.1754944e-38, %v1278_v17  ;;  %v224_v19 = vld [vmem:[%s7473_s5 + $0x48] sm:$0xff] }
 0x81f   :  { %v1265_v24 = vsel %vm1262_vm8, %v1264_v1, %v1260_v42  ;;  %v1268_v44 = vmul.f32 %v4979_v36, %v1251_v13  ;;  %vm1273_vm10 = vweird.f32 %v4979_v36  ;;  %vm1027_vm2 = vmor %vm1025_vm11, %vm1026_vm9  ;;  %vm1277_vm8 = vcmp.eq.f32.partialorder %v1276_v16, 8.507059e+37  ;;  %1336 = vmatpush.msra.mxu0 %v224_v19  ;;  %v4705_v13 = vld [vmem:[%s7473_s5 + $0xe0] sm:$0xff]  ;;  %v239_v1 = vld [vmem:[%s7474_s6 + $0x18] sm:$0xff] }
 0x820   :  { %v1022_v61 = vsub.f32 1.0, %v1021_v0  ;;  %v1266_v39 = vmul.f32 %v5782_v55, %v1265_v24  ;;  %vm1274_vm7 = vmor %vm1272_vm13, %vm1273_vm10  ;;  %1423 = vmatpush.msrb.mxu1 %v239_v1  ;;  %v237_v42 = vld [vmem:[%s7474_s6 + $0x8] sm:$0xff]  ;;  %v236_v0 = vld [vmem:[%s7474_s6] sm:$0xff] }
 0x821   :  { %v1269_v58 = vsub.f32 1.0, %v1268_v44  ;;  %v5871_v16 = vld [vmem:[%s7473_s5 + $0x148] sm:$0xff] }
 0x822   :  { %v1023_v26 = vmul.f32 %v4977_v15, %v1022_v61  ;;  %4690 = vmatmul.msk.f32.vlgmr.msrb.gmra.mxu3 %vm365_vm15, %v1266_v39 }
 0x823   :  { %v1270_v7 = vmul.f32 %v4979_v36, %v1269_v58 }
 0x824   :  { %v1024_v11 = vadd.f32 %v4977_v15, %v1023_v26 }
 0x825   :  { %v1271_v29 = vadd.f32 %v4979_v36, %v1270_v7 }
 0x826   :  { %v1028_v18 = vsel %vm1027_vm2, %v4977_v15, %v1024_v11  ;;  %v4702_v15 = vld [vmem:[%s7473_s5 + $0xc8] sm:$0xff] }
 0x827   :  { %v1033_v55 = vsel %vm1030_vm6, %v1032_v37, %v1028_v18  ;;  %v1275_v12 = vsel %vm1274_vm7, %v4979_v36, %v1271_v29  ;;  %v238_v36 = vld [vmem:[%s7474_s6 + $0x10] sm:$0xff] }
 0x828   :  { %v1034_v47 = vmul.f32 %v5786_v21, %v1033_v55  ;;  %v1280_v57 = vsel %vm1277_vm8, %v1279_v62, %v1275_v12  ;;  %v223_v21 = vld [vmem:[%s7473_s5 + $0x40] sm:$0xff]  ;;  %1424 = vmatpush.msrb.mxu1 %v238_v36  ;;  %vm7479_vm8 = vcmask 523264  }
 0x829   :  { %v1281_v30 = vmul.f32 %v5788_v46, %v1280_v57  ;;  %1337 = vmatpush.msra.mxu0 %v223_v21  ;;  %v786_v46 = vpop.f32.mrf.mxu0 }
 0x82a   :  { %4680 = vmatmul.msk.f32.gmra.mxu0 %vm365_vm15, %v1034_v47  ;;  %1425 = vmatpush.msrb.mxu1 %v237_v42  ;;  %v816_v44 = vadd.f32 %v5656_v56, %v786_v46  ;;  %v5919_v47 = vld [vmem:[%s7473_s5 + $0xa0] sm:$0xff] }
 0x82b   :  { %4691 = vmatmul.msk.f32.gmra.mxu3 %vm365_vm15, %v1281_v30  ;;  %1570 = vmatpush.msrb.mxu0 %v4705_v13  ;;  %v1315_v57 = vperm.slane %v5919_v47, 2 }
 0x82c   :  { %1426 = vmatpush.msrb.mxu1 %v236_v0 }
 0x82d   :  { %1571 = vmatpush.msrb.mxu0 %v4704_v9 }
 0x82f   :  { %1572 = vmatpush.msrb.mxu0 %v4703_v6 }
 0x831   :  { %v789_v5 = vpop.f32.mrf.mxu0  ;;  %1573 = vmatpush.msrb.mxu0 %v4702_v15  ;;  %v5242_v15 = vmov 32.0  }
 0x832   :  { %v819_v26 = vadd.f32 %v5658_v2, %v789_v5  ;;  %v1533_v2 = vperm.slane %v5871_v16, 0  ;;  %4980 = vrcp.f32 %v5242_v15 }
 0x833   :  { %4711 = vmatmul.msk.f32.vlgmr.msra.gmra.mxu3 %vm71_vm0, %v5366_v43 }
 0x838   :  { %v4981_v1 = vpop.eup %4980 }
 0x839   :  { %v1060_v24 = vpop.f32.mrf.mxu0  ;;  %v1354_v36 = vmul.f32 32.0, %v4981_v1  ;;  %vm1358_vm9 = vweird.f32 %v4981_v1 }
 0x83a   :  { %v1066_v61 = vadd.f32 %v1060_v24, %v816_v44 }
 0x83b   :  { %4712 = vmatmul.msk.f32.gmra.mxu3 %vm71_vm0, %v5377_v48  ;;  %v1355_v42 = vsub.f32 1.0, %v1354_v36 }
 0x83d   :  { %v1356_v0 = vmul.f32 %v4981_v1, %v1355_v42  ;;  %v234_v42 = vld [vmem:[%s7473_s5 + $0x98] sm:$0xff] }
 0x83e   :  { %1452 = vmatpush.msra.mxu2 %v234_v42 }
 0x83f   :  { %v1357_v24 = vadd.f32 %v4981_v1, %v1356_v0  ;;  %v233_v0 = vld [vmem:[%s7473_s5 + $0x90] sm:$0xff] }
 0x840   :  { %1453 = vmatpush.msra.mxu2 %v233_v0 }
 0x841   :  { %v5926_v44 = vsel %vm1358_vm9, %v4981_v1, %v1357_v24  ;;  %v1557_v1 = vperm.slane %v5871_v16, 1  ;;  %v232_v16 = vld [vmem:[%s7473_s5 + $0x88] sm:$0xff] }
 0x842   :  { %1454 = vmatpush.msra.mxu2 %v232_v16 }
 0x8a5   :  { %v1307_v39 = vpop.f32.mrf.mxu3 }
 0x8a6   :  { %v1313_v38 = vadd.f32 %v1307_v39, %v1066_v61 }
 0x8a7   :  { %v1063_v58 = vpop.f32.mrf.mxu0 }
 0x8a8   :  { %4692 = vmatmul.msk.f32.vlgmr.msra.gmra.mxu0 %vm71_vm0, %v1313_v38  ;;  %v1067_v17 = vadd.f32 %v1063_v58, %v819_v26 }
 0x8a9   :  { %4728 = vmatpush.msk.msra.mxu0 %vm5395_vm3, %v7484_v54 }
 0x8ab   :  { %4729 = vmatpush.msk.msra.mxu0 %vm5401_vm4, %v7484_v54 }
 0x8ae   :  { %v1310_v60 = vpop.f32.mrf.mxu3 }
 0x8af   :  { %v1314_v7 = vadd.f32 %v1310_v60, %v1067_v17 }
 0x8b1   :  { %4693 = vmatmul.msk.f32.gmra.mxu0 %vm71_vm0, %v1314_v7 }
 0x8b6   :  { %v1551_v56 = vpop.f32.mrf.mxu3 }
 0x8b7   :  { %v5888_v29 = vadd.f32 %v1551_v56, %v1533_v2 }
 0x8b9   :  { %4713 = vmatmul.msk.f32.vlgmr.msrb.gmra.mxu0 %vm71_vm0, %v5366_v43  ;;  %v1803_v62 = vmul.f32 %v5447_v4, %v5888_v29  ;;  %v2077_v55 = vmul.f32 %v5464_v10, %v5888_v29 }
 0x8ba   :  { %4741 = vmatpush.msk.msrb.mxu0 %vm5395_vm3, %v7484_v54 }
 0x8bc   :  { %4742 = vmatpush.msk.msrb.mxu0 %vm5401_vm4, %v7484_v54 }
 0x8be   :  { %v1554_v11 = vpop.f32.mrf.mxu3 }
 0x8bf   :  { %v5880_v37 = vadd.f32 %v1554_v11, %v1533_v2 }
 0x8c1   :  { %4714 = vmatmul.msk.f32.gmra.mxu0 %vm71_vm0, %v5377_v48  ;;  %4715 = vmatpush.xpose.msk.msra.mxu1 %vm71_vm0, %v5880_v37  ;;  %v1804_v18 = vmul.f32 %v5447_v4, %v5880_v37  ;;  %v2078_v12 = vmul.f32 %v5464_v10, %v5880_v37 }
 0x8c2   :  { %4724 = vmatpush.xpose.msk.msrb.mxu3 %vm71_vm0, %v5880_v37 }
 0x8c5   :  { %4716 = vmatpush.xpose.msk.msra.mxu1 %vm71_vm0, %v5888_v29 }
 0x8c6   :  { %4725 = vmatpush.xpose.msk.msrb.mxu3 %vm71_vm0, %v5888_v29 }
 0x8c9   :  { %4726 = vmatmul.msk.f32.vlgmr.msrb.gmra.mxu3 %vm71_vm0, %v1803_v62 }
 0x8ca   :  { %4737 = vmatpush.xpose.msk.msra.mxu3 %vm71_vm0, %v5880_v37 }
 0x8ce   :  { %4738 = vmatpush.xpose.msk.msra.mxu3 %vm71_vm0, %v5888_v29 }
 0x8d1   :  { %4727 = vmatmul.msk.f32.gmra.mxu3 %vm71_vm0, %v1804_v18 }
 0x8d2   :  { %4752 = vmatpush.msk.msrb.mxu3 %vm5395_vm3, %v7484_v54 }
 0x8d4   :  { %4753 = vmatpush.msk.msrb.mxu3 %vm5401_vm4, %v7484_v54 }
 0x8d9   :  { %4739 = vmatmul.msk.f32.vlgmr.msra.gmra.mxu3 %vm71_vm0, %v2077_v55 }
 0x8e1   :  { %4740 = vmatmul.msk.f32.gmra.mxu3 %vm71_vm0, %v2078_v12 }
 0x925   :  { %v1339_v30 = vpop.f32.mrf.mxu0 }
 0x926   :  { %v1340_v19 = vadd.f32 %v1339_v30, %v1315_v57 }
 0x928   :  { %v1345_v21 = vadd.f32 %v1340_v19, %v5371_v45 }
 0x92a   :  { %v1347_v46 = vsel %vm71_vm0, %v1345_v21, 0.0 }
 0x92b   :  { %1348 = vadd.xlane.f32.xlu0 %v1347_v46 }
 0x92e   :  { %v1342_v13 = vpop.f32.mrf.mxu0 }
 0x92f   :  { %v1343_v9 = vadd.f32 %v1342_v13, %v1315_v57 }
 0x931   :  { %v1346_v6 = vadd.f32 %v1343_v9, %v5382_v49 }
 0x933   :  { %v1350_v5 = vsel %vm71_vm0, %v1346_v6, 0.0 }
 0x934   :  { %1351 = vadd.xlane.f32.xlu1 %v1350_v5  ;;  %v1398_v5 = vperm.slane %v5919_v47, 3 }
 0x936   :  { %v1575_v12 = vpop.f32.mrf.mxu0 }
 0x99e   :  { %v1349_v45 = vpop.xlane.xlu0 %1348 }
 0x99f   :  { %v1360_v61 = vmul.f32 %v5926_v44, %v1349_v45 }
 0x9a1   :  { %v1362_v39 = vsub.f32 %v1345_v21, %v1360_v61  ;;  %v1401_v61 = vperm.slane %v5919_v47, 4 }
 0x9a3   :  { %v1364_v38 = vmul.f32 %v1362_v39, %v1362_v39 }
 0x9a5   :  { %v1366_v49 = vsel %vm71_vm0, %v1364_v38, 0.0 }
 0x9a6   :  { %1367 = vadd.xlane.f32.xlu2 %v1366_v49 }
 0x9a7   :  { %v1352_v58 = vpop.xlane.xlu1 %1351 }
 0x9a8   :  { %v1361_v26 = vmul.f32 %v5926_v44, %v1352_v58 }
 0x9aa   :  { %v1363_v17 = vsub.f32 %v1346_v6, %v1361_v26  ;;  %v1578_v6 = vpop.f32.mrf.mxu0  ;;  %v5948_v26 = vadd.f32 %v1575_v12, %v1557_v1  ;;  %v228_v12 = vld [vmem:[%s7473_s5 + $0x68] sm:$0xff] }
 0x9ab   :  { %v5943_v38 = vadd.f32 %v1578_v6, %v1557_v1 }
 0x9ac   :  { %v1365_v60 = vmul.f32 %v1363_v17, %v1363_v17 }
 0x9ad   :  { %v2018_v47 = vmul.f32 %v5447_v4, %v5943_v38  ;;  %v1802_v1 = vmul.f32 %v5444_v3, %v5943_v38 }
 0x9ae   :  { %v1369_v7 = vsel %vm71_vm0, %v1365_v60, 0.0  ;;  %v231_v60 = vld [vmem:[%s7473_s5 + $0x80] sm:$0xff] }
 0x9af   :  { %1370 = vadd.xlane.f32.xlu0 %v1369_v7  ;;  %1455 = vmatpush.msra.mxu2 %v231_v60 }
 0xa19   :  { %v1368_v56 = vpop.xlane.xlu2 %1367 }
 0xa1a   :  { %v1372_v2 = vmul.f32 %v1368_v56, %v5926_v44  ;;  %v230_v56 = vld [vmem:[%s7473_s5 + $0x78] sm:$0xff] }
 0xa1b   :  { %1456 = vmatpush.msra.mxu2 %v230_v56 }
 0xa1c   :  { %v1374_v11 = vadd.f32 1e-05, %v1372_v2 }
 0xa1e   :  { %4982 = vrsqrt.f32 %v1374_v11  ;;  %vm1382_vm11 = vweird.f32 %v1374_v11 }
 0xa22   :  { %v1371_v62 = vpop.xlane.xlu0 %1370 }
 0xa23   :  { %v1373_v18 = vmul.f32 %v1371_v62, %v5926_v44  ;;  %v229_v62 = vld [vmem:[%s7473_s5 + $0x70] sm:$0xff] }
 0xa24   :  { %v4983_v55 = vpop.eup %4982  ;;  %1457 = vmatpush.msra.mxu2 %v229_v62 }
 0xa25   :  { %v1377_v57 = vmul.f32 %v4983_v55, %v1374_v11  ;;  %v1375_v30 = vadd.f32 1e-05, %v1373_v18  ;;  %vm1383_vm10 = vweird.f32 %v4983_v55  ;;  %v2017_v11 = vmul.f32 %v5447_v4, %v5948_v26 }
 0xa26   :  { %vm1384_vm13 = vmor %vm1382_vm11, %vm1383_vm10  ;;  %1458 = vmatpush.msra.mxu2 %v228_v12 }
 0xa27   :  { %v1378_v19 = vmul.f32 %v4983_v55, %v1377_v57  ;;  %4984 = vrsqrt.f32 %v1375_v30  ;;  %vm1392_vm6 = vweird.f32 %v1375_v30 }
 0xa29   :  { %v1379_v21 = vmul.f32 0.5, %v1378_v19  ;;  %v1581_v19 = vmul.f32 %v5444_v3, %v5888_v29 }
 0xa2b   :  { %v1380_v46 = vsub.f32 1.5, %v1379_v21  ;;  %v2292_v21 = vmul.f32 %v5464_v10, %v5943_v38 }
 0xa2d   :  { %v4985_v13 = vpop.eup %4984  ;;  %v1381_v9 = vmul.f32 %v4983_v55, %v1380_v46  ;;  %v1582_v46 = vmul.f32 %v5444_v3, %v5880_v37 }
 0xa2e   :  { %v1387_v15 = vmul.f32 %v4985_v13, %v1375_v30  ;;  %vm1393_vm2 = vweird.f32 %v4985_v13 }
 0xa2f   :  { %v1385_v36 = vsel %vm1384_vm13, %v4983_v55, %v1381_v9  ;;  %vm1394_vm7 = vmor %vm1392_vm6, %vm1393_vm2  ;;  %v4880_v9 = vld [vmem:[%s7474_s6 + $0x20] ss:$0 sm:$0xff] }
 0xa30   :  { %v1396_v24 = vmul.f32 %v1385_v36, %v1362_v39  ;;  %v1388_v45 = vmul.f32 %v4985_v13, %v1387_v15  ;;  %v1801_v36 = vmul.f32 %v5444_v3, %v5948_v26 }
 0xa32   :  { %v1399_v49 = vmul.f32 %v1398_v5, %v1396_v24  ;;  %v1389_v58 = vmul.f32 0.5, %v1388_v45 }
 0xa34   :  { %v1390_v39 = vsub.f32 1.5, %v1389_v58  ;;  %v5953_v7 = vadd.f32 %v1401_v61, %v1399_v49 }
 0xa36   :  { %v1391_v2 = vmul.f32 %v4985_v13, %v1390_v39  ;;  %4694 = vmatmul.msk.f32.vlgmr.msrb.gmra.mxu1 %vm71_vm0, %v5953_v7 }
 0xa37   :  { %2039 = vmatpush.msrb.mxu1 %v2018_v47 }
 0xa38   :  { %v1395_v18 = vsel %vm1394_vm7, %v4985_v13, %v1391_v2  ;;  %v227_v13 = vld [vmem:[%s7473_s5 + $0x60] sm:$0xff] }
 0xa39   :  { %2040 = vmatpush.msrb.mxu1 %v2017_v11  ;;  %v1397_v55 = vmul.f32 %v1395_v18, %v1363_v17  ;;  %v2291_v17 = vmul.f32 %v5464_v10, %v5948_v26  ;;  %1459 = vmatpush.msra.mxu2 %v227_v13 }
 0xa3b   :  { %v1400_v57 = vmul.f32 %v1398_v5, %v1397_v55  ;;  %4719 = vmatpush.msk.msrb.mxu2 %vm5395_vm3, %v7484_v54 }
 0xa3d   :  { %v5970_v30 = vadd.f32 %v1401_v61, %v1400_v57  ;;  %4720 = vmatpush.msk.msrb.mxu2 %vm5401_vm4, %v7484_v54 }
 0xa3f   :  { %4695 = vmatmul.msk.f32.gmra.mxu1 %vm71_vm0, %v5970_v30 }
 0xa47   :  { %4717 = vmatmul.msk.f32.vlgmr.msra.gmra.mxu1 %vm71_vm0, %v1581_v19 }
 0xa48   :  { %2313 = vmatpush.msra.mxu1 %v2292_v21 }
 0xa4a   :  { %2314 = vmatpush.msra.mxu1 %v2291_v17 }
 0xa4f   :  { %4718 = vmatmul.msk.f32.gmra.mxu1 %vm71_vm0, %v1582_v46 }
 0xab3   :  { %v1428_v6 = vpop.f32.mrf.mxu1 }
 0xab4   :  { %v1429_v5 = vadd.f32 %v4880_v9, %v1428_v6 }
 0xab6   :  { %v1434_v15 = vmax.f32 %v1429_v5, 0.0 }
 0xab8   :  { %4696 = vmatmul.msk.f32.vlgmr.msra.gmra.mxu2 %vm7479_vm8, %v1434_v15 }
 0xab9   :  { %2068 = vmatpush.msra.mxu2 %v1802_v1 }
 0xabb   :  { %2069 = vmatpush.msra.mxu2 %v1801_v36 }
 0xabc   :  { %v1431_v42 = vpop.f32.mrf.mxu1 }
 0xabd   :  { %v1432_v0 = vadd.f32 %v4880_v9, %v1431_v42 }
 0xabf   :  { %v1435_v24 = vmax.f32 %v1432_v0, 0.0 }
 0xac1   :  { %4697 = vmatmul.msk.f32.gmra.mxu2 %vm7479_vm8, %v1435_v24 }
 0xac4   :  { %v1612_v45 = vpop.f32.mrf.mxu1 }
 0xac5   :  { %v6002_v61 = vmul.f32 0.35355338, %v1612_v45 }
 0xac7   :  { %v1620_v16 = vsel %vm5527_vm14, %v6002_v61, -1e+32 }
 0xac8   :  { %v1622_v49 = vsel %vm365_vm15, %v1620_v16, -inf }
 0xac9   :  { %1623 = vmax.xlane.f32.xlu1 %v1622_v49 }
 0xacc   :  { %v1615_v58 = vpop.f32.mrf.mxu1 }
 0xacd   :  { %v6008_v60 = vmul.f32 0.35355338, %v1615_v58 }
 0xacf   :  { %v1621_v39 = vsel %vm5548_vm5, %v6008_v60, -1e+32 }
 0xad0   :  { %v1625_v47 = vsel %vm365_vm15, %v1621_v39, -inf }
 0xad1   :  { %1626 = vmax.xlane.f32.xlu2 %v1625_v47 }
 0xb3c   :  { %v1624_v56 = vpop.xlane.xlu1 %1623 }
 0xb3d   :  { %v1628_v2 = vsub.f32 %v1620_v16, %v1624_v56 }
 0xb3f   :  { %v1630_v11 = vmul.f32 1.442695, %v1628_v2 }
 0xb41   :  { %4986 = vpow2.f32 %v1630_v11 }
 0xb44   :  { %v1627_v62 = vpop.xlane.xlu2 %1626 }
 0xb45   :  { %v1629_v18 = vsub.f32 %v1621_v39, %v1627_v62 }
 0xb47   :  { %v4987_v55 = vpop.eup %4986  ;;  %v1632_v12 = vmul.f32 1.442695, %v1629_v18 }
 0xb48   :  { %v1634_v57 = vsel %vm365_vm15, %v4987_v55, 0.0 }
 0xb49   :  { %4988 = vpow2.f32 %v1632_v12  ;;  %1635 = vadd.xlane.f32.xlu0 %v1634_v57 }
 0xb4f   :  { %v4989_v19 = vpop.eup %4988 }
 0xb50   :  { %v1637_v21 = vsel %vm365_vm15, %v4989_v19, 0.0 }
 0xb51   :  { %1638 = vadd.xlane.f32.xlu1 %v1637_v21 }
 0xbbc   :  { %v1636_v17 = vpop.xlane.xlu0 %1635 }
 0xbbd   :  { %4990 = vrcp.f32 %v1636_v17  ;;  %v1651_v5 = vand.u32 2147483648, %v1636_v17  ;;  %v1649_v1 = vand.u32 2147483647, %v1636_v17  ;;  %vm1645_vm10 = vweird.f32 %v1636_v17 }
 0xbbf   :  { %v1652_v0 = vor.u32 1.1754944e-38, %v1651_v5  ;;  %vm1650_vm13 = vcmp.eq.f32.partialorder %v1649_v1, 8.507059e+37 }
 0xbc3   :  { %v4991_v46 = vpop.eup %4990 }
 0xbc4   :  { %v1641_v13 = vmul.f32 %v4991_v46, %v1636_v17  ;;  %v1639_v9 = vpop.xlane.xlu1 %1638  ;;  %vm1646_vm9 = vweird.f32 %v4991_v46 }
 0xbc5   :  { %4992 = vrcp.f32 %v1639_v9  ;;  %vm1647_vm11 = vmor %vm1645_vm10, %vm1646_vm9  ;;  %v1666_v39 = vand.u32 2147483648, %v1639_v9  ;;  %v1664_v56 = vand.u32 2147483647, %v1639_v9  ;;  %vm1660_vm6 = vweird.f32 %v1639_v9 }
 0xbc6   :  { %v1642_v6 = vsub.f32 1.0, %v1641_v13 }
 0xbc7   :  { %v1667_v18 = vor.u32 1.1754944e-38, %v1666_v39  ;;  %vm1665_vm9 = vcmp.eq.f32.partialorder %v1664_v56, 8.507059e+37 }
 0xbc8   :  { %v1643_v15 = vmul.f32 %v4991_v46, %v1642_v6 }
 0xbca   :  { %v1644_v36 = vadd.f32 %v4991_v46, %v1643_v15 }
 0xbcb   :  { %v4993_v42 = vpop.eup %4992 }
 0xbcc   :  { %v1648_v24 = vsel %vm1647_vm11, %v4991_v46, %v1644_v36  ;;  %v1656_v45 = vmul.f32 %v4993_v42, %v1639_v9  ;;  %vm1661_vm2 = vweird.f32 %v4993_v42  ;;  %v6026_v46 = vpop.f32.mrf.mxu2 }
 0xbcd   :  { %v1653_v16 = vsel %vm1650_vm13, %v1652_v0, %v1648_v24  ;;  %vm1662_vm7 = vmor %vm1660_vm6, %vm1661_vm2 }
 0xbce   :  { %v1654_v49 = vmul.f32 %v4987_v55, %v1653_v16  ;;  %v1657_v58 = vsub.f32 1.0, %v1656_v45 }
 0xbd0   :  { %v1658_v47 = vmul.f32 %v4993_v42, %v1657_v58  ;;  %v1670_v2 = vmul.f32 %v5563_v34, %v1654_v49 }
 0xbd2   :  { %v1659_v11 = vadd.f32 %v4993_v42, %v1658_v47  ;;  %4721 = vmatmul.msk.f32.vlgmr.msrb.gmra.mxu2 %vm365_vm15, %v1670_v2  ;;  %v1701_v62 = vsel %vm365_vm15, %v1670_v2, 0.0 }
 0xbd3   :  { %4748 = vmatpush.xpose.msk.msrb.mxu2 %vm71_vm0, %v5880_v37  ;;  %1702 = vadd.xlane.f32.xlu2 %v1701_v62 }
 0xbd4   :  { %v1663_v55 = vsel %vm1662_vm7, %v4993_v42, %v1659_v11  ;;  %v6028_v13 = vpop.f32.mrf.mxu2 }
 0xbd5   :  { %v1668_v12 = vsel %vm1665_vm9, %v1667_v18, %v1663_v55  ;;  %v1738_v55 = vstv %s4723_s14 }
 0xbd6   :  { %v1669_v57 = vmul.f32 %v4989_v19, %v1668_v12 }
 0xbd7   :  { %4749 = vmatpush.xpose.msk.msrb.mxu2 %vm71_vm0, %v5888_v29 }
 0xbd8   :  { %v1671_v21 = vmul.f32 %v5573_v59, %v1669_v57 }
 0xbda   :  { %4722 = vmatmul.msk.f32.gmra.mxu2 %vm365_vm15, %v1671_v21  ;;  %v1704_v17 = vsel %vm365_vm15, %v1671_v21, 0.0 }
 0xbdb   :  { %1705 = vadd.xlane.f32.xlu0 %v1704_v17 }
 0xc46   :  { %v1703_v9 = vpop.xlane.xlu2 %1702 }
 0xc4e   :  { %v1706_v1 = vpop.xlane.xlu0 %1705 }
 0xc55   :  { %v1695_v6 = vpop.f32.mrf.mxu2 }
 0xc56   :  { %v1707_v5 = vsub.f32 %v1703_v9, %v1695_v6 }
 0xc58   :  { %v1709_v15 = vmul.f32 %v1707_v5, %v5582_v8 }
 0xc5a   :  { %v1711_v19 = vmax.f32 %v1709_v15, 0.0 }
 0xc5c   :  { %4994 = vrsqrt.f32 %v1711_v19  ;;  %vm1720_vm10 = vcmp.eq.f32.partialorder %v1711_v19, inf  ;;  %v1723_v18 = vand.u32 2147483648, %v1711_v19  ;;  %vm1722_vm11 = vcmp.eq.f32.partialorder %v1711_v19, 0.0 }
 0xc5d   :  { %v1698_v36 = vpop.f32.mrf.mxu2 }
 0xc5e   :  { %v1708_v42 = vsub.f32 %v1706_v1, %v1698_v36 }
 0xc60   :  { %v1710_v0 = vmul.f32 %v1708_v42, %v5587_v14 }
 0xc62   :  { %v4995_v24 = vpop.eup %4994  ;;  %v1712_v45 = vmax.f32 %v1710_v0, 0.0 }
 0xc63   :  { %v1714_v16 = vmul.f32 %v4995_v24, %v1711_v19 }
 0xc64   :  { %4996 = vrsqrt.f32 %v1712_v45  ;;  %vm1732_vm13 = vcmp.eq.f32.partialorder %v1712_v45, inf  ;;  %v1735_v1 = vand.u32 2147483648, %v1712_v45  ;;  %vm1734_vm2 = vcmp.eq.f32.partialorder %v1712_v45, 0.0 }
 0xc65   :  { %v1715_v49 = vmul.f32 %v4995_v24, %v1714_v16 }
 0xc67   :  { %v1716_v58 = vmul.f32 0.5, %v1715_v49 }
 0xc69   :  { %v1717_v39 = vsub.f32 1.5, %v1716_v58  ;;  %v1828_v58 = vpop.f32.mrf.mxu3 }
 0xc6a   :  { %v4997_v47 = vpop.eup %4996 }
 0xc6b   :  { %v1718_v56 = vmul.f32 %v4995_v24, %v1717_v39  ;;  %v1726_v2 = vmul.f32 %v4997_v47, %v1712_v45 }
 0xc6d   :  { %v1719_v11 = vmul.f32 %v1718_v56, %v1711_v19  ;;  %v1727_v62 = vmul.f32 %v4997_v47, %v1726_v2 }
 0xc6f   :  { %v1721_v12 = vsel %vm1720_vm10, %v1711_v19, %v1719_v11  ;;  %v1728_v57 = vmul.f32 0.5, %v1727_v62 }
 0xc70   :  { %v1724_v21 = vsel %vm1722_vm11, %v1723_v18, %v1721_v12 }
 0xc71   :  { %v1739_v17 = vmul.f32 %v1738_v55, %v1724_v21  ;;  %v1729_v9 = vsub.f32 1.5, %v1728_v57  ;;  %v6040_v57 = vmul.f32 0.35355338, %v1828_v58 }
 0xc73   :  { %v1741_v6 = vmul.f32 1.442695, %v1739_v17  ;;  %v1730_v5 = vmul.f32 %v4997_v47, %v1729_v9 }
 0xc75   :  { %4998 = vpow2.f32 %v1741_v6  ;;  %v1731_v15 = vmul.f32 %v1730_v5, %v1712_v45 }
 0xc77   :  { %v1733_v36 = vsel %vm1732_vm13, %v1712_v45, %v1731_v15  ;;  %v1831_v45 = vpop.f32.mrf.mxu3 }
 0xc78   :  { %v1736_v42 = vsel %vm1734_vm2, %v1735_v1, %v1733_v36 }
 0xc79   :  { %v1740_v0 = vmul.f32 %v1738_v55, %v1736_v42 }
 0xc7b   :  { %v4999_v24 = vpop.eup %4998  ;;  %v1743_v16 = vmul.f32 1.442695, %v1740_v0 }
 0xc7c   :  { %v1745_v49 = vmax.f32 %v4999_v24, 1e-05 }
 0xc7d   :  { %5000 = vpow2.f32 %v1743_v16 }
 0xc7e   :  { %v1747_v19 = vmin.f32 %v1745_v49, 100000.0  ;;  %v6053_v49 = vmul.f32 0.35355338, %v1831_v45 }
 0xc7f   :  { %v2102_v21 = vpop.f32.mrf.mxu3 }
 0xc80   :  { %v1749_v39 = vmul.f32 %v1747_v19, %v6002_v61  ;;  %v1836_v61 = vsel %vm5527_vm14, %v6040_v57, -1e+32  ;;  %v6046_v9 = vmul.f32 0.35355338, %v2102_v21 }
 0xc81   :  { %v1838_v17 = vsel %vm365_vm15, %v1836_v61, -inf }
 0xc82   :  { %v1751_v56 = vsel %vm5527_vm14, %v1749_v39, -1e+32  ;;  %v6058_v39 = vsel %vm5548_vm5, %v6053_v49, -1e+32 }
 0xc83   :  { %v5001_v47 = vpop.eup %5000  ;;  %v1753_v2 = vsel %vm365_vm15, %v1751_v56, -inf }
 0xc84   :  { %1754 = vmax.xlane.f32.xlu1 %v1753_v2  ;;  %v1746_v11 = vmax.f32 %v5001_v47, 1e-05  ;;  %v1841_v2 = vsel %vm365_vm15, %v6058_v39, -inf }
 0xc86   :  { %v1748_v62 = vmin.f32 %v1746_v11, 100000.0 }
 0xc88   :  { %v1750_v18 = vmul.f32 %v1748_v62, %v6008_v60  ;;  %v2110_v60 = vsel %vm5527_vm14, %v6046_v9, -1e+32 }
 0xc89   :  { %v2112_v6 = vsel %vm365_vm15, %v2110_v60, -inf }
 0xc8a   :  { %v1752_v55 = vsel %vm5548_vm5, %v1750_v18, -1e+32 }
 0xc8b   :  { %v1756_v12 = vsel %vm365_vm15, %v1752_v55, -inf }
 0xc8c   :  { %1757 = vmax.xlane.f32.xlu2 %v1756_v12 }
 0xc94   :  { %1839 = vmax.xlane.f32.xlu2 %v1838_v17 }
 0xc9c   :  { %2113 = vmax.xlane.f32.xlu2 %v2112_v6 }
 0xcf7   :  { %v1755_v5 = vpop.xlane.xlu1 %1754 }
 0xcf8   :  { %v1759_v15 = vsub.f32 %v1751_v56, %v1755_v5 }
 0xcfa   :  { %v1761_v1 = vmul.f32 1.442695, %v1759_v15 }
 0xcfc   :  { %5002 = vpow2.f32 %v1761_v1 }
 0xcff   :  { %v1758_v36 = vpop.xlane.xlu2 %1757 }
 0xd00   :  { %v1760_v42 = vsub.f32 %v1752_v55, %v1758_v36 }
 0xd02   :  { %v5003_v0 = vpop.eup %5002  ;;  %v1763_v24 = vmul.f32 1.442695, %v1760_v42 }
 0xd03   :  { %v1765_v16 = vsel %vm365_vm15, %v5003_v0, 0.0 }
 0xd04   :  { %5004 = vpow2.f32 %v1763_v24  ;;  %1766 = vadd.xlane.f32.xlu0 %v1765_v16 }
 0xd07   :  { %v1840_v58 = vpop.xlane.xlu2 %1839 }
 0xd08   :  { %v1844_v19 = vsub.f32 %v1836_v61, %v1840_v58 }
 0xd0a   :  { %v5005_v56 = vpop.eup %5004  ;;  %v1846_v47 = vmul.f32 1.442695, %v1844_v19 }
 0xd0b   :  { %v1768_v11 = vsel %vm365_vm15, %v5005_v56, 0.0 }
 0xd0c   :  { %5006 = vpow2.f32 %v1846_v47  ;;  %1842 = vmax.xlane.f32.xlu0 %v1841_v2  ;;  %1769 = vadd.xlane.f32.xlu1 %v1768_v11 }
 0xd0f   :  { %v2114_v62 = vpop.xlane.xlu2 %2113 }
 0xd10   :  { %v2118_v45 = vsub.f32 %v2110_v60, %v2114_v62 }
 0xd12   :  { %v5007_v18 = vpop.eup %5006  ;;  %v2120_v55 = vmul.f32 1.442695, %v2118_v45 }
 0xd13   :  { %v1850_v12 = vsel %vm365_vm15, %v5007_v18, 0.0 }
 0xd14   :  { %5008 = vpow2.f32 %v2120_v55  ;;  %1851 = vadd.xlane.f32.xlu2 %v1850_v12 }
 0xd1a   :  { %v6064_v61 = vpop.eup %5008 }
 0xd1b   :  { %v2124_v21 = vsel %vm365_vm15, %v6064_v61, 0.0 }
 0xd1c   :  { %2125 = vadd.xlane.f32.xlu2 %v2124_v21 }
 0xd77   :  { %v1767_v17 = vpop.xlane.xlu0 %1766 }
 0xd78   :  { %5010 = vrcp.f32 %v1767_v17  ;;  %v1782_v60 = vand.u32 2147483648, %v1767_v17  ;;  %v1780_v42 = vand.u32 2147483647, %v1767_v17  ;;  %vm1776_vm7 = vweird.f32 %v1767_v17 }
 0xd7a   :  { %v1783_v58 = vor.u32 1.1754944e-38, %v1782_v60  ;;  %vm1781_vm10 = vcmp.eq.f32.partialorder %v1780_v42, 8.507059e+37 }
 0xd7e   :  { %v5011_v6 = vpop.eup %5010 }
 0xd7f   :  { %v1772_v5 = vmul.f32 %v5011_v6, %v1767_v17  ;;  %v1770_v15 = vpop.xlane.xlu1 %1769  ;;  %vm1777_vm6 = vweird.f32 %v5011_v6 }
 0xd80   :  { %5012 = vrcp.f32 %v1770_v15  ;;  %vm1778_vm9 = vmor %vm1776_vm7, %vm1777_vm6  ;;  %v1797_v55 = vand.u32 2147483648, %v1770_v15  ;;  %v1795_v21 = vand.u32 2147483647, %v1770_v15  ;;  %vm1791_vm13 = vweird.f32 %v1770_v15 }
 0xd81   :  { %v1773_v1 = vsub.f32 1.0, %v1772_v5 }
 0xd82   :  { %vm1796_vm6 = vcmp.eq.f32.partialorder %v1795_v21, 8.507059e+37 }
 0xd83   :  { %v1774_v36 = vmul.f32 %v5011_v6, %v1773_v1  ;;  %v1798_v1 = vor.u32 1.1754944e-38, %v1797_v55  ;;  %v2539_v55 = vmul.f32 %v5634_v63, %v5943_v38  ;;  %v1843_v38 = vpop.xlane.xlu0 %1842 }
 0xd85   :  { %v1775_v24 = vadd.f32 %v5011_v6, %v1774_v36 }
 0xd86   :  { %v5013_v16 = vpop.eup %5012 }
 0xd87   :  { %v1779_v19 = vsel %vm1778_vm9, %v5011_v6, %v1775_v24  ;;  %v1787_v47 = vmul.f32 %v5013_v16, %v1770_v15  ;;  %v1852_v2 = vpop.xlane.xlu2 %1851  ;;  %vm1792_vm11 = vweird.f32 %v5013_v16 }
 0xd88   :  { %v1784_v11 = vsel %vm1781_vm10, %v1783_v58, %v1779_v19  ;;  %5014 = vrcp.f32 %v1852_v2  ;;  %vm1793_vm2 = vmor %vm1791_vm13, %vm1792_vm11  ;;  %v1867_v58 = vand.u32 2147483648, %v1852_v2  ;;  %vm1861_vm9 = vweird.f32 %v1852_v2 }
 0xd89   :  { %v1788_v62 = vsub.f32 1.0, %v1787_v47  ;;  %v1785_v45 = vmul.f32 %v5003_v0, %v1784_v11  ;;  %v1865_v0 = vand.u32 2147483647, %v1852_v2 }
 0xd8a   :  { %v1868_v15 = vor.u32 1.1754944e-38, %v1867_v58 }
 0xd8b   :  { %v1789_v12 = vmul.f32 %v5013_v16, %v1788_v62  ;;  %4735 = vmatmul.msk.f32.vlgmr.msra.gmra.mxu2 %vm365_vm15, %v1785_v45  ;;  %vm1866_vm8 = vcmp.eq.f32.partialorder %v1865_v0, 8.507059e+37 }
 0xd8d   :  { %v1790_v5 = vadd.f32 %v5013_v16, %v1789_v12  ;;  %v2538_v12 = vmul.f32 %v5634_v63, %v5948_v26 }
 0xd8e   :  { %v5015_v17 = vpop.eup %5014 }
 0xd8f   :  { %v1857_v60 = vmul.f32 %v5015_v17, %v1852_v2  ;;  %v1794_v6 = vsel %vm1793_vm2, %v5013_v16, %v1790_v5  ;;  %vm1862_vm7 = vweird.f32 %v5015_v17  ;;  %v2324_v16 = vmul.f32 %v5634_v63, %v5888_v29 }
 0xd90   :  { %v1799_v36 = vsel %vm1796_vm6, %v1798_v1, %v1794_v6  ;;  %vm1863_vm10 = vmor %vm1861_vm9, %vm1862_vm7  ;;  %v2325_v29 = vmul.f32 %v5634_v63, %v5880_v37  ;;  %v2105_v1 = vpop.f32.mrf.mxu3 }
 0xd91   :  { %v1858_v42 = vsub.f32 1.0, %v1857_v60  ;;  %v1800_v24 = vmul.f32 %v5005_v56, %v1799_v36  ;;  %v1845_v60 = vsub.f32 %v6058_v39, %v1843_v38  ;;  %v6094_v37 = vmul.f32 0.35355338, %v2105_v1 }
 0xd93   :  { %v1859_v19 = vmul.f32 %v5015_v17, %v1858_v42  ;;  %4736 = vmatmul.msk.f32.gmra.mxu2 %vm365_vm15, %v1800_v24  ;;  %v1848_v36 = vmul.f32 1.442695, %v1845_v60  ;;  %v2111_v58 = vsel %vm5548_vm5, %v6094_v37, -1e+32 }
 0xd95   :  { %v1860_v47 = vadd.f32 %v5015_v17, %v1859_v19  ;;  %5016 = vpow2.f32 %v1848_v36  ;;  %v2115_v19 = vsel %vm365_vm15, %v2111_v58, -inf }
 0xd97   :  { %v1864_v11 = vsel %vm1863_vm10, %v5015_v17, %v1860_v47 }
 0xd98   :  { %v1869_v62 = vsel %vm1866_vm8, %v1868_v15, %v1864_v11  ;;  %v2126_v11 = vpop.xlane.xlu2 %2125 }
 0xd99   :  { %v1870_v45 = vmul.f32 %v5007_v18, %v1869_v62  ;;  %5018 = vrcp.f32 %v2126_v11  ;;  %v2141_v36 = vand.u32 2147483648, %v2126_v11  ;;  %vm2135_vm11 = vweird.f32 %v2126_v11 }
 0xd9b   :  { %4750 = vmatmul.msk.f32.vlgmr.msrb.gmra.mxu2 %vm71_vm0, %v2324_v16  ;;  %v1886_v56 = vmul.f32 %v5563_v34, %v1870_v45  ;;  %v5017_v47 = vpop.eup %5016 }
 0xd9c   :  { %v1853_v15 = vsel %vm365_vm15, %v5017_v47, 0.0 }
 0xd9d   :  { %4730 = vmatmul.msk.f32.vlgmr.msra.gmra.mxu0 %vm365_vm15, %v1886_v56  ;;  %v1917_v2 = vsel %vm365_vm15, %v1886_v56, 0.0 }
 0xd9e   :  { %2560 = vmatpush.msra.mxu0 %v2539_v55  ;;  %1918 = vadd.xlane.f32.xlu2 %v1917_v2 }
 0xd9f   :  { %v5019_v62 = vpop.eup %5018 }
 0xda0   :  { %2561 = vmatpush.msra.mxu0 %v2538_v12  ;;  %v2131_v45 = vmul.f32 %v5019_v62, %v2126_v11  ;;  %vm2136_vm8 = vweird.f32 %v5019_v62 }
 0xda1   :  { %vm2137_vm13 = vmor %vm2135_vm11, %vm2136_vm8 }
 0xda2   :  { %v2132_v55 = vsub.f32 1.0, %v2131_v45  ;;  %v2142_v45 = vor.u32 1.1754944e-38, %v2141_v36 }
 0xda3   :  { %4751 = vmatmul.msk.f32.gmra.mxu2 %vm71_vm0, %v2325_v29 }
 0xda4   :  { %v2133_v12 = vmul.f32 %v5019_v62, %v2132_v55 }
 0xda6   :  { %v2134_v60 = vadd.f32 %v5019_v62, %v2133_v12 }
 0xe0e   :  { %v6083_v18 = vpop.f32.mrf.mxu2 }
 0xe16   :  { %v6085_v21 = vpop.f32.mrf.mxu2 }
 0xe1e   :  { %v2349_v5 = vpop.f32.mrf.mxu2 }
 0xe1f   :  { %v6087_v17 = vmul.f32 0.35355338, %v2349_v5 }
 0xe21   :  { %v2357_v26 = vsel %vm5527_vm14, %v6087_v17, -1e+32 }
 0xe22   :  { %v2359_v6 = vsel %vm365_vm15, %v2357_v26, -inf }
 0xe23   :  { %2360 = vmax.xlane.f32.xlu1 %v2359_v6 }
 0xe26   :  { %v2352_v42 = vpop.f32.mrf.mxu2 }
 0xe27   :  { %v6096_v24 = vmul.f32 0.35355338, %v2352_v42 }
 0xe29   :  { %v2358_v39 = vsel %vm5548_vm5, %v6096_v24, -1e+32 }
 0xe2a   :  { %v2362_v0 = vsel %vm365_vm15, %v2358_v39, -inf }
 0xe2b   :  { %2116 = vmax.xlane.f32.xlu1 %v2115_v19  ;;  %2363 = vmax.xlane.f32.xlu0 %v2362_v0 }
 0xe33   :  { %1854 = vadd.xlane.f32.xlu0 %v1853_v15  ;;  %v2138_v15 = vsel %vm2137_vm13, %v5019_v62, %v2134_v60 }
 0xe96   :  { %v2361_v16 = vpop.xlane.xlu1 %2360 }
 0xe97   :  { %v2365_v56 = vsub.f32 %v2357_v26, %v2361_v16  ;;  %v2139_v26 = vand.u32 2147483647, %v2126_v11 }
 0xe99   :  { %v2367_v2 = vmul.f32 1.442695, %v2365_v56  ;;  %vm2140_vm2 = vcmp.eq.f32.partialorder %v2139_v26, 8.507059e+37 }
 0xe9b   :  { %5020 = vpow2.f32 %v2367_v2 }
 0xe9e   :  { %v2117_v29 = vpop.xlane.xlu1 %2116  ;;  %v2364_v38 = vpop.xlane.xlu0 %2363 }
 0xe9f   :  { %v2119_v5 = vsub.f32 %v2111_v58, %v2117_v29  ;;  %v2366_v1 = vsub.f32 %v2358_v39, %v2364_v38  ;;  %v2143_v39 = vsel %vm2140_vm2, %v2142_v45, %v2138_v15 }
 0xea0   :  { %v2144_v2 = vmul.f32 %v6064_v61, %v2143_v39  ;;  %v1911_v39 = vpop.f32.mrf.mxu0 }
 0xea1   :  { %v6107_v6 = vpop.eup %5020  ;;  %v2122_v42 = vmul.f32 1.442695, %v2119_v5  ;;  %v2369_v19 = vmul.f32 1.442695, %v2366_v1 }
 0xea2   :  { %v2371_v0 = vsel %vm365_vm15, %v6107_v6, 0.0  ;;  %v2160_v29 = vmul.f32 %v5563_v34, %v2144_v2 }
 0xea3   :  { %5022 = vpow2.f32 %v2122_v42  ;;  %2372 = vadd.xlane.f32.xlu1 %v2371_v0 }
 0xea4   :  { %5024 = vpow2.f32 %v2369_v19  ;;  %v2191_v36 = vsel %vm365_vm15, %v2160_v29, 0.0 }
 0xea6   :  { %v1855_v58 = vpop.xlane.xlu0 %1854 }
 0xea7   :  { %5026 = vrcp.f32 %v1855_v58  ;;  %v1882_v5 = vand.u32 2147483648, %v1855_v58  ;;  %v1880_v60 = vand.u32 2147483647, %v1855_v58  ;;  %vm1876_vm7 = vweird.f32 %v1855_v58 }
 0xea9   :  { %v6111_v16 = vpop.eup %5022  ;;  %v1883_v61 = vor.u32 1.1754944e-38, %v1882_v5  ;;  %vm1881_vm10 = vcmp.eq.f32.partialorder %v1880_v60, 8.507059e+37 }
 0xeaa   :  { %v6113_v56 = vpop.eup %5024  ;;  %v2127_v55 = vsel %vm365_vm15, %v6111_v16, 0.0 }
 0xeab   :  { %2128 = vadd.xlane.f32.xlu1 %v2127_v55  ;;  %v2374_v11 = vsel %vm365_vm15, %v6113_v56, 0.0  ;;  %v1919_v55 = vpop.xlane.xlu2 %1918 }
 0xeac   :  { %2375 = vadd.xlane.f32.xlu0 %v2374_v11  ;;  %v1923_v2 = vsub.f32 %v1919_v55, %v1911_v39 }
 0xead   :  { %v5027_v62 = vpop.eup %5026 }
 0xeae   :  { %v1872_v12 = vmul.f32 %v5027_v62, %v1855_v58  ;;  %vm1877_vm6 = vweird.f32 %v5027_v62  ;;  %v1925_v58 = vmul.f32 %v1923_v2, %v5582_v8 }
 0xeaf   :  { %vm1878_vm9 = vmor %vm1876_vm7, %vm1877_vm6 }
 0xeb0   :  { %v1873_v38 = vsub.f32 1.0, %v1872_v12  ;;  %v1927_v11 = vmax.f32 %v1925_v58, 0.0 }
 0xeb2   :  { %v1874_v1 = vmul.f32 %v5027_v62, %v1873_v38  ;;  %5028 = vrsqrt.f32 %v1927_v11  ;;  %vm1936_vm8 = vcmp.eq.f32.partialorder %v1927_v11, inf  ;;  %vm1938_vm11 = vcmp.eq.f32.partialorder %v1927_v11, 0.0 }
 0xeb3   :  { %2192 = vadd.xlane.f32.xlu1 %v2191_v36  ;;  %v1939_v36 = vand.u32 2147483648, %v1927_v11 }
 0xeb4   :  { %v1875_v42 = vadd.f32 %v5027_v62, %v1874_v1 }
 0xeb6   :  { %v1879_v19 = vsel %vm1878_vm9, %v5027_v62, %v1875_v42 }
 0xeb7   :  { %v1884_v0 = vsel %vm1881_vm10, %v1883_v61, %v1879_v19  ;;  %v1954_v61 = vstv %s6127_s15 }
 0xeb8   :  { %v1885_v26 = vmul.f32 %v5017_v47, %v1884_v0  ;;  %v5029_v12 = vpop.eup %5028 }
 0xeb9   :  { %v1930_v62 = vmul.f32 %v5029_v12, %v1927_v11 }
 0xeba   :  { %v1887_v15 = vmul.f32 %v5573_v59, %v1885_v26 }
 0xebb   :  { %v1931_v38 = vmul.f32 %v5029_v12, %v1930_v62 }
 0xebc   :  { %4731 = vmatmul.msk.f32.gmra.mxu0 %vm365_vm15, %v1887_v15  ;;  %v1920_v45 = vsel %vm365_vm15, %v1887_v15, 0.0 }
 0xebd   :  { %1921 = vadd.xlane.f32.xlu0 %v1920_v45  ;;  %v1932_v47 = vmul.f32 0.5, %v1931_v38 }
 0xebf   :  { %v1933_v5 = vsub.f32 1.5, %v1932_v47 }
 0xec1   :  { %v1934_v1 = vmul.f32 %v5029_v12, %v1933_v5 }
 0xec3   :  { %v1935_v60 = vmul.f32 %v1934_v1, %v1927_v11 }
 0xec4   :  { %4743 = vmatmul.msk.f32.vlgmr.msrb.gmra.mxu0 %vm365_vm15, %v2160_v29 }
 0xec5   :  { %v1937_v29 = vsel %vm1936_vm8, %v1927_v11, %v1935_v60 }
 0xec6   :  { %v1940_v42 = vsel %vm1938_vm11, %v1939_v36, %v1937_v29 }
 0xec7   :  { %v1955_v19 = vmul.f32 %v1954_v61, %v1940_v42 }
 0xec9   :  { %v1957_v26 = vmul.f32 1.442695, %v1955_v19 }
 0xf16   :  { %v2373_v0 = vpop.xlane.xlu1 %2372 }
 0xf17   :  { %5030 = vrcp.f32 %v2373_v0  ;;  %v2388_v58 = vand.u32 2147483648, %v2373_v0  ;;  %v2386_v11 = vand.u32 2147483647, %v2373_v0  ;;  %vm2382_vm2 = vweird.f32 %v2373_v0 }
 0xf18   :  { %5032 = vpow2.f32 %v1957_v26 }
 0xf19   :  { %v2389_v5 = vor.u32 1.1754944e-38, %v2388_v58  ;;  %vm2387_vm7 = vcmp.eq.f32.partialorder %v2386_v11, 8.507059e+37 }
 0xf1d   :  { %v5031_v15 = vpop.eup %5030 }
 0xf1e   :  { %v2378_v45 = vmul.f32 %v5031_v15, %v2373_v0  ;;  %v2129_v39 = vpop.xlane.xlu1 %2128  ;;  %v5033_v12 = vpop.eup %5032  ;;  %vm2383_vm13 = vweird.f32 %v5031_v15 }
 0xf1f   :  { %5034 = vrcp.f32 %v2129_v39  ;;  %v2376_v55 = vpop.xlane.xlu0 %2375  ;;  %vm2384_vm6 = vmor %vm2382_vm2, %vm2383_vm13  ;;  %v1961_v1 = vmax.f32 %v5033_v12, 1e-05  ;;  %v2154_v35 = vand.u32 2147483647, %v2129_v39  ;;  %v2156_v28 = vand.u32 2147483648, %v2129_v39 }
 0xf20   :  { %v2379_v2 = vsub.f32 1.0, %v2378_v45  ;;  %5036 = vrcp.f32 %v2376_v55  ;;  %v2403_v0 = vand.u32 2147483648, %v2376_v55  ;;  %v2401_v12 = vand.u32 2147483647, %v2376_v55 }
 0xf21   :  { %v1963_v22 = vmin.f32 %v1961_v1, 100000.0  ;;  %vm2150_vm8 = vweird.f32 %v2129_v39  ;;  %vm2397_vm13 = vweird.f32 %v2376_v55  ;;  %vm2155_vm2 = vcmp.eq.f32.partialorder %v2154_v35, 8.507059e+37 }
 0xf22   :  { %v2380_v62 = vmul.f32 %v5031_v15, %v2379_v2 }
 0xf24   :  { %v2381_v38 = vadd.f32 %v5031_v15, %v2380_v62 }
 0xf25   :  { %v5035_v47 = vpop.eup %5034 }
 0xf26   :  { %v5037_v60 = vpop.eup %5036  ;;  %v2385_v29 = vsel %vm2384_vm6, %v5031_v15, %v2381_v38  ;;  %v2146_v36 = vmul.f32 %v5035_v47, %v2129_v39  ;;  %vm2151_vm9 = vweird.f32 %v5035_v47 }
 0xf27   :  { %v2390_v42 = vsel %vm2387_vm7, %v2389_v5, %v2385_v29  ;;  %v2393_v19 = vmul.f32 %v5037_v60, %v2376_v55  ;;  %vm2398_vm10 = vweird.f32 %v5037_v60  ;;  %vm2152_vm11 = vmor %vm2150_vm8, %vm2151_vm9  ;;  %v2404_v5 = vor.u32 1.1754944e-38, %v2403_v0 }
 0xf28   :  { %v2391_v26 = vmul.f32 %v6107_v6, %v2390_v42  ;;  %v2147_v45 = vsub.f32 1.0, %v2146_v36  ;;  %v2157_v6 = vor.u32 1.1754944e-38, %v2156_v28  ;;  %vm2399_vm6 = vmor %vm2397_vm13, %vm2398_vm10  ;;  %vm2402_vm7 = vcmp.eq.f32.partialorder %v2401_v12, 8.507059e+37 }
 0xf29   :  { %v2394_v2 = vsub.f32 1.0, %v2393_v19 }
 0xf2a   :  { %v2148_v54 = vmul.f32 %v5035_v47, %v2147_v45  ;;  %v2407_v62 = vmul.f32 %v5563_v34, %v2391_v26  ;;  %v1965_v34 = vmul.f32 %v1963_v22, %v6040_v57  ;;  %v2193_v26 = vpop.xlane.xlu1 %2192 }
 0xf2b   :  { %v2395_v58 = vmul.f32 %v5037_v60, %v2394_v2 }
 0xf2c   :  { %v2149_v15 = vadd.f32 %v5035_v47, %v2148_v54  ;;  %4754 = vmatmul.msk.f32.vlgmr.msrb.gmra.mxu3 %vm365_vm15, %v2407_v62  ;;  %v2438_v11 = vsel %vm365_vm15, %v2407_v62, 0.0  ;;  %v6142_v28 = vsel %vm5527_vm14, %v1965_v34, -1e+32 }
 0xf2d   :  { %v2396_v38 = vadd.f32 %v5037_v60, %v2395_v58  ;;  %2439 = vadd.xlane.f32.xlu2 %v2438_v11 }
 0xf2e   :  { %v2153_v1 = vsel %vm2152_vm11, %v5035_v47, %v2149_v15 }
 0xf2f   :  { %v2158_v29 = vsel %vm2155_vm2, %v2157_v6, %v2153_v1  ;;  %v2400_v36 = vsel %vm2399_vm6, %v5037_v60, %v2396_v38 }
 0xf30   :  { %v2159_v54 = vmul.f32 %v6111_v16, %v2158_v29  ;;  %v2405_v39 = vsel %vm2402_vm7, %v2404_v5, %v2400_v36  ;;  %v1969_v16 = vsel %vm365_vm15, %v6142_v28, -inf }
 0xf31   :  { %v2406_v42 = vmul.f32 %v6113_v56, %v2405_v39  ;;  %v1922_v56 = vpop.xlane.xlu0 %1921 }
 0xf32   :  { %v2161_v19 = vmul.f32 %v5573_v59, %v2159_v54 }
 0xf33   :  { %v2408_v35 = vmul.f32 %v5573_v59, %v2406_v42 }
 0xf34   :  { %4744 = vmatmul.msk.f32.gmra.mxu0 %vm365_vm15, %v2161_v19  ;;  %v2194_v22 = vsel %vm365_vm15, %v2161_v19, 0.0 }
 0xf35   :  { %4755 = vmatmul.msk.f32.gmra.mxu3 %vm365_vm15, %v2408_v35  ;;  %2195 = vadd.xlane.f32.xlu0 %v2194_v22  ;;  %v2441_v57 = vsel %vm365_vm15, %v2408_v35, 0.0 }
 0xf36   :  { %2442 = vadd.xlane.f32.xlu1 %v2441_v57  ;;  %1970 = vmax.xlane.f32.xlu2 %v1969_v16 }
 0xf39   :  { %v1914_v55 = vpop.f32.mrf.mxu0 }
 0xf3a   :  { %v1924_v47 = vsub.f32 %v1922_v56, %v1914_v55  ;;  %v2228_v55 = vstv %s6153_s16 }
 0xf3c   :  { %v1926_v60 = vmul.f32 %v1924_v47, %v5587_v14 }
 0xf3e   :  { %v1928_v59 = vmax.f32 %v1926_v60, 0.0 }
 0xf40   :  { %5038 = vrsqrt.f32 %v1928_v59  ;;  %vm1948_vm9 = vcmp.eq.f32.partialorder %v1928_v59, inf  ;;  %v1951_v36 = vand.u32 2147483648, %v1928_v59  ;;  %vm1950_vm10 = vcmp.eq.f32.partialorder %v1928_v59, 0.0 }
 0xf41   :  { %v2185_v45 = vpop.f32.mrf.mxu0 }
 0xf42   :  { %v2197_v2 = vsub.f32 %v2193_v26, %v2185_v45 }
 0xf44   :  { %v2199_v0 = vmul.f32 %v2197_v2, %v5582_v8 }
 0xf46   :  { %v5039_v62 = vpop.eup %5038  ;;  %v2201_v58 = vmax.f32 %v2199_v0, 0.0 }
 0xf47   :  { %v1942_v12 = vmul.f32 %v5039_v62, %v1928_v59 }
 0xf48   :  { %5040 = vrsqrt.f32 %v2201_v58  ;;  %vm2210_vm8 = vcmp.eq.f32.partialorder %v2201_v58, inf  ;;  %v2213_v56 = vand.u32 2147483648, %v2201_v58  ;;  %vm2212_vm11 = vcmp.eq.f32.partialorder %v2201_v58, 0.0 }
 0xf49   :  { %v1943_v15 = vmul.f32 %v5039_v62, %v1942_v12 }
 0xf4b   :  { %v1944_v11 = vmul.f32 0.5, %v1943_v15 }
 0xf4d   :  { %v1945_v6 = vsub.f32 1.5, %v1944_v11 }
 0xf4e   :  { %v5041_v38 = vpop.eup %5040 }
 0xf4f   :  { %v1946_v5 = vmul.f32 %v5039_v62, %v1945_v6  ;;  %v2204_v1 = vmul.f32 %v5041_v38, %v2201_v58 }
 0xf51   :  { %v1947_v34 = vmul.f32 %v1946_v5, %v1928_v59  ;;  %v2205_v29 = vmul.f32 %v5041_v38, %v2204_v1 }
 0xf53   :  { %v1949_v54 = vsel %vm1948_vm9, %v1928_v59, %v1947_v34  ;;  %v2206_v39 = vmul.f32 0.5, %v2205_v29 }
 0xf54   :  { %v1952_v42 = vsel %vm1950_vm10, %v1951_v36, %v1949_v54 }
 0xf55   :  { %v1956_v19 = vmul.f32 %v1954_v61, %v1952_v42  ;;  %v2207_v35 = vsub.f32 1.5, %v2206_v39 }
 0xf57   :  { %v1959_v22 = vmul.f32 1.442695, %v1956_v19  ;;  %v2208_v57 = vmul.f32 %v5041_v38, %v2207_v35 }
 0xf59   :  { %5042 = vpow2.f32 %v1959_v22  ;;  %v2209_v16 = vmul.f32 %v2208_v57, %v2201_v58 }
 0xf5b   :  { %v2211_v47 = vsel %vm2210_vm8, %v2201_v58, %v2209_v16 }
 0xf5c   :  { %v2214_v60 = vsel %vm2212_vm11, %v2213_v56, %v2211_v47 }
 0xf5d   :  { %v2229_v26 = vmul.f32 %v2228_v55, %v2214_v60 }
 0xf5f   :  { %v5043_v45 = vpop.eup %5042  ;;  %v2231_v2 = vmul.f32 1.442695, %v2229_v26 }
 0xf60   :  { %v1962_v59 = vmax.f32 %v5043_v45, 1e-05 }
 0xf61   :  { %5044 = vpow2.f32 %v2231_v2 }
 0xf62   :  { %v1964_v0 = vmin.f32 %v1962_v59, 100000.0 }
 0xf64   :  { %v1966_v61 = vmul.f32 %v1964_v0, %v6053_v49 }
 0xf66   :  { %v6163_v62 = vsel %vm5548_vm5, %v1966_v61, -1e+32 }
 0xf67   :  { %v5045_v12 = vpop.eup %5044  ;;  %v1972_v15 = vsel %vm365_vm15, %v6163_v62, -inf }
 0xf68   :  { %1973 = vmax.xlane.f32.xlu0 %v1972_v15  ;;  %v2235_v58 = vmax.f32 %v5045_v12, 1e-05 }
 0xf6a   :  { %v2237_v11 = vmin.f32 %v2235_v58, 100000.0 }
 0xf6c   :  { %v2239_v6 = vmul.f32 %v2237_v11, %v6046_v9 }
 0xf6e   :  { %v6170_v38 = vsel %vm5527_vm14, %v2239_v6, -1e+32 }
 0xf6f   :  { %v2243_v49 = vsel %vm365_vm15, %v6170_v38, -inf }
 0xf70   :  { %2244 = vmax.xlane.f32.xlu1 %v2243_v49 }
 0xfa0   :  { %v2440_v5 = vpop.xlane.xlu2 %2439 }
 0xfa8   :  { %v2196_v29 = vpop.xlane.xlu0 %2195 }
 0xfa9   :  { %v2443_v35 = vpop.xlane.xlu1 %2442 }
 0xfaf   :  { %v2432_v1 = vpop.f32.mrf.mxu3 }
 0xfb0   :  { %v2444_v34 = vsub.f32 %v2440_v5, %v2432_v1 }
 0xfb1   :  { %v2188_v36 = vpop.f32.mrf.mxu0 }
 0xfb2   :  { %v2446_v54 = vmul.f32 %v2444_v34, %v5582_v8  ;;  %v2198_v39 = vsub.f32 %v2196_v29, %v2188_v36  ;;  %v2475_v34 = vstv %s6177_s17 }
 0xfb4   :  { %v2448_v42 = vmax.f32 %v2446_v54, 0.0  ;;  %v2200_v19 = vmul.f32 %v2198_v39, %v5587_v14 }
 0xfb6   :  { %5046 = vrsqrt.f32 %v2448_v42  ;;  %v2202_v9 = vmax.f32 %v2200_v19, 0.0  ;;  %vm2457_vm13 = vcmp.eq.f32.partialorder %v2448_v42, inf  ;;  %v2460_v1 = vand.u32 2147483648, %v2448_v42 }
 0xfb7   :  { %vm2459_vm2 = vcmp.eq.f32.partialorder %v2448_v42, 0.0 }
 0xfb8   :  { %5048 = vrsqrt.f32 %v2202_v9  ;;  %v2435_v22 = vpop.f32.mrf.mxu3  ;;  %vm2222_vm6 = vcmp.eq.f32.partialorder %v2202_v9, inf  ;;  %v2225_v19 = vand.u32 2147483648, %v2202_v9  ;;  %vm2224_vm7 = vcmp.eq.f32.partialorder %v2202_v9, 0.0 }
 0xfb9   :  { %v2445_v57 = vsub.f32 %v2443_v35, %v2435_v22 }
 0xfbb   :  { %v2447_v16 = vmul.f32 %v2445_v57, %v5587_v14 }
 0xfbc   :  { %v5047_v56 = vpop.eup %5046 }
 0xfbd   :  { %v2449_v47 = vmax.f32 %v2447_v16, 0.0  ;;  %v2451_v60 = vmul.f32 %v5047_v56, %v2448_v42 }
 0xfbe   :  { %v5049_v26 = vpop.eup %5048 }
 0xfbf   :  { %5050 = vrsqrt.f32 %v2449_v47  ;;  %v2452_v45 = vmul.f32 %v5047_v56, %v2451_v60  ;;  %v2216_v2 = vmul.f32 %v5049_v26, %v2202_v9  ;;  %vm2469_vm9 = vcmp.eq.f32.partialorder %v2449_v47, inf }
 0xfc0   :  { %vm2471_vm10 = vcmp.eq.f32.partialorder %v2449_v47, 0.0 }
 0xfc1   :  { %v2453_v59 = vmul.f32 0.5, %v2452_v45  ;;  %v2217_v0 = vmul.f32 %v5049_v26, %v2216_v2 }
 0xfc3   :  { %v2454_v61 = vsub.f32 1.5, %v2453_v59  ;;  %v2218_v12 = vmul.f32 0.5, %v2217_v0  ;;  %v1971_v0 = vpop.xlane.xlu2 %1970 }
 0xfc5   :  { %v5051_v15 = vpop.eup %5050  ;;  %v2455_v58 = vmul.f32 %v5047_v56, %v2454_v61  ;;  %v2219_v11 = vsub.f32 1.5, %v2218_v12 }
 0xfc6   :  { %v2463_v6 = vmul.f32 %v5051_v15, %v2449_v47 }
 0xfc7   :  { %v2456_v49 = vmul.f32 %v2455_v58, %v2448_v42  ;;  %v2220_v5 = vmul.f32 %v5049_v26, %v2219_v11  ;;  %v1975_v58 = vsub.f32 %v6142_v28, %v1971_v0 }
 0xfc8   :  { %v2464_v29 = vmul.f32 %v5051_v15, %v2463_v6 }
 0xfc9   :  { %v2458_v36 = vsel %vm2457_vm13, %v2448_v42, %v2456_v49  ;;  %v2221_v54 = vmul.f32 %v2220_v5, %v2202_v9  ;;  %v2472_v42 = vand.u32 2147483648, %v2449_v47 }
 0xfca   :  { %v2461_v39 = vsel %vm2459_vm2, %v2460_v1, %v2458_v36  ;;  %v2465_v35 = vmul.f32 0.5, %v2464_v29  ;;  %v1977_v1 = vmul.f32 1.442695, %v1975_v58 }
 0xfcb   :  { %v2476_v22 = vmul.f32 %v2475_v34, %v2461_v39  ;;  %v2223_v57 = vsel %vm2222_vm6, %v2202_v9, %v2221_v54 }
 0xfcc   :  { %v2226_v16 = vsel %vm2224_vm7, %v2225_v19, %v2223_v57  ;;  %v2466_v56 = vsub.f32 1.5, %v2465_v35 }
 0xfcd   :  { %v2478_v60 = vmul.f32 1.442695, %v2476_v22  ;;  %v2230_v26 = vmul.f32 %v2228_v55, %v2226_v16 }
 0xfce   :  { %v2467_v45 = vmul.f32 %v5051_v15, %v2466_v56 }
 0xfcf   :  { %5052 = vpow2.f32 %v2478_v60  ;;  %v2233_v2 = vmul.f32 1.442695, %v2230_v26 }
 0xfd0   :  { %v2468_v59 = vmul.f32 %v2467_v45, %v2449_v47 }
 0xfd1   :  { %5054 = vpow2.f32 %v2233_v2 }
 0xfd2   :  { %v2470_v61 = vsel %vm2469_vm9, %v2449_v47, %v2468_v59 }
 0xfd3   :  { %v2473_v12 = vsel %vm2471_vm10, %v2472_v42, %v2470_v61 }
 0xfd4   :  { %v2477_v11 = vmul.f32 %v2475_v34, %v2473_v12 }
 0xfd5   :  { %v5053_v9 = vpop.eup %5052 }
 0xfd6   :  { %v2482_v6 = vmax.f32 %v5053_v9, 1e-05  ;;  %v2480_v49 = vmul.f32 1.442695, %v2477_v11 }
 0xfd7   :  { %v5055_v5 = vpop.eup %5054 }
 0xfd8   :  { %v2484_v55 = vmin.f32 %v2482_v6, 100000.0  ;;  %v2236_v15 = vmax.f32 %v5055_v5, 1e-05  ;;  %5056 = vpow2.f32 %v2480_v49 }
 0xfd9   :  { %5058 = vpow2.f32 %v1977_v1 }
 0xfda   :  { %v2486_v29 = vmul.f32 %v2484_v55, %v6087_v17  ;;  %v2238_v36 = vmin.f32 %v2236_v15, 100000.0 }
 0xfdb   :  { %v1974_v54 = vpop.xlane.xlu0 %1973 }
 0xfdc   :  { %v1976_v39 = vsub.f32 %v6163_v62, %v1974_v54  ;;  %v2488_v47 = vsel %vm5527_vm14, %v2486_v29, -1e+32  ;;  %v2240_v28 = vmul.f32 %v2238_v36, %v6094_v37 }
 0xfdd   :  { %v2490_v34 = vsel %vm365_vm15, %v2488_v47, -inf }
 0xfde   :  { %v5057_v19 = vpop.eup %5056  ;;  %v1979_v35 = vmul.f32 1.442695, %v1976_v39  ;;  %2491 = vmax.xlane.f32.xlu2 %v2490_v34  ;;  %v2242_v22 = vsel %vm5548_vm5, %v2240_v28, -1e+32 }
 0xfdf   :  { %v2246_v17 = vsel %vm365_vm15, %v2242_v22, -inf  ;;  %v2483_v57 = vmax.f32 %v5057_v19, 1e-05  ;;  %v6192_v62 = vpop.eup %5058 }
 0xfe0   :  { %5060 = vpow2.f32 %v1979_v35  ;;  %2247 = vmax.xlane.f32.xlu0 %v2246_v17  ;;  %v1981_v26 = vsel %vm365_vm15, %v6192_v62, 0.0 }
 0xfe1   :  { %v2485_v16 = vmin.f32 %v2483_v57, 100000.0 }
 0xfe3   :  { %v2245_v33 = vpop.xlane.xlu1 %2244  ;;  %v2487_v56 = vmul.f32 %v2485_v16, %v6096_v24 }
 0xfe4   :  { %v2249_v37 = vsub.f32 %v6170_v38, %v2245_v33 }
 0xfe5   :  { %v2489_v60 = vsel %vm5548_vm5, %v2487_v56, -1e+32 }
 0xfe6   :  { %v6200_v45 = vpop.eup %5060  ;;  %v2251_v2 = vmul.f32 1.442695, %v2249_v37  ;;  %v2493_v59 = vsel %vm365_vm15, %v2489_v60, -inf  ;;  %1982 = vadd.xlane.f32.xlu2 %v1981_v26 }
 0xfe7   :  { %2494 = vmax.xlane.f32.xlu1 %v2493_v59  ;;  %v1984_v0 = vsel %vm365_vm15, %v6200_v45, 0.0 }
 0xfe8   :  { %5062 = vpow2.f32 %v2251_v2  ;;  %1985 = vadd.xlane.f32.xlu0 %v1984_v0 }
 0xfee   :  { %v6205_v24 = vpop.eup %5062 }
 0xfef   :  { %v2255_v41 = vsel %vm365_vm15, %v6205_v24, 0.0 }
 0xff0   :  { %2256 = vadd.xlane.f32.xlu1 %v2255_v41 }
0x1051   :  { %v2492_v38 = vpop.xlane.xlu2 %2491 }
0x1052   :  { %v2496_v42 = vsub.f32 %v2488_v47, %v2492_v38 }
0x1053   :  { %v2248_v61 = vpop.xlane.xlu0 %2247 }
0x1054   :  { %v2498_v12 = vmul.f32 1.442695, %v2496_v42  ;;  %v2250_v58 = vsub.f32 %v2242_v22, %v2248_v61 }
0x1056   :  { %5064 = vpow2.f32 %v2498_v12  ;;  %v2253_v11 = vmul.f32 1.442695, %v2250_v58 }
0x1058   :  { %5066 = vpow2.f32 %v2253_v11 }
0x1059   :  { %v1983_v9 = vpop.xlane.xlu2 %1982 }
0x105a   :  { %v2495_v6 = vpop.xlane.xlu1 %2494  ;;  %5068 = vrcp.f32 %v1983_v9  ;;  %v1998_v35 = vand.u32 2147483648, %v1983_v9  ;;  %v1996_v57 = vand.u32 2147483647, %v1983_v9  ;;  %vm1992_vm5 = vweird.f32 %v1983_v9 }
0x105b   :  { %v2497_v49 = vsub.f32 %v2489_v60, %v2495_v6  ;;  %v1986_v5 = vpop.xlane.xlu0 %1985 }
0x105c   :  { %v6209_v1 = vpop.eup %5064  ;;  %5070 = vrcp.f32 %v1986_v5  ;;  %v1999_v60 = vor.u32 1.1754944e-38, %v1998_v35  ;;  %vm1997_vm11 = vcmp.eq.f32.partialorder %v1996_v57, 8.507059e+37  ;;  %v2013_v41 = vand.u32 2147483648, %v1986_v5 }
0x105d   :  { %v2500_v55 = vmul.f32 1.442695, %v2497_v49  ;;  %v2502_v15 = vsel %vm365_vm15, %v6209_v1, 0.0  ;;  %vm2007_vm2 = vweird.f32 %v1986_v5  ;;  %v2011_v61 = vand.u32 2147483647, %v1986_v5 }
0x105e   :  { %v6213_v29 = vpop.eup %5066  ;;  %2503 = vadd.xlane.f32.xlu2 %v2502_v15  ;;  %v2014_v11 = vor.u32 1.1754944e-38, %v2013_v41 }
0x105f   :  { %5072 = vpow2.f32 %v2500_v55  ;;  %v2258_v36 = vsel %vm365_vm15, %v6213_v29, 0.0  ;;  %vm2012_vm7 = vcmp.eq.f32.partialorder %v2011_v61, 8.507059e+37 }
0x1060   :  { %v5069_v54 = vpop.eup %5068  ;;  %2259 = vadd.xlane.f32.xlu0 %v2258_v36 }
0x1061   :  { %v1988_v39 = vmul.f32 %v5069_v54, %v1983_v9  ;;  %vm1993_vm14 = vweird.f32 %v5069_v54 }
0x1062   :  { %v5071_v47 = vpop.eup %5070  ;;  %vm1994_vm8 = vmor %vm1992_vm5, %vm1993_vm14 }
0x1063   :  { %v1989_v28 = vsub.f32 1.0, %v1988_v39  ;;  %v2003_v34 = vmul.f32 %v5071_v47, %v1986_v5  ;;  %v2257_v19 = vpop.xlane.xlu1 %2256  ;;  %vm2008_vm13 = vweird.f32 %v5071_v47 }
0x1064   :  { %5074 = vrcp.f32 %v2257_v19  ;;  %vm2009_vm6 = vmor %vm2007_vm2, %vm2008_vm13  ;;  %v2272_v55 = vand.u32 2147483648, %v2257_v19  ;;  %vm2266_vm10 = vweird.f32 %v2257_v19  ;;  %v2270_v15 = vand.u32 2147483647, %v2257_v19 }
0x1065   :  { %v6217_v22 = vpop.eup %5072  ;;  %v1990_v17 = vmul.f32 %v5069_v54, %v1989_v28  ;;  %v2004_v16 = vsub.f32 1.0, %v2003_v34 }
0x1066   :  { %v2505_v33 = vsel %vm365_vm15, %v6217_v22, 0.0  ;;  %vm2271_vm5 = vcmp.eq.f32.partialorder %v2270_v15, 8.507059e+37 }
0x1067   :  { %v1991_v56 = vadd.f32 %v5069_v54, %v1990_v17  ;;  %v2005_v37 = vmul.f32 %v5071_v47, %v2004_v16  ;;  %2506 = vadd.xlane.f32.xlu1 %v2505_v33  ;;  %v4709_v16 = vld [vmem:[%s7473_s5 + $0x100] sm:$0xff] }
0x1069   :  { %v1995_v26 = vsel %vm1994_vm8, %v5069_v54, %v1991_v56  ;;  %v2006_v2 = vadd.f32 %v5071_v47, %v2005_v37 }
0x106a   :  { %v5075_v59 = vpop.eup %5074  ;;  %v2000_v0 = vsel %vm1997_vm11, %v1999_v60, %v1995_v26 }
0x106b   :  { %v2262_v38 = vmul.f32 %v5075_v59, %v2257_v19  ;;  %v2001_v42 = vmul.f32 %v6192_v62, %v2000_v0  ;;  %v2010_v58 = vsel %vm2009_vm6, %v5071_v47, %v2006_v2  ;;  %vm2267_vm9 = vweird.f32 %v5075_v59 }
0x106c   :  { %v2015_v6 = vsel %vm2012_vm7, %v2014_v11, %v2010_v58  ;;  %vm2268_vm14 = vmor %vm2266_vm10, %vm2267_vm9  ;;  %v2273_v62 = vor.u32 1.1754944e-38, %v2272_v55 }
0x106d   :  { %v2263_v12 = vsub.f32 1.0, %v2262_v38  ;;  %4733 = vmatmul.msk.f32.vlgmr.msrb.gmra.mxu1 %vm365_vm15, %v2001_v42  ;;  %v2016_v36 = vmul.f32 %v6200_v45, %v2015_v6 }
0x106e   :  { %2590 = vmatpush.msrb.mxu1 %v4709_v16 }
0x106f   :  { %v2264_v9 = vmul.f32 %v5075_v59, %v2263_v12 }
0x1071   :  { %v2265_v49 = vadd.f32 %v5075_v59, %v2264_v9 }
0x1073   :  { %v2269_v54 = vsel %vm2268_vm14, %v5075_v59, %v2265_v49 }
0x1074   :  { %v2274_v5 = vsel %vm2271_vm5, %v2273_v62, %v2269_v54 }
0x1075   :  { %4734 = vmatmul.msk.f32.gmra.mxu1 %vm365_vm15, %v2016_v36  ;;  %v2275_v39 = vmul.f32 %v6205_v24, %v2274_v5  ;;  %v4708_v24 = vld [vmem:[%s7473_s5 + $0xf8] sm:$0xff] }
0x1076   :  { %2591 = vmatpush.msrb.mxu1 %v4708_v24 }
0x107d   :  { %4746 = vmatmul.msk.f32.vlgmr.msra.gmra.mxu1 %vm365_vm15, %v2275_v39 }
0x10d1   :  { %v2504_v47 = vpop.xlane.xlu2 %2503 }
0x10d2   :  { %5076 = vrcp.f32 %v2504_v47  ;;  %v2519_v33 = vand.u32 2147483648, %v2504_v47  ;;  %v2517_v37 = vand.u32 2147483647, %v2504_v47  ;;  %vm2513_vm11 = vweird.f32 %v2504_v47 }
0x10d3   :  { %v2260_v28 = vpop.xlane.xlu0 %2259 }
0x10d4   :  { %5078 = vrcp.f32 %v2260_v28  ;;  %v2287_v26 = vand.u32 2147483648, %v2260_v28  ;;  %v2285_v0 = vand.u32 2147483647, %v2260_v28  ;;  %v2520_v41 = vor.u32 1.1754944e-38, %v2519_v33 }
0x10d5   :  { %vm2518_vm6 = vcmp.eq.f32.partialorder %v2517_v37, 8.507059e+37  ;;  %vm2281_vm7 = vweird.f32 %v2260_v28 }
0x10d6   :  { %v2288_v58 = vor.u32 1.1754944e-38, %v2287_v26  ;;  %vm2286_vm10 = vcmp.eq.f32.partialorder %v2285_v0, 8.507059e+37 }
0x10d8   :  { %v5077_v34 = vpop.eup %5076 }
0x10d9   :  { %v2509_v35 = vmul.f32 %v5077_v34, %v2504_v47  ;;  %vm2514_vm8 = vweird.f32 %v5077_v34 }
0x10da   :  { %v5079_v19 = vpop.eup %5078  ;;  %v2507_v17 = vpop.xlane.xlu1 %2506  ;;  %vm2515_vm2 = vmor %vm2513_vm11, %vm2514_vm8 }
0x10db   :  { %v2510_v45 = vsub.f32 1.0, %v2509_v35  ;;  %v2277_v57 = vmul.f32 %v5079_v19, %v2260_v28  ;;  %5080 = vrcp.f32 %v2507_v17  ;;  %vm2282_vm13 = vweird.f32 %v5079_v19 }
0x10dc   :  { %vm2283_vm9 = vmor %vm2281_vm7, %vm2282_vm13  ;;  %v2534_v15 = vand.u32 2147483648, %v2507_v17  ;;  %v2532_v62 = vand.u32 2147483647, %v2507_v17  ;;  %vm2528_vm5 = vweird.f32 %v2507_v17  ;;  %v7498_v35 = vmov 1.0  }
0x10dd   :  { %v2511_v56 = vmul.f32 %v5077_v34, %v2510_v45  ;;  %v2278_v60 = vsub.f32 1.0, %v2277_v57 }
0x10de   :  { %v2535_v39 = vor.u32 1.1754944e-38, %v2534_v15  ;;  %vm2533_vm11 = vcmp.eq.f32.partialorder %v2532_v62, 8.507059e+37 }
0x10df   :  { %v2512_v2 = vadd.f32 %v5077_v34, %v2511_v56  ;;  %v2279_v59 = vmul.f32 %v5079_v19, %v2278_v60 }
0x10e1   :  { %v5081_v38 = vpop.eup %5080  ;;  %v2516_v42 = vsel %vm2515_vm2, %v5077_v34, %v2512_v2  ;;  %v2280_v61 = vadd.f32 %v5079_v19, %v2279_v59  ;;  %v4706_v34 = vld [vmem:[%s7473_s5 + $0xe8] sm:$0xff] }
0x10e2   :  { %v2521_v12 = vsel %vm2518_vm6, %v2520_v41, %v2516_v42  ;;  %v2524_v11 = vmul.f32 %v5081_v38, %v2507_v17  ;;  %vm2529_vm14 = vweird.f32 %v5081_v38  ;;  %v6258_v2 = vld [vmem:[%s7473_s5 + $0x148] sm:$0xff] }
0x10e3   :  { %v2522_v9 = vmul.f32 %v6209_v1, %v2521_v12  ;;  %v2284_v6 = vsel %vm2283_vm9, %v5079_v19, %v2280_v61  ;;  %vm2530_vm8 = vmor %vm2528_vm5, %vm2529_vm14  ;;  %vm163_vm14 = vcmp.lt.s32.totalorder %v5328_v20, %v5388_v50  ;;  %v6358_v50 = vld [vmem:[%s7473_s5 + $0xa0] sm:$0xff] }
0x10e4   :  { %v2525_v49 = vsub.f32 1.0, %v2524_v11  ;;  %v2289_v55 = vsel %vm2286_vm10, %v2288_v58, %v2284_v6  ;;  %vm6343_vm5 = vmand %vm5520_vm12, %vm163_vm14  ;;  %v1436_v32 = vperm.slane %v6358_v50, 5 }
0x10e5   :  { %4757 = vmatmul.msk.f32.vlgmr.msra.gmra.mxu0 %vm365_vm15, %v2522_v9  ;;  %v2290_v36 = vmul.f32 %v6213_v29, %v2289_v55  ;;  %v4707_v29 = vld [vmem:[%s7473_s5 + $0xf0] sm:$0xff] }
0x10e6   :  { %v2526_v54 = vmul.f32 %v5081_v38, %v2525_v49  ;;  %2592 = vmatpush.msrb.mxu1 %v4707_v29 }
0x10e7   :  { %4747 = vmatmul.msk.f32.gmra.mxu1 %vm365_vm15, %v2290_v36 }
0x10e8   :  { %v2527_v5 = vadd.f32 %v5081_v38, %v2526_v54  ;;  %2593 = vmatpush.msrb.mxu1 %v4706_v34 }
0x10ea   :  { %v2531_v47 = vsel %vm2530_vm8, %v5081_v38, %v2527_v5  ;;  %4795 = vmatpush.msk.msra.mxu1 %vm5395_vm3, %v7498_v35  ;;  %v4764_v5 = vld [vmem:[%s7473_s5 + $0x168] sm:$0xff]  ;;  %vm164_vm8 = vcmp.lt.s32.totalorder %v5328_v20, %v5391_v51  ;;  %v1462_v51 = vadd.f32 %v6026_v46, %v1436_v32 }
0x10eb   :  { %v2536_v1 = vsel %vm2533_vm11, %v2535_v39, %v2531_v47  ;;  %2700 = vmatpush.msra.mxu2 %v4764_v5  ;;  %v4763_v39 = vld [vmem:[%s7473_s5 + $0x160] sm:$0xff]  ;;  %v4762_v47 = vld [vmem:[%s7473_s5 + $0x158] sm:$0xff]  ;;  %vm6363_vm12 = vmand %vm5541_vm1, %vm164_vm8 }
0x10ec   :  { %v2537_v28 = vmul.f32 %v6217_v22, %v2536_v1  ;;  %4796 = vmatpush.msk.msra.mxu1 %vm5401_vm4, %v7498_v35  ;;  %v2042_v22 = vpop.f32.mrf.mxu1  ;;  %v4761_v1 = vld [vmem:[%s7473_s5 + $0x150] sm:$0xff] }
0x10ed   :  { %v2072_v45 = vadd.f32 %v6083_v18, %v2042_v22  ;;  %v2571_v18 = vperm.slane %v6258_v2, 2  ;;  %2701 = vmatpush.msra.mxu2 %v4763_v39 }
0x10ee   :  { %4758 = vmatmul.msk.f32.gmra.mxu0 %vm365_vm15, %v2537_v28 }
0x10ef   :  { %2702 = vmatpush.msra.mxu2 %v4762_v47 }
0x10f1   :  { %2703 = vmatpush.msra.mxu2 %v4761_v1 }
0x10f4   :  { %v2045_v19 = vpop.f32.mrf.mxu1 }
0x10f5   :  { %v2075_v56 = vadd.f32 %v6085_v21, %v2045_v19 }
0x10fc   :  { %v2316_v17 = vpop.f32.mrf.mxu1 }
0x10fd   :  { %v2322_v57 = vadd.f32 %v2316_v17, %v2072_v45 }
0x1162   :  { %v2563_v16 = vpop.f32.mrf.mxu0 }
0x1163   :  { %v2569_v24 = vadd.f32 %v2563_v16, %v2322_v57 }
0x1164   :  { %v2319_v33 = vpop.f32.mrf.mxu1 }
0x1165   :  { %4759 = vmatmul.msk.f32.vlgmr.msrb.gmra.mxu1 %vm71_vm0, %v2569_v24  ;;  %v2323_v37 = vadd.f32 %v2319_v33, %v2075_v56 }
0x116b   :  { %v2566_v60 = vpop.f32.mrf.mxu0 }
0x116c   :  { %v2570_v26 = vadd.f32 %v2566_v60, %v2323_v37  ;;  %v2647_v60 = vperm.slane %v6258_v2, 3 }
0x116e   :  { %4760 = vmatmul.msk.f32.gmra.mxu1 %vm71_vm0, %v2570_v26 }
0x11e2   :  { %v2595_v59 = vpop.f32.mrf.mxu1 }
0x11e3   :  { %v2596_v0 = vadd.f32 %v2595_v59, %v2571_v18 }
0x11e5   :  { %v2601_v41 = vadd.f32 %v2596_v0, %v5366_v43 }
0x11e7   :  { %v2603_v38 = vsel %vm71_vm0, %v2601_v41, 0.0 }
0x11e8   :  { %2604 = vadd.xlane.f32.xlu2 %v2603_v38 }
0x11eb   :  { %v2598_v21 = vpop.f32.mrf.mxu1 }
0x11ec   :  { %v2599_v42 = vadd.f32 %v2598_v21, %v2571_v18 }
0x11ee   :  { %v2602_v61 = vadd.f32 %v2599_v42, %v5377_v48 }
0x11f0   :  { %v2606_v12 = vsel %vm71_vm0, %v2602_v61, 0.0 }
0x11f1   :  { %2607 = vadd.xlane.f32.xlu0 %v2606_v12 }
0x125b   :  { %v2605_v58 = vpop.xlane.xlu2 %2604 }
0x125c   :  { %v2609_v11 = vmul.f32 %v2605_v58, %v5926_v44 }
0x125e   :  { %v2611_v9 = vsub.f32 %v2601_v41, %v2609_v11  ;;  %v2650_v41 = vperm.slane %v6258_v2, 4 }
0x1260   :  { %v2613_v6 = vmul.f32 %v2611_v9, %v2611_v9 }
0x1262   :  { %v2615_v49 = vsel %vm71_vm0, %v2613_v6, 0.0 }
0x1263   :  { %2616 = vadd.xlane.f32.xlu1 %v2615_v49 }
0x1264   :  { %v2608_v55 = vpop.xlane.xlu0 %2607 }
0x1265   :  { %v2610_v15 = vmul.f32 %v2608_v55, %v5926_v44 }
0x1267   :  { %v2612_v36 = vsub.f32 %v2602_v61, %v2610_v15 }
0x1269   :  { %v2614_v54 = vmul.f32 %v2612_v36, %v2612_v36 }
0x126b   :  { %v2618_v62 = vsel %vm71_vm0, %v2614_v54, 0.0 }
0x126c   :  { %2619 = vadd.xlane.f32.xlu2 %v2618_v62 }
0x12d6   :  { %v2617_v28 = vpop.xlane.xlu1 %2616 }
0x12d7   :  { %v2621_v29 = vmul.f32 %v2617_v28, %v5926_v44 }
0x12d9   :  { %v2623_v34 = vadd.f32 1e-05, %v2621_v29 }
0x12db   :  { %5082 = vrsqrt.f32 %v2623_v34  ;;  %vm2631_vm2 = vweird.f32 %v2623_v34 }
0x12df   :  { %v2620_v22 = vpop.xlane.xlu2 %2619 }
0x12e0   :  { %v2622_v19 = vmul.f32 %v2620_v22, %v5926_v44 }
0x12e1   :  { %v5083_v17 = vpop.eup %5082 }
0x12e2   :  { %v2626_v45 = vmul.f32 %v5083_v17, %v2623_v34  ;;  %v2624_v57 = vadd.f32 1e-05, %v2622_v19  ;;  %vm2632_vm13 = vweird.f32 %v5083_v17 }
0x12e3   :  { %vm2633_vm6 = vmor %vm2631_vm2, %vm2632_vm13 }
0x12e4   :  { %v2627_v16 = vmul.f32 %v5083_v17, %v2626_v45  ;;  %5084 = vrsqrt.f32 %v2624_v57  ;;  %vm2641_vm9 = vweird.f32 %v2624_v57 }
0x12e6   :  { %v2628_v24 = vmul.f32 0.5, %v2627_v16 }
0x12e8   :  { %v2629_v33 = vsub.f32 1.5, %v2628_v24 }
0x12ea   :  { %v5085_v56 = vpop.eup %5084  ;;  %v2630_v37 = vmul.f32 %v5083_v17, %v2629_v33  ;;  %v1467_v33 = vadd.f32 %v1462_v51, %v5953_v7 }
0x12eb   :  { %v2636_v26 = vmul.f32 %v5085_v56, %v2624_v57  ;;  %vm2642_vm7 = vweird.f32 %v5085_v56 }
0x12ec   :  { %v2634_v18 = vsel %vm2633_vm6, %v5083_v17, %v2630_v37  ;;  %vm2643_vm10 = vmor %vm2641_vm9, %vm2642_vm7 }
0x12ed   :  { %v2645_v59 = vmul.f32 %v2634_v18, %v2611_v9  ;;  %v2637_v0 = vmul.f32 %v5085_v56, %v2636_v26  ;;  %v6296_v9 = vld [vmem:[%s7473_s5 + $0x1f0] sm:$0xff] }
0x12ee   :  { %v2681_v55 = vperm.slane %v6296_v9, 0 }
0x12ef   :  { %v2648_v38 = vmul.f32 %v2647_v60, %v2645_v59  ;;  %v2638_v21 = vmul.f32 0.5, %v2637_v0 }
0x12f1   :  { %v2639_v42 = vsub.f32 1.5, %v2638_v21  ;;  %v6285_v61 = vadd.f32 %v2650_v41, %v2648_v38 }
0x12f3   :  { %v2640_v12 = vmul.f32 %v5085_v56, %v2639_v42  ;;  %4787 = vmatmul.msk.f32.vlgmr.msra.gmra.mxu2 %vm71_vm0, %v6285_v61 }
0x12f5   :  { %v2644_v58 = vsel %vm2643_vm10, %v5085_v56, %v2640_v12  ;;  %v1469_v56 = vsel %vm71_vm0, %v1467_v33, 0.0 }
0x12f6   :  { %v2646_v11 = vmul.f32 %v2644_v58, %v2612_v36 }
0x12f8   :  { %v2649_v6 = vmul.f32 %v2647_v60, %v2646_v11 }
0x12fa   :  { %v6289_v49 = vadd.f32 %v2650_v41, %v2649_v6  ;;  %v1465_v41 = vadd.f32 %v6028_v13, %v1436_v32 }
0x12fc   :  { %4788 = vmatmul.msk.f32.gmra.mxu2 %vm71_vm0, %v6289_v49  ;;  %v1468_v7 = vadd.f32 %v1465_v41, %v5970_v30 }
0x12fe   :  { %v1472_v11 = vsel %vm71_vm0, %v1468_v7, 0.0 }
0x1376   :  { %v2705_v2 = vpop.f32.mrf.mxu2 }
0x1377   :  { %v6305_v36 = vadd.f32 %v2705_v2, %v2681_v55  ;;  %v4768_v2 = vld [vmem:[%s7473_s5 + $0x188] sm:$0xff] }
0x1378   :  { %2730 = vmatpush.msra.mxu3 %v4768_v2 }
0x1379   :  { %v2741_v62 = vmul.f32 %v5444_v3, %v6305_v36  ;;  %v2965_v5 = vmul.f32 %v5447_v4, %v6305_v36  ;;  %v3241_v1 = vmul.f32 %v5464_v10, %v6305_v36 }
0x137f   :  { %v2708_v15 = vpop.f32.mrf.mxu2 }
0x1380   :  { %v6299_v54 = vadd.f32 %v2708_v15, %v2681_v55 }
0x1382   :  { %4791 = vmatpush.xpose.msk.msrb.mxu0 %vm71_vm0, %v6299_v54  ;;  %4800 = vmatpush.xpose.msk.msrb.mxu2 %vm71_vm0, %v6299_v54  ;;  %v2742_v39 = vmul.f32 %v5444_v3, %v6299_v54  ;;  %v2966_v47 = vmul.f32 %v5447_v4, %v6299_v54  ;;  %v3242_v28 = vmul.f32 %v5464_v10, %v6299_v54 }
0x1386   :  { %4792 = vmatpush.xpose.msk.msrb.mxu0 %vm71_vm0, %v6305_v36  ;;  %4801 = vmatpush.xpose.msk.msrb.mxu2 %vm71_vm0, %v6305_v36 }
0x1389   :  { %4793 = vmatmul.msk.f32.vlgmr.msrb.gmra.mxu0 %vm71_vm0, %v2741_v62  ;;  %4802 = vmatmul.msk.f32.vlgmr.msrb.gmra.mxu2 %vm71_vm0, %v2965_v5 }
0x138a   :  { %4813 = vmatpush.xpose.msk.msra.mxu2 %vm71_vm0, %v6299_v54 }
0x138e   :  { %4814 = vmatpush.xpose.msk.msra.mxu2 %vm71_vm0, %v6305_v36 }
0x1391   :  { %4794 = vmatmul.msk.f32.gmra.mxu0 %vm71_vm0, %v2742_v39  ;;  %4803 = vmatmul.msk.f32.gmra.mxu2 %vm71_vm0, %v2966_v47  ;;  %v4767_v39 = vld [vmem:[%s7473_s5 + $0x180] sm:$0xff]  ;;  %v4766_v47 = vld [vmem:[%s7473_s5 + $0x178] sm:$0xff] }
0x1392   :  { %4828 = vmatpush.msk.msrb.mxu2 %vm5395_vm3, %v7498_v35  ;;  %2731 = vmatpush.msra.mxu3 %v4767_v39 }
0x1394   :  { %4829 = vmatpush.msk.msrb.mxu2 %vm5401_vm4, %v7498_v35  ;;  %2732 = vmatpush.msra.mxu3 %v4766_v47 }
0x1399   :  { %4815 = vmatmul.msk.f32.vlgmr.msra.gmra.mxu2 %vm71_vm0, %v3241_v1 }
0x13a1   :  { %4816 = vmatmul.msk.f32.gmra.mxu2 %vm71_vm0, %v3242_v28 }
0x1406   :  { %v2772_v29 = vpop.f32.mrf.mxu0 }
0x1407   :  { %v6347_v22 = vmul.f32 0.35355338, %v2772_v29  ;;  %v4765_v29 = vld [vmem:[%s7473_s5 + $0x170] sm:$0xff] }
0x1408   :  { %2733 = vmatpush.msra.mxu3 %v4765_v29 }
0x1409   :  { %v2780_v19 = vsel %vm6343_vm5, %v6347_v22, -1e+32 }
0x140a   :  { %v2782_v17 = vsel %vm365_vm15, %v2780_v19, -inf  ;;  %4804 = vmatpush.msk.msrb.mxu3 %vm5395_vm3, %v7498_v35 }
0x140b   :  { %2783 = vmax.xlane.f32.xlu0 %v2782_v17 }
0x140c   :  { %4805 = vmatpush.msk.msrb.mxu3 %vm5401_vm4, %v7498_v35 }
0x140e   :  { %v2775_v45 = vpop.f32.mrf.mxu0 }
0x140f   :  { %v6367_v16 = vmul.f32 0.35355338, %v2775_v45 }
0x1411   :  { %v2781_v20 = vsel %vm6363_vm12, %v6367_v16, -1e+32 }
0x1412   :  { %v2785_v24 = vsel %vm365_vm15, %v2781_v20, -inf }
0x1413   :  { %2786 = vmax.xlane.f32.xlu1 %v2785_v24 }
0x141b   :  { %1470 = vadd.xlane.f32.xlu1 %v1469_v56 }
0x147e   :  { %v2784_v40 = vpop.xlane.xlu0 %2783 }
0x147f   :  { %v2788_v37 = vsub.f32 %v2780_v19, %v2784_v40 }
0x1481   :  { %v2790_v60 = vmul.f32 1.442695, %v2788_v37 }
0x1483   :  { %5086 = vpow2.f32 %v2790_v60 }
0x1486   :  { %v2787_v26 = vpop.xlane.xlu1 %2786 }
0x1487   :  { %v2789_v18 = vsub.f32 %v2781_v20, %v2787_v26 }
0x1489   :  { %v5087_v59 = vpop.eup %5086  ;;  %v2792_v0 = vmul.f32 1.442695, %v2789_v18 }
0x148a   :  { %v2794_v46 = vsel %vm365_vm15, %v5087_v59, 0.0 }
0x148b   :  { %5088 = vpow2.f32 %v2792_v0  ;;  %2795 = vadd.xlane.f32.xlu2 %v2794_v46  ;;  %v7503_v0 = vmov 0.0  }
0x148c   :  { %v6418_v41 = vsel %vm6343_vm5, 1.0, %v7503_v0 }
0x148e   :  { %v1471_v38 = vpop.xlane.xlu1 %1470 }
0x148f   :  { %v1475_v21 = vmul.f32 %v1471_v38, %v5926_v44 }
0x1491   :  { %v6380_v42 = vpop.eup %5088  ;;  %v6382_v12 = vsub.f32 %v1467_v33, %v1475_v21 }
0x1492   :  { %v2797_v58 = vsel %vm365_vm15, %v6380_v42, 0.0 }
0x1493   :  { %2798 = vadd.xlane.f32.xlu0 %v2797_v58  ;;  %1473 = vadd.xlane.f32.xlu2 %v1472_v11  ;;  %v1479_v13 = vmul.f32 %v6382_v12, %v6382_v12 }
0x1495   :  { %v1481_v6 = vsel %vm71_vm0, %v1479_v13, 0.0 }
0x149b   :  { %1482 = vadd.xlane.f32.xlu0 %v1481_v6 }
0x14fe   :  { %v2796_v30 = vpop.xlane.xlu2 %2795 }
0x14ff   :  { %5090 = vrcp.f32 %v2796_v30  ;;  %v2811_v19 = vand.u32 2147483648, %v2796_v30  ;;  %v2809_v32 = vand.u32 2147483647, %v2796_v30  ;;  %vm2805_vm11 = vweird.f32 %v2796_v30 }
0x1501   :  { %v2812_v33 = vor.u32 1.1754944e-38, %v2811_v19  ;;  %vm2810_vm2 = vcmp.eq.f32.partialorder %v2809_v32, 8.507059e+37  ;;  %v1513_v32 = vperm.slane %v6358_v50, 6 }
0x1505   :  { %v5091_v55 = vpop.eup %5090 }
0x1506   :  { %v2801_v15 = vmul.f32 %v5091_v55, %v2796_v30  ;;  %v2799_v62 = vpop.xlane.xlu0 %2798  ;;  %v1474_v5 = vpop.xlane.xlu2 %1473  ;;  %vm2806_vm1 = vweird.f32 %v5091_v55 }
0x1507   :  { %5092 = vrcp.f32 %v2799_v62  ;;  %v1476_v28 = vmul.f32 %v1474_v5, %v5926_v44  ;;  %vm2807_vm13 = vmor %vm2805_vm11, %vm2806_vm1  ;;  %v2824_v11 = vand.u32 2147483647, %v2799_v62  ;;  %vm2820_vm7 = vweird.f32 %v2799_v62 }
0x1508   :  { %v2802_v1 = vsub.f32 1.0, %v2801_v15 }
0x1509   :  { %v6403_v45 = vsub.f32 %v1468_v7, %v1476_v28  ;;  %v2826_v7 = vand.u32 2147483648, %v2799_v62  ;;  %vm2825_vm10 = vcmp.eq.f32.partialorder %v2824_v11, 8.507059e+37 }
0x150a   :  { %v2803_v17 = vmul.f32 %v5091_v55, %v2802_v1 }
0x150b   :  { %v1480_v51 = vmul.f32 %v6403_v45, %v6403_v45  ;;  %v2827_v2 = vor.u32 1.1754944e-38, %v2826_v7 }
0x150c   :  { %v2804_v20 = vadd.f32 %v5091_v55, %v2803_v17 }
0x150d   :  { %v5093_v24 = vpop.eup %5092  ;;  %v1484_v60 = vsel %vm71_vm0, %v1480_v51, 0.0  ;;  %v1516_v51 = vperm.slane %v6358_v50, 7 }
0x150e   :  { %v2808_v56 = vsel %vm2807_vm13, %v5091_v55, %v2804_v20  ;;  %v2816_v40 = vmul.f32 %v5093_v24, %v2799_v62  ;;  %v1483_v37 = vpop.xlane.xlu0 %1482  ;;  %1485 = vadd.xlane.f32.xlu1 %v1484_v60  ;;  %vm2821_vm6 = vweird.f32 %v5093_v24  ;;  %v6426_v55 = vsel %vm6363_vm12, 1.0, %v7503_v0 }
0x150f   :  { %v2813_v26 = vsel %vm2810_vm2, %v2812_v33, %v2808_v56  ;;  %v1487_v18 = vmul.f32 %v1483_v37, %v5926_v44  ;;  %vm2822_vm9 = vmor %vm2820_vm7, %vm2821_vm6 }
0x1510   :  { %v2814_v46 = vmul.f32 %v5087_v59, %v2813_v26  ;;  %v2817_v38 = vsub.f32 1.0, %v2816_v40 }
0x1511   :  { %v1489_v21 = vadd.f32 1e-05, %v1487_v18 }
0x1512   :  { %v2818_v58 = vmul.f32 %v5093_v24, %v2817_v38  ;;  %v2830_v13 = vmul.f32 %v6418_v41, %v2814_v46 }
0x1513   :  { %5094 = vrsqrt.f32 %v1489_v21  ;;  %vm1497_vm8 = vweird.f32 %v1489_v21 }
0x1514   :  { %v2819_v6 = vadd.f32 %v5093_v24, %v2818_v58  ;;  %4797 = vmatmul.msk.f32.vlgmr.msra.gmra.mxu1 %vm365_vm15, %v2830_v13  ;;  %v2861_v30 = vsel %vm365_vm15, %v2830_v13, 0.0 }
0x1515   :  { %2862 = vadd.xlane.f32.xlu2 %v2861_v30 }
0x1516   :  { %v2823_v59 = vsel %vm2822_vm9, %v5093_v24, %v2819_v6 }
0x1517   :  { %v2828_v15 = vsel %vm2825_vm10, %v2827_v2, %v2823_v59 }
0x1518   :  { %v2829_v5 = vmul.f32 %v6380_v42, %v2828_v15 }
0x1519   :  { %v5095_v39 = vpop.eup %5094 }
0x151a   :  { %v1492_v47 = vmul.f32 %v5095_v39, %v1489_v21  ;;  %v2831_v62 = vmul.f32 %v6426_v55, %v2829_v5  ;;  %vm1498_vm14 = vweird.f32 %v5095_v39 }
0x151b   :  { %vm1499_vm1 = vmor %vm1497_vm8, %vm1498_vm14 }
0x151c   :  { %v1493_v1 = vmul.f32 %v5095_v39, %v1492_v47  ;;  %4798 = vmatmul.msk.f32.gmra.mxu1 %vm365_vm15, %v2831_v62  ;;  %v2864_v28 = vsel %vm365_vm15, %v2831_v62, 0.0 }
0x151d   :  { %2865 = vadd.xlane.f32.xlu0 %v2864_v28 }
0x151e   :  { %v1494_v29 = vmul.f32 0.5, %v1493_v1 }
0x1520   :  { %v1495_v19 = vsub.f32 1.5, %v1494_v29 }
0x1522   :  { %v1496_v17 = vmul.f32 %v5095_v39, %v1495_v19 }
0x1524   :  { %v1500_v20 = vsel %vm1499_vm1, %v5095_v39, %v1496_v17 }
0x1525   :  { %v1511_v42 = vmul.f32 %v1500_v20, %v6382_v12  ;;  %v2898_v20 = vstv %s4799_s0 }
0x1527   :  { %v1514_v24 = vmul.f32 %v1513_v32, %v1511_v42 }
0x1529   :  { %v1517_v33 = vadd.f32 %v1516_v51, %v1514_v24 }
0x152b   :  { %4789 = vmatmul.msk.f32.vlgmr.msra.gmra.mxu3 %vm71_vm0, %v1517_v33 }
0x152c   :  { %4817 = vmatpush.msk.msra.mxu3 %vm5395_vm3, %v7498_v35 }
0x152e   :  { %4818 = vmatpush.msk.msra.mxu3 %vm5401_vm4, %v7498_v35 }
0x1581   :  { %v1486_v56 = vpop.xlane.xlu1 %1485 }
0x1582   :  { %v1488_v40 = vmul.f32 %v1486_v56, %v5926_v44 }
0x1584   :  { %v1490_v37 = vadd.f32 1e-05, %v1488_v40 }
0x1586   :  { %5096 = vrsqrt.f32 %v1490_v37  ;;  %vm1507_vm3 = vweird.f32 %v1490_v37 }
0x1588   :  { %v2863_v26 = vpop.xlane.xlu2 %2862 }
0x158c   :  { %v5097_v12 = vpop.eup %5096 }
0x158d   :  { %v1502_v60 = vmul.f32 %v5097_v12, %v1490_v37  ;;  %vm1508_vm11 = vweird.f32 %v5097_v12 }
0x158e   :  { %vm1509_vm4 = vmor %vm1507_vm3, %vm1508_vm11 }
0x158f   :  { %v1503_v50 = vmul.f32 %v5097_v12, %v1502_v60 }
0x1590   :  { %v2866_v58 = vpop.xlane.xlu0 %2865 }
0x1591   :  { %v2855_v18 = vpop.f32.mrf.mxu1  ;;  %v1504_v46 = vmul.f32 0.5, %v1503_v50 }
0x1592   :  { %v2867_v38 = vsub.f32 %v2863_v26, %v2855_v18 }
0x1593   :  { %v1505_v7 = vsub.f32 1.5, %v1504_v46 }
0x1594   :  { %v2869_v52 = vmul.f32 %v2867_v38, %v5582_v8 }
0x1595   :  { %v1506_v21 = vmul.f32 %v5097_v12, %v1505_v7 }
0x1596   :  { %v2871_v53 = vmax.f32 %v2869_v52, 0.0  ;;  %v2990_v52 = vpop.f32.mrf.mxu2 }
0x1597   :  { %v1510_v35 = vsel %vm1509_vm4, %v5097_v12, %v1506_v21 }
0x1598   :  { %5098 = vrsqrt.f32 %v2871_v53  ;;  %v1512_v13 = vmul.f32 %v1510_v35, %v6403_v45  ;;  %vm2880_vm13 = vcmp.eq.f32.partialorder %v2871_v53, inf  ;;  %vm2882_vm2 = vcmp.eq.f32.partialorder %v2871_v53, 0.0 }
0x1599   :  { %v2858_v11 = vpop.f32.mrf.mxu1 }
0x159a   :  { %v2868_v6 = vsub.f32 %v2866_v58, %v2858_v11  ;;  %v1515_v30 = vmul.f32 %v1513_v32, %v1512_v13  ;;  %v2883_v32 = vand.u32 2147483648, %v2871_v53 }
0x159c   :  { %v2870_v2 = vmul.f32 %v2868_v6, %v5587_v14  ;;  %v1518_v59 = vadd.f32 %v1516_v51, %v1515_v30 }
0x159e   :  { %v5099_v15 = vpop.eup %5098  ;;  %v2872_v5 = vmax.f32 %v2870_v2, 0.0  ;;  %4790 = vmatmul.msk.f32.gmra.mxu3 %vm71_vm0, %v1518_v59  ;;  %v2993_v30 = vpop.f32.mrf.mxu2 }
0x159f   :  { %v2874_v39 = vmul.f32 %v5099_v15, %v2871_v53 }
0x15a0   :  { %5100 = vrsqrt.f32 %v2872_v5  ;;  %vm2892_vm6 = vcmp.eq.f32.partialorder %v2872_v5, inf  ;;  %v2895_v60 = vand.u32 2147483648, %v2872_v5  ;;  %vm2894_vm7 = vcmp.eq.f32.partialorder %v2872_v5, 0.0 }
0x15a1   :  { %v2875_v47 = vmul.f32 %v5099_v15, %v2874_v39 }
0x15a3   :  { %v2876_v62 = vmul.f32 0.5, %v2875_v47 }
0x15a5   :  { %v2877_v1 = vsub.f32 1.5, %v2876_v62 }
0x15a6   :  { %v5101_v28 = vpop.eup %5100  ;;  %v3266_v39 = vpop.f32.mrf.mxu2 }
0x15a7   :  { %v2878_v29 = vmul.f32 %v5099_v15, %v2877_v1  ;;  %v2886_v19 = vmul.f32 %v5101_v28, %v2872_v5  ;;  %v6461_v62 = vmul.f32 0.35355338, %v3266_v39 }
0x15a9   :  { %v2879_v17 = vmul.f32 %v2878_v29, %v2871_v53  ;;  %v2887_v45 = vmul.f32 %v5101_v28, %v2886_v19  ;;  %v2711_v29 = vperm.slane %v6296_v9, 1 }
0x15ab   :  { %v2881_v42 = vsel %vm2880_vm13, %v2871_v53, %v2879_v17  ;;  %v2888_v51 = vmul.f32 0.5, %v2887_v45 }
0x15ac   :  { %v2884_v24 = vsel %vm2882_vm2, %v2883_v32, %v2881_v42 }
0x15ad   :  { %v2899_v33 = vmul.f32 %v2898_v20, %v2884_v24  ;;  %v2889_v56 = vsub.f32 1.5, %v2888_v51 }
0x15af   :  { %v2901_v40 = vmul.f32 1.442695, %v2899_v33  ;;  %v2890_v37 = vmul.f32 %v5101_v28, %v2889_v56  ;;  %v2735_v28 = vpop.f32.mrf.mxu3 }
0x15b0   :  { %v6468_v17 = vadd.f32 %v2735_v28, %v2711_v29 }
0x15b1   :  { %5102 = vpow2.f32 %v2901_v40  ;;  %v2891_v12 = vmul.f32 %v2890_v37, %v2872_v5 }
0x15b2   :  { %v3181_v42 = vmul.f32 %v5447_v4, %v6468_v17  ;;  %v2963_v51 = vmul.f32 %v5444_v3, %v6468_v17  ;;  %v3457_v24 = vmul.f32 %v5464_v10, %v6468_v17 }
0x15b3   :  { %v2893_v50 = vsel %vm2892_vm6, %v2872_v5, %v2891_v12  ;;  %v6455_v5 = vmul.f32 0.35355338, %v2990_v52 }
0x15b4   :  { %v2896_v26 = vsel %vm2894_vm7, %v2895_v60, %v2893_v50  ;;  %v6489_v50 = vmul.f32 0.35355338, %v2993_v30 }
0x15b5   :  { %v2900_v18 = vmul.f32 %v2898_v20, %v2896_v26 }
0x15b7   :  { %v5103_v46 = vpop.eup %5102  ;;  %v2903_v38 = vmul.f32 1.442695, %v2900_v18  ;;  %v6494_v18 = vsel %vm6363_vm12, %v6489_v50, -1e+32 }
0x15b8   :  { %v2905_v7 = vmax.f32 %v5103_v46, 1e-05 }
0x15b9   :  { %5104 = vpow2.f32 %v2903_v38 }
0x15ba   :  { %v2907_v21 = vmin.f32 %v2905_v7, 100000.0  ;;  %v3003_v7 = vsel %vm365_vm15, %v6494_v18, -inf }
0x15bc   :  { %v2909_v53 = vmul.f32 %v2907_v21, %v6347_v22  ;;  %v2998_v22 = vsel %vm6343_vm5, %v6455_v5, -1e+32 }
0x15bd   :  { %v3000_v47 = vsel %vm365_vm15, %v2998_v22, -inf }
0x15be   :  { %v2911_v35 = vsel %vm6343_vm5, %v2909_v53, -1e+32 }
0x15bf   :  { %v5105_v58 = vpop.eup %5104  ;;  %v2913_v11 = vsel %vm365_vm15, %v2911_v35, -inf }
0x15c0   :  { %2914 = vmax.xlane.f32.xlu1 %v2913_v11  ;;  %v2906_v13 = vmax.f32 %v5105_v58, 1e-05 }
0x15c2   :  { %v2908_v6 = vmin.f32 %v2906_v13, 100000.0 }
0x15c4   :  { %v2910_v2 = vmul.f32 %v2908_v6, %v6367_v16  ;;  %v3274_v16 = vsel %vm6343_vm5, %v6461_v62, -1e+32 }
0x15c5   :  { %v3276_v1 = vsel %vm365_vm15, %v3274_v16, -inf }
0x15c6   :  { %v2912_v59 = vsel %vm6363_vm12, %v2910_v2, -1e+32  ;;  %v7504_v2 = vfloor.f32 %v5507_v25 }
0x15c7   :  { %v2916_v15 = vsel %vm365_vm15, %v2912_v59, -inf }
0x15c8   :  { %2917 = vmax.xlane.f32.xlu2 %v2916_v15 }
0x15d0   :  { %3001 = vmax.xlane.f32.xlu2 %v3000_v47 }
0x15d8   :  { %3277 = vmax.xlane.f32.xlu2 %v3276_v1 }
0x1621   :  { %v2738_v19 = vpop.f32.mrf.mxu3 }
0x1622   :  { %v6470_v45 = vadd.f32 %v2738_v19, %v2711_v29 }
0x1624   :  { %v3182_v32 = vmul.f32 %v5447_v4, %v6470_v45  ;;  %v2964_v20 = vmul.f32 %v5444_v3, %v6470_v45  ;;  %v3458_v9 = vmul.f32 %v5464_v10, %v6470_v45 }
0x1626   :  { %3203 = vmatpush.msra.mxu0 %v3182_v32  ;;  %3232 = vmatpush.msrb.mxu1 %v2964_v20  ;;  %v7505_v32 = vfloor.f32 %v5516_v31 }
0x1628   :  { %3204 = vmatpush.msra.mxu0 %v3181_v42  ;;  %3233 = vmatpush.msrb.mxu1 %v2963_v51  ;;  %v186_v20 = vmul.f32 8.0, %v7505_v32 }
0x162a   :  { %3479 = vmatpush.msrb.mxu0 %v3458_v9  ;;  %4824 = vmatpush.xpose.msk.msra.mxu1 %vm71_vm0, %v6299_v54 }
0x162c   :  { %3480 = vmatpush.msrb.mxu0 %v3457_v24 }
0x162e   :  { %4825 = vmatpush.xpose.msk.msra.mxu1 %vm71_vm0, %v6305_v36 }
0x1633   :  { %v2915_v4 = vpop.xlane.xlu1 %2914 }
0x1634   :  { %v2919_v33 = vsub.f32 %v2911_v35, %v2915_v4 }
0x1636   :  { %v2921_v56 = vmul.f32 1.442695, %v2919_v33 }
0x1638   :  { %5106 = vpow2.f32 %v2921_v56 }
0x163b   :  { %v2918_v3 = vpop.xlane.xlu2 %2917 }
0x163c   :  { %v2920_v40 = vsub.f32 %v2912_v59, %v2918_v3  ;;  %v185_v59 = vmul.f32 8.0, %v7504_v2  ;;  %v188_v3 = vsub.f32 %v5511_v27, %v186_v20  ;;  %v3707_v20 = vmul.f32 %v5634_v63, %v6470_v45 }
0x163e   :  { %v5107_v37 = vpop.eup %5106  ;;  %v2923_v12 = vmul.f32 1.442695, %v2920_v40  ;;  %vm190_vm4 = vcmp.gt.f32.partialorder %v188_v3, 0.0 }
0x163f   :  { %v2925_v60 = vsel %vm365_vm15, %v5107_v37, 0.0  ;;  %v6522_v27 = vsel %vm190_vm4, 1.0, %v7503_v0 }
0x1640   :  { %5108 = vpow2.f32 %v2923_v12  ;;  %2926 = vadd.xlane.f32.xlu0 %v2925_v60 }
0x1643   :  { %v3002_v26 = vpop.xlane.xlu2 %3001 }
0x1644   :  { %v3006_v10 = vsub.f32 %v2998_v22, %v3002_v26 }
0x1646   :  { %v6496_v46 = vpop.eup %5108  ;;  %v3008_v38 = vmul.f32 1.442695, %v3006_v10 }
0x1647   :  { %v2928_v52 = vsel %vm365_vm15, %v6496_v46, 0.0 }
0x1648   :  { %5110 = vpow2.f32 %v3008_v38  ;;  %3004 = vmax.xlane.f32.xlu0 %v3003_v7  ;;  %2929 = vadd.xlane.f32.xlu1 %v2928_v52 }
0x164b   :  { %v3278_v21 = vpop.xlane.xlu2 %3277 }
0x164c   :  { %v3282_v53 = vsub.f32 %v3274_v16, %v3278_v21  ;;  %v187_v16 = vsub.f32 %v5501_v23, %v185_v59 }
0x164e   :  { %v6502_v35 = vpop.eup %5110  ;;  %v3284_v58 = vmul.f32 1.442695, %v3282_v53  ;;  %vm189_vm14 = vcmp.gt.f32.partialorder %v187_v16, 0.0 }
0x164f   :  { %v3012_v11 = vsel %vm365_vm15, %v6502_v35, 0.0  ;;  %v6516_v23 = vsel %vm189_vm14, 1.0, %v7503_v0 }
0x1650   :  { %5112 = vpow2.f32 %v3284_v58  ;;  %3013 = vadd.xlane.f32.xlu2 %v3012_v11 }
0x1656   :  { %v6506_v13 = vpop.eup %5112 }
0x1657   :  { %v3288_v6 = vsel %vm365_vm15, %v6506_v13, 0.0 }
0x1658   :  { %3289 = vadd.xlane.f32.xlu2 %v3288_v6 }
0x16b3   :  { %v2927_v30 = vpop.xlane.xlu0 %2926 }
0x16b4   :  { %5114 = vrcp.f32 %v2927_v30  ;;  %v2942_v1 = vand.u32 2147483648, %v2927_v30  ;;  %v2940_v29 = vand.u32 2147483647, %v2927_v30  ;;  %vm2936_vm10 = vweird.f32 %v2927_v30 }
0x16b6   :  { %v2943_v25 = vor.u32 1.1754944e-38, %v2942_v1  ;;  %vm2941_vm1 = vcmp.eq.f32.partialorder %v2940_v29, 8.507059e+37 }
0x16ba   :  { %v5115_v15 = vpop.eup %5114 }
0x16bb   :  { %v2932_v22 = vmul.f32 %v5115_v15, %v2927_v30  ;;  %v2930_v39 = vpop.xlane.xlu1 %2929  ;;  %vm2937_vm9 = vweird.f32 %v5115_v15  ;;  %v3005_v3 = vpop.xlane.xlu0 %3004 }
0x16bc   :  { %5116 = vrcp.f32 %v2930_v39  ;;  %vm2938_vm8 = vmor %vm2936_vm10, %vm2937_vm9  ;;  %v2957_v40 = vand.u32 2147483648, %v2930_v39  ;;  %v2955_v31 = vand.u32 2147483647, %v2930_v39  ;;  %vm2951_vm3 = vweird.f32 %v2930_v39 }
0x16bd   :  { %v2933_v47 = vsub.f32 1.0, %v2932_v22 }
0x16be   :  { %v2958_v38 = vor.u32 1.1754944e-38, %v2957_v40  ;;  %vm2956_vm2 = vcmp.eq.f32.partialorder %v2955_v31, 8.507059e+37 }
0x16bf   :  { %v2934_v28 = vmul.f32 %v5115_v15, %v2933_v47 }
0x16c1   :  { %v2935_v19 = vadd.f32 %v5115_v15, %v2934_v28  ;;  %v3490_v28 = vmul.f32 %v5634_v63, %v6305_v36  ;;  %v3706_v36 = vmul.f32 %v5634_v63, %v6468_v17 }
0x16c2   :  { %v5117_v42 = vpop.eup %5116 }
0x16c3   :  { %v2939_v51 = vsel %vm2938_vm8, %v5115_v15, %v2935_v19  ;;  %v2947_v9 = vmul.f32 %v5117_v42, %v2930_v39  ;;  %v3014_v24 = vpop.xlane.xlu2 %3013  ;;  %vm2952_vm11 = vweird.f32 %v5117_v42 }
0x16c4   :  { %v2944_v4 = vsel %vm2941_vm1, %v2943_v25, %v2939_v51  ;;  %5118 = vrcp.f32 %v3014_v24  ;;  %vm2953_vm13 = vmor %vm2951_vm3, %vm2952_vm11  ;;  %v3029_v11 = vand.u32 2147483648, %v3014_v24  ;;  %v3027_v30 = vand.u32 2147483647, %v3014_v24 }
0x16c5   :  { %v2945_v33 = vmul.f32 %v5107_v37, %v2944_v4  ;;  %v2948_v56 = vsub.f32 1.0, %v2947_v9  ;;  %vm3023_vm7 = vweird.f32 %v3014_v24 }
0x16c6   :  { %v3030_v22 = vor.u32 1.1754944e-38, %v3029_v11  ;;  %vm3028_vm10 = vcmp.eq.f32.partialorder %v3027_v30, 8.507059e+37 }
0x16c7   :  { %v2949_v12 = vmul.f32 %v5117_v42, %v2948_v56  ;;  %v2961_v60 = vmul.f32 %v6516_v23, %v2945_v33 }
0x16c9   :  { %v2950_v26 = vadd.f32 %v5117_v42, %v2949_v12  ;;  %4811 = vmatmul.msk.f32.vlgmr.msrb.gmra.mxu1 %vm365_vm15, %v2961_v60 }
0x16ca   :  { %v5119_v10 = vpop.eup %5118 }
0x16cb   :  { %v3019_v7 = vmul.f32 %v5119_v10, %v3014_v24  ;;  %v3290_v37 = vpop.xlane.xlu2 %3289  ;;  %v2954_v52 = vsel %vm2953_vm13, %v5117_v42, %v2950_v26  ;;  %vm3024_vm6 = vweird.f32 %v5119_v10  ;;  %v3491_v24 = vmul.f32 %v5634_v63, %v6299_v54 }
0x16cc   :  { %5120 = vrcp.f32 %v3290_v37  ;;  %v2959_v21 = vsel %vm2956_vm2, %v2958_v38, %v2954_v52  ;;  %vm3025_vm9 = vmor %vm3023_vm7, %vm3024_vm6  ;;  %v3305_v1 = vand.u32 2147483648, %v3290_v37  ;;  %v3303_v32 = vand.u32 2147483647, %v3290_v37 }
0x16cd   :  { %v3020_v53 = vsub.f32 1.0, %v3019_v7  ;;  %v2960_v58 = vmul.f32 %v6496_v46, %v2959_v21  ;;  %vm3299_vm8 = vweird.f32 %v3290_v37  ;;  %v3007_v63 = vsub.f32 %v6494_v18, %v3005_v3 }
0x16ce   :  { %v3306_v25 = vor.u32 1.1754944e-38, %v3305_v1  ;;  %vm3304_vm11 = vcmp.eq.f32.partialorder %v3303_v32, 8.507059e+37  ;;  %v3116_v1 = vstv %s6575_s23 }
0x16cf   :  { %v3021_v6 = vmul.f32 %v5119_v10, %v3020_v53  ;;  %v2962_v2 = vmul.f32 %v6522_v27, %v2960_v58  ;;  %v3010_v38 = vmul.f32 1.442695, %v3007_v63 }
0x16d1   :  { %v3022_v59 = vadd.f32 %v5119_v10, %v3021_v6  ;;  %4812 = vmatmul.msk.f32.gmra.mxu1 %vm365_vm15, %v2962_v2  ;;  %5122 = vpow2.f32 %v3010_v38 }
0x16d2   :  { %v5121_v15 = vpop.eup %5120 }
0x16d3   :  { %v3026_v39 = vsel %vm3025_vm9, %v5119_v10, %v3022_v59  ;;  %v3295_v0 = vmul.f32 %v5121_v15, %v3290_v37  ;;  %vm3300_vm14 = vweird.f32 %v5121_v15 }
0x16d4   :  { %v3031_v47 = vsel %vm3028_vm10, %v3030_v22, %v3026_v39  ;;  %vm3301_vm1 = vmor %vm3299_vm8, %vm3300_vm14 }
0x16d5   :  { %v3032_v16 = vmul.f32 %v6502_v35, %v3031_v47  ;;  %v3296_v46 = vsub.f32 1.0, %v3295_v0 }
0x16d7   :  { %v3297_v29 = vmul.f32 %v5121_v15, %v3296_v46  ;;  %v3048_v19 = vmul.f32 %v6418_v41, %v3032_v16  ;;  %v6571_v30 = vpop.eup %5122 }
0x16d8   :  { %v3015_v59 = vsel %vm365_vm15, %v6571_v30, 0.0 }
0x16d9   :  { %4806 = vmatmul.msk.f32.vlgmr.msrb.gmra.mxu3 %vm365_vm15, %v3048_v19  ;;  %4826 = vmatmul.msk.f32.vlgmr.msra.gmra.mxu1 %vm71_vm0, %v3490_v28  ;;  %v3079_v35 = vsel %vm365_vm15, %v3048_v19, 0.0  ;;  %v3298_v42 = vadd.f32 %v5121_v15, %v3297_v29 }
0x16da   :  { %3728 = vmatpush.msrb.mxu3 %v3707_v20  ;;  %3080 = vadd.xlane.f32.xlu2 %v3079_v35 }
0x16db   :  { %v3302_v51 = vsel %vm3301_vm1, %v5121_v15, %v3298_v42 }
0x16dc   :  { %3729 = vmatpush.msrb.mxu3 %v3706_v36  ;;  %v3307_v9 = vsel %vm3304_vm11, %v3306_v25, %v3302_v51 }
0x16dd   :  { %v3308_v45 = vmul.f32 %v6506_v13, %v3307_v9  ;;  %v3269_v13 = vpop.f32.mrf.mxu2 }
0x16de   :  { %v6558_v60 = vmul.f32 0.35355338, %v3269_v13 }
0x16df   :  { %v6542_v4 = vmul.f32 %v6418_v41, %v3308_v45 }
0x16e0   :  { %v3275_v18 = vsel %vm6363_vm12, %v6558_v60, -1e+32 }
0x16e1   :  { %4827 = vmatmul.msk.f32.gmra.mxu1 %vm71_vm0, %v3491_v24  ;;  %v3355_v33 = vsel %vm365_vm15, %v6542_v4, 0.0  ;;  %v3279_v11 = vsel %vm365_vm15, %v3275_v18, -inf }
0x16e2   :  { %3356 = vadd.xlane.f32.xlu2 %v3355_v33 }
0x1746   :  { %v6547_v56 = vpop.f32.mrf.mxu1 }
0x174d   :  { %v3081_v26 = vpop.xlane.xlu2 %3080 }
0x174e   :  { %v6549_v17 = vpop.f32.mrf.mxu1 }
0x1756   :  { %v3515_v40 = vpop.f32.mrf.mxu1 }
0x1757   :  { %v6551_v12 = vmul.f32 0.35355338, %v3515_v40 }
0x1759   :  { %v3523_v54 = vsel %vm6343_vm5, %v6551_v12, -1e+32 }
0x175a   :  { %v3525_v31 = vsel %vm365_vm15, %v3523_v54, -inf }
0x175b   :  { %3526 = vmax.xlane.f32.xlu1 %v3525_v31 }
0x175c   :  { %v3073_v10 = vpop.f32.mrf.mxu3 }
0x175d   :  { %v3085_v7 = vsub.f32 %v3081_v26, %v3073_v10 }
0x175e   :  { %v3518_v37 = vpop.f32.mrf.mxu1 }
0x175f   :  { %v3087_v52 = vmul.f32 %v3085_v7, %v5582_v8  ;;  %v6561_v21 = vmul.f32 0.35355338, %v3518_v37 }
0x1761   :  { %v3089_v53 = vmax.f32 %v3087_v52, 0.0  ;;  %v3524_v58 = vsel %vm6363_vm12, %v6561_v21, -1e+32 }
0x1762   :  { %v3528_v6 = vsel %vm365_vm15, %v3524_v58, -inf }
0x1763   :  { %5124 = vrsqrt.f32 %v3089_v53  ;;  %3280 = vmax.xlane.f32.xlu1 %v3279_v11  ;;  %3529 = vmax.xlane.f32.xlu0 %v3528_v6  ;;  %vm3098_vm3 = vcmp.eq.f32.partialorder %v3089_v53, inf  ;;  %v3101_v46 = vand.u32 2147483648, %v3089_v53  ;;  %vm3100_vm4 = vcmp.eq.f32.partialorder %v3089_v53, 0.0 }
0x1769   :  { %v5125_v2 = vpop.eup %5124 }
0x176a   :  { %v3092_v15 = vmul.f32 %v5125_v2, %v3089_v53 }
0x176b   :  { %3016 = vadd.xlane.f32.xlu0 %v3015_v59 }
0x176c   :  { %v3093_v22 = vmul.f32 %v5125_v2, %v3092_v15 }
0x176e   :  { %v3094_v39 = vmul.f32 0.5, %v3093_v22 }
0x1770   :  { %v3095_v0 = vsub.f32 1.5, %v3094_v39 }
0x1772   :  { %v3096_v47 = vmul.f32 %v5125_v2, %v3095_v0 }
0x1774   :  { %v3097_v16 = vmul.f32 %v3096_v47, %v3089_v53 }
0x1776   :  { %v3099_v28 = vsel %vm3098_vm3, %v3089_v53, %v3097_v16 }
0x1777   :  { %v3102_v29 = vsel %vm3100_vm4, %v3101_v46, %v3099_v28 }
0x1778   :  { %v3117_v19 = vmul.f32 %v3116_v1, %v3102_v29 }
0x177a   :  { %v3119_v32 = vmul.f32 1.442695, %v3117_v19 }
0x177c   :  { %5126 = vpow2.f32 %v3119_v32 }
0x1782   :  { %v5127_v20 = vpop.eup %5126 }
0x1783   :  { %v3123_v35 = vmax.f32 %v5127_v20, 1e-05 }
0x1785   :  { %v3125_v42 = vmin.f32 %v3123_v35, 100000.0 }
0x1787   :  { %v3127_v25 = vmul.f32 %v3125_v42, %v6455_v5 }
0x1789   :  { %v6583_v36 = vsel %vm6343_vm5, %v3127_v25, -1e+32 }
0x178a   :  { %v3131_v51 = vsel %vm365_vm15, %v6583_v36, -inf }
0x178b   :  { %3132 = vmax.xlane.f32.xlu2 %v3131_v51 }
0x17ce   :  { %v3527_v9 = vpop.xlane.xlu1 %3526 }
0x17cf   :  { %v3531_v45 = vsub.f32 %v3523_v54, %v3527_v9 }
0x17d1   :  { %v3533_v24 = vmul.f32 1.442695, %v3531_v45 }
0x17d3   :  { %5128 = vpow2.f32 %v3533_v24 }
0x17d6   :  { %v3281_v33 = vpop.xlane.xlu1 %3280  ;;  %v3530_v3 = vpop.xlane.xlu0 %3529 }
0x17d7   :  { %v3283_v40 = vsub.f32 %v3275_v18, %v3281_v33  ;;  %v3532_v13 = vsub.f32 %v3524_v58, %v3530_v3 }
0x17d9   :  { %v5129_v63 = vpop.eup %5128  ;;  %v3286_v31 = vmul.f32 1.442695, %v3283_v40  ;;  %v3535_v26 = vmul.f32 1.442695, %v3532_v13 }
0x17da   :  { %v3537_v5 = vsel %vm365_vm15, %v5129_v63, 0.0 }
0x17db   :  { %5130 = vpow2.f32 %v3286_v31  ;;  %3538 = vadd.xlane.f32.xlu1 %v3537_v5 }
0x17dc   :  { %5132 = vpow2.f32 %v3535_v26 }
0x17de   :  { %v3017_v10 = vpop.xlane.xlu0 %3016 }
0x17df   :  { %5134 = vrcp.f32 %v3017_v10  ;;  %v3044_v58 = vand.u32 2147483648, %v3017_v10  ;;  %v3042_v6 = vand.u32 2147483647, %v3017_v10  ;;  %vm3038_vm2 = vweird.f32 %v3017_v10 }
0x17e1   :  { %v6588_v38 = vpop.eup %5130  ;;  %v3045_v59 = vor.u32 1.1754944e-38, %v3044_v58  ;;  %vm3043_vm7 = vcmp.eq.f32.partialorder %v3042_v6, 8.507059e+37 }
0x17e2   :  { %v6590_v7 = vpop.eup %5132  ;;  %v3291_v54 = vsel %vm365_vm15, %v6588_v38, 0.0 }
0x17e3   :  { %3292 = vadd.xlane.f32.xlu1 %v3291_v54  ;;  %v3540_v37 = vsel %vm365_vm15, %v6590_v7, 0.0 }
0x17e4   :  { %3541 = vadd.xlane.f32.xlu0 %v3540_v37 }
0x17e5   :  { %v5135_v52 = vpop.eup %5134 }
0x17e6   :  { %v3034_v18 = vmul.f32 %v5135_v52, %v3017_v10  ;;  %vm3039_vm13 = vweird.f32 %v5135_v52 }
0x17e7   :  { %vm3040_vm6 = vmor %vm3038_vm2, %vm3039_vm13 }
0x17e8   :  { %v3035_v53 = vsub.f32 1.0, %v3034_v18 }
0x17ea   :  { %v3036_v11 = vmul.f32 %v5135_v52, %v3035_v53 }
0x17ec   :  { %v3037_v2 = vadd.f32 %v5135_v52, %v3036_v11 }
0x17ee   :  { %v3041_v15 = vsel %vm3040_vm6, %v5135_v52, %v3037_v2 }
0x17ef   :  { %v3046_v22 = vsel %vm3043_vm7, %v3045_v59, %v3041_v15 }
0x17f0   :  { %v3047_v39 = vmul.f32 %v6571_v30, %v3046_v22 }
0x17f2   :  { %v3049_v0 = vmul.f32 %v6426_v55, %v3047_v39 }
0x17f4   :  { %4807 = vmatmul.msk.f32.gmra.mxu3 %vm365_vm15, %v3049_v0  ;;  %v3082_v47 = vsel %vm365_vm15, %v3049_v0, 0.0 }
0x17f5   :  { %3083 = vadd.xlane.f32.xlu0 %v3082_v47 }
0x17fc   :  { %4819 = vmatmul.msk.f32.vlgmr.msra.gmra.mxu3 %vm365_vm15, %v6542_v4 }
0x184e   :  { %v3539_v16 = vpop.xlane.xlu1 %3538 }
0x184f   :  { %5136 = vrcp.f32 %v3539_v16  ;;  %v3554_v30 = vand.u32 2147483648, %v3539_v16  ;;  %v3552_v35 = vand.u32 2147483647, %v3539_v16  ;;  %vm3548_vm10 = vweird.f32 %v3539_v16 }
0x1851   :  { %v3555_v51 = vor.u32 1.1754944e-38, %v3554_v30  ;;  %vm3553_vm8 = vcmp.eq.f32.partialorder %v3552_v35, 8.507059e+37 }
0x1855   :  { %v5137_v46 = vpop.eup %5136 }
0x1856   :  { %v3544_v28 = vmul.f32 %v5137_v46, %v3539_v16  ;;  %v3293_v29 = vpop.xlane.xlu1 %3292  ;;  %vm3549_vm9 = vweird.f32 %v5137_v46 }
0x1857   :  { %5138 = vrcp.f32 %v3293_v29  ;;  %v3542_v19 = vpop.xlane.xlu0 %3541  ;;  %vm3550_vm14 = vmor %vm3548_vm10, %vm3549_vm9  ;;  %v3318_v13 = vand.u32 2147483647, %v3293_v29  ;;  %v3320_v31 = vand.u32 2147483648, %v3293_v29  ;;  %vm3314_vm3 = vweird.f32 %v3293_v29 }
0x1858   :  { %v3545_v32 = vsub.f32 1.0, %v3544_v28  ;;  %5140 = vrcp.f32 %v3542_v19  ;;  %v3569_v10 = vand.u32 2147483648, %v3542_v19  ;;  %v3567_v52 = vand.u32 2147483647, %v3542_v19 }
0x1859   :  { %vm3563_vm13 = vweird.f32 %v3542_v19  ;;  %vm3319_vm2 = vcmp.eq.f32.partialorder %v3318_v13, 8.507059e+37 }
0x185a   :  { %v3546_v20 = vmul.f32 %v5137_v46, %v3545_v32  ;;  %v3570_v11 = vor.u32 1.1754944e-38, %v3569_v10  ;;  %vm3568_vm7 = vcmp.eq.f32.partialorder %v3567_v52, 8.507059e+37 }
0x185c   :  { %v3547_v42 = vadd.f32 %v5137_v46, %v3546_v20 }
0x185d   :  { %v5139_v25 = vpop.eup %5138 }
0x185e   :  { %v5141_v9 = vpop.eup %5140  ;;  %v3551_v4 = vsel %vm3550_vm14, %v5137_v46, %v3547_v42  ;;  %v3310_v45 = vmul.f32 %v5139_v25, %v3293_v29  ;;  %vm3315_vm1 = vweird.f32 %v5139_v25 }
0x185f   :  { %v3556_v24 = vsel %vm3553_vm8, %v3555_v51, %v3551_v4  ;;  %v3559_v33 = vmul.f32 %v5141_v9, %v3542_v19  ;;  %vm3564_vm11 = vweird.f32 %v5141_v9  ;;  %vm3316_vm4 = vmor %vm3314_vm3, %vm3315_vm1  ;;  %v3357_v19 = vpop.xlane.xlu2 %3356 }
0x1860   :  { %v3557_v3 = vmul.f32 %v5129_v63, %v3556_v24  ;;  %v3311_v40 = vsub.f32 1.0, %v3310_v45  ;;  %v3321_v63 = vor.u32 1.1754944e-38, %v3320_v31  ;;  %vm3565_vm6 = vmor %vm3563_vm13, %vm3564_vm11 }
0x1861   :  { %v3560_v26 = vsub.f32 1.0, %v3559_v33 }
0x1862   :  { %v3312_v5 = vmul.f32 %v5139_v25, %v3311_v40  ;;  %v3573_v54 = vmul.f32 %v6418_v41, %v3557_v3 }
0x1863   :  { %v3561_v37 = vmul.f32 %v5141_v9, %v3560_v26 }
0x1864   :  { %v3313_v18 = vadd.f32 %v5139_v25, %v3312_v5  ;;  %4830 = vmatmul.msk.f32.vlgmr.msrb.gmra.mxu2 %vm365_vm15, %v3573_v54  ;;  %v3604_v53 = vsel %vm365_vm15, %v3573_v54, 0.0 }
0x1865   :  { %v3562_v58 = vadd.f32 %v5141_v9, %v3561_v37  ;;  %3605 = vadd.xlane.f32.xlu1 %v3604_v53  ;;  %v3392_v53 = vstv %s6615_s24 }
0x1866   :  { %v3317_v6 = vsel %vm3316_vm4, %v5139_v25, %v3313_v18 }
0x1867   :  { %v3322_v41 = vsel %vm3319_vm2, %v3321_v63, %v3317_v6  ;;  %v3566_v2 = vsel %vm3565_vm6, %v5141_v9, %v3562_v58 }
0x1868   :  { %v3323_v59 = vmul.f32 %v6588_v38, %v3322_v41  ;;  %v3571_v15 = vsel %vm3568_vm7, %v3570_v11, %v3566_v2  ;;  %v3084_v46 = vpop.xlane.xlu0 %3083 }
0x1869   :  { %v3572_v22 = vmul.f32 %v6590_v7, %v3571_v15  ;;  %v3133_v15 = vpop.xlane.xlu2 %3132 }
0x186a   :  { %v3325_v39 = vmul.f32 %v6426_v55, %v3323_v59 }
0x186b   :  { %v3574_v0 = vmul.f32 %v6426_v55, %v3572_v22  ;;  %v3137_v22 = vsub.f32 %v6583_v36, %v3133_v15 }
0x186c   :  { %4820 = vmatmul.msk.f32.gmra.mxu3 %vm365_vm15, %v3325_v39  ;;  %v3358_v47 = vsel %vm365_vm15, %v3325_v39, 0.0 }
0x186d   :  { %4831 = vmatmul.msk.f32.gmra.mxu2 %vm365_vm15, %v3574_v0  ;;  %3359 = vadd.xlane.f32.xlu1 %v3358_v47  ;;  %v3607_v16 = vsel %vm365_vm15, %v3574_v0, 0.0 }
0x186e   :  { %3608 = vadd.xlane.f32.xlu0 %v3607_v16 }
0x1877   :  { %v3076_v28 = vpop.f32.mrf.mxu3 }
0x1878   :  { %v3086_v38 = vsub.f32 %v3084_v46, %v3076_v28  ;;  %v3139_v46 = vmul.f32 1.442695, %v3137_v22 }
0x187a   :  { %v3088_v29 = vmul.f32 %v3086_v38, %v5587_v14 }
0x187c   :  { %v3090_v7 = vmax.f32 %v3088_v29, 0.0 }
0x187e   :  { %5142 = vrsqrt.f32 %v3090_v7  ;;  %vm3110_vm9 = vcmp.eq.f32.partialorder %v3090_v7, inf  ;;  %v3113_v40 = vand.u32 2147483648, %v3090_v7  ;;  %vm3112_vm10 = vcmp.eq.f32.partialorder %v3090_v7, 0.0 }
0x187f   :  { %v3349_v32 = vpop.f32.mrf.mxu3 }
0x1880   :  { %v3361_v55 = vsub.f32 %v3357_v19, %v3349_v32 }
0x1882   :  { %v3363_v30 = vmul.f32 %v3361_v55, %v5582_v8 }
0x1884   :  { %v5143_v20 = vpop.eup %5142  ;;  %v3365_v35 = vmax.f32 %v3363_v30, 0.0 }
0x1885   :  { %v3104_v42 = vmul.f32 %v5143_v20, %v3090_v7 }
0x1886   :  { %5144 = vrsqrt.f32 %v3365_v35  ;;  %vm3374_vm14 = vcmp.eq.f32.partialorder %v3365_v35, inf  ;;  %v3377_v18 = vand.u32 2147483648, %v3365_v35  ;;  %vm3376_vm8 = vcmp.eq.f32.partialorder %v3365_v35, 0.0 }
0x1887   :  { %v3105_v25 = vmul.f32 %v5143_v20, %v3104_v42 }
0x1889   :  { %v3106_v51 = vmul.f32 0.5, %v3105_v25 }
0x188b   :  { %v3107_v9 = vsub.f32 1.5, %v3106_v51 }
0x188c   :  { %v5145_v4 = vpop.eup %5144 }
0x188d   :  { %v3108_v45 = vmul.f32 %v5143_v20, %v3107_v9  ;;  %v3368_v24 = vmul.f32 %v5145_v4, %v3365_v35 }
0x188f   :  { %v3109_v33 = vmul.f32 %v3108_v45, %v3090_v7  ;;  %v3369_v3 = vmul.f32 %v5145_v4, %v3368_v24 }
0x1891   :  { %v3111_v13 = vsel %vm3110_vm9, %v3090_v7, %v3109_v33  ;;  %v3370_v31 = vmul.f32 0.5, %v3369_v3 }
0x1892   :  { %v3114_v26 = vsel %vm3112_vm10, %v3113_v40, %v3111_v13 }
0x1893   :  { %v3118_v5 = vmul.f32 %v3116_v1, %v3114_v26  ;;  %v3371_v10 = vsub.f32 1.5, %v3370_v31 }
0x1895   :  { %v3121_v54 = vmul.f32 1.442695, %v3118_v5  ;;  %v3372_v37 = vmul.f32 %v5145_v4, %v3371_v10 }
0x1897   :  { %5146 = vpow2.f32 %v3121_v54  ;;  %v3373_v52 = vmul.f32 %v3372_v37, %v3365_v35 }
0x1899   :  { %v3375_v63 = vsel %vm3374_vm14, %v3365_v35, %v3373_v52 }
0x189a   :  { %v3378_v58 = vsel %vm3376_vm8, %v3377_v18, %v3375_v63  ;;  %v3641_v63 = vstv %s6644_s25 }
0x189b   :  { %v3393_v11 = vmul.f32 %v3392_v53, %v3378_v58 }
0x189d   :  { %v5147_v6 = vpop.eup %5146  ;;  %v3395_v41 = vmul.f32 1.442695, %v3393_v11 }
0x189e   :  { %v3124_v2 = vmax.f32 %v5147_v6, 1e-05 }
0x189f   :  { %5148 = vpow2.f32 %v3395_v41 }
0x18a0   :  { %v3126_v59 = vmin.f32 %v3124_v2, 100000.0  ;;  %5150 = vpow2.f32 %v3139_v46 }
0x18a2   :  { %v3128_v1 = vmul.f32 %v3126_v59, %v6489_v50 }
0x18a4   :  { %v6626_v39 = vsel %vm6363_vm12, %v3128_v1, -1e+32 }
0x18a5   :  { %v5149_v0 = vpop.eup %5148  ;;  %v3134_v47 = vsel %vm365_vm15, %v6626_v39, -inf }
0x18a6   :  { %3135 = vmax.xlane.f32.xlu0 %v3134_v47  ;;  %v3399_v16 = vmax.f32 %v5149_v0, 1e-05  ;;  %v6637_v29 = vpop.eup %5150 }
0x18a7   :  { %v3143_v7 = vsel %vm365_vm15, %v6637_v29, 0.0 }
0x18a8   :  { %v3401_v28 = vmin.f32 %v3399_v16, 100000.0 }
0x18aa   :  { %v3403_v38 = vmul.f32 %v3401_v28, %v6461_v62 }
0x18ac   :  { %v6633_v50 = vsel %vm6343_vm5, %v3403_v38, -1e+32 }
0x18ad   :  { %v3407_v36 = vsel %vm365_vm15, %v6633_v50, -inf }
0x18ae   :  { %3408 = vmax.xlane.f32.xlu2 %v3407_v36 }
0x18b6   :  { %3144 = vadd.xlane.f32.xlu2 %v3143_v7 }
0x18d8   :  { %v3606_v19 = vpop.xlane.xlu1 %3605 }
0x18e0   :  { %v3360_v20 = vpop.xlane.xlu1 %3359 }
0x18e1   :  { %v3609_v42 = vpop.xlane.xlu0 %3608 }
0x18e7   :  { %v3598_v32 = vpop.f32.mrf.mxu2 }
0x18e8   :  { %v3610_v55 = vsub.f32 %v3606_v19, %v3598_v32 }
0x18ea   :  { %v3612_v62 = vmul.f32 %v3610_v55, %v5582_v8 }
0x18ec   :  { %v3614_v30 = vmax.f32 %v3612_v62, 0.0 }
0x18ee   :  { %5152 = vrsqrt.f32 %v3614_v30  ;;  %vm3623_vm1 = vcmp.eq.f32.partialorder %v3614_v30, inf  ;;  %vm3625_vm11 = vcmp.eq.f32.partialorder %v3614_v30, 0.0 }
0x18ef   :  { %v3352_v35 = vpop.f32.mrf.mxu3 }
0x18f0   :  { %v3362_v25 = vsub.f32 %v3360_v20, %v3352_v35  ;;  %v3601_v51 = vpop.f32.mrf.mxu2 }
0x18f1   :  { %v3611_v9 = vsub.f32 %v3609_v42, %v3601_v51 }
0x18f2   :  { %v3364_v4 = vmul.f32 %v3362_v25, %v5587_v14 }
0x18f3   :  { %v3613_v45 = vmul.f32 %v3611_v9, %v5587_v14  ;;  %v3626_v14 = vand.u32 2147483648, %v3614_v30 }
0x18f4   :  { %v5153_v24 = vpop.eup %5152  ;;  %v3366_v33 = vmax.f32 %v3364_v4, 0.0 }
0x18f5   :  { %v3615_v3 = vmax.f32 %v3613_v45, 0.0  ;;  %v3617_v40 = vmul.f32 %v5153_v24, %v3614_v30 }
0x18f6   :  { %5154 = vrsqrt.f32 %v3366_v33  ;;  %vm3386_vm3 = vcmp.eq.f32.partialorder %v3366_v33, inf  ;;  %v3389_v28 = vand.u32 2147483648, %v3366_v33  ;;  %vm3388_vm13 = vcmp.eq.f32.partialorder %v3366_v33, 0.0 }
0x18f7   :  { %5156 = vrsqrt.f32 %v3615_v3  ;;  %v3618_v13 = vmul.f32 %v5153_v24, %v3617_v40  ;;  %vm3635_vm4 = vcmp.eq.f32.partialorder %v3615_v3, inf  ;;  %v3638_v38 = vand.u32 2147483648, %v3615_v3 }
0x18f8   :  { %vm3637_vm2 = vcmp.eq.f32.partialorder %v3615_v3, 0.0 }
0x18f9   :  { %v3619_v8 = vmul.f32 0.5, %v3618_v13 }
0x18fb   :  { %v3620_v31 = vsub.f32 1.5, %v3619_v8 }
0x18fc   :  { %v5155_v26 = vpop.eup %5154 }
0x18fd   :  { %v5157_v5 = vpop.eup %5156  ;;  %v3621_v10 = vmul.f32 %v5153_v24, %v3620_v31  ;;  %v3380_v54 = vmul.f32 %v5155_v26, %v3366_v33 }
0x18fe   :  { %v3629_v37 = vmul.f32 %v5157_v5, %v3615_v3 }
0x18ff   :  { %v3622_v52 = vmul.f32 %v3621_v10, %v3614_v30  ;;  %v3381_v18 = vmul.f32 %v5155_v26, %v3380_v54 }
0x1900   :  { %v3630_v58 = vmul.f32 %v5157_v5, %v3629_v37 }
0x1901   :  { %v3624_v11 = vsel %vm3623_vm1, %v3614_v30, %v3622_v52  ;;  %v3382_v6 = vmul.f32 0.5, %v3381_v18 }
0x1902   :  { %v3627_v41 = vsel %vm3625_vm11, %v3626_v14, %v3624_v11  ;;  %v3631_v2 = vmul.f32 0.5, %v3630_v58 }
0x1903   :  { %v3642_v59 = vmul.f32 %v3641_v63, %v3627_v41  ;;  %v3383_v15 = vsub.f32 1.5, %v3382_v6 }
0x1904   :  { %v3632_v1 = vsub.f32 1.5, %v3631_v2 }
0x1905   :  { %v3644_v22 = vmul.f32 1.442695, %v3642_v59  ;;  %v3384_v0 = vmul.f32 %v5155_v26, %v3383_v15 }
0x1906   :  { %v3633_v47 = vmul.f32 %v5157_v5, %v3632_v1 }
0x1907   :  { %5158 = vpow2.f32 %v3644_v22  ;;  %v3385_v16 = vmul.f32 %v3384_v0, %v3366_v33 }
0x1908   :  { %v3634_v46 = vmul.f32 %v3633_v47, %v3615_v3 }
0x1909   :  { %v3387_v36 = vsel %vm3386_vm3, %v3366_v33, %v3385_v16 }
0x190a   :  { %v3636_v7 = vsel %vm3635_vm4, %v3615_v3, %v3634_v46  ;;  %v3390_v19 = vsel %vm3388_vm13, %v3389_v28, %v3387_v36 }
0x190b   :  { %v3639_v32 = vsel %vm3637_vm2, %v3638_v38, %v3636_v7  ;;  %v3394_v55 = vmul.f32 %v3392_v53, %v3390_v19 }
0x190c   :  { %v3643_v62 = vmul.f32 %v3641_v63, %v3639_v32 }
0x190d   :  { %v5159_v30 = vpop.eup %5158  ;;  %v3397_v20 = vmul.f32 1.442695, %v3394_v55 }
0x190e   :  { %v3648_v35 = vmax.f32 %v5159_v30, 1e-05  ;;  %v3646_v42 = vmul.f32 1.442695, %v3643_v62 }
0x190f   :  { %5160 = vpow2.f32 %v3397_v20 }
0x1910   :  { %v3650_v25 = vmin.f32 %v3648_v35, 100000.0  ;;  %5162 = vpow2.f32 %v3646_v42 }
0x1912   :  { %v3652_v51 = vmul.f32 %v3650_v25, %v6551_v12 }
0x1914   :  { %v3654_v9 = vsel %vm6343_vm5, %v3652_v51, -1e+32 }
0x1915   :  { %v5161_v4 = vpop.eup %5160  ;;  %v3656_v45 = vsel %vm365_vm15, %v3654_v9, -inf }
0x1916   :  { %v5163_v24 = vpop.eup %5162  ;;  %3657 = vmax.xlane.f32.xlu1 %v3656_v45  ;;  %v3400_v33 = vmax.f32 %v5161_v4, 1e-05 }
0x1917   :  { %v3649_v53 = vmax.f32 %v5163_v24, 1e-05 }
0x1918   :  { %v3402_v3 = vmin.f32 %v3400_v33, 100000.0 }
0x1919   :  { %v3136_v40 = vpop.xlane.xlu0 %3135  ;;  %v3651_v13 = vmin.f32 %v3649_v53, 100000.0 }
0x191a   :  { %v3138_v8 = vsub.f32 %v6626_v39, %v3136_v40  ;;  %v3404_v31 = vmul.f32 %v3402_v3, %v6558_v60 }
0x191b   :  { %v3653_v26 = vmul.f32 %v3651_v13, %v6561_v21 }
0x191c   :  { %v3141_v12 = vmul.f32 1.442695, %v3138_v8  ;;  %v3406_v34 = vsel %vm6363_vm12, %v3404_v31, -1e+32 }
0x191d   :  { %v3655_v5 = vsel %vm6363_vm12, %v3653_v26, -1e+32  ;;  %v3410_v10 = vsel %vm365_vm15, %v3406_v34, -inf }
0x191e   :  { %5164 = vpow2.f32 %v3141_v12  ;;  %v3659_v54 = vsel %vm365_vm15, %v3655_v5, -inf  ;;  %3411 = vmax.xlane.f32.xlu1 %v3410_v10 }
0x191f   :  { %3660 = vmax.xlane.f32.xlu0 %v3659_v54 }
0x1921   :  { %v3409_v37 = vpop.xlane.xlu2 %3408 }
0x1922   :  { %v3413_v39 = vsub.f32 %v6633_v50, %v3409_v37 }
0x1924   :  { %v6663_v60 = vpop.eup %5164  ;;  %v3415_v21 = vmul.f32 1.442695, %v3413_v39 }
0x1925   :  { %v3146_v52 = vsel %vm365_vm15, %v6663_v60, 0.0 }
0x1926   :  { %5166 = vpow2.f32 %v3415_v21 }
0x1927   :  { %3147 = vadd.xlane.f32.xlu0 %v3146_v52 }
0x1929   :  { %v3145_v57 = vpop.xlane.xlu2 %3144 }
0x192a   :  { %5168 = vrcp.f32 %v3145_v57  ;;  %v3160_v50 = vand.u32 2147483648, %v3145_v57  ;;  %v3158_v41 = vand.u32 2147483647, %v3145_v57  ;;  %vm3154_vm12 = vweird.f32 %v3145_v57 }
0x192c   :  { %v6667_v18 = vpop.eup %5166  ;;  %v3161_v59 = vor.u32 1.1754944e-38, %v3160_v50  ;;  %vm3159_vm7 = vcmp.eq.f32.partialorder %v3158_v41, 8.507059e+37 }
0x192d   :  { %v3419_v14 = vsel %vm365_vm15, %v6667_v18, 0.0 }
0x192e   :  { %3420 = vadd.xlane.f32.xlu2 %v3419_v14 }
0x1930   :  { %v5169_v63 = vpop.eup %5168 }
0x1931   :  { %v3150_v58 = vmul.f32 %v5169_v63, %v3145_v57  ;;  %vm3155_vm5 = vweird.f32 %v5169_v63 }
0x1932   :  { %vm3156_vm6 = vmor %vm3154_vm12, %vm3155_vm5 }
0x1933   :  { %v3151_v11 = vsub.f32 1.0, %v3150_v58 }
0x1935   :  { %v3152_v6 = vmul.f32 %v5169_v63, %v3151_v11  ;;  %v3939_v11 = vld [vmem:[%s7475_s7 + $0x20] sm:$0xff] }
0x1937   :  { %v3153_v2 = vadd.f32 %v5169_v63, %v3152_v6 }
0x1939   :  { %v3157_v15 = vsel %vm3156_vm6, %v5169_v63, %v3153_v2  ;;  %v3941_v63 = vld [vmem:[%s7475_s7 + $0x30] sm:$0xff] }
0x193a   :  { %v3162_v1 = vsel %vm3159_vm7, %v3161_v59, %v3157_v15 }
0x193b   :  { %v3163_v22 = vmul.f32 %v6637_v29, %v3162_v1 }
0x193d   :  { %v3179_v0 = vmul.f32 %v6516_v23, %v3163_v22 }
0x193f   :  { %4809 = vmatmul.msk.f32.vlgmr.msra.gmra.mxu0 %vm365_vm15, %v3179_v0 }
0x1989   :  { %v3658_v47 = vpop.xlane.xlu1 %3657 }
0x198a   :  { %v3662_v16 = vsub.f32 %v3654_v9, %v3658_v47 }
0x198c   :  { %v3664_v46 = vmul.f32 1.442695, %v3662_v16 }
0x198e   :  { %5170 = vpow2.f32 %v3664_v46  ;;  %v4772_v46 = vld [vmem:[%s7473_s5 + $0x1a8] sm:$0xff] }
0x198f   :  { %3758 = vmatpush.msra.mxu0 %v4772_v46 }
0x1991   :  { %v3412_v28 = vpop.xlane.xlu1 %3411 }
0x1992   :  { %v3661_v38 = vpop.xlane.xlu0 %3660  ;;  %v3414_v36 = vsub.f32 %v3406_v34, %v3412_v28  ;;  %v4771_v28 = vld [vmem:[%s7473_s5 + $0x1a0] sm:$0xff] }
0x1993   :  { %v3663_v7 = vsub.f32 %v3655_v5, %v3661_v38  ;;  %3759 = vmatpush.msra.mxu0 %v4771_v28  ;;  %v4784_v28 = vld [vmem:[%s7474_s6 + $0x60] sm:$0xff] }
0x1994   :  { %v6674_v19 = vpop.eup %5170  ;;  %v3417_v32 = vmul.f32 1.442695, %v3414_v36 }
0x1995   :  { %v3666_v55 = vmul.f32 1.442695, %v3663_v7  ;;  %v3668_v62 = vsel %vm365_vm15, %v6674_v19, 0.0 }
0x1996   :  { %5172 = vpow2.f32 %v3417_v32  ;;  %3669 = vadd.xlane.f32.xlu1 %v3668_v62 }
0x1997   :  { %5174 = vpow2.f32 %v3666_v55 }
0x199a   :  { %v3148_v29 = vpop.xlane.xlu0 %3147 }
0x199b   :  { %5176 = vrcp.f32 %v3148_v29  ;;  %v3175_v45 = vand.u32 2147483648, %v3148_v29  ;;  %v3173_v33 = vand.u32 2147483647, %v3148_v29  ;;  %vm3169_vm10 = vweird.f32 %v3148_v29 }
0x199c   :  { %v6678_v30 = vpop.eup %5172 }
0x199d   :  { %v6680_v20 = vpop.eup %5174  ;;  %v3422_v35 = vsel %vm365_vm15, %v6678_v30, 0.0  ;;  %v3176_v40 = vor.u32 1.1754944e-38, %v3175_v45  ;;  %vm3174_vm8 = vcmp.eq.f32.partialorder %v3173_v33, 8.507059e+37 }
0x199e   :  { %v3671_v42 = vsel %vm365_vm15, %v6680_v20, 0.0  ;;  %3423 = vadd.xlane.f32.xlu1 %v3422_v35 }
0x199f   :  { %3672 = vadd.xlane.f32.xlu0 %v3671_v42 }
0x19a1   :  { %v5177_v25 = vpop.eup %5176  ;;  %v3421_v51 = vpop.xlane.xlu2 %3420 }
0x19a2   :  { %v3165_v9 = vmul.f32 %v5177_v25, %v3148_v29  ;;  %5178 = vrcp.f32 %v3421_v51  ;;  %vm3170_vm9 = vweird.f32 %v5177_v25  ;;  %v3436_v12 = vand.u32 2147483648, %v3421_v51 }
0x19a3   :  { %vm3171_vm14 = vmor %vm3169_vm10, %vm3170_vm9  ;;  %v3434_v10 = vand.u32 2147483647, %v3421_v51  ;;  %vm3430_vm11 = vweird.f32 %v3421_v51 }
0x19a4   :  { %v3166_v4 = vsub.f32 1.0, %v3165_v9  ;;  %v3437_v39 = vor.u32 1.1754944e-38, %v3436_v12 }
0x19a5   :  { %vm3435_vm4 = vcmp.eq.f32.partialorder %v3434_v10, 8.507059e+37 }
0x19a6   :  { %v3167_v24 = vmul.f32 %v5177_v25, %v3166_v4 }
0x19a8   :  { %v5179_v53 = vpop.eup %5178  ;;  %v3168_v3 = vadd.f32 %v5177_v25, %v3167_v24 }
0x19a9   :  { %v3426_v13 = vmul.f32 %v5179_v53, %v3421_v51  ;;  %vm3431_vm1 = vweird.f32 %v5179_v53 }
0x19aa   :  { %v3172_v8 = vsel %vm3171_vm14, %v5177_v25, %v3168_v3  ;;  %vm3432_vm3 = vmor %vm3430_vm11, %vm3431_vm1 }
0x19ab   :  { %v3427_v31 = vsub.f32 1.0, %v3426_v13  ;;  %v3177_v26 = vsel %vm3174_vm8, %v3176_v40, %v3172_v8 }
0x19ac   :  { %v3178_v34 = vmul.f32 %v6663_v60, %v3177_v26  ;;  %v3942_v60 = vld [vmem:[%s7475_s7 + $0x38] sm:$0xff] }
0x19ad   :  { %v3428_v5 = vmul.f32 %v5179_v53, %v3427_v31  ;;  %3956 = vmatpush.msra.mxu3 %v3942_v60  ;;  %v6736_v60 = vld [vmem:[%s7473_s5 + $0x1f0] sm:$0xff] }
0x19ae   :  { %v3180_v54 = vmul.f32 %v6522_v27, %v3178_v34 }
0x19af   :  { %v3429_v37 = vadd.f32 %v5179_v53, %v3428_v5  ;;  %3957 = vmatpush.msra.mxu3 %v3941_v63 }
0x19b0   :  { %4810 = vmatmul.msk.f32.gmra.mxu0 %vm365_vm15, %v3180_v54 }
0x19b1   :  { %v3433_v21 = vsel %vm3432_vm3, %v5179_v53, %v3429_v37 }
0x19b2   :  { %v3438_v52 = vsel %vm3435_vm4, %v3437_v39, %v3433_v21 }
0x19b3   :  { %v3439_v57 = vmul.f32 %v6667_v18, %v3438_v52  ;;  %v3940_v18 = vld [vmem:[%s7475_s7 + $0x28] sm:$0xff] }
0x19b4   :  { %3958 = vmatpush.msra.mxu3 %v3940_v18 }
0x19b5   :  { %v3455_v14 = vmul.f32 %v6516_v23, %v3439_v57 }
0x19b6   :  { %3959 = vmatpush.msra.mxu3 %v3939_v11 }
0x19b8   :  { %4822 = vmatmul.msk.f32.vlgmr.msrb.gmra.mxu0 %vm365_vm15, %v3455_v14 }
0x1a09   :  { %v3670_v58 = vpop.xlane.xlu1 %3669 }
0x1a0a   :  { %5180 = vrcp.f32 %v3670_v58  ;;  %v3685_v15 = vand.u32 2147483648, %v3670_v58  ;;  %v3683_v22 = vand.u32 2147483647, %v3670_v58  ;;  %vm3679_vm2 = vweird.f32 %v3670_v58 }
0x1a0c   :  { %v3686_v16 = vor.u32 1.1754944e-38, %v3685_v15  ;;  %vm3684_vm12 = vcmp.eq.f32.partialorder %v3683_v22, 8.507059e+37 }
0x1a10   :  { %v5181_v50 = vpop.eup %5180 }
0x1a11   :  { %v3675_v6 = vmul.f32 %v5181_v50, %v3670_v58  ;;  %v3424_v41 = vpop.xlane.xlu1 %3423  ;;  %vm3680_vm13 = vweird.f32 %v5181_v50 }
0x1a12   :  { %v3673_v2 = vpop.xlane.xlu0 %3672  ;;  %5182 = vrcp.f32 %v3424_v41  ;;  %vm3681_vm5 = vmor %vm3679_vm2, %vm3680_vm13  ;;  %v3449_v42 = vand.u32 2147483647, %v3424_v41  ;;  %v3451_v25 = vand.u32 2147483648, %v3424_v41  ;;  %vm3445_vm9 = vweird.f32 %v3424_v41 }
0x1a13   :  { %v3676_v59 = vsub.f32 1.0, %v3675_v6  ;;  %5184 = vrcp.f32 %v3673_v2  ;;  %v3700_v51 = vand.u32 2147483648, %v3673_v2  ;;  %v3698_v24 = vand.u32 2147483647, %v3673_v2 }
0x1a14   :  { %vm3694_vm10 = vweird.f32 %v3673_v2  ;;  %vm3450_vm1 = vcmp.eq.f32.partialorder %v3449_v42, 8.507059e+37 }
0x1a15   :  { %v3677_v1 = vmul.f32 %v5181_v50, %v3676_v59  ;;  %v3701_v3 = vor.u32 1.1754944e-38, %v3700_v51  ;;  %vm3699_vm11 = vcmp.eq.f32.partialorder %v3698_v24, 8.507059e+37  ;;  %v4777_v51 = vld [vmem:[%s7473_s5 + $0x1d0] sm:$0xff]  ;;  %v4776_v24 = vld [vmem:[%s7473_s5 + $0x1c8] sm:$0xff] }
0x1a17   :  { %v3678_v0 = vadd.f32 %v5181_v50, %v3677_v1 }
0x1a18   :  { %v5183_v47 = vpop.eup %5182 }
0x1a19   :  { %v5185_v38 = vpop.eup %5184  ;;  %v3682_v36 = vsel %vm3681_vm5, %v5181_v50, %v3678_v0  ;;  %v3441_v7 = vmul.f32 %v5183_v47, %v3424_v41  ;;  %vm3446_vm6 = vweird.f32 %v5183_v47 }
0x1a1a   :  { %v3687_v32 = vsel %vm3684_vm12, %v3686_v16, %v3682_v36  ;;  %v3690_v55 = vmul.f32 %v5185_v38, %v3673_v2  ;;  %vm3695_vm7 = vweird.f32 %v5185_v38  ;;  %vm3447_vm14 = vmor %vm3445_vm9, %vm3446_vm6  ;;  %v4782_v36 = vld [vmem:[%s7474_s6 + $0x50] sm:$0xff]  ;;  %vm7506_vm6 = vcmask 523264  }
0x1a1b   :  { %v3688_v62 = vmul.f32 %v6674_v19, %v3687_v32  ;;  %v3442_v29 = vsub.f32 1.0, %v3441_v7  ;;  %v3452_v19 = vor.u32 1.1754944e-38, %v3451_v25  ;;  %vm3696_vm8 = vmor %vm3694_vm10, %vm3695_vm7 }
0x1a1c   :  { %v3691_v35 = vsub.f32 1.0, %v3690_v55  ;;  %vm7507_vm7 = vmmov %vm7506_vm6 }
0x1a1d   :  { %v3443_v9 = vmul.f32 %v5183_v47, %v3442_v29  ;;  %v3704_v4 = vmul.f32 %v6516_v23, %v3688_v62  ;;  %v4780_v62 = vld [vmem:[%s7473_s5 + $0x1e8] sm:$0xff]  ;;  %v4779_v29 = vld [vmem:[%s7473_s5 + $0x1e0] sm:$0xff] }
0x1a1e   :  { %v3692_v45 = vmul.f32 %v5185_v38, %v3691_v35  ;;  %3868 = vmatpush.msra.mxu2 %v4780_v62  ;;  %v4778_v35 = vld [vmem:[%s7473_s5 + $0x1d8] sm:$0xff]  ;;  %v3935_v62 = vld [vmem:[%s7475_s7] sm:$0xff] }
0x1a1f   :  { %v3444_v33 = vadd.f32 %v5183_v47, %v3443_v9  ;;  %4833 = vmatmul.msk.f32.vlgmr.msrb.gmra.mxu3 %vm365_vm15, %v3704_v4 }
0x1a20   :  { %v3693_v53 = vadd.f32 %v5185_v38, %v3692_v45  ;;  %3869 = vmatpush.msra.mxu2 %v4779_v29 }
0x1a21   :  { %v3448_v40 = vsel %vm3447_vm14, %v5183_v47, %v3444_v33 }
0x1a22   :  { %v3453_v13 = vsel %vm3450_vm1, %v3452_v19, %v3448_v40  ;;  %v3697_v8 = vsel %vm3696_vm8, %v5185_v38, %v3693_v53  ;;  %v4783_v38 = vld [vmem:[%s7474_s6 + $0x58] sm:$0xff]  ;;  %3870 = vmatpush.msra.mxu2 %v4778_v35 }
0x1a23   :  { %v3454_v23 = vmul.f32 %v6678_v30, %v3453_v13  ;;  %v3702_v31 = vsel %vm3699_vm11, %v3701_v3, %v3697_v8  ;;  %v4770_v30 = vld [vmem:[%s7473_s5 + $0x198] sm:$0xff]  ;;  %v3815_v13 = vperm.slane %v6736_v60, 3 }
0x1a24   :  { %v3703_v26 = vmul.f32 %v6680_v20, %v3702_v31  ;;  %3760 = vmatpush.msra.mxu0 %v4770_v30  ;;  %v4769_v20 = vld [vmem:[%s7473_s5 + $0x190] sm:$0xff]  ;;  %3871 = vmatpush.msra.mxu2 %v4777_v51  ;;  %v3818_v31 = vperm.slane %v6736_v60, 4  ;;  %v4058_v51 = vld [vmem:[%s7476_s8 + $0x1c8] sm:$0xff] }
0x1a25   :  { %v3456_v12 = vmul.f32 %v6522_v27, %v3454_v23 }
0x1a26   :  { %v3705_v34 = vmul.f32 %v6522_v27, %v3703_v26  ;;  %3761 = vmatpush.msra.mxu0 %v4769_v20  ;;  %v3206_v27 = vpop.f32.mrf.mxu0  ;;  %3872 = vmatpush.msra.mxu2 %v4776_v24  ;;  %v4050_v24 = vld [vmem:[%s7476_s8 + $0x188] sm:$0xff] }
0x1a27   :  { %4823 = vmatmul.msk.f32.gmra.mxu0 %vm365_vm15, %v3456_v12  ;;  %v3236_v54 = vadd.f32 %v6547_v56, %v3206_v27  ;;  %v3739_v56 = vperm.slane %v6736_v60, 2 }
0x1a28   :  { %4834 = vmatmul.msk.f32.gmra.mxu3 %vm365_vm15, %v3705_v34 }
0x1a2e   :  { %v3209_v5 = vpop.f32.mrf.mxu0 }
0x1a2f   :  { %v3239_v21 = vadd.f32 %v6549_v17, %v3209_v5 }
0x1a30   :  { %4841 = vmatmul.msk.f32.vlgmr.msra.gmra.mxu3 %vm71_vm0, %v5366_v43 }
0x1a36   :  { %v3482_v10 = vpop.f32.mrf.mxu0 }
0x1a37   :  { %v3488_v37 = vadd.f32 %v3482_v10, %v3236_v54 }
0x1a38   :  { %4842 = vmatmul.msk.f32.gmra.mxu3 %vm71_vm0, %v5377_v48 }
0x1aa2   :  { %v3731_v43 = vpop.f32.mrf.mxu3 }
0x1aa3   :  { %v3737_v39 = vadd.f32 %v3731_v43, %v3488_v37 }
0x1aa4   :  { %v3485_v48 = vpop.f32.mrf.mxu0 }
0x1aa5   :  { %4835 = vmatmul.msk.f32.vlgmr.msra.gmra.mxu0 %vm71_vm0, %v3737_v39  ;;  %v3489_v52 = vadd.f32 %v3485_v48, %v3239_v21  ;;  %v4775_v39 = vld [vmem:[%s7473_s5 + $0x1c0] sm:$0xff]  ;;  %v4774_v48 = vld [vmem:[%s7473_s5 + $0x1b8] sm:$0xff]  ;;  %v4773_v21 = vld [vmem:[%s7473_s5 + $0x1b0] sm:$0xff] }
0x1aa6   :  { %3873 = vmatpush.msra.mxu2 %v4775_v39 }
0x1aa8   :  { %3874 = vmatpush.msra.mxu2 %v4774_v48 }
0x1aaa   :  { %3875 = vmatpush.msra.mxu2 %v4773_v21  ;;  %v3932_v21 = vperm.slane %v6736_v60, 7 }
0x1aab   :  { %v3734_v57 = vpop.f32.mrf.mxu3 }
0x1aac   :  { %v3738_v14 = vadd.f32 %v3734_v57, %v3489_v52  ;;  %v4881_v52 = vld [vmem:[%s7474_s6 + $0x70] ss:$0 sm:$0xff]  ;;  %4123 = vmatpush.msrb.mxu2 %v4058_v51  ;;  %v4045_v51 = vld [vmem:[%s7476_s8 + $0x160] sm:$0xff] }
0x1aae   :  { %4836 = vmatmul.msk.f32.gmra.mxu0 %vm71_vm0, %v3738_v14  ;;  %4124 = vmatpush.msrb.mxu2 %v4050_v24  ;;  %v4037_v24 = vld [vmem:[%s7476_s8 + $0x120] sm:$0xff] }
0x1b22   :  { %v3763_v63 = vpop.f32.mrf.mxu0 }
0x1b23   :  { %v3764_v58 = vadd.f32 %v3763_v63, %v3739_v56 }
0x1b25   :  { %v3769_v18 = vadd.f32 %v3764_v58, %v6285_v61 }
0x1b27   :  { %v3771_v11 = vsel %vm71_vm0, %v3769_v18, 0.0 }
0x1b28   :  { %3772 = vadd.xlane.f32.xlu2 %v3771_v11  ;;  %v3853_v11 = vperm.slane %v6736_v60, 5 }
0x1b2b   :  { %v3766_v17 = vpop.f32.mrf.mxu0 }
0x1b2c   :  { %v3767_v50 = vadd.f32 %v3766_v17, %v3739_v56 }
0x1b2e   :  { %v3770_v6 = vadd.f32 %v3767_v50, %v6289_v49  ;;  %v4785_v49 = vld [vmem:[%s7474_s6 + $0x68] sm:$0xff] }
0x1b2f   :  { %3840 = vmatpush.msrb.mxu1 %v4785_v49 }
0x1b30   :  { %v3774_v41 = vsel %vm71_vm0, %v3770_v6, 0.0 }
0x1b31   :  { %3775 = vadd.xlane.f32.xlu0 %v3774_v41  ;;  %3841 = vmatpush.msrb.mxu1 %v4784_v28 }
0x1b33   :  { %3842 = vmatpush.msrb.mxu1 %v4783_v38 }
0x1b35   :  { %3843 = vmatpush.msrb.mxu1 %v4782_v36 }
0x1b9b   :  { %v3773_v2 = vpop.xlane.xlu2 %3772 }
0x1b9c   :  { %v3777_v59 = vmul.f32 %v3773_v2, %v5926_v44 }
0x1b9e   :  { %v3779_v15 = vsub.f32 %v3769_v18, %v3777_v59 }
0x1ba0   :  { %v3781_v1 = vmul.f32 %v3779_v15, %v3779_v15 }
0x1ba2   :  { %v3783_v22 = vsel %vm71_vm0, %v3781_v1, 0.0 }
0x1ba3   :  { %3784 = vadd.xlane.f32.xlu1 %v3783_v22 }
0x1ba4   :  { %v3776_v0 = vpop.xlane.xlu0 %3775 }
0x1ba5   :  { %v3778_v61 = vmul.f32 %v3776_v0, %v5926_v44 }
0x1ba7   :  { %v3780_v47 = vsub.f32 %v3770_v6, %v3778_v61 }
0x1ba9   :  { %v3782_v16 = vmul.f32 %v3780_v47, %v3780_v47 }
0x1bab   :  { %v3786_v46 = vsel %vm71_vm0, %v3782_v16, 0.0 }
0x1bac   :  { %3787 = vadd.xlane.f32.xlu2 %v3786_v46 }
0x1c16   :  { %v3785_v7 = vpop.xlane.xlu1 %3784 }
0x1c17   :  { %v3789_v32 = vmul.f32 %v3785_v7, %v5926_v44  ;;  %v3938_v7 = vld [vmem:[%s7475_s7 + $0x18] sm:$0xff] }
0x1c18   :  { %3985 = vmatpush.msrb.mxu0 %v3938_v7  ;;  %v4061_v7 = vld [vmem:[%s7476_s8 + $0x1e0] sm:$0xff] }
0x1c19   :  { %v3791_v55 = vadd.f32 1e-05, %v3789_v32  ;;  %v3937_v32 = vld [vmem:[%s7475_s7 + $0x10] sm:$0xff] }
0x1c1a   :  { %3986 = vmatpush.msrb.mxu0 %v3937_v32  ;;  %v4062_v32 = vld [vmem:[%s7476_s8 + $0x1e8] sm:$0xff] }
0x1c1b   :  { %5186 = vrsqrt.f32 %v3791_v55  ;;  %vm3799_vm4 = vweird.f32 %v3791_v55 }
0x1c1f   :  { %v3788_v42 = vpop.xlane.xlu2 %3787 }
0x1c20   :  { %v3790_v25 = vmul.f32 %v3788_v42, %v5926_v44 }
0x1c21   :  { %v5187_v9 = vpop.eup %5186 }
0x1c22   :  { %v3794_v4 = vmul.f32 %v5187_v9, %v3791_v55  ;;  %v3792_v45 = vadd.f32 1e-05, %v3790_v25  ;;  %vm3800_vm3 = vweird.f32 %v5187_v9  ;;  %v3936_v55 = vld [vmem:[%s7475_s7 + $0x8] sm:$0xff]  ;;  %v4057_v25 = vld [vmem:[%s7476_s8 + $0x1c0] sm:$0xff] }
0x1c23   :  { %vm3801_vm13 = vmor %vm3799_vm4, %vm3800_vm3  ;;  %3987 = vmatpush.msrb.mxu0 %v3936_v55  ;;  %4100 = vmatpush.msra.mxu1 %v4057_v25  ;;  %v4063_v55 = vld [vmem:[%s7476_s8 + $0x1f0] sm:$0xff]  ;;  %v4056_v25 = vld [vmem:[%s7476_s8 + $0x1b8] sm:$0xff] }
0x1c24   :  { %v3795_v33 = vmul.f32 %v5187_v9, %v3794_v4  ;;  %5188 = vrsqrt.f32 %v3792_v45  ;;  %vm3809_vm5 = vweird.f32 %v3792_v45  ;;  %v4060_v4 = vld [vmem:[%s7476_s8 + $0x1d8] sm:$0xff] }
0x1c25   :  { %3988 = vmatpush.msrb.mxu0 %v3935_v62  ;;  %v4064_v62 = vld [vmem:[%s7476_s8 + $0x1f8] sm:$0xff] }
0x1c26   :  { %v3796_v53 = vmul.f32 0.5, %v3795_v33  ;;  %v4051_v33 = vld [vmem:[%s7476_s8 + $0x190] sm:$0xff] }
0x1c27   :  { %4169 = vmatpush.msra.mxu0 %v4060_v4  ;;  %v4047_v4 = vld [vmem:[%s7476_s8 + $0x170] sm:$0xff] }
0x1c28   :  { %v3797_v19 = vsub.f32 1.5, %v3796_v53  ;;  %v4052_v53 = vld [vmem:[%s7476_s8 + $0x198] sm:$0xff] }
0x1c29   :  { %4170 = vmatpush.msra.mxu0 %v4052_v53  ;;  %v4039_v53 = vld [vmem:[%s7476_s8 + $0x130] sm:$0xff] }
0x1c2a   :  { %v5189_v3 = vpop.eup %5188  ;;  %v3798_v40 = vmul.f32 %v5187_v9, %v3797_v19  ;;  %v4041_v19 = vld [vmem:[%s7476_s8 + $0x140] sm:$0xff] }
0x1c2b   :  { %v3804_v8 = vmul.f32 %v5189_v3, %v3792_v45  ;;  %vm3810_vm2 = vweird.f32 %v5189_v3  ;;  %v4049_v45 = vld [vmem:[%s7476_s8 + $0x180] sm:$0xff] }
0x1c2c   :  { %v3802_v23 = vsel %vm3801_vm13, %v5187_v9, %v3798_v40  ;;  %vm3811_vm12 = vmor %vm3809_vm5, %vm3810_vm2  ;;  %v4059_v9 = vld [vmem:[%s7476_s8 + $0x1d0] sm:$0xff]  ;;  %4101 = vmatpush.msra.mxu1 %v4049_v45  ;;  %v4042_v40 = vld [vmem:[%s7476_s8 + $0x148] sm:$0xff] }
0x1c2d   :  { %v3813_v26 = vmul.f32 %v3802_v23, %v3779_v15  ;;  %v3805_v12 = vmul.f32 %v5189_v3, %v3804_v8  ;;  %4146 = vmatpush.msrb.mxu3 %v4059_v9  ;;  %v4044_v8 = vld [vmem:[%s7476_s8 + $0x158] sm:$0xff]  ;;  %4125 = vmatpush.msrb.mxu2 %v4042_v40  ;;  %v4046_v9 = vld [vmem:[%s7476_s8 + $0x168] sm:$0xff] }
0x1c2e   :  { %4102 = vmatpush.msra.mxu1 %v4041_v19  ;;  %4171 = vmatpush.msra.mxu0 %v4044_v8  ;;  %v4048_v45 = vld [vmem:[%s7476_s8 + $0x178] sm:$0xff]  ;;  %v4030_v40 = vld [vmem:[%s7476_s8 + $0xe8] sm:$0xff] }
0x1c2f   :  { %v3816_v34 = vmul.f32 %v3815_v13, %v3813_v26  ;;  %v3806_v30 = vmul.f32 0.5, %v3805_v12  ;;  %4147 = vmatpush.msrb.mxu3 %v4051_v33  ;;  %v4034_v26 = vld [vmem:[%s7476_s8 + $0x108] sm:$0xff]  ;;  %v4040_v19 = vld [vmem:[%s7476_s8 + $0x138] sm:$0xff] }
0x1c30   :  { %4126 = vmatpush.msrb.mxu2 %v4034_v26  ;;  %v4038_v33 = vld [vmem:[%s7476_s8 + $0x128] sm:$0xff]  ;;  %v4032_v8 = vld [vmem:[%s7476_s8 + $0xf8] sm:$0xff]  ;;  %v4023_v26 = vld [vmem:[%s7476_s8 + $0xb0] sm:$0xff] }
0x1c31   :  { %v3819_v20 = vadd.f32 %v3818_v31, %v3816_v34  ;;  %v3807_v27 = vsub.f32 1.5, %v3806_v30  ;;  %v4035_v34 = vld [vmem:[%s7476_s8 + $0x110] sm:$0xff] }
0x1c33   :  { %v3808_v5 = vmul.f32 %v5189_v3, %v3807_v27  ;;  %4837 = vmatmul.msk.f32.vlgmr.msrb.gmra.mxu1 %vm71_vm0, %v3819_v20 }
0x1c35   :  { %v3812_v10 = vsel %vm3811_vm12, %v5189_v3, %v3808_v5 }
0x1c36   :  { %v3814_v54 = vmul.f32 %v3812_v10, %v3780_v47 }
0x1c38   :  { %v3817_v37 = vmul.f32 %v3815_v13, %v3814_v54  ;;  %v4043_v13 = vld [vmem:[%s7476_s8 + $0x150] sm:$0xff] }
0x1c39   :  { %4148 = vmatpush.msrb.mxu3 %v4043_v13  ;;  %v4031_v13 = vld [vmem:[%s7476_s8 + $0xf0] sm:$0xff] }
0x1c3a   :  { %v3820_v43 = vadd.f32 %v3818_v31, %v3817_v37  ;;  %v4033_v31 = vld [vmem:[%s7476_s8 + $0x100] sm:$0xff] }
0x1c3b   :  { %4103 = vmatpush.msra.mxu1 %v4033_v31  ;;  %4149 = vmatpush.msrb.mxu3 %v4035_v34  ;;  %v4022_v31 = vld [vmem:[%s7476_s8 + $0xa8] sm:$0xff]  ;;  %v4013_v34 = vld [vmem:[%s7476_s8 + $0x60] sm:$0xff] }
0x1c3c   :  { %4838 = vmatmul.msk.f32.gmra.mxu1 %vm71_vm0, %v3820_v43 }
0x1cb0   :  { %v3845_v57 = vpop.f32.mrf.mxu1 }
0x1cb1   :  { %v3846_v14 = vadd.f32 %v4881_v52, %v3845_v57 }
0x1cb3   :  { %v3851_v56 = vmax.f32 %v3846_v14, 0.0 }
0x1cb5   :  { %4839 = vmatmul.msk.f32.vlgmr.msra.gmra.mxu2 %vm7506_vm6, %v3851_v56 }
0x1cb9   :  { %v3848_v63 = vpop.f32.mrf.mxu1 }
0x1cba   :  { %v3849_v58 = vadd.f32 %v4881_v52, %v3848_v63 }
0x1cbc   :  { %v3852_v18 = vmax.f32 %v3849_v58, 0.0 }
0x1cbe   :  { %4840 = vmatmul.msk.f32.gmra.mxu2 %vm7507_vm7, %v3852_v18 }
0x1d38   :  { %v3877_v17 = vpop.f32.mrf.mxu2 }
0x1d39   :  { %v3878_v50 = vadd.f32 %v3877_v17, %v3853_v11 }
0x1d3b   :  { %v3883_v6 = vadd.f32 %v3878_v50, %v3819_v20 }
0x1d3d   :  { %v3885_v41 = vsel %vm71_vm0, %v3883_v6, 0.0 }
0x1d3e   :  { %3886 = vadd.xlane.f32.xlu0 %v3885_v41  ;;  %v4026_v41 = vld [vmem:[%s7476_s8 + $0xc8] sm:$0xff] }
0x1d3f   :  { %4127 = vmatpush.msrb.mxu2 %v4026_v41  ;;  %v4305_v41 = vld [vmem:[%s7477_s9 + $0x68] sm:$0xff] }
0x1d41   :  { %v3880_v2 = vpop.f32.mrf.mxu2 }
0x1d42   :  { %v3881_v59 = vadd.f32 %v3880_v2, %v3853_v11  ;;  %v4027_v2 = vld [vmem:[%s7476_s8 + $0xd0] sm:$0xff] }
0x1d43   :  { %4150 = vmatpush.msrb.mxu3 %v4027_v2  ;;  %v4353_v2 = vld [vmem:[%s7477_s9 + $0x1e8] sm:$0xff] }
0x1d44   :  { %v3884_v15 = vadd.f32 %v3881_v59, %v3820_v43  ;;  %v3929_v43 = vperm.slane %v6736_v60, 6  ;;  %v4025_v60 = vld [vmem:[%s7476_s8 + $0xc0] sm:$0xff]  ;;  %v4028_v59 = vld [vmem:[%s7476_s8 + $0xd8] sm:$0xff] }
0x1d45   :  { %4104 = vmatpush.msra.mxu1 %v4025_v60 }
0x1d46   :  { %v3888_v1 = vsel %vm71_vm0, %v3884_v15, 0.0 }
0x1d47   :  { %3889 = vadd.xlane.f32.xlu1 %v3888_v1  ;;  %v4018_v1 = vld [vmem:[%s7476_s8 + $0x88] sm:$0xff] }
0x1d48   :  { %4128 = vmatpush.msrb.mxu2 %v4018_v1 }
0x1db1   :  { %v3887_v22 = vpop.xlane.xlu0 %3886 }
0x1db2   :  { %v3891_v0 = vmul.f32 %v3887_v22, %v5926_v44  ;;  %v4019_v22 = vld [vmem:[%s7476_s8 + $0x90] sm:$0xff] }
0x1db3   :  { %4151 = vmatpush.msrb.mxu3 %v4019_v22  ;;  %v4304_v22 = vld [vmem:[%s7477_s9 + $0x60] sm:$0xff] }
0x1db4   :  { %v6798_v61 = vsub.f32 %v3883_v6, %v3891_v0  ;;  %v4020_v0 = vld [vmem:[%s7476_s8 + $0x98] sm:$0xff] }
0x1db6   :  { %v3895_v47 = vmul.f32 %v6798_v61, %v6798_v61 }
0x1db8   :  { %v3897_v16 = vsel %vm71_vm0, %v3895_v47, 0.0  ;;  %v4010_v47 = vld [vmem:[%s7476_s8 + $0x48] sm:$0xff] }
0x1db9   :  { %3898 = vadd.xlane.f32.xlu2 %v3897_v16  ;;  %v4011_v16 = vld [vmem:[%s7476_s8 + $0x50] sm:$0xff]  ;;  %4129 = vmatpush.msrb.mxu2 %v4010_v47  ;;  %v4303_v47 = vld [vmem:[%s7477_s9 + $0x58] sm:$0xff] }
0x1dba   :  { %v3890_v46 = vpop.xlane.xlu1 %3889  ;;  %4152 = vmatpush.msrb.mxu3 %v4011_v16  ;;  %v4351_v16 = vld [vmem:[%s7477_s9 + $0x1d8] sm:$0xff] }
0x1dbb   :  { %v3892_v49 = vmul.f32 %v3890_v46, %v5926_v44  ;;  %v4012_v46 = vld [vmem:[%s7476_s8 + $0x58] sm:$0xff] }
0x1dbd   :  { %v6804_v28 = vsub.f32 %v3884_v15, %v3892_v49  ;;  %v4017_v15 = vld [vmem:[%s7476_s8 + $0x80] sm:$0xff] }
0x1dbe   :  { %4105 = vmatpush.msra.mxu1 %v4017_v15  ;;  %v4001_v49 = vld [vmem:[%s7476_s8] sm:$0xff]  ;;  %v4337_v15 = vld [vmem:[%s7477_s9 + $0x168] sm:$0xff] }
0x1dbf   :  { %v3896_v38 = vmul.f32 %v6804_v28, %v6804_v28 }
0x1dc1   :  { %v3900_v36 = vsel %vm71_vm0, %v3896_v38, 0.0  ;;  %v4003_v38 = vld [vmem:[%s7476_s8 + $0x10] sm:$0xff] }
0x1dc2   :  { %3901 = vadd.xlane.f32.xlu0 %v3900_v36  ;;  %v4004_v36 = vld [vmem:[%s7476_s8 + $0x18] sm:$0xff]  ;;  %4153 = vmatpush.msrb.mxu3 %v4003_v38  ;;  %v4350_v38 = vld [vmem:[%s7477_s9 + $0x1d0] sm:$0xff] }
0x1dc4   :  { %4238 = vmatpush.msra.mxu3 %v4063_v55  ;;  %v4349_v55 = vld [vmem:[%s7477_s9 + $0x1c8] sm:$0xff] }
0x1e2c   :  { %v3899_v29 = vpop.xlane.xlu2 %3898 }
0x1e2d   :  { %v3903_v35 = vmul.f32 %v3899_v29, %v5926_v44  ;;  %v4053_v29 = vld [vmem:[%s7476_s8 + $0x1a0] sm:$0xff] }
0x1e2f   :  { %v3905_v42 = vadd.f32 1e-05, %v3903_v35  ;;  %v4054_v35 = vld [vmem:[%s7476_s8 + $0x1a8] sm:$0xff] }
0x1e31   :  { %5190 = vrsqrt.f32 %v3905_v42  ;;  %vm3913_vm10 = vweird.f32 %v3905_v42 }
0x1e35   :  { %v3902_v3 = vpop.xlane.xlu0 %3901 }
0x1e36   :  { %v3904_v23 = vmul.f32 %v3902_v3, %v5926_v44  ;;  %v4036_v44 = vld [vmem:[%s7476_s8 + $0x118] sm:$0xff]  ;;  %v4029_v3 = vld [vmem:[%s7476_s8 + $0xe0] sm:$0xff] }
0x1e37   :  { %v5191_v12 = vpop.eup %5190  ;;  %4172 = vmatpush.msra.mxu0 %v4036_v44  ;;  %v4014_v44 = vld [vmem:[%s7476_s8 + $0x68] sm:$0xff] }
0x1e38   :  { %v3908_v30 = vmul.f32 %v5191_v12, %v3905_v42  ;;  %v3906_v20 = vadd.f32 1e-05, %v3904_v23  ;;  %vm3914_vm9 = vweird.f32 %v5191_v12  ;;  %v4055_v42 = vld [vmem:[%s7476_s8 + $0x1b0] sm:$0xff]  ;;  %v4021_v23 = vld [vmem:[%s7476_s8 + $0xa0] sm:$0xff] }
0x1e39   :  { %vm3915_vm14 = vmor %vm3913_vm10, %vm3914_vm9  ;;  %4173 = vmatpush.msra.mxu0 %v4028_v59  ;;  %4239 = vmatpush.msra.mxu3 %v4055_v42  ;;  %v4321_v59 = vld [vmem:[%s7477_s9 + $0xe8] sm:$0xff]  ;;  %v4348_v42 = vld [vmem:[%s7477_s9 + $0x1c0] sm:$0xff] }
0x1e3a   :  { %v3909_v27 = vmul.f32 %v5191_v12, %v3908_v30  ;;  %5192 = vrsqrt.f32 %v3906_v20  ;;  %vm3923_vm1 = vweird.f32 %v3906_v20  ;;  %v4015_v30 = vld [vmem:[%s7476_s8 + $0x70] sm:$0xff] }
0x1e3b   :  { %4174 = vmatpush.msra.mxu0 %v4020_v0  ;;  %4240 = vmatpush.msra.mxu3 %v4047_v4  ;;  %v4352_v0 = vld [vmem:[%s7477_s9 + $0x1e0] sm:$0xff]  ;;  %v4347_v4 = vld [vmem:[%s7477_s9 + $0x1b8] sm:$0xff] }
0x1e3c   :  { %v3910_v5 = vmul.f32 0.5, %v3909_v27  ;;  %v4005_v27 = vld [vmem:[%s7476_s8 + $0x20] sm:$0xff] }
0x1e3d   :  { %4175 = vmatpush.msra.mxu0 %v4012_v46  ;;  %4241 = vmatpush.msra.mxu3 %v4039_v53  ;;  %v4320_v46 = vld [vmem:[%s7477_s9 + $0xe0] sm:$0xff]  ;;  %v4346_v53 = vld [vmem:[%s7477_s9 + $0x1b0] sm:$0xff] }
0x1e3e   :  { %v3911_v10 = vsub.f32 1.5, %v3910_v5  ;;  %v4006_v5 = vld [vmem:[%s7476_s8 + $0x28] sm:$0xff] }
0x1e3f   :  { %4176 = vmatpush.msra.mxu0 %v4004_v36  ;;  %4242 = vmatpush.msra.mxu3 %v4031_v13  ;;  %v4319_v36 = vld [vmem:[%s7477_s9 + $0xd8] sm:$0xff]  ;;  %v4345_v13 = vld [vmem:[%s7477_s9 + $0x1a8] sm:$0xff] }
0x1e40   :  { %v5193_v54 = vpop.eup %5192  ;;  %v3912_v37 = vmul.f32 %v5191_v12, %v3911_v10  ;;  %v4007_v10 = vld [vmem:[%s7476_s8 + $0x30] sm:$0xff] }
0x1e41   :  { %v3918_v39 = vmul.f32 %v5193_v54, %v3906_v20  ;;  %vm3924_vm8 = vweird.f32 %v5193_v54  ;;  %v4016_v20 = vld [vmem:[%s7476_s8 + $0x78] sm:$0xff]  ;;  %4243 = vmatpush.msra.mxu3 %v4023_v26  ;;  %v4344_v26 = vld [vmem:[%s7477_s9 + $0x1a0] sm:$0xff] }
0x1e42   :  { %v3916_v48 = vsel %vm3915_vm14, %v5191_v12, %v3912_v37  ;;  %vm3925_vm11 = vmor %vm3923_vm1, %vm3924_vm8  ;;  %v4024_v12 = vld [vmem:[%s7476_s8 + $0xb8] sm:$0xff]  ;;  %v3961_v37 = vpop.f32.mrf.mxu3 }
0x1e43   :  { %v3927_v52 = vmul.f32 %v3916_v48, %v6798_v61  ;;  %v3919_v57 = vmul.f32 %v5193_v54, %v3918_v39  ;;  %v4009_v61 = vld [vmem:[%s7476_s8 + $0x40] sm:$0xff]  ;;  %4244 = vmatpush.msra.mxu3 %v4015_v30  ;;  %v4343_v30 = vld [vmem:[%s7477_s9 + $0x198] sm:$0xff] }
0x1e44   :  { %4106 = vmatpush.msra.mxu1 %v4009_v61 }
0x1e45   :  { %v3930_v14 = vmul.f32 %v3929_v43, %v3927_v52  ;;  %v3920_v56 = vmul.f32 0.5, %v3919_v57  ;;  %4245 = vmatpush.msra.mxu3 %v4007_v10  ;;  %v4307_v57 = vld [vmem:[%s7477_s9 + $0x78] sm:$0xff]  ;;  %v4342_v10 = vld [vmem:[%s7477_s9 + $0x190] sm:$0xff] }
0x1e46   :  { %4107 = vmatpush.msra.mxu1 %v4001_v49  ;;  %v4336_v49 = vld [vmem:[%s7477_s9 + $0x160] sm:$0xff] }
0x1e47   :  { %v3933_v63 = vadd.f32 %v3932_v21, %v3930_v14  ;;  %v3921_v58 = vsub.f32 1.5, %v3920_v56  ;;  %v4355_v14 = vld [vmem:[%s7477_s9 + $0x1f8] sm:$0xff] }
0x1e48   :  { %4192 = vmatpush.msrb.mxu1 %v4061_v7  ;;  %v4323_v56 = vld [vmem:[%s7477_s9 + $0xf8] sm:$0xff] }
0x1e49   :  { %v3922_v18 = vmul.f32 %v5193_v54, %v3921_v58  ;;  %4843 = vmatmul.msk.f32.vlgmr.msrb.gmra.mxu0 %vm71_vm0, %v3933_v63  ;;  %v4339_v63 = vld [vmem:[%s7477_s9 + $0x178] sm:$0xff]  ;;  %v4306_v58 = vld [vmem:[%s7477_s9 + $0x70] sm:$0xff] }
0x1e4a   :  { %4261 = vmatpush.msrb.mxu0 %v4064_v62  ;;  %4193 = vmatpush.msrb.mxu1 %v4053_v29  ;;  %v4335_v7 = vld [vmem:[%s7477_s9 + $0x158] sm:$0xff]  ;;  %v4318_v62 = vld [vmem:[%s7477_s9 + $0xd0] sm:$0xff] }
0x1e4b   :  { %v3926_v11 = vsel %vm3925_vm11, %v5193_v54, %v3922_v18  ;;  %v4008_v54 = vld [vmem:[%s7476_s8 + $0x38] sm:$0xff]  ;;  %v4354_v18 = vld [vmem:[%s7477_s9 + $0x1f0] sm:$0xff] }
0x1e4c   :  { %v3928_v17 = vmul.f32 %v3926_v11, %v6804_v28  ;;  %v4002_v28 = vld [vmem:[%s7476_s8 + $0x8] sm:$0xff]  ;;  %4262 = vmatpush.msrb.mxu0 %v4056_v25  ;;  %4194 = vmatpush.msrb.mxu1 %v4045_v51  ;;  %v3964_v11 = vpop.f32.mrf.mxu3  ;;  %v4334_v29 = vld [vmem:[%s7477_s9 + $0x150] sm:$0xff] }
0x1e4d   :  { %4130 = vmatpush.msrb.mxu2 %v4002_v28  ;;  %v4302_v28 = vld [vmem:[%s7477_s9 + $0x50] sm:$0xff]  ;;  %v4317_v25 = vld [vmem:[%s7477_s9 + $0xc8] sm:$0xff] }
0x1e4e   :  { %v3931_v50 = vmul.f32 %v3929_v43, %v3928_v17  ;;  %4263 = vmatpush.msrb.mxu0 %v4048_v45  ;;  %4195 = vmatpush.msrb.mxu1 %v4037_v24  ;;  %v4882_v43 = vld [vmem:[%s7475_s7 + $0x40] ss:$0 sm:$0xff]  ;;  %v4333_v51 = vld [vmem:[%s7477_s9 + $0x148] sm:$0xff] }
0x1e4f   :  { %4215 = vmatpush.msra.mxu2 %v4062_v32  ;;  %v4301_v32 = vld [vmem:[%s7477_s9 + $0x48] sm:$0xff]  ;;  %v4316_v45 = vld [vmem:[%s7477_s9 + $0xc0] sm:$0xff] }
0x1e50   :  { %v3934_v6 = vadd.f32 %v3932_v21, %v3931_v50  ;;  %4264 = vmatpush.msrb.mxu0 %v4040_v19  ;;  %4196 = vmatpush.msrb.mxu1 %v4029_v3  ;;  %v4322_v50 = vld [vmem:[%s7477_s9 + $0xf0] sm:$0xff]  ;;  %v4332_v24 = vld [vmem:[%s7477_s9 + $0x140] sm:$0xff]  ;;  %v4315_v19 = vld [vmem:[%s7477_s9 + $0xb8] sm:$0xff] }
0x1e51   :  { %4216 = vmatpush.msra.mxu2 %v4054_v35  ;;  %v4300_v35 = vld [vmem:[%s7477_s9 + $0x40] sm:$0xff]  ;;  %v4331_v3 = vld [vmem:[%s7477_s9 + $0x138] sm:$0xff] }
0x1e52   :  { %4844 = vmatmul.msk.f32.gmra.mxu0 %vm71_vm0, %v3934_v6  ;;  %4197 = vmatpush.msrb.mxu1 %v4021_v23  ;;  %vm7508_vm0 = vmmov %vm7506_vm6  ;;  %v4338_v6 = vld [vmem:[%s7477_s9 + $0x170] sm:$0xff] }
0x1e53   :  { %4217 = vmatpush.msra.mxu2 %v4046_v9  ;;  %4265 = vmatpush.msrb.mxu0 %v4032_v8  ;;  %vm7509_vm3 = vmmov %vm7508_vm0  ;;  %v4299_v9 = vld [vmem:[%s7477_s9 + $0x38] sm:$0xff]  ;;  %v4314_v8 = vld [vmem:[%s7477_s9 + $0xb0] sm:$0xff] }
0x1e54   :  { %4198 = vmatpush.msrb.mxu1 %v4013_v34  ;;  %vm7510_vm4 = vmmov %vm7508_vm0  ;;  %v4330_v23 = vld [vmem:[%s7477_s9 + $0x130] sm:$0xff]  ;;  %v4329_v34 = vld [vmem:[%s7477_s9 + $0x128] sm:$0xff] }
0x1e55   :  { %4218 = vmatpush.msra.mxu2 %v4038_v33  ;;  %4266 = vmatpush.msrb.mxu0 %v4024_v12  ;;  %vm7511_vm13 = vmmov %vm7508_vm0  ;;  %v4298_v33 = vld [vmem:[%s7477_s9 + $0x30] sm:$0xff]  ;;  %v4313_v12 = vld [vmem:[%s7477_s9 + $0xa8] sm:$0xff] }
0x1e56   :  { %4199 = vmatpush.msrb.mxu1 %v4005_v27  ;;  %vm7512_vm2 = vmmov %vm7508_vm0  ;;  %v4328_v27 = vld [vmem:[%s7477_s9 + $0x120] sm:$0xff] }
0x1e57   :  { %4219 = vmatpush.msra.mxu2 %v4030_v40  ;;  %4267 = vmatpush.msrb.mxu0 %v4016_v20  ;;  %vm7513_vm5 = vmmov %vm7508_vm0  ;;  %v4297_v40 = vld [vmem:[%s7477_s9 + $0x28] sm:$0xff]  ;;  %v4312_v20 = vld [vmem:[%s7477_s9 + $0xa0] sm:$0xff] }
0x1e58   :  { %vm7514_vm12 = vmmov %vm7508_vm0 }
0x1e59   :  { %4220 = vmatpush.msra.mxu2 %v4022_v31  ;;  %4268 = vmatpush.msrb.mxu0 %v4008_v54  ;;  %vm7515_vm6 = vmmov %vm7508_vm0  ;;  %v4296_v31 = vld [vmem:[%s7477_s9 + $0x20] sm:$0xff]  ;;  %v4311_v54 = vld [vmem:[%s7477_s9 + $0x98] sm:$0xff] }
0x1e5a   :  { %vm7516_vm7 = vmmov %vm7508_vm0 }
0x1e5b   :  { %4221 = vmatpush.msra.mxu2 %v4014_v44  ;;  %vm7517_vm9 = vmmov %vm7508_vm0  ;;  %v4295_v44 = vld [vmem:[%s7477_s9 + $0x18] sm:$0xff] }
0x1e5c   :  { %vm7518_vm10 = vmmov %vm7508_vm0 }
0x1e5d   :  { %4222 = vmatpush.msra.mxu2 %v4006_v5  ;;  %vm7519_vm14 = vmmov %vm7508_vm0  ;;  %v4294_v5 = vld [vmem:[%s7477_s9 + $0x10] sm:$0xff] }
0x1e5e   :  { %vm7520_vm8 = vmmov %vm7508_vm0 }
0x1e5f   :  { %vm7521_vm1 = vmmov %vm7508_vm0 }
0x1e60   :  { %vm7522_vm11 = vmmov %vm7508_vm0 }
0x1ec6   :  { %v3990_v39 = vpop.f32.mrf.mxu0 }
0x1ec7   :  { %v3991_v48 = vadd.f32 %v3990_v39, %v3961_v37  ;;  %v4327_v37 = vld [vmem:[%s7477_s9 + $0x118] sm:$0xff]  ;;  %v4341_v39 = vld [vmem:[%s7477_s9 + $0x188] sm:$0xff] }
0x1ec9   :  { %v3997_v21 = vadd.f32 %v4882_v43, %v3991_v48  ;;  %v4310_v48 = vld [vmem:[%s7477_s9 + $0x90] sm:$0xff] }
0x1ecb   :  { %v7024_v52 = vmax.f32 %v3997_v21, 0.0  ;;  %v4326_v21 = vld [vmem:[%s7477_s9 + $0x110] sm:$0xff] }
0x1ecd   :  { %4847 = vmatmul.msk.f32.vlgmr.msra.gmra.mxu1 %vm7508_vm0, %v7024_v52  ;;  %4849 = vmatmul.msk.f32.vlgmr.msrb.gmra.mxu2 %vm7509_vm3, %v7024_v52 }
0x1ece   :  { %4851 = vmatmul.msk.f32.vlgmr.msrb.gmra.mxu3 %vm7510_vm4, %v7024_v52  ;;  %4853 = vmatmul.msk.f32.vlgmr.msra.gmra.mxu0 %vm7511_vm13, %v7024_v52 }
0x1ecf   :  { %v3993_v17 = vpop.f32.mrf.mxu0  ;;  %4422 = vmatpush.msra.mxu1 %v4307_v57  ;;  %4491 = vmatpush.msra.mxu0 %v4355_v14  ;;  %v4340_v57 = vld [vmem:[%s7477_s9 + $0x180] sm:$0xff]  ;;  %v4371_v14 = vld [vmem:[%s7477_s9 + $0x278] sm:$0xff] }
0x1ed0   :  { %v3994_v60 = vadd.f32 %v3993_v17, %v3964_v11  ;;  %4445 = vmatpush.msrb.mxu2 %v4323_v56  ;;  %4468 = vmatpush.msrb.mxu3 %v4339_v63  ;;  %v4419_v56 = vld [vmem:[%s7477_s9 + $0x3f8] sm:$0xff]  ;;  %v4309_v63 = vld [vmem:[%s7477_s9 + $0x88] sm:$0xff]  ;;  %v4418_v11 = vld [vmem:[%s7477_s9 + $0x3f0] sm:$0xff] }
0x1ed1   :  { %4423 = vmatpush.msra.mxu1 %v4306_v58  ;;  %4492 = vmatpush.msra.mxu0 %v4354_v18  ;;  %v4325_v58 = vld [vmem:[%s7477_s9 + $0x108] sm:$0xff]  ;;  %v4370_v18 = vld [vmem:[%s7477_s9 + $0x270] sm:$0xff]  ;;  %v4308_v17 = vld [vmem:[%s7477_s9 + $0x80] sm:$0xff] }
0x1ed2   :  { %v3998_v1 = vadd.f32 %v4882_v43, %v3994_v60  ;;  %4446 = vmatpush.msrb.mxu2 %v4322_v50  ;;  %4469 = vmatpush.msrb.mxu3 %v4338_v6  ;;  %v4293_v43 = vld [vmem:[%s7477_s9 + $0x8] sm:$0xff]  ;;  %v4324_v50 = vld [vmem:[%s7477_s9 + $0x100] sm:$0xff] }
0x1ed3   :  { %4424 = vmatpush.msra.mxu1 %v4305_v41  ;;  %4493 = vmatpush.msra.mxu0 %v4353_v2  ;;  %v4369_v6 = vld [vmem:[%s7477_s9 + $0x268] sm:$0xff]  ;;  %v4387_v41 = vld [vmem:[%s7477_s9 + $0x2f8] sm:$0xff] }
0x1ed4   :  { %v7076_v61 = vmax.f32 %v3998_v1, 0.0  ;;  %4447 = vmatpush.msrb.mxu2 %v4321_v59  ;;  %4470 = vmatpush.msrb.mxu3 %v4337_v15  ;;  %v4417_v60 = vld [vmem:[%s7477_s9 + $0x3e8] sm:$0xff]  ;;  %v4403_v2 = vld [vmem:[%s7477_s9 + $0x378] sm:$0xff]  ;;  %v4368_v59 = vld [vmem:[%s7477_s9 + $0x260] sm:$0xff] }
0x1ed5   :  { %4425 = vmatpush.msra.mxu1 %v4304_v22  ;;  %4494 = vmatpush.msra.mxu0 %v4352_v0  ;;  %v4416_v15 = vld [vmem:[%s7477_s9 + $0x3e0] sm:$0xff]  ;;  %v4386_v1 = vld [vmem:[%s7477_s9 + $0x2f0] sm:$0xff]  ;;  %v4367_v0 = vld [vmem:[%s7477_s9 + $0x258] sm:$0xff] }
0x1ed6   :  { %4848 = vmatmul.msk.f32.gmra.mxu1 %vm7512_vm2, %v7076_v61  ;;  %4850 = vmatmul.msk.f32.gmra.mxu2 %vm7513_vm5, %v7076_v61  ;;  %v4402_v22 = vld [vmem:[%s7477_s9 + $0x370] sm:$0xff] }
0x1ed7   :  { %4852 = vmatmul.msk.f32.gmra.mxu3 %vm7514_vm12, %v7076_v61  ;;  %4854 = vmatmul.msk.f32.gmra.mxu0 %vm7515_vm6, %v7076_v61 }
0x1ed8   :  { %4426 = vmatpush.msra.mxu1 %v4303_v47  ;;  %4495 = vmatpush.msra.mxu0 %v4351_v16  ;;  %v4366_v47 = vld [vmem:[%s7477_s9 + $0x250] sm:$0xff]  ;;  %v4385_v16 = vld [vmem:[%s7477_s9 + $0x2e8] sm:$0xff] }
0x1ed9   :  { %4448 = vmatpush.msrb.mxu2 %v4320_v46  ;;  %4471 = vmatpush.msrb.mxu3 %v4336_v49  ;;  %v4401_v46 = vld [vmem:[%s7477_s9 + $0x368] sm:$0xff]  ;;  %v4414_v49 = vld [vmem:[%s7477_s9 + $0x3d0] sm:$0xff] }
0x1eda   :  { %4427 = vmatpush.msra.mxu1 %v4302_v28  ;;  %4496 = vmatpush.msra.mxu0 %v4350_v38  ;;  %v4365_v28 = vld [vmem:[%s7477_s9 + $0x248] sm:$0xff]  ;;  %v4384_v38 = vld [vmem:[%s7477_s9 + $0x2e0] sm:$0xff] }
0x1edb   :  { %4449 = vmatpush.msrb.mxu2 %v4319_v36  ;;  %4472 = vmatpush.msrb.mxu3 %v4335_v7  ;;  %v4400_v36 = vld [vmem:[%s7477_s9 + $0x360] sm:$0xff]  ;;  %v4413_v7 = vld [vmem:[%s7477_s9 + $0x3c8] sm:$0xff] }
0x1edc   :  { %4428 = vmatpush.msra.mxu1 %v4301_v32  ;;  %4497 = vmatpush.msra.mxu0 %v4349_v55  ;;  %v4364_v32 = vld [vmem:[%s7477_s9 + $0x240] sm:$0xff]  ;;  %v4383_v55 = vld [vmem:[%s7477_s9 + $0x2d8] sm:$0xff] }
0x1edd   :  { %4450 = vmatpush.msrb.mxu2 %v4318_v62  ;;  %4473 = vmatpush.msrb.mxu3 %v4334_v29  ;;  %v4399_v62 = vld [vmem:[%s7477_s9 + $0x358] sm:$0xff]  ;;  %v4412_v29 = vld [vmem:[%s7477_s9 + $0x3c0] sm:$0xff] }
0x1ede   :  { %4855 = vmatmul.msk.f32.vlgmr.msrb.gmra.mxu1 %vm7516_vm7, %v7024_v52  ;;  %4857 = vmatmul.msk.f32.vlgmr.msra.gmra.mxu2 %vm7517_vm9, %v7024_v52 }
0x1edf   :  { %4859 = vmatmul.msk.f32.vlgmr.msra.gmra.mxu3 %vm7518_vm10, %v7024_v52  ;;  %4861 = vmatmul.msk.f32.vlgmr.msrb.gmra.mxu0 %vm7519_vm14, %v7024_v52  ;;  %v4292_v52 = vld [vmem:[%s7477_s9] sm:$0xff] }
0x1ee0   :  { %4429 = vmatpush.msra.mxu1 %v4300_v35  ;;  %4498 = vmatpush.msra.mxu0 %v4348_v42  ;;  %v4363_v35 = vld [vmem:[%s7477_s9 + $0x238] sm:$0xff]  ;;  %v4382_v42 = vld [vmem:[%s7477_s9 + $0x2d0] sm:$0xff] }
0x1ee1   :  { %4451 = vmatpush.msrb.mxu2 %v4317_v25  ;;  %4474 = vmatpush.msrb.mxu3 %v4333_v51  ;;  %v4398_v25 = vld [vmem:[%s7477_s9 + $0x350] sm:$0xff]  ;;  %v4411_v51 = vld [vmem:[%s7477_s9 + $0x3b8] sm:$0xff] }
0x1ee2   :  { %4430 = vmatpush.msra.mxu1 %v4299_v9  ;;  %4499 = vmatpush.msra.mxu0 %v4347_v4  ;;  %v4362_v9 = vld [vmem:[%s7477_s9 + $0x230] sm:$0xff]  ;;  %v4381_v4 = vld [vmem:[%s7477_s9 + $0x2c8] sm:$0xff] }
0x1ee3   :  { %4452 = vmatpush.msrb.mxu2 %v4316_v45  ;;  %4475 = vmatpush.msrb.mxu3 %v4332_v24  ;;  %v4397_v45 = vld [vmem:[%s7477_s9 + $0x348] sm:$0xff]  ;;  %v4410_v24 = vld [vmem:[%s7477_s9 + $0x3b0] sm:$0xff] }
0x1ee4   :  { %4431 = vmatpush.msra.mxu1 %v4298_v33  ;;  %4500 = vmatpush.msra.mxu0 %v4346_v53  ;;  %v4361_v33 = vld [vmem:[%s7477_s9 + $0x228] sm:$0xff]  ;;  %v4380_v53 = vld [vmem:[%s7477_s9 + $0x2c0] sm:$0xff] }
0x1ee5   :  { %4453 = vmatpush.msrb.mxu2 %v4315_v19  ;;  %4476 = vmatpush.msrb.mxu3 %v4331_v3  ;;  %v4396_v19 = vld [vmem:[%s7477_s9 + $0x340] sm:$0xff]  ;;  %v4409_v3 = vld [vmem:[%s7477_s9 + $0x3a8] sm:$0xff] }
0x1ee6   :  { %4856 = vmatmul.msk.f32.gmra.mxu1 %vm7520_vm8, %v7076_v61  ;;  %4858 = vmatmul.msk.f32.gmra.mxu2 %vm7521_vm1, %v7076_v61 }
0x1ee7   :  { %4860 = vmatmul.msk.f32.gmra.mxu3 %vm7522_vm11, %v7076_v61  ;;  %4862 = vmatmul.msk.f32.gmra.mxu0 %vm7508_vm0, %v7076_v61  ;;  %v4415_v61 = vld [vmem:[%s7477_s9 + $0x3d8] sm:$0xff] }
0x1ee8   :  { %4432 = vmatpush.msra.mxu1 %v4297_v40  ;;  %4501 = vmatpush.msra.mxu0 %v4345_v13  ;;  %v4360_v40 = vld [vmem:[%s7477_s9 + $0x220] sm:$0xff]  ;;  %v4379_v13 = vld [vmem:[%s7477_s9 + $0x2b8] sm:$0xff] }
0x1ee9   :  { %4454 = vmatpush.msrb.mxu2 %v4314_v8  ;;  %4477 = vmatpush.msrb.mxu3 %v4330_v23  ;;  %v4395_v8 = vld [vmem:[%s7477_s9 + $0x338] sm:$0xff]  ;;  %v4408_v23 = vld [vmem:[%s7477_s9 + $0x3a0] sm:$0xff] }
0x1eea   :  { %4433 = vmatpush.msra.mxu1 %v4296_v31  ;;  %4502 = vmatpush.msra.mxu0 %v4344_v26  ;;  %v4359_v31 = vld [vmem:[%s7477_s9 + $0x218] sm:$0xff]  ;;  %v4378_v26 = vld [vmem:[%s7477_s9 + $0x2b0] sm:$0xff] }
0x1eeb   :  { %4455 = vmatpush.msrb.mxu2 %v4313_v12  ;;  %4478 = vmatpush.msrb.mxu3 %v4329_v34  ;;  %v4394_v12 = vld [vmem:[%s7477_s9 + $0x330] sm:$0xff]  ;;  %v4407_v34 = vld [vmem:[%s7477_s9 + $0x398] sm:$0xff] }
0x1eec   :  { %4434 = vmatpush.msra.mxu1 %v4295_v44  ;;  %4503 = vmatpush.msra.mxu0 %v4343_v30  ;;  %v4358_v44 = vld [vmem:[%s7477_s9 + $0x210] sm:$0xff]  ;;  %v4377_v30 = vld [vmem:[%s7477_s9 + $0x2a8] sm:$0xff] }
0x1eed   :  { %4456 = vmatpush.msrb.mxu2 %v4312_v20  ;;  %4479 = vmatpush.msrb.mxu3 %v4328_v27  ;;  %v4393_v20 = vld [vmem:[%s7477_s9 + $0x328] sm:$0xff]  ;;  %v4406_v27 = vld [vmem:[%s7477_s9 + $0x390] sm:$0xff] }
0x1eee   :  { %4435 = vmatpush.msra.mxu1 %v4294_v5  ;;  %4504 = vmatpush.msra.mxu0 %v4342_v10  ;;  %v4357_v5 = vld [vmem:[%s7477_s9 + $0x208] sm:$0xff]  ;;  %v4376_v10 = vld [vmem:[%s7477_s9 + $0x2a0] sm:$0xff] }
0x1eef   :  { %4457 = vmatpush.msrb.mxu2 %v4311_v54  ;;  %4480 = vmatpush.msrb.mxu3 %v4327_v37  ;;  %v4392_v54 = vld [vmem:[%s7477_s9 + $0x320] sm:$0xff] }
0x1ef0   :  { %4436 = vmatpush.msra.mxu1 %v4293_v43  ;;  %4505 = vmatpush.msra.mxu0 %v4341_v39  ;;  %v4845_v37 = vld [vmem:[%s7476_s8 + $0x200] ss:$8 sm:$0xf] }
0x1ef1   :  { %4458 = vmatpush.msrb.mxu2 %v4310_v48  ;;  %4481 = vmatpush.msrb.mxu3 %v4326_v21  ;;  %v4405_v43 = vld [vmem:[%s7477_s9 + $0x388] sm:$0xff]  ;;  %v4356_v39 = vld [vmem:[%s7477_s9 + $0x200] sm:$0xff]  ;;  %v4375_v48 = vld [vmem:[%s7477_s9 + $0x298] sm:$0xff] }
0x1ef2   :  { %4437 = vmatpush.msra.mxu1 %v4292_v52  ;;  %4506 = vmatpush.msra.mxu0 %v4340_v57  ;;  %v4391_v21 = vld [vmem:[%s7477_s9 + $0x318] sm:$0xff]  ;;  %v4404_v57 = vld [vmem:[%s7477_s9 + $0x380] sm:$0xff] }
0x1ef3   :  { %4459 = vmatpush.msrb.mxu2 %v4309_v63  ;;  %4482 = vmatpush.msrb.mxu3 %v4325_v58  ;;  %v4846_v52 = vld [vmem:[%s7476_s8 + $0x200] ss:$8 sm:$0xf0] }
0x1ef4   :  { %4514 = vmatpush.msrb.mxu1 %v4371_v14  ;;  %4583 = vmatpush.msrb.mxu0 %v4419_v56  ;;  %v4374_v14 = vld [vmem:[%s7477_s9 + $0x290] sm:$0xff]  ;;  %v7438_v63 = vor.u32 %v4846_v52, %v4845_v37  ;;  %v4373_v58 = vld [vmem:[%s7477_s9 + $0x288] sm:$0xff] }
0x1ef5   :  { %4460 = vmatpush.msrb.mxu2 %v4308_v17  ;;  %4483 = vmatpush.msrb.mxu3 %v4324_v50  ;;  %v4390_v56 = vld [vmem:[%s7477_s9 + $0x310] sm:$0xff]  ;;  %v4388_v17 = vld [vmem:[%s7477_s9 + $0x300] sm:$0xff] }
0x1ef6   :  { %4515 = vmatpush.msrb.mxu1 %v4370_v18  ;;  %4584 = vmatpush.msrb.mxu0 %v4418_v11  ;;  %v4389_v18 = vld [vmem:[%s7477_s9 + $0x308] sm:$0xff]  ;;  %v4372_v11 = vld [vmem:[%s7477_s9 + $0x280] sm:$0xff]  ;;  %v4070_v50 = vperm.slane %v7438_v63, 0 }
0x1ef7   :  { %4537 = vmatpush.msra.mxu2 %v4387_v41  ;;  %4560 = vmatpush.msra.mxu3 %v4403_v2 }
0x1ef8   :  { %4516 = vmatpush.msrb.mxu1 %v4369_v6  ;;  %4585 = vmatpush.msrb.mxu0 %v4417_v60  ;;  %v4073_v6 = vperm.slane %v7438_v63, 3 }
0x1ef9   :  { %4538 = vmatpush.msra.mxu2 %v4386_v1  ;;  %4561 = vmatpush.msra.mxu3 %v4402_v22  ;;  %v4071_v1 = vperm.slane %v7438_v63, 1 }
0x1efa   :  { %4517 = vmatpush.msrb.mxu1 %v4368_v59  ;;  %4586 = vmatpush.msrb.mxu0 %v4416_v15 }
0x1efb   :  { %4539 = vmatpush.msra.mxu2 %v4385_v16  ;;  %4562 = vmatpush.msra.mxu3 %v4401_v46 }
0x1efc   :  { %4518 = vmatpush.msrb.mxu1 %v4367_v0  ;;  %4587 = vmatpush.msrb.mxu0 %v4415_v61  ;;  %v4072_v0 = vperm.slane %v7438_v63, 2 }
0x1efd   :  { %4540 = vmatpush.msra.mxu2 %v4384_v38  ;;  %4563 = vmatpush.msra.mxu3 %v4400_v36 }
0x1efe   :  { %4519 = vmatpush.msrb.mxu1 %v4366_v47  ;;  %4588 = vmatpush.msrb.mxu0 %v4414_v49 }
0x1eff   :  { %4541 = vmatpush.msra.mxu2 %v4383_v55  ;;  %4564 = vmatpush.msra.mxu3 %v4399_v62 }
0x1f00   :  { %4520 = vmatpush.msrb.mxu1 %v4365_v28  ;;  %4589 = vmatpush.msrb.mxu0 %v4413_v7 }
0x1f01   :  { %4542 = vmatpush.msra.mxu2 %v4382_v42  ;;  %4565 = vmatpush.msra.mxu3 %v4398_v25  ;;  %v4077_v42 = vperm.slane %v7438_v63, 7 }
0x1f02   :  { %4521 = vmatpush.msrb.mxu1 %v4364_v32  ;;  %4590 = vmatpush.msrb.mxu0 %v4412_v29  ;;  %v4074_v29 = vperm.slane %v7438_v63, 4 }
0x1f03   :  { %4543 = vmatpush.msra.mxu2 %v4381_v4  ;;  %4566 = vmatpush.msra.mxu3 %v4397_v45 }
0x1f04   :  { %4522 = vmatpush.msrb.mxu1 %v4363_v35  ;;  %4591 = vmatpush.msrb.mxu0 %v4411_v51 }
0x1f05   :  { %4544 = vmatpush.msra.mxu2 %v4380_v53  ;;  %4567 = vmatpush.msra.mxu3 %v4396_v19 }
0x1f06   :  { %4523 = vmatpush.msrb.mxu1 %v4362_v9  ;;  %4592 = vmatpush.msrb.mxu0 %v4410_v24 }
0x1f07   :  { %4545 = vmatpush.msra.mxu2 %v4379_v13  ;;  %4568 = vmatpush.msra.mxu3 %v4395_v8  ;;  %v4076_v8 = vperm.slane %v7438_v63, 6 }
0x1f08   :  { %4524 = vmatpush.msrb.mxu1 %v4361_v33  ;;  %4593 = vmatpush.msrb.mxu0 %v4409_v3 }
0x1f09   :  { %4546 = vmatpush.msra.mxu2 %v4378_v26  ;;  %4569 = vmatpush.msra.mxu3 %v4394_v12 }
0x1f0a   :  { %4525 = vmatpush.msrb.mxu1 %v4360_v40  ;;  %4594 = vmatpush.msrb.mxu0 %v4408_v23  ;;  %v4075_v40 = vperm.slane %v7438_v63, 5 }
0x1f0b   :  { %4547 = vmatpush.msra.mxu2 %v4377_v30  ;;  %4570 = vmatpush.msra.mxu3 %v4393_v20 }
0x1f0c   :  { %4526 = vmatpush.msrb.mxu1 %v4359_v31  ;;  %4595 = vmatpush.msrb.mxu0 %v4407_v34 }
0x1f0d   :  { %4548 = vmatpush.msra.mxu2 %v4376_v10  ;;  %4571 = vmatpush.msra.mxu3 %v4392_v54 }
0x1f0e   :  { %4527 = vmatpush.msrb.mxu1 %v4358_v44  ;;  %4596 = vmatpush.msrb.mxu0 %v4406_v27 }
0x1f0f   :  { %4549 = vmatpush.msra.mxu2 %v4375_v48  ;;  %4572 = vmatpush.msra.mxu3 %v4391_v21 }
0x1f10   :  { %4528 = vmatpush.msrb.mxu1 %v4357_v5  ;;  %4597 = vmatpush.msrb.mxu0 %v4405_v43 }
0x1f11   :  { %4550 = vmatpush.msra.mxu2 %v4374_v14  ;;  %4573 = vmatpush.msra.mxu3 %v4390_v56  ;;  %v4883_v14 = vld [vmem:[%s7477_s9 + $0x400] ss:$0 sm:$0xff]  ;;  %s5243_s9 = smov [#allocation5]  }
0x1f12   :  { %4529 = vmatpush.msrb.mxu1 %v4356_v39  ;;  %4598 = vmatpush.msrb.mxu0 %v4404_v57  ;;  %s4612_s28 = sshll.u32 %s5243_s9, 4  ;;  %s4613_s28 = int_to_ptr.vmem [resolvable:$true] %s4612_s28 }
0x1f13   :  { %4551 = vmatpush.msra.mxu2 %v4373_v58  ;;  %4574 = vmatpush.msra.mxu3 %v4389_v18 }
0x1f15   :  { %4552 = vmatpush.msra.mxu2 %v4372_v11  ;;  %4575 = vmatpush.msra.mxu3 %v4388_v17 }
0x1f4a   :  { %v4109_v60 = vpop.f32.mrf.mxu1 }
0x1f4b   :  { %v4110_v41 = vadd.f32 %v4109_v60, %v4070_v50  ;;  %v4178_v2 = vpop.f32.mrf.mxu0 }
0x1f4c   :  { %v4179_v59 = vadd.f32 %v4178_v2, %v4073_v6 }
0x1f4d   :  { %v4276_v15 = vmax.f32 %v4110_v41, 0.0 }
0x1f4e   :  { %v4279_v22 = vmax.f32 %v4179_v59, 0.0 }
0x1f4f   :  { %4438 = vmatmul.f32.vlgmr.msra.gmra.mxu1 %v4276_v15 }
0x1f50   :  { %4507 = vmatmul.f32.vlgmr.msra.gmra.mxu0 %v4279_v22  ;;  %v4132_v61 = vpop.f32.mrf.mxu2 }
0x1f51   :  { %v4133_v47 = vadd.f32 %v4132_v61, %v4071_v1  ;;  %v4155_v16 = vpop.f32.mrf.mxu3 }
0x1f52   :  { %v4156_v46 = vadd.f32 %v4155_v16, %v4072_v0 }
0x1f53   :  { %v4277_v49 = vmax.f32 %v4133_v47, 0.0  ;;  %v4112_v28 = vpop.f32.mrf.mxu1 }
0x1f54   :  { %v4278_v38 = vmax.f32 %v4156_v46, 0.0  ;;  %v4113_v36 = vadd.f32 %v4112_v28, %v4070_v50  ;;  %v4181_v7 = vpop.f32.mrf.mxu0 }
0x1f55   :  { %v4182_v32 = vadd.f32 %v4181_v7, %v4073_v6  ;;  %4461 = vmatmul.f32.vlgmr.msrb.gmra.mxu2 %v4277_v49 }
0x1f56   :  { %v4284_v55 = vmax.f32 %v4113_v36, 0.0  ;;  %4484 = vmatmul.f32.vlgmr.msrb.gmra.mxu3 %v4278_v38 }
0x1f57   :  { %v4287_v62 = vmax.f32 %v4182_v32, 0.0 }
0x1f58   :  { %4441 = vmatmul.f32.gmra.mxu1 %v4284_v55 }
0x1f59   :  { %4510 = vmatmul.f32.gmra.mxu0 %v4287_v62  ;;  %v4135_v35 = vpop.f32.mrf.mxu2 }
0x1f5a   :  { %v4136_v25 = vadd.f32 %v4135_v35, %v4071_v1  ;;  %v4158_v51 = vpop.f32.mrf.mxu3 }
0x1f5b   :  { %v4159_v9 = vadd.f32 %v4158_v51, %v4072_v0  ;;  %v4201_v4 = vpop.f32.mrf.mxu1 }
0x1f5c   :  { %v4285_v45 = vmax.f32 %v4136_v25, 0.0  ;;  %v4202_v24 = vadd.f32 %v4201_v4, %v4074_v29  ;;  %v4270_v33 = vpop.f32.mrf.mxu0 }
0x1f5d   :  { %v4286_v53 = vmax.f32 %v4159_v9, 0.0  ;;  %v4271_v19 = vadd.f32 %v4270_v33, %v4077_v42 }
0x1f5e   :  { %v4280_v3 = vmax.f32 %v4202_v24, 0.0  ;;  %4464 = vmatmul.f32.gmra.mxu2 %v4285_v45 }
0x1f5f   :  { %v4283_v13 = vmax.f32 %v4271_v19, 0.0  ;;  %4487 = vmatmul.f32.gmra.mxu3 %v4286_v53 }
0x1f60   :  { %4530 = vmatmul.f32.vlgmr.msrb.gmra.mxu1 %v4280_v3 }
0x1f61   :  { %4599 = vmatmul.f32.vlgmr.msrb.gmra.mxu0 %v4283_v13  ;;  %v4224_v23 = vpop.f32.mrf.mxu2 }
0x1f62   :  { %v4225_v31 = vadd.f32 %v4224_v23, %v4075_v40  ;;  %v4247_v26 = vpop.f32.mrf.mxu3 }
0x1f63   :  { %v4248_v12 = vadd.f32 %v4247_v26, %v4076_v8  ;;  %v4204_v34 = vpop.f32.mrf.mxu1 }
0x1f64   :  { %v4281_v44 = vmax.f32 %v4225_v31, 0.0  ;;  %v4205_v30 = vadd.f32 %v4204_v34, %v4074_v29  ;;  %v4273_v20 = vpop.f32.mrf.mxu0 }
0x1f65   :  { %v4282_v27 = vmax.f32 %v4248_v12, 0.0  ;;  %v4274_v5 = vadd.f32 %v4273_v20, %v4077_v42 }
0x1f66   :  { %v4288_v10 = vmax.f32 %v4205_v30, 0.0  ;;  %4553 = vmatmul.f32.vlgmr.msra.gmra.mxu2 %v4281_v44 }
0x1f67   :  { %v4291_v54 = vmax.f32 %v4274_v5, 0.0  ;;  %4576 = vmatmul.f32.vlgmr.msra.gmra.mxu3 %v4282_v27 }
0x1f68   :  { %4533 = vmatmul.f32.gmra.mxu1 %v4288_v10 }
0x1f69   :  { %4602 = vmatmul.f32.gmra.mxu0 %v4291_v54  ;;  %v4227_v37 = vpop.f32.mrf.mxu2 }
0x1f6a   :  { %v4228_v43 = vadd.f32 %v4227_v37, %v4075_v40  ;;  %v4250_v39 = vpop.f32.mrf.mxu3 }
0x1f6b   :  { %v4251_v48 = vadd.f32 %v4250_v39, %v4076_v8 }
0x1f6c   :  { %v4289_v21 = vmax.f32 %v4228_v43, 0.0 }
0x1f6d   :  { %v4290_v52 = vmax.f32 %v4251_v48, 0.0 }
0x1f6e   :  { %4556 = vmatmul.f32.gmra.mxu2 %v4289_v21 }
0x1f6f   :  { %4579 = vmatmul.f32.gmra.mxu3 %v4290_v52 }
0x1fcc   :  { %v4439_v57 = vpop.f32.mrf.mxu1 }
0x1fcd   :  { %v4508_v56 = vpop.f32.mrf.mxu0  ;;  %v4440_v18 = vadd.f32 %v4883_v14, %v4439_v57 }
0x1fd5   :  { %v4442_v11 = vpop.f32.mrf.mxu1 }
0x1fd6   :  { %v4511_v6 = vpop.f32.mrf.mxu0  ;;  %v4443_v41 = vadd.f32 %v4883_v14, %v4442_v11 }
0x1fd8   :  { %v4462_v63 = vpop.f32.mrf.mxu2 }
0x1fd9   :  { %v4485_v58 = vpop.f32.mrf.mxu3  ;;  %v4463_v17 = vadd.f32 %v4462_v63, %v4440_v18 }
0x1fdb   :  { %v4486_v50 = vadd.f32 %v4485_v58, %v4463_v17 }
0x1fdd   :  { %v4509_v59 = vadd.f32 %v4508_v56, %v4486_v50  ;;  %v4531_v1 = vpop.f32.mrf.mxu1 }
0x1fde   :  { %v4600_v46 = vpop.f32.mrf.mxu0 }
0x1fdf   :  { %v4532_v22 = vadd.f32 %v4531_v1, %v4509_v59 }
0x1fe1   :  { %v4465_v60 = vpop.f32.mrf.mxu2 }
0x1fe2   :  { %v4488_v2 = vpop.f32.mrf.mxu3  ;;  %v4466_v15 = vadd.f32 %v4465_v60, %v4443_v41 }
0x1fe4   :  { %v4489_v0 = vadd.f32 %v4488_v2, %v4466_v15 }
0x1fe5   :  { %v4534_v36 = vpop.f32.mrf.mxu1 }
0x1fe6   :  { %v4512_v49 = vadd.f32 %v4511_v6, %v4489_v0  ;;  %v4603_v35 = vpop.f32.mrf.mxu0 }
0x1fe8   :  { %v4535_v7 = vadd.f32 %v4534_v36, %v4512_v49 }
0x1fe9   :  { %v4554_v61 = vpop.f32.mrf.mxu2 }
0x1fea   :  { %v4555_v47 = vadd.f32 %v4554_v61, %v4532_v22  ;;  %v4577_v16 = vpop.f32.mrf.mxu3 }
0x1fec   :  { %v4578_v28 = vadd.f32 %v4577_v16, %v4555_v47 }
0x1fee   :  { %v4601_v38 = vadd.f32 %v4600_v46, %v4578_v28 }
0x1ff0   :  { %4606 = vst.msk [vmem:[#allocation5] sm:$0xff] %vm365_vm15, %v4601_v38 }
0x1ff1   :  { %v4557_v32 = vpop.f32.mrf.mxu2 }
0x1ff2   :  { %v4558_v55 = vadd.f32 %v4557_v32, %v4535_v7  ;;  %v4580_v62 = vpop.f32.mrf.mxu3 }
0x1ff4   :  { %v4581_v29 = vadd.f32 %v4580_v62, %v4558_v55 }
0x1ff6   :  { %v4604_v42 = vadd.f32 %v4603_v35, %v4581_v29 }
0x1ff8   :  { %4607 = vst.msk [vmem:[#allocation5 + $0x8] sm:$0xff] %vm365_vm15, %v4604_v42 }
0x1ff9   :  { %4620 = dma.vmem_to_hbm [thread:$0]  %s4613_s28, 256, %s4615_s11, [#allocation3], %s5244_s1, %s5244_s1, %s5245_s2  }
0x1ffa   :  { %5236 = dma.done.wait [#allocation3], 256  }
0x1ffb   :  { %5237 = vsyncadd [#allocation3], 4294967040 }
0x1ffc   :  { %4625 = vsyncpa [#allocation3], 1 }
0x1ffd   :  { %4626 = vsyncpa [#allocation4], 1 }

</bundles_post_ra>
